<compile_context>
chip_gen: v6e
topology: v6e:2x2x1
jax: 0.10.0
libtpu: 0.0.40
codegen_flags: <defaults>
</compile_context>

<pallas_src>
import functools

import jax
import jax.numpy as jnp
from jax.experimental import pallas as pl
from jax.experimental.pallas import tpu as pltpu

EMB_DIM = 256          # embedding size (nn.Embedding(inputs_dim, 256))
HID = 256              # GRU hidden size
NUM_CLASSES = 10       # Linear(256*2, 10)
LIN_PAD = 128          # classifier output padded to a full lane width
VOCAB = 1000           # inputs_dim (synthetic)
MAX_TCHUNK = 64        # timesteps per grid step (bounds VMEM at O(chunk))


def _round_up(x, m):
    return ((x + m - 1) // m) * m


# ----------------------------------------------------------------------------
# Fused bidirectional-GRU + classifier kernel, grid over time chunks.
#   ef_ref  : (TC, Bp, EMB)   bf16   fwd time-chunk c (forward time order)
#   eb_ref  : (TC, Bp, EMB)   bf16   chunk n_chunks-1-c (reversed within chunk
#                                    inside the kernel -> backward direction)
#   wih_ref : (2, EMB, 3H)    bf16   [0]=fwd, [1]=bwd, gate cols [r | z | n]
#   whh_ref : (2, HID, 3H)    bf16
#   bgi_ref : (2, 1, 3H)      f32    fused [b_ih_r+b_hh_r | b_ih_z+b_hh_z | b_ih_n]
#   bhn_ref : (2, 1, H)       f32    b_hh_n (must stay inside the r* term)
#   lw_ref  : (2H, 128)       bf16   Linear weight, rows [fwd ; bwd], lane-padded
#   lb_ref  : (1, 128)        f32    Linear bias, lane-padded
#   out_ref : (Bp, 128)       f32    logits (cols >= 10 are padding)
# ----------------------------------------------------------------------------
def _bigru_kernel(ef_ref, eb_ref, wih_ref, whh_ref, bgi_ref, bhn_ref,
                  lw_ref, lb_ref, out_ref,
                  gif_scr, gib_scr, hf_scr, hb_scr, *, T, T_pad, TC, Bp):
    H = HID
    f32 = jnp.float32
    bf16 = jnp.bfloat16
    c = pl.program_id(0)

    # ---- init hidden state at the first time-chunk --------------------------
    @pl.when(c == 0)
    def _():
        hf_scr[...] = jnp.zeros_like(hf_scr)
        hb_scr[...] = jnp.zeros_like(hb_scr)

    # ---- phase 1: hoisted input-to-hidden projection for this chunk ---------
    # (biases for r/z fused with b_ih_n into a single add; result kept bf16)
    x_f = ef_ref[...].reshape(TC * Bp, EMB_DIM)
    x_b = eb_ref[...].reshape(TC * Bp, EMB_DIM)
    gif = jnp.dot(x_f, wih_ref[0], preferred_element_type=f32) + bgi_ref[0]
    gib = jnp.dot(x_b, wih_ref[1], preferred_element_type=f32) + bgi_ref[1]
    gif_scr[...] = gif.reshape(TC, Bp, 3 * H).astype(bf16)
    gib_scr[...] = gib.reshape(TC, Bp, 3 * H).astype(bf16)

    bhn_f = bhn_ref[0]                                           # (1, H) f32
    bhn_b = bhn_ref[1]

    def cell(gi, gh, bhn, h):
        gi = gi.astype(f32)
        rz = jax.nn.sigmoid(gi[:, :2 * H] + gh[:, :2 * H])
        r, z = rz[:, :H], rz[:, H:]
        n = jnp.tanh(gi[:, 2 * H:] + r * (gh[:, 2 * H:] + bhn))
        return (1.0 - z) * n + z * h

    # ---- phase 2: fused fwd/bwd recurrence over this chunk's TC steps -------
    def step(s, carry):
        h_f, h_b = carry                                         # (Bp, H) f32
        gh_f = jnp.dot(h_f.astype(bf16), whh_ref[0], preferred_element_type=f32)
        gh_b = jnp.dot(h_b.astype(bf16), whh_ref[1], preferred_element_type=f32)
        gi_f = gif_scr[s]                # fwd: within-chunk forward order
        gi_b = gib_scr[TC - 1 - s]       # bwd: within-chunk reversed order
        h_f_new = cell(gi_f, gh_f, bhn_f, h_f)
        h_b_new = cell(gi_b, gh_b, bhn_b, h_b)
        if T_pad != T:                   # static: mask time-padding steps only
            u = c * TC + s               # global step index
            h_f_new = jnp.where(u < T, h_f_new, h_f)
            h_b_new = jnp.where(u >= T_pad - T, h_b_new, h_b)
        return h_f_new, h_b_new

    h_f, h_b = jax.lax.fori_loop(0, TC, step, (hf_scr[...], hb_scr[...]),
                                 unroll=min(TC, 8))
    hf_scr[...] = h_f
    hb_scr[...] = h_b

    # ---- phase 3: classifier head on final hidden states (last chunk only) --
    @pl.when(c == pl.num_programs(0) - 1)
    def _():
        h_cat = jnp.concatenate([h_f, h_b], axis=1).astype(bf16)  # (Bp, 2H)
        out_ref[...] = (jnp.dot(h_cat, lw_ref[...], preferred_element_type=f32)
                        + lb_ref[...])


def bigru_classifier(emb, wih, whh, bgi, bhn, lw, lb, *, T, T_pad, TC, B_pad):
    n_chunks = T_pad // TC
    kernel = functools.partial(_bigru_kernel, T=T, T_pad=T_pad, TC=TC, Bp=B_pad)

    def _const_spec(shape):
        return pl.BlockSpec(shape, lambda c, _n=len(shape): (0,) * _n)

    emb_spec_f = pl.BlockSpec((TC, B_pad, EMB_DIM), lambda c: (c, 0, 0))
    emb_spec_b = pl.BlockSpec((TC, B_pad, EMB_DIM),
                              lambda c: (n_chunks - 1 - c, 0, 0))

    grid_spec = pltpu.PrefetchScalarGridSpec(
        num_scalar_prefetch=0,
        grid=(n_chunks,),
        in_specs=[
            emb_spec_f, emb_spec_b,
            _const_spec((2, EMB_DIM, 3 * HID)),   # wih
            _const_spec((2, HID, 3 * HID)),       # whh
            _const_spec((2, 1, 3 * HID)),         # bgi
            _const_spec((2, 1, HID)),             # bhn
            _const_spec((2 * HID, LIN_PAD)),      # lw
            _const_spec((1, LIN_PAD)),            # lb
        ],
        out_specs=pl.BlockSpec((B_pad, LIN_PAD), lambda c: (0, 0)),
        scratch_shapes=[
            pltpu.VMEM((TC, B_pad, 3 * HID), jnp.bfloat16),   # fwd gi chunk
            pltpu.VMEM((TC, B_pad, 3 * HID), jnp.bfloat16),   # bwd gi chunk
            pltpu.VMEM((B_pad, HID), jnp.float32),            # h_fwd carry
            pltpu.VMEM((B_pad, HID), jnp.float32),            # h_bwd carry
        ],
    )

    # --- explicit VMEM budget (double-buffered inputs + scratch + headroom) --
    nbytes = lambda a: a.size * a.dtype.itemsize
    emb_blk = TC * B_pad * EMB_DIM * 2                          # one bf16 chunk
    weights = (nbytes(wih) + nbytes(whh) + nbytes(bgi) + nbytes(bhn)
               + nbytes(lw) + nbytes(lb))
    scratch = 2 * TC * B_pad * 3 * HID * 2 + 2 * B_pad * HID * 4
    out_b = B_pad * LIN_PAD * 4
    vmem_limit = int(min(2 * (2 * emb_blk + weights + out_b) + scratch + (4 << 20),
                         64 * 1024 * 1024))

    flops = (4 * T_pad * B_pad * 3 * HID * (EMB_DIM + HID)
             + 2 * B_pad * 2 * HID * LIN_PAD)
    cost = pl.CostEstimate(
        flops=int(flops),
        transcendentals=int(2 * T_pad * B_pad * 3 * HID),
        bytes_accessed=int(2 * nbytes(emb) + weights + out_b))

    return pl.pallas_call(
        kernel,
        out_shape=jax.ShapeDtypeStruct((B_pad, LIN_PAD), jnp.float32),
        grid_spec=grid_spec,
        compiler_params=pltpu.CompilerParams(
            dimension_semantics=("arbitrary",),
            vmem_limit_bytes=vmem_limit),
        cost_estimate=cost,
    )(emb, emb, wih, whh, bgi, bhn, lw, lb)


# ----------------------------------------------------------------------------
# Parameter init (deterministic, PyTorch-like uniform(-1/sqrt(H), 1/sqrt(H)))
# ----------------------------------------------------------------------------
def init_params(key):
    ks = jax.random.split(key, 7)
    s = 1.0 / jnp.sqrt(jnp.float32(HID))
    u = lambda k, shape: jax.random.uniform(k, shape, jnp.float32, -s, s)
    return dict(
        emb_table=jax.random.normal(ks[0], (VOCAB, EMB_DIM), jnp.float32),
        # per-direction GRU weights, stored transposed: (in, 3H), gates [r|z|n]
        wih=u(ks[1], (2, EMB_DIM, 3 * HID)),
        whh=u(ks[2], (2, HID, 3 * HID)),
        bih=u(ks[3], (2, 1, 3 * HID)),
        bhh=u(ks[4], (2, 1, 3 * HID)),
        # Linear(512, 10), stored as (512, 10); rows [0:256]=fwd, [256:512]=bwd
        lin_w=u(ks[5], (2 * HID, NUM_CLASSES)),
        lin_b=u(ks[6], (1, NUM_CLASSES)),
    )


def gru_rnn_forward(params, inputs):
    """inputs: (B, T) int32 token ids. Returns logits (B, 10)."""
    B, T = inputs.shape

    # Embedding lookup straight to time-major (no activation transpose);
    # dropout == identity (eval semantics).
    # TODO(synk): embedding gather stays in plain-JAX glue (jnp.take).
    emb_tm = jnp.take(params["emb_table"], inputs.T, axis=0)      # (T, B, EMB) f32

    # Pad batch to a multiple of 16 (bf16 sublane packing) and time to a
    # multiple of the chunk size (padded steps are masked in-kernel).
    B_pad = max(16, _round_up(B, 16))
    TC = min(T, MAX_TCHUNK)
    T_pad = _round_up(T, TC)
    emb_tm = jnp.pad(emb_tm, ((0, T_pad - T), (0, B_pad - B), (0, 0)))
    emb = emb_tm.astype(jnp.bfloat16)                             # (T_pad, Bp, EMB)

    # Pre-fuse biases: gi bias = [b_ih_r+b_hh_r | b_ih_z+b_hh_z | b_ih_n];
    # b_hh_n stays separate (must remain inside the r* term, PyTorch GRU).
    bih, bhh = params["bih"], params["bhh"]
    bgi = jnp.concatenate(
        [bih[..., :2 * HID] + bhh[..., :2 * HID], bih[..., 2 * HID:]], axis=-1)
    bhn = bhh[..., 2 * HID:]

    # Linear(2H, 10) applied to concat([h_fwd_final, h_bwd_final]);
    # output lanes padded 10 -> 128 for a lane-dense unmasked store.
    lw = jnp.pad(params["lin_w"],
                 ((0, 0), (0, LIN_PAD - NUM_CLASSES))).astype(jnp.bfloat16)
    lb = jnp.pad(params["lin_b"], ((0, 0), (0, LIN_PAD - NUM_CLASSES)))

    logits = bigru_classifier(
        emb,
        params["wih"].astype(jnp.bfloat16),
        params["whh"].astype(jnp.bfloat16),
        bgi, bhn, lw, lb, T=T, T_pad=T_pad, TC=TC, B_pad=B_pad)

    # NOTE: matches the original interpretation: Linear applied to the
    # concatenated final hidden states h_n = [h_fwd_final ; h_bwd_final]
    # (dropout == identity at inference).
    return logits[:B, :NUM_CLASSES]


if __name__ == "__main__":
    key = jax.random.PRNGKey(0)
    k_param, k_inp = jax.random.split(key)

    B, T = 2, 8
    params = init_params(k_param)
    inputs = jax.random.randint(k_inp, (B, T), 0, VOCAB, dtype=jnp.int32)

    logits = jax.jit(gru_rnn_forward)(params, inputs)
    jax.block_until_ready(logits)
    assert logits.shape == (B, NUM_CLASSES)
    print("KERNEL_OK")
</pallas_src>

<mosaic_0001>
module attributes {stable_mosaic.version = 11 : i64} {
  func.func @_bigru_kernel(%arg0: i32, %arg1: memref<8x16x256xbf16, #tpu.memory_space<vmem>>, %arg2: memref<8x16x256xbf16, #tpu.memory_space<vmem>>, %arg3: memref<2x256x768xbf16, #tpu.memory_space<vmem>>, %arg4: memref<2x256x768xbf16, #tpu.memory_space<vmem>>, %arg5: memref<2x1x768xf32, #tpu.memory_space<vmem>>, %arg6: memref<2x1x256xf32, #tpu.memory_space<vmem>>, %arg7: memref<512x128xbf16, #tpu.memory_space<vmem>>, %arg8: memref<1x128xf32, #tpu.memory_space<vmem>>, %arg9: memref<16x128xf32, #tpu.memory_space<vmem>>, %arg10: memref<8x16x768xbf16, #tpu.memory_space<vmem>>, %arg11: memref<8x16x768xbf16, #tpu.memory_space<vmem>>, %arg12: memref<16x256xf32, #tpu.memory_space<vmem>>, %arg13: memref<16x256xf32, #tpu.memory_space<vmem>>) attributes {dimension_semantics = [#tpu.dimension_semantics<arbitrary>], iteration_bounds = array<i64: 1>, scalar_prefetch = 0 : i64, scratch_operands = 4 : i64, tpu.core_type = #tpu.core_type<tc>, window_params = [{transform_indices = @transform_0, window_bounds = array<i64: 8, 16, 256>}, {transform_indices = @transform_1, window_bounds = array<i64: 8, 16, 256>}, {pipeline_mode = #tpu.pipeline_mode<synchronous>, transform_indices = @transform_2, window_bounds = array<i64: 2, 256, 768>}, {pipeline_mode = #tpu.pipeline_mode<synchronous>, transform_indices = @transform_3, window_bounds = array<i64: 2, 256, 768>}, {pipeline_mode = #tpu.pipeline_mode<synchronous>, transform_indices = @transform_4, window_bounds = array<i64: 2, 1, 768>}, {pipeline_mode = #tpu.pipeline_mode<synchronous>, transform_indices = @transform_5, window_bounds = array<i64: 2, 1, 256>}, {pipeline_mode = #tpu.pipeline_mode<synchronous>, transform_indices = @transform_6, window_bounds = array<i64: 512, 128>}, {pipeline_mode = #tpu.pipeline_mode<synchronous>, transform_indices = @transform_7, window_bounds = array<i64: 1, 128>}, {pipeline_mode = #tpu.pipeline_mode<synchronous>, transform_indices = @transform_8, window_bounds = array<i64: 16, 128>}]} {
    %c0_i32 = arith.constant 0 : i32
    %0 = arith.cmpi eq, %arg0, %c0_i32 : i32
    %1 = arith.extui %0 : i1 to i32
    %c0_i32_0 = arith.constant 0 : i32
    %2 = arith.cmpi ne, %1, %c0_i32_0 : i32
    scf.if %2 {
      %cst_177 = arith.constant 0.000000e+00 : f32
      %526 = vector.broadcast %cst_177 : f32 to vector<16x256xf32>
      %c0_178 = arith.constant 0 : index
      %c0_179 = arith.constant 0 : index
      %527 = vector.load %arg12[%c0_178, %c0_179] : memref<16x256xf32, #tpu.memory_space<vmem>>, vector<16x256xf32>
      tpu.vector_store %arg12[%c0_178, %c0_179], %526 {strides = array<i32>} : memref<16x256xf32, #tpu.memory_space<vmem>>, vector<16x256xf32>,
      %cst_180 = arith.constant 0.000000e+00 : f32
      %528 = vector.broadcast %cst_180 : f32 to vector<16x256xf32>
      %c0_181 = arith.constant 0 : index
      %c0_182 = arith.constant 0 : index
      %529 = vector.load %arg13[%c0_181, %c0_182] : memref<16x256xf32, #tpu.memory_space<vmem>>, vector<16x256xf32>
      tpu.vector_store %arg13[%c0_181, %c0_182], %528 {strides = array<i32>} : memref<16x256xf32, #tpu.memory_space<vmem>>, vector<16x256xf32>,
    } else {
    }
    %c0 = arith.constant 0 : index
    %c0_1 = arith.constant 0 : index
    %c0_2 = arith.constant 0 : index
    %3 = vector.load %arg1[%c0, %c0_1, %c0_2] : memref<8x16x256xbf16, #tpu.memory_space<vmem>>, vector<8x16x256xbf16>
    %4 = vector.shape_cast %3 : vector<8x16x256xbf16> to vector<128x256xbf16>
    %c0_3 = arith.constant 0 : index
    %c0_4 = arith.constant 0 : index
    %c0_5 = arith.constant 0 : index
    %5 = vector.load %arg2[%c0_3, %c0_4, %c0_5] : memref<8x16x256xbf16, #tpu.memory_space<vmem>>, vector<8x16x256xbf16>
    %6 = vector.shape_cast %5 : vector<8x16x256xbf16> to vector<128x256xbf16>
    %c0_6 = arith.constant 0 : index
    %c0_7 = arith.constant 0 : index
    %c0_8 = arith.constant 0 : index
    %7 = vector.load %arg3[%c0_6, %c0_7, %c0_8] : memref<2x256x768xbf16, #tpu.memory_space<vmem>>, vector<1x256x768xbf16>
    %8 = vector.shape_cast %7 : vector<1x256x768xbf16> to vector<256x768xbf16>
    %cst = arith.constant dense<0.000000e+00> : vector<128x768xf32>
    %9 = tpu.matmul %4, %8, %cst {dimension_numbers = #tpu.dot_dimension_numbers<[1], [0], [0], [1], [0, 0, 1, 1], [], []>} : vector<128x256xbf16>, vector<256x768xbf16>, vector<128x768xf32> -> vector<128x768xf32>
    %c0_9 = arith.constant 0 : index
    %c0_10 = arith.constant 0 : index
    %c0_11 = arith.constant 0 : index
    %10 = vector.load %arg5[%c0_9, %c0_10, %c0_11] : memref<2x1x768xf32, #tpu.memory_space<vmem>>, vector<1x1x768xf32>
    %11 = vector.shape_cast %10 : vector<1x1x768xf32> to vector<1x768xf32>
    %12 = vector.broadcast %11 : vector<1x768xf32> to vector<128x768xf32>
    %13 = arith.addf %9, %12 : vector<128x768xf32>
    %c1 = arith.constant 1 : index
    %c0_12 = arith.constant 0 : index
    %c0_13 = arith.constant 0 : index
    %14 = vector.load %arg3[%c1, %c0_12, %c0_13] : memref<2x256x768xbf16, #tpu.memory_space<vmem>>, vector<1x256x768xbf16>
    %15 = vector.shape_cast %14 : vector<1x256x768xbf16> to vector<256x768xbf16>
    %cst_14 = arith.constant dense<0.000000e+00> : vector<128x768xf32>
    %16 = tpu.matmul %6, %15, %cst_14 {dimension_numbers = #tpu.dot_dimension_numbers<[1], [0], [0], [1], [0, 0, 1, 1], [], []>} : vector<128x256xbf16>, vector<256x768xbf16>, vector<128x768xf32> -> vector<128x768xf32>
    %c1_15 = arith.constant 1 : index
    %c0_16 = arith.constant 0 : index
    %c0_17 = arith.constant 0 : index
    %17 = vector.load %arg5[%c1_15, %c0_16, %c0_17] : memref<2x1x768xf32, #tpu.memory_space<vmem>>, vector<1x1x768xf32>
    %18 = vector.shape_cast %17 : vector<1x1x768xf32> to vector<1x768xf32>
    %19 = vector.broadcast %18 : vector<1x768xf32> to vector<128x768xf32>
    %20 = arith.addf %16, %19 : vector<128x768xf32>
    %21 = vector.shape_cast %13 : vector<128x768xf32> to vector<8x16x768xf32>
    %22 = arith.truncf %21 : vector<8x16x768xf32> to vector<8x16x768xbf16>
    %c0_18 = arith.constant 0 : index
    %c0_19 = arith.constant 0 : index
    %c0_20 = arith.constant 0 : index
    %23 = vector.load %arg10[%c0_18, %c0_19, %c0_20] : memref<8x16x768xbf16, #tpu.memory_space<vmem>>, vector<8x16x768xbf16>
    tpu.vector_store %arg10[%c0_18, %c0_19, %c0_20], %22 {strides = array<i32>} : memref<8x16x768xbf16, #tpu.memory_space<vmem>>, vector<8x16x768xbf16>,
    %24 = vector.shape_cast %20 : vector<128x768xf32> to vector<8x16x768xf32>
    %25 = arith.truncf %24 : vector<8x16x768xf32> to vector<8x16x768xbf16>
    %c0_21 = arith.constant 0 : index
    %c0_22 = arith.constant 0 : index
    %c0_23 = arith.constant 0 : index
    %26 = vector.load %arg11[%c0_21, %c0_22, %c0_23] : memref<8x16x768xbf16, #tpu.memory_space<vmem>>, vector<8x16x768xbf16>
    tpu.vector_store %arg11[%c0_21, %c0_22, %c0_23], %25 {strides = array<i32>} : memref<8x16x768xbf16, #tpu.memory_space<vmem>>, vector<8x16x768xbf16>,
    %c0_24 = arith.constant 0 : index
    %c0_25 = arith.constant 0 : index
    %c0_26 = arith.constant 0 : index
    %27 = vector.load %arg6[%c0_24, %c0_25, %c0_26] : memref<2x1x256xf32, #tpu.memory_space<vmem>>, vector<1x1x256xf32>
    %28 = vector.shape_cast %27 : vector<1x1x256xf32> to vector<1x256xf32>
    %c1_27 = arith.constant 1 : index
    %c0_28 = arith.constant 0 : index
    %c0_29 = arith.constant 0 : index
    %29 = vector.load %arg6[%c1_27, %c0_28, %c0_29] : memref<2x1x256xf32, #tpu.memory_space<vmem>>, vector<1x1x256xf32>
    %30 = vector.shape_cast %29 : vector<1x1x256xf32> to vector<1x256xf32>
    %c0_30 = arith.constant 0 : index
    %c0_31 = arith.constant 0 : index
    %31 = vector.load %arg12[%c0_30, %c0_31] : memref<16x256xf32, #tpu.memory_space<vmem>>, vector<16x256xf32>
    %c0_32 = arith.constant 0 : index
    %c0_33 = arith.constant 0 : index
    %32 = vector.load %arg13[%c0_32, %c0_33] : memref<16x256xf32, #tpu.memory_space<vmem>>, vector<16x256xf32>
    %c0_i32_34 = arith.constant 0 : i32
    %33 = arith.truncf %31 : vector<16x256xf32> to vector<16x256xbf16>
    %c0_35 = arith.constant 0 : index
    %c0_36 = arith.constant 0 : index
    %c0_37 = arith.constant 0 : index
    %34 = vector.load %arg4[%c0_35, %c0_36, %c0_37] : memref<2x256x768xbf16, #tpu.memory_space<vmem>>, vector<1x256x768xbf16>
    %35 = vector.shape_cast %34 : vector<1x256x768xbf16> to vector<256x768xbf16>
    %cst_38 = arith.constant dense<0.000000e+00> : vector<16x768xf32>
    %36 = tpu.matmul %33, %35, %cst_38 {dimension_numbers = #tpu.dot_dimension_numbers<[1], [0], [0], [1], [0, 0, 1, 1], [], []>} : vector<16x256xbf16>, vector<256x768xbf16>, vector<16x768xf32> -> vector<16x768xf32>
    %37 = arith.truncf %32 : vector<16x256xf32> to vector<16x256xbf16>
    %c1_39 = arith.constant 1 : index
    %c0_40 = arith.constant 0 : index
    %c0_41 = arith.constant 0 : index
    %38 = vector.load %arg4[%c1_39, %c0_40, %c0_41] : memref<2x256x768xbf16, #tpu.memory_space<vmem>>, vector<1x256x768xbf16>
    %39 = vector.shape_cast %38 : vector<1x256x768xbf16> to vector<256x768xbf16>
    %cst_42 = arith.constant dense<0.000000e+00> : vector<16x768xf32>
    %40 = tpu.matmul %37, %39, %cst_42 {dimension_numbers = #tpu.dot_dimension_numbers<[1], [0], [0], [1], [0, 0, 1, 1], [], []>} : vector<16x256xbf16>, vector<256x768xbf16>, vector<16x768xf32> -> vector<16x768xf32>
    %41 = arith.index_cast %c0_i32_34 : i32 to index
    %c0_43 = arith.constant 0 : index
    %c0_44 = arith.constant 0 : index
    %42 = vector.load %arg10[%41, %c0_43, %c0_44] : memref<8x16x768xbf16, #tpu.memory_space<vmem>>, vector<1x16x768xbf16>
    %43 = vector.shape_cast %42 : vector<1x16x768xbf16> to vector<16x768xbf16>
    %c7_i32 = arith.constant 7 : i32
    %44 = arith.subi %c7_i32, %c0_i32_34 : i32
    %45 = arith.index_cast %44 : i32 to index
    %c0_45 = arith.constant 0 : index
    %c0_46 = arith.constant 0 : index
    %46 = vector.load %arg11[%45, %c0_45, %c0_46] : memref<8x16x768xbf16, #tpu.memory_space<vmem>>, vector<1x16x768xbf16>
    %47 = vector.shape_cast %46 : vector<1x16x768xbf16> to vector<16x768xbf16>
    %48 = arith.extf %43 : vector<16x768xbf16> to vector<16x768xf32>
    %49 = vector.extract_strided_slice %48 {offsets = [0, 0], sizes = [16, 512], strides = [1, 1]} : vector<16x768xf32> to vector<16x512xf32>
    %50 = vector.extract_strided_slice %36 {offsets = [0, 0], sizes = [16, 512], strides = [1, 1]} : vector<16x768xf32> to vector<16x512xf32>
    %51 = arith.addf %49, %50 : vector<16x512xf32>
    %52 = arith.negf %51 : vector<16x512xf32>
    %53 = math.exp %52 : vector<16x512xf32>
    %cst_47 = arith.constant 1.000000e+00 : f32
    %54 = vector.broadcast %cst_47 : f32 to vector<16x512xf32>
    %55 = arith.addf %54, %53 : vector<16x512xf32>
    %56 = arith.divf %54, %55 : vector<16x512xf32>
    %57 = vector.extract_strided_slice %56 {offsets = [0, 0], sizes = [16, 256], strides = [1, 1]} : vector<16x512xf32> to vector<16x256xf32>
    %58 = vector.extract_strided_slice %56 {offsets = [0, 256], sizes = [16, 256], strides = [1, 1]} : vector<16x512xf32> to vector<16x256xf32>
    %59 = vector.extract_strided_slice %48 {offsets = [0, 512], sizes = [16, 256], strides = [1, 1]} : vector<16x768xf32> to vector<16x256xf32>
    %60 = vector.extract_strided_slice %36 {offsets = [0, 512], sizes = [16, 256], strides = [1, 1]} : vector<16x768xf32> to vector<16x256xf32>
    %61 = vector.broadcast %28 : vector<1x256xf32> to vector<16x256xf32>
    %62 = arith.addf %60, %61 : vector<16x256xf32>
    %63 = arith.mulf %57, %62 : vector<16x256xf32>
    %64 = arith.addf %59, %63 : vector<16x256xf32>
    %65 = math.tanh %64 : vector<16x256xf32>
    %cst_48 = arith.constant 1.000000e+00 : f32
    %66 = vector.broadcast %cst_48 : f32 to vector<16x256xf32>
    %67 = arith.subf %66, %58 : vector<16x256xf32>
    %68 = arith.mulf %67, %65 : vector<16x256xf32>
    %69 = arith.mulf %58, %31 : vector<16x256xf32>
    %70 = arith.addf %68, %69 : vector<16x256xf32>
    %71 = arith.extf %47 : vector<16x768xbf16> to vector<16x768xf32>
    %72 = vector.extract_strided_slice %71 {offsets = [0, 0], sizes = [16, 512], strides = [1, 1]} : vector<16x768xf32> to vector<16x512xf32>
    %73 = vector.extract_strided_slice %40 {offsets = [0, 0], sizes = [16, 512], strides = [1, 1]} : vector<16x768xf32> to vector<16x512xf32>
    %74 = arith.addf %72, %73 : vector<16x512xf32>
    %75 = arith.negf %74 : vector<16x512xf32>
    %76 = math.exp %75 : vector<16x512xf32>
    %cst_49 = arith.constant 1.000000e+00 : f32
    %77 = vector.broadcast %cst_49 : f32 to vector<16x512xf32>
    %78 = arith.addf %77, %76 : vector<16x512xf32>
    %79 = arith.divf %77, %78 : vector<16x512xf32>
    %80 = vector.extract_strided_slice %79 {offsets = [0, 0], sizes = [16, 256], strides = [1, 1]} : vector<16x512xf32> to vector<16x256xf32>
    %81 = vector.extract_strided_slice %79 {offsets = [0, 256], sizes = [16, 256], strides = [1, 1]} : vector<16x512xf32> to vector<16x256xf32>
    %82 = vector.extract_strided_slice %71 {offsets = [0, 512], sizes = [16, 256], strides = [1, 1]} : vector<16x768xf32> to vector<16x256xf32>
    %83 = vector.extract_strided_slice %40 {offsets = [0, 512], sizes = [16, 256], strides = [1, 1]} : vector<16x768xf32> to vector<16x256xf32>
    %84 = vector.broadcast %30 : vector<1x256xf32> to vector<16x256xf32>
    %85 = arith.addf %83, %84 : vector<16x256xf32>
    %86 = arith.mulf %80, %85 : vector<16x256xf32>
    %87 = arith.addf %82, %86 : vector<16x256xf32>
    %88 = math.tanh %87 : vector<16x256xf32>
    %cst_50 = arith.constant 1.000000e+00 : f32
    %89 = vector.broadcast %cst_50 : f32 to vector<16x256xf32>
    %90 = arith.subf %89, %81 : vector<16x256xf32>
    %91 = arith.mulf %90, %88 : vector<16x256xf32>
    %92 = arith.mulf %81, %32 : vector<16x256xf32>
    %93 = arith.addf %91, %92 : vector<16x256xf32>
    %c1_i32 = arith.constant 1 : i32
    %94 = arith.truncf %70 : vector<16x256xf32> to vector<16x256xbf16>
    %c0_51 = arith.constant 0 : index
    %c0_52 = arith.constant 0 : index
    %c0_53 = arith.constant 0 : index
    %95 = vector.load %arg4[%c0_51, %c0_52, %c0_53] : memref<2x256x768xbf16, #tpu.memory_space<vmem>>, vector<1x256x768xbf16>
    %96 = vector.shape_cast %95 : vector<1x256x768xbf16> to vector<256x768xbf16>
    %cst_54 = arith.constant dense<0.000000e+00> : vector<16x768xf32>
    %97 = tpu.matmul %94, %96, %cst_54 {dimension_numbers = #tpu.dot_dimension_numbers<[1], [0], [0], [1], [0, 0, 1, 1], [], []>} : vector<16x256xbf16>, vector<256x768xbf16>, vector<16x768xf32> -> vector<16x768xf32>
    %98 = arith.truncf %93 : vector<16x256xf32> to vector<16x256xbf16>
    %c1_55 = arith.constant 1 : index
    %c0_56 = arith.constant 0 : index
    %c0_57 = arith.constant 0 : index
    %99 = vector.load %arg4[%c1_55, %c0_56, %c0_57] : memref<2x256x768xbf16, #tpu.memory_space<vmem>>, vector<1x256x768xbf16>
    %100 = vector.shape_cast %99 : vector<1x256x768xbf16> to vector<256x768xbf16>
    %cst_58 = arith.constant dense<0.000000e+00> : vector<16x768xf32>
    %101 = tpu.matmul %98, %100, %cst_58 {dimension_numbers = #tpu.dot_dimension_numbers<[1], [0], [0], [1], [0, 0, 1, 1], [], []>} : vector<16x256xbf16>, vector<256x768xbf16>, vector<16x768xf32> -> vector<16x768xf32>
    %102 = arith.index_cast %c1_i32 : i32 to index
    %c0_59 = arith.constant 0 : index
    %c0_60 = arith.constant 0 : index
    %103 = vector.load %arg10[%102, %c0_59, %c0_60] : memref<8x16x768xbf16, #tpu.memory_space<vmem>>, vector<1x16x768xbf16>
    %104 = vector.shape_cast %103 : vector<1x16x768xbf16> to vector<16x768xbf16>
    %c7_i32_61 = arith.constant 7 : i32
    %105 = arith.subi %c7_i32_61, %c1_i32 : i32
    %106 = arith.index_cast %105 : i32 to index
    %c0_62 = arith.constant 0 : index
    %c0_63 = arith.constant 0 : index
    %107 = vector.load %arg11[%106, %c0_62, %c0_63] : memref<8x16x768xbf16, #tpu.memory_space<vmem>>, vector<1x16x768xbf16>
    %108 = vector.shape_cast %107 : vector<1x16x768xbf16> to vector<16x768xbf16>
    %109 = arith.extf %104 : vector<16x768xbf16> to vector<16x768xf32>
    %110 = vector.extract_strided_slice %109 {offsets = [0, 0], sizes = [16, 512], strides = [1, 1]} : vector<16x768xf32> to vector<16x512xf32>
    %111 = vector.extract_strided_slice %97 {offsets = [0, 0], sizes = [16, 512], strides = [1, 1]} : vector<16x768xf32> to vector<16x512xf32>
    %112 = arith.addf %110, %111 : vector<16x512xf32>
    %113 = arith.negf %112 : vector<16x512xf32>
    %114 = math.exp %113 : vector<16x512xf32>
    %cst_64 = arith.constant 1.000000e+00 : f32
    %115 = vector.broadcast %cst_64 : f32 to vector<16x512xf32>
    %116 = arith.addf %115, %114 : vector<16x512xf32>
    %117 = arith.divf %115, %116 : vector<16x512xf32>
    %118 = vector.extract_strided_slice %117 {offsets = [0, 0], sizes = [16, 256], strides = [1, 1]} : vector<16x512xf32> to vector<16x256xf32>
    %119 = vector.extract_strided_slice %117 {offsets = [0, 256], sizes = [16, 256], strides = [1, 1]} : vector<16x512xf32> to vector<16x256xf32>
    %120 = vector.extract_strided_slice %109 {offsets = [0, 512], sizes = [16, 256], strides = [1, 1]} : vector<16x768xf32> to vector<16x256xf32>
    %121 = vector.extract_strided_slice %97 {offsets = [0, 512], sizes = [16, 256], strides = [1, 1]} : vector<16x768xf32> to vector<16x256xf32>
    %122 = vector.broadcast %28 : vector<1x256xf32> to vector<16x256xf32>
    %123 = arith.addf %121, %122 : vector<16x256xf32>
    %124 = arith.mulf %118, %123 : vector<16x256xf32>
    %125 = arith.addf %120, %124 : vector<16x256xf32>
    %126 = math.tanh %125 : vector<16x256xf32>
    %cst_65 = arith.constant 1.000000e+00 : f32
    %127 = vector.broadcast %cst_65 : f32 to vector<16x256xf32>
    %128 = arith.subf %127, %119 : vector<16x256xf32>
    %129 = arith.mulf %128, %126 : vector<16x256xf32>
    %130 = arith.mulf %119, %70 : vector<16x256xf32>
    %131 = arith.addf %129, %130 : vector<16x256xf32>
    %132 = arith.extf %108 : vector<16x768xbf16> to vector<16x768xf32>
    %133 = vector.extract_strided_slice %132 {offsets = [0, 0], sizes = [16, 512], strides = [1, 1]} : vector<16x768xf32> to vector<16x512xf32>
    %134 = vector.extract_strided_slice %101 {offsets = [0, 0], sizes = [16, 512], strides = [1, 1]} : vector<16x768xf32> to vector<16x512xf32>
    %135 = arith.addf %133, %134 : vector<16x512xf32>
    %136 = arith.negf %135 : vector<16x512xf32>
    %137 = math.exp %136 : vector<16x512xf32>
    %cst_66 = arith.constant 1.000000e+00 : f32
    %138 = vector.broadcast %cst_66 : f32 to vector<16x512xf32>
    %139 = arith.addf %138, %137 : vector<16x512xf32>
    %140 = arith.divf %138, %139 : vector<16x512xf32>
    %141 = vector.extract_strided_slice %140 {offsets = [0, 0], sizes = [16, 256], strides = [1, 1]} : vector<16x512xf32> to vector<16x256xf32>
    %142 = vector.extract_strided_slice %140 {offsets = [0, 256], sizes = [16, 256], strides = [1, 1]} : vector<16x512xf32> to vector<16x256xf32>
    %143 = vector.extract_strided_slice %132 {offsets = [0, 512], sizes = [16, 256], strides = [1, 1]} : vector<16x768xf32> to vector<16x256xf32>
    %144 = vector.extract_strided_slice %101 {offsets = [0, 512], sizes = [16, 256], strides = [1, 1]} : vector<16x768xf32> to vector<16x256xf32>
    %145 = vector.broadcast %30 : vector<1x256xf32> to vector<16x256xf32>
    %146 = arith.addf %144, %145 : vector<16x256xf32>
    %147 = arith.mulf %141, %146 : vector<16x256xf32>
    %148 = arith.addf %143, %147 : vector<16x256xf32>
    %149 = math.tanh %148 : vector<16x256xf32>
    %cst_67 = arith.constant 1.000000e+00 : f32
    %150 = vector.broadcast %cst_67 : f32 to vector<16x256xf32>
    %151 = arith.subf %150, %142 : vector<16x256xf32>
    %152 = arith.mulf %151, %149 : vector<16x256xf32>
    %153 = arith.mulf %142, %93 : vector<16x256xf32>
    %154 = arith.addf %152, %153 : vector<16x256xf32>
    %c2_i32 = arith.constant 2 : i32
    %155 = arith.truncf %131 : vector<16x256xf32> to vector<16x256xbf16>
    %c0_68 = arith.constant 0 : index
    %c0_69 = arith.constant 0 : index
    %c0_70 = arith.constant 0 : index
    %156 = vector.load %arg4[%c0_68, %c0_69, %c0_70] : memref<2x256x768xbf16, #tpu.memory_space<vmem>>, vector<1x256x768xbf16>
    %157 = vector.shape_cast %156 : vector<1x256x768xbf16> to vector<256x768xbf16>
    %cst_71 = arith.constant dense<0.000000e+00> : vector<16x768xf32>
    %158 = tpu.matmul %155, %157, %cst_71 {dimension_numbers = #tpu.dot_dimension_numbers<[1], [0], [0], [1], [0, 0, 1, 1], [], []>} : vector<16x256xbf16>, vector<256x768xbf16>, vector<16x768xf32> -> vector<16x768xf32>
    %159 = arith.truncf %154 : vector<16x256xf32> to vector<16x256xbf16>
    %c1_72 = arith.constant 1 : index
    %c0_73 = arith.constant 0 : index
    %c0_74 = arith.constant 0 : index
    %160 = vector.load %arg4[%c1_72, %c0_73, %c0_74] : memref<2x256x768xbf16, #tpu.memory_space<vmem>>, vector<1x256x768xbf16>
    %161 = vector.shape_cast %160 : vector<1x256x768xbf16> to vector<256x768xbf16>
    %cst_75 = arith.constant dense<0.000000e+00> : vector<16x768xf32>
    %162 = tpu.matmul %159, %161, %cst_75 {dimension_numbers = #tpu.dot_dimension_numbers<[1], [0], [0], [1], [0, 0, 1, 1], [], []>} : vector<16x256xbf16>, vector<256x768xbf16>, vector<16x768xf32> -> vector<16x768xf32>
    %163 = arith.index_cast %c2_i32 : i32 to index
    %c0_76 = arith.constant 0 : index
    %c0_77 = arith.constant 0 : index
    %164 = vector.load %arg10[%163, %c0_76, %c0_77] : memref<8x16x768xbf16, #tpu.memory_space<vmem>>, vector<1x16x768xbf16>
    %165 = vector.shape_cast %164 : vector<1x16x768xbf16> to vector<16x768xbf16>
    %c7_i32_78 = arith.constant 7 : i32
    %166 = arith.subi %c7_i32_78, %c2_i32 : i32
    %167 = arith.index_cast %166 : i32 to index
    %c0_79 = arith.constant 0 : index
    %c0_80 = arith.constant 0 : index
    %168 = vector.load %arg11[%167, %c0_79, %c0_80] : memref<8x16x768xbf16, #tpu.memory_space<vmem>>, vector<1x16x768xbf16>
    %169 = vector.shape_cast %168 : vector<1x16x768xbf16> to vector<16x768xbf16>
    %170 = arith.extf %165 : vector<16x768xbf16> to vector<16x768xf32>
    %171 = vector.extract_strided_slice %170 {offsets = [0, 0], sizes = [16, 512], strides = [1, 1]} : vector<16x768xf32> to vector<16x512xf32>
    %172 = vector.extract_strided_slice %158 {offsets = [0, 0], sizes = [16, 512], strides = [1, 1]} : vector<16x768xf32> to vector<16x512xf32>
    %173 = arith.addf %171, %172 : vector<16x512xf32>
    %174 = arith.negf %173 : vector<16x512xf32>
    %175 = math.exp %174 : vector<16x512xf32>
    %cst_81 = arith.constant 1.000000e+00 : f32
    %176 = vector.broadcast %cst_81 : f32 to vector<16x512xf32>
    %177 = arith.addf %176, %175 : vector<16x512xf32>
    %178 = arith.divf %176, %177 : vector<16x512xf32>
    %179 = vector.extract_strided_slice %178 {offsets = [0, 0], sizes = [16, 256], strides = [1, 1]} : vector<16x512xf32> to vector<16x256xf32>
    %180 = vector.extract_strided_slice %178 {offsets = [0, 256], sizes = [16, 256], strides = [1, 1]} : vector<16x512xf32> to vector<16x256xf32>
    %181 = vector.extract_strided_slice %170 {offsets = [0, 512], sizes = [16, 256], strides = [1, 1]} : vector<16x768xf32> to vector<16x256xf32>
    %182 = vector.extract_strided_slice %158 {offsets = [0, 512], sizes = [16, 256], strides = [1, 1]} : vector<16x768xf32> to vector<16x256xf32>
    %183 = vector.broadcast %28 : vector<1x256xf32> to vector<16x256xf32>
    %184 = arith.addf %182, %183 : vector<16x256xf32>
    %185 = arith.mulf %179, %184 : vector<16x256xf32>
    %186 = arith.addf %181, %185 : vector<16x256xf32>
    %187 = math.tanh %186 : vector<16x256xf32>
    %cst_82 = arith.constant 1.000000e+00 : f32
    %188 = vector.broadcast %cst_82 : f32 to vector<16x256xf32>
    %189 = arith.subf %188, %180 : vector<16x256xf32>
    %190 = arith.mulf %189, %187 : vector<16x256xf32>
    %191 = arith.mulf %180, %131 : vector<16x256xf32>
    %192 = arith.addf %190, %191 : vector<16x256xf32>
    %193 = arith.extf %169 : vector<16x768xbf16> to vector<16x768xf32>
    %194 = vector.extract_strided_slice %193 {offsets = [0, 0], sizes = [16, 512], strides = [1, 1]} : vector<16x768xf32> to vector<16x512xf32>
    %195 = vector.extract_strided_slice %162 {offsets = [0, 0], sizes = [16, 512], strides = [1, 1]} : vector<16x768xf32> to vector<16x512xf32>
    %196 = arith.addf %194, %195 : vector<16x512xf32>
    %197 = arith.negf %196 : vector<16x512xf32>
    %198 = math.exp %197 : vector<16x512xf32>
    %cst_83 = arith.constant 1.000000e+00 : f32
    %199 = vector.broadcast %cst_83 : f32 to vector<16x512xf32>
    %200 = arith.addf %199, %198 : vector<16x512xf32>
    %201 = arith.divf %199, %200 : vector<16x512xf32>
    %202 = vector.extract_strided_slice %201 {offsets = [0, 0], sizes = [16, 256], strides = [1, 1]} : vector<16x512xf32> to vector<16x256xf32>
    %203 = vector.extract_strided_slice %201 {offsets = [0, 256], sizes = [16, 256], strides = [1, 1]} : vector<16x512xf32> to vector<16x256xf32>
    %204 = vector.extract_strided_slice %193 {offsets = [0, 512], sizes = [16, 256], strides = [1, 1]} : vector<16x768xf32> to vector<16x256xf32>
    %205 = vector.extract_strided_slice %162 {offsets = [0, 512], sizes = [16, 256], strides = [1, 1]} : vector<16x768xf32> to vector<16x256xf32>
    %206 = vector.broadcast %30 : vector<1x256xf32> to vector<16x256xf32>
    %207 = arith.addf %205, %206 : vector<16x256xf32>
    %208 = arith.mulf %202, %207 : vector<16x256xf32>
    %209 = arith.addf %204, %208 : vector<16x256xf32>
    %210 = math.tanh %209 : vector<16x256xf32>
    %cst_84 = arith.constant 1.000000e+00 : f32
    %211 = vector.broadcast %cst_84 : f32 to vector<16x256xf32>
    %212 = arith.subf %211, %203 : vector<16x256xf32>
    %213 = arith.mulf %212, %210 : vector<16x256xf32>
    %214 = arith.mulf %203, %154 : vector<16x256xf32>
    %215 = arith.addf %213, %214 : vector<16x256xf32>
    %c3_i32 = arith.constant 3 : i32
    %216 = arith.truncf %192 : vector<16x256xf32> to vector<16x256xbf16>
    %c0_85 = arith.constant 0 : index
    %c0_86 = arith.constant 0 : index
    %c0_87 = arith.constant 0 : index
    %217 = vector.load %arg4[%c0_85, %c0_86, %c0_87] : memref<2x256x768xbf16, #tpu.memory_space<vmem>>, vector<1x256x768xbf16>
    %218 = vector.shape_cast %217 : vector<1x256x768xbf16> to vector<256x768xbf16>
    %cst_88 = arith.constant dense<0.000000e+00> : vector<16x768xf32>
    %219 = tpu.matmul %216, %218, %cst_88 {dimension_numbers = #tpu.dot_dimension_numbers<[1], [0], [0], [1], [0, 0, 1, 1], [], []>} : vector<16x256xbf16>, vector<256x768xbf16>, vector<16x768xf32> -> vector<16x768xf32>
    %220 = arith.truncf %215 : vector<16x256xf32> to vector<16x256xbf16>
    %c1_89 = arith.constant 1 : index
    %c0_90 = arith.constant 0 : index
    %c0_91 = arith.constant 0 : index
    %221 = vector.load %arg4[%c1_89, %c0_90, %c0_91] : memref<2x256x768xbf16, #tpu.memory_space<vmem>>, vector<1x256x768xbf16>
    %222 = vector.shape_cast %221 : vector<1x256x768xbf16> to vector<256x768xbf16>
    %cst_92 = arith.constant dense<0.000000e+00> : vector<16x768xf32>
    %223 = tpu.matmul %220, %222, %cst_92 {dimension_numbers = #tpu.dot_dimension_numbers<[1], [0], [0], [1], [0, 0, 1, 1], [], []>} : vector<16x256xbf16>, vector<256x768xbf16>, vector<16x768xf32> -> vector<16x768xf32>
    %224 = arith.index_cast %c3_i32 : i32 to index
    %c0_93 = arith.constant 0 : index
    %c0_94 = arith.constant 0 : index
    %225 = vector.load %arg10[%224, %c0_93, %c0_94] : memref<8x16x768xbf16, #tpu.memory_space<vmem>>, vector<1x16x768xbf16>
    %226 = vector.shape_cast %225 : vector<1x16x768xbf16> to vector<16x768xbf16>
    %c7_i32_95 = arith.constant 7 : i32
    %227 = arith.subi %c7_i32_95, %c3_i32 : i32
    %228 = arith.index_cast %227 : i32 to index
    %c0_96 = arith.constant 0 : index
    %c0_97 = arith.constant 0 : index
    %229 = vector.load %arg11[%228, %c0_96, %c0_97] : memref<8x16x768xbf16, #tpu.memory_space<vmem>>, vector<1x16x768xbf16>
    %230 = vector.shape_cast %229 : vector<1x16x768xbf16> to vector<16x768xbf16>
    %231 = arith.extf %226 : vector<16x768xbf16> to vector<16x768xf32>
    %232 = vector.extract_strided_slice %231 {offsets = [0, 0], sizes = [16, 512], strides = [1, 1]} : vector<16x768xf32> to vector<16x512xf32>
    %233 = vector.extract_strided_slice %219 {offsets = [0, 0], sizes = [16, 512], strides = [1, 1]} : vector<16x768xf32> to vector<16x512xf32>
    %234 = arith.addf %232, %233 : vector<16x512xf32>
    %235 = arith.negf %234 : vector<16x512xf32>
    %236 = math.exp %235 : vector<16x512xf32>
    %cst_98 = arith.constant 1.000000e+00 : f32
    %237 = vector.broadcast %cst_98 : f32 to vector<16x512xf32>
    %238 = arith.addf %237, %236 : vector<16x512xf32>
    %239 = arith.divf %237, %238 : vector<16x512xf32>
    %240 = vector.extract_strided_slice %239 {offsets = [0, 0], sizes = [16, 256], strides = [1, 1]} : vector<16x512xf32> to vector<16x256xf32>
    %241 = vector.extract_strided_slice %239 {offsets = [0, 256], sizes = [16, 256], strides = [1, 1]} : vector<16x512xf32> to vector<16x256xf32>
    %242 = vector.extract_strided_slice %231 {offsets = [0, 512], sizes = [16, 256], strides = [1, 1]} : vector<16x768xf32> to vector<16x256xf32>
    %243 = vector.extract_strided_slice %219 {offsets = [0, 512], sizes = [16, 256], strides = [1, 1]} : vector<16x768xf32> to vector<16x256xf32>
    %244 = vector.broadcast %28 : vector<1x256xf32> to vector<16x256xf32>
    %245 = arith.addf %243, %244 : vector<16x256xf32>
    %246 = arith.mulf %240, %245 : vector<16x256xf32>
    %247 = arith.addf %242, %246 : vector<16x256xf32>
    %248 = math.tanh %247 : vector<16x256xf32>
    %cst_99 = arith.constant 1.000000e+00 : f32
    %249 = vector.broadcast %cst_99 : f32 to vector<16x256xf32>
    %250 = arith.subf %249, %241 : vector<16x256xf32>
    %251 = arith.mulf %250, %248 : vector<16x256xf32>
    %252 = arith.mulf %241, %192 : vector<16x256xf32>
    %253 = arith.addf %251, %252 : vector<16x256xf32>
    %254 = arith.extf %230 : vector<16x768xbf16> to vector<16x768xf32>
    %255 = vector.extract_strided_slice %254 {offsets = [0, 0], sizes = [16, 512], strides = [1, 1]} : vector<16x768xf32> to vector<16x512xf32>
    %256 = vector.extract_strided_slice %223 {offsets = [0, 0], sizes = [16, 512], strides = [1, 1]} : vector<16x768xf32> to vector<16x512xf32>
    %257 = arith.addf %255, %256 : vector<16x512xf32>
    %258 = arith.negf %257 : vector<16x512xf32>
    %259 = math.exp %258 : vector<16x512xf32>
    %cst_100 = arith.constant 1.000000e+00 : f32
    %260 = vector.broadcast %cst_100 : f32 to vector<16x512xf32>
    %261 = arith.addf %260, %259 : vector<16x512xf32>
    %262 = arith.divf %260, %261 : vector<16x512xf32>
    %263 = vector.extract_strided_slice %262 {offsets = [0, 0], sizes = [16, 256], strides = [1, 1]} : vector<16x512xf32> to vector<16x256xf32>
    %264 = vector.extract_strided_slice %262 {offsets = [0, 256], sizes = [16, 256], strides = [1, 1]} : vector<16x512xf32> to vector<16x256xf32>
    %265 = vector.extract_strided_slice %254 {offsets = [0, 512], sizes = [16, 256], strides = [1, 1]} : vector<16x768xf32> to vector<16x256xf32>
    %266 = vector.extract_strided_slice %223 {offsets = [0, 512], sizes = [16, 256], strides = [1, 1]} : vector<16x768xf32> to vector<16x256xf32>
    %267 = vector.broadcast %30 : vector<1x256xf32> to vector<16x256xf32>
    %268 = arith.addf %266, %267 : vector<16x256xf32>
    %269 = arith.mulf %263, %268 : vector<16x256xf32>
    %270 = arith.addf %265, %269 : vector<16x256xf32>
    %271 = math.tanh %270 : vector<16x256xf32>
    %cst_101 = arith.constant 1.000000e+00 : f32
    %272 = vector.broadcast %cst_101 : f32 to vector<16x256xf32>
    %273 = arith.subf %272, %264 : vector<16x256xf32>
    %274 = arith.mulf %273, %271 : vector<16x256xf32>
    %275 = arith.mulf %264, %215 : vector<16x256xf32>
    %276 = arith.addf %274, %275 : vector<16x256xf32>
    %c4_i32 = arith.constant 4 : i32
    %277 = arith.truncf %253 : vector<16x256xf32> to vector<16x256xbf16>
    %c0_102 = arith.constant 0 : index
    %c0_103 = arith.constant 0 : index
    %c0_104 = arith.constant 0 : index
    %278 = vector.load %arg4[%c0_102, %c0_103, %c0_104] : memref<2x256x768xbf16, #tpu.memory_space<vmem>>, vector<1x256x768xbf16>
    %279 = vector.shape_cast %278 : vector<1x256x768xbf16> to vector<256x768xbf16>
    %cst_105 = arith.constant dense<0.000000e+00> : vector<16x768xf32>
    %280 = tpu.matmul %277, %279, %cst_105 {dimension_numbers = #tpu.dot_dimension_numbers<[1], [0], [0], [1], [0, 0, 1, 1], [], []>} : vector<16x256xbf16>, vector<256x768xbf16>, vector<16x768xf32> -> vector<16x768xf32>
    %281 = arith.truncf %276 : vector<16x256xf32> to vector<16x256xbf16>
    %c1_106 = arith.constant 1 : index
    %c0_107 = arith.constant 0 : index
    %c0_108 = arith.constant 0 : index
    %282 = vector.load %arg4[%c1_106, %c0_107, %c0_108] : memref<2x256x768xbf16, #tpu.memory_space<vmem>>, vector<1x256x768xbf16>
    %283 = vector.shape_cast %282 : vector<1x256x768xbf16> to vector<256x768xbf16>
    %cst_109 = arith.constant dense<0.000000e+00> : vector<16x768xf32>
    %284 = tpu.matmul %281, %283, %cst_109 {dimension_numbers = #tpu.dot_dimension_numbers<[1], [0], [0], [1], [0, 0, 1, 1], [], []>} : vector<16x256xbf16>, vector<256x768xbf16>, vector<16x768xf32> -> vector<16x768xf32>
    %285 = arith.index_cast %c4_i32 : i32 to index
    %c0_110 = arith.constant 0 : index
    %c0_111 = arith.constant 0 : index
    %286 = vector.load %arg10[%285, %c0_110, %c0_111] : memref<8x16x768xbf16, #tpu.memory_space<vmem>>, vector<1x16x768xbf16>
    %287 = vector.shape_cast %286 : vector<1x16x768xbf16> to vector<16x768xbf16>
    %c7_i32_112 = arith.constant 7 : i32
    %288 = arith.subi %c7_i32_112, %c4_i32 : i32
    %289 = arith.index_cast %288 : i32 to index
    %c0_113 = arith.constant 0 : index
    %c0_114 = arith.constant 0 : index
    %290 = vector.load %arg11[%289, %c0_113, %c0_114] : memref<8x16x768xbf16, #tpu.memory_space<vmem>>, vector<1x16x768xbf16>
    %291 = vector.shape_cast %290 : vector<1x16x768xbf16> to vector<16x768xbf16>
    %292 = arith.extf %287 : vector<16x768xbf16> to vector<16x768xf32>
    %293 = vector.extract_strided_slice %292 {offsets = [0, 0], sizes = [16, 512], strides = [1, 1]} : vector<16x768xf32> to vector<16x512xf32>
    %294 = vector.extract_strided_slice %280 {offsets = [0, 0], sizes = [16, 512], strides = [1, 1]} : vector<16x768xf32> to vector<16x512xf32>
    %295 = arith.addf %293, %294 : vector<16x512xf32>
    %296 = arith.negf %295 : vector<16x512xf32>
    %297 = math.exp %296 : vector<16x512xf32>
    %cst_115 = arith.constant 1.000000e+00 : f32
    %298 = vector.broadcast %cst_115 : f32 to vector<16x512xf32>
    %299 = arith.addf %298, %297 : vector<16x512xf32>
    %300 = arith.divf %298, %299 : vector<16x512xf32>
    %301 = vector.extract_strided_slice %300 {offsets = [0, 0], sizes = [16, 256], strides = [1, 1]} : vector<16x512xf32> to vector<16x256xf32>
    %302 = vector.extract_strided_slice %300 {offsets = [0, 256], sizes = [16, 256], strides = [1, 1]} : vector<16x512xf32> to vector<16x256xf32>
    %303 = vector.extract_strided_slice %292 {offsets = [0, 512], sizes = [16, 256], strides = [1, 1]} : vector<16x768xf32> to vector<16x256xf32>
    %304 = vector.extract_strided_slice %280 {offsets = [0, 512], sizes = [16, 256], strides = [1, 1]} : vector<16x768xf32> to vector<16x256xf32>
    %305 = vector.broadcast %28 : vector<1x256xf32> to vector<16x256xf32>
    %306 = arith.addf %304, %305 : vector<16x256xf32>
    %307 = arith.mulf %301, %306 : vector<16x256xf32>
    %308 = arith.addf %303, %307 : vector<16x256xf32>
    %309 = math.tanh %308 : vector<16x256xf32>
    %cst_116 = arith.constant 1.000000e+00 : f32
    %310 = vector.broadcast %cst_116 : f32 to vector<16x256xf32>
    %311 = arith.subf %310, %302 : vector<16x256xf32>
    %312 = arith.mulf %311, %309 : vector<16x256xf32>
    %313 = arith.mulf %302, %253 : vector<16x256xf32>
    %314 = arith.addf %312, %313 : vector<16x256xf32>
    %315 = arith.extf %291 : vector<16x768xbf16> to vector<16x768xf32>
    %316 = vector.extract_strided_slice %315 {offsets = [0, 0], sizes = [16, 512], strides = [1, 1]} : vector<16x768xf32> to vector<16x512xf32>
    %317 = vector.extract_strided_slice %284 {offsets = [0, 0], sizes = [16, 512], strides = [1, 1]} : vector<16x768xf32> to vector<16x512xf32>
    %318 = arith.addf %316, %317 : vector<16x512xf32>
    %319 = arith.negf %318 : vector<16x512xf32>
    %320 = math.exp %319 : vector<16x512xf32>
    %cst_117 = arith.constant 1.000000e+00 : f32
    %321 = vector.broadcast %cst_117 : f32 to vector<16x512xf32>
    %322 = arith.addf %321, %320 : vector<16x512xf32>
    %323 = arith.divf %321, %322 : vector<16x512xf32>
    %324 = vector.extract_strided_slice %323 {offsets = [0, 0], sizes = [16, 256], strides = [1, 1]} : vector<16x512xf32> to vector<16x256xf32>
    %325 = vector.extract_strided_slice %323 {offsets = [0, 256], sizes = [16, 256], strides = [1, 1]} : vector<16x512xf32> to vector<16x256xf32>
    %326 = vector.extract_strided_slice %315 {offsets = [0, 512], sizes = [16, 256], strides = [1, 1]} : vector<16x768xf32> to vector<16x256xf32>
    %327 = vector.extract_strided_slice %284 {offsets = [0, 512], sizes = [16, 256], strides = [1, 1]} : vector<16x768xf32> to vector<16x256xf32>
    %328 = vector.broadcast %30 : vector<1x256xf32> to vector<16x256xf32>
    %329 = arith.addf %327, %328 : vector<16x256xf32>
    %330 = arith.mulf %324, %329 : vector<16x256xf32>
    %331 = arith.addf %326, %330 : vector<16x256xf32>
    %332 = math.tanh %331 : vector<16x256xf32>
    %cst_118 = arith.constant 1.000000e+00 : f32
    %333 = vector.broadcast %cst_118 : f32 to vector<16x256xf32>
    %334 = arith.subf %333, %325 : vector<16x256xf32>
    %335 = arith.mulf %334, %332 : vector<16x256xf32>
    %336 = arith.mulf %325, %276 : vector<16x256xf32>
    %337 = arith.addf %335, %336 : vector<16x256xf32>
    %c5_i32 = arith.constant 5 : i32
    %338 = arith.truncf %314 : vector<16x256xf32> to vector<16x256xbf16>
    %c0_119 = arith.constant 0 : index
    %c0_120 = arith.constant 0 : index
    %c0_121 = arith.constant 0 : index
    %339 = vector.load %arg4[%c0_119, %c0_120, %c0_121] : memref<2x256x768xbf16, #tpu.memory_space<vmem>>, vector<1x256x768xbf16>
    %340 = vector.shape_cast %339 : vector<1x256x768xbf16> to vector<256x768xbf16>
    %cst_122 = arith.constant dense<0.000000e+00> : vector<16x768xf32>
    %341 = tpu.matmul %338, %340, %cst_122 {dimension_numbers = #tpu.dot_dimension_numbers<[1], [0], [0], [1], [0, 0, 1, 1], [], []>} : vector<16x256xbf16>, vector<256x768xbf16>, vector<16x768xf32> -> vector<16x768xf32>
    %342 = arith.truncf %337 : vector<16x256xf32> to vector<16x256xbf16>
    %c1_123 = arith.constant 1 : index
    %c0_124 = arith.constant 0 : index
    %c0_125 = arith.constant 0 : index
    %343 = vector.load %arg4[%c1_123, %c0_124, %c0_125] : memref<2x256x768xbf16, #tpu.memory_space<vmem>>, vector<1x256x768xbf16>
    %344 = vector.shape_cast %343 : vector<1x256x768xbf16> to vector<256x768xbf16>
    %cst_126 = arith.constant dense<0.000000e+00> : vector<16x768xf32>
    %345 = tpu.matmul %342, %344, %cst_126 {dimension_numbers = #tpu.dot_dimension_numbers<[1], [0], [0], [1], [0, 0, 1, 1], [], []>} : vector<16x256xbf16>, vector<256x768xbf16>, vector<16x768xf32> -> vector<16x768xf32>
    %346 = arith.index_cast %c5_i32 : i32 to index
    %c0_127 = arith.constant 0 : index
    %c0_128 = arith.constant 0 : index
    %347 = vector.load %arg10[%346, %c0_127, %c0_128] : memref<8x16x768xbf16, #tpu.memory_space<vmem>>, vector<1x16x768xbf16>
    %348 = vector.shape_cast %347 : vector<1x16x768xbf16> to vector<16x768xbf16>
    %c7_i32_129 = arith.constant 7 : i32
    %349 = arith.subi %c7_i32_129, %c5_i32 : i32
    %350 = arith.index_cast %349 : i32 to index
    %c0_130 = arith.constant 0 : index
    %c0_131 = arith.constant 0 : index
    %351 = vector.load %arg11[%350, %c0_130, %c0_131] : memref<8x16x768xbf16, #tpu.memory_space<vmem>>, vector<1x16x768xbf16>
    %352 = vector.shape_cast %351 : vector<1x16x768xbf16> to vector<16x768xbf16>
    %353 = arith.extf %348 : vector<16x768xbf16> to vector<16x768xf32>
    %354 = vector.extract_strided_slice %353 {offsets = [0, 0], sizes = [16, 512], strides = [1, 1]} : vector<16x768xf32> to vector<16x512xf32>
    %355 = vector.extract_strided_slice %341 {offsets = [0, 0], sizes = [16, 512], strides = [1, 1]} : vector<16x768xf32> to vector<16x512xf32>
    %356 = arith.addf %354, %355 : vector<16x512xf32>
    %357 = arith.negf %356 : vector<16x512xf32>
    %358 = math.exp %357 : vector<16x512xf32>
    %cst_132 = arith.constant 1.000000e+00 : f32
    %359 = vector.broadcast %cst_132 : f32 to vector<16x512xf32>
    %360 = arith.addf %359, %358 : vector<16x512xf32>
    %361 = arith.divf %359, %360 : vector<16x512xf32>
    %362 = vector.extract_strided_slice %361 {offsets = [0, 0], sizes = [16, 256], strides = [1, 1]} : vector<16x512xf32> to vector<16x256xf32>
    %363 = vector.extract_strided_slice %361 {offsets = [0, 256], sizes = [16, 256], strides = [1, 1]} : vector<16x512xf32> to vector<16x256xf32>
    %364 = vector.extract_strided_slice %353 {offsets = [0, 512], sizes = [16, 256], strides = [1, 1]} : vector<16x768xf32> to vector<16x256xf32>
    %365 = vector.extract_strided_slice %341 {offsets = [0, 512], sizes = [16, 256], strides = [1, 1]} : vector<16x768xf32> to vector<16x256xf32>
    %366 = vector.broadcast %28 : vector<1x256xf32> to vector<16x256xf32>
    %367 = arith.addf %365, %366 : vector<16x256xf32>
    %368 = arith.mulf %362, %367 : vector<16x256xf32>
    %369 = arith.addf %364, %368 : vector<16x256xf32>
    %370 = math.tanh %369 : vector<16x256xf32>
    %cst_133 = arith.constant 1.000000e+00 : f32
    %371 = vector.broadcast %cst_133 : f32 to vector<16x256xf32>
    %372 = arith.subf %371, %363 : vector<16x256xf32>
    %373 = arith.mulf %372, %370 : vector<16x256xf32>
    %374 = arith.mulf %363, %314 : vector<16x256xf32>
    %375 = arith.addf %373, %374 : vector<16x256xf32>
    %376 = arith.extf %352 : vector<16x768xbf16> to vector<16x768xf32>
    %377 = vector.extract_strided_slice %376 {offsets = [0, 0], sizes = [16, 512], strides = [1, 1]} : vector<16x768xf32> to vector<16x512xf32>
    %378 = vector.extract_strided_slice %345 {offsets = [0, 0], sizes = [16, 512], strides = [1, 1]} : vector<16x768xf32> to vector<16x512xf32>
    %379 = arith.addf %377, %378 : vector<16x512xf32>
    %380 = arith.negf %379 : vector<16x512xf32>
    %381 = math.exp %380 : vector<16x512xf32>
    %cst_134 = arith.constant 1.000000e+00 : f32
    %382 = vector.broadcast %cst_134 : f32 to vector<16x512xf32>
    %383 = arith.addf %382, %381 : vector<16x512xf32>
    %384 = arith.divf %382, %383 : vector<16x512xf32>
    %385 = vector.extract_strided_slice %384 {offsets = [0, 0], sizes = [16, 256], strides = [1, 1]} : vector<16x512xf32> to vector<16x256xf32>
    %386 = vector.extract_strided_slice %384 {offsets = [0, 256], sizes = [16, 256], strides = [1, 1]} : vector<16x512xf32> to vector<16x256xf32>
    %387 = vector.extract_strided_slice %376 {offsets = [0, 512], sizes = [16, 256], strides = [1, 1]} : vector<16x768xf32> to vector<16x256xf32>
    %388 = vector.extract_strided_slice %345 {offsets = [0, 512], sizes = [16, 256], strides = [1, 1]} : vector<16x768xf32> to vector<16x256xf32>
    %389 = vector.broadcast %30 : vector<1x256xf32> to vector<16x256xf32>
    %390 = arith.addf %388, %389 : vector<16x256xf32>
    %391 = arith.mulf %385, %390 : vector<16x256xf32>
    %392 = arith.addf %387, %391 : vector<16x256xf32>
    %393 = math.tanh %392 : vector<16x256xf32>
    %cst_135 = arith.constant 1.000000e+00 : f32
    %394 = vector.broadcast %cst_135 : f32 to vector<16x256xf32>
    %395 = arith.subf %394, %386 : vector<16x256xf32>
    %396 = arith.mulf %395, %393 : vector<16x256xf32>
    %397 = arith.mulf %386, %337 : vector<16x256xf32>
    %398 = arith.addf %396, %397 : vector<16x256xf32>
    %c6_i32 = arith.constant 6 : i32
    %399 = arith.truncf %375 : vector<16x256xf32> to vector<16x256xbf16>
    %c0_136 = arith.constant 0 : index
    %c0_137 = arith.constant 0 : index
    %c0_138 = arith.constant 0 : index
    %400 = vector.load %arg4[%c0_136, %c0_137, %c0_138] : memref<2x256x768xbf16, #tpu.memory_space<vmem>>, vector<1x256x768xbf16>
    %401 = vector.shape_cast %400 : vector<1x256x768xbf16> to vector<256x768xbf16>
    %cst_139 = arith.constant dense<0.000000e+00> : vector<16x768xf32>
    %402 = tpu.matmul %399, %401, %cst_139 {dimension_numbers = #tpu.dot_dimension_numbers<[1], [0], [0], [1], [0, 0, 1, 1], [], []>} : vector<16x256xbf16>, vector<256x768xbf16>, vector<16x768xf32> -> vector<16x768xf32>
    %403 = arith.truncf %398 : vector<16x256xf32> to vector<16x256xbf16>
    %c1_140 = arith.constant 1 : index
    %c0_141 = arith.constant 0 : index
    %c0_142 = arith.constant 0 : index
    %404 = vector.load %arg4[%c1_140, %c0_141, %c0_142] : memref<2x256x768xbf16, #tpu.memory_space<vmem>>, vector<1x256x768xbf16>
    %405 = vector.shape_cast %404 : vector<1x256x768xbf16> to vector<256x768xbf16>
    %cst_143 = arith.constant dense<0.000000e+00> : vector<16x768xf32>
    %406 = tpu.matmul %403, %405, %cst_143 {dimension_numbers = #tpu.dot_dimension_numbers<[1], [0], [0], [1], [0, 0, 1, 1], [], []>} : vector<16x256xbf16>, vector<256x768xbf16>, vector<16x768xf32> -> vector<16x768xf32>
    %407 = arith.index_cast %c6_i32 : i32 to index
    %c0_144 = arith.constant 0 : index
    %c0_145 = arith.constant 0 : index
    %408 = vector.load %arg10[%407, %c0_144, %c0_145] : memref<8x16x768xbf16, #tpu.memory_space<vmem>>, vector<1x16x768xbf16>
    %409 = vector.shape_cast %408 : vector<1x16x768xbf16> to vector<16x768xbf16>
    %c7_i32_146 = arith.constant 7 : i32
    %410 = arith.subi %c7_i32_146, %c6_i32 : i32
    %411 = arith.index_cast %410 : i32 to index
    %c0_147 = arith.constant 0 : index
    %c0_148 = arith.constant 0 : index
    %412 = vector.load %arg11[%411, %c0_147, %c0_148] : memref<8x16x768xbf16, #tpu.memory_space<vmem>>, vector<1x16x768xbf16>
    %413 = vector.shape_cast %412 : vector<1x16x768xbf16> to vector<16x768xbf16>
    %414 = arith.extf %409 : vector<16x768xbf16> to vector<16x768xf32>
    %415 = vector.extract_strided_slice %414 {offsets = [0, 0], sizes = [16, 512], strides = [1, 1]} : vector<16x768xf32> to vector<16x512xf32>
    %416 = vector.extract_strided_slice %402 {offsets = [0, 0], sizes = [16, 512], strides = [1, 1]} : vector<16x768xf32> to vector<16x512xf32>
    %417 = arith.addf %415, %416 : vector<16x512xf32>
    %418 = arith.negf %417 : vector<16x512xf32>
    %419 = math.exp %418 : vector<16x512xf32>
    %cst_149 = arith.constant 1.000000e+00 : f32
    %420 = vector.broadcast %cst_149 : f32 to vector<16x512xf32>
    %421 = arith.addf %420, %419 : vector<16x512xf32>
    %422 = arith.divf %420, %421 : vector<16x512xf32>
    %423 = vector.extract_strided_slice %422 {offsets = [0, 0], sizes = [16, 256], strides = [1, 1]} : vector<16x512xf32> to vector<16x256xf32>
    %424 = vector.extract_strided_slice %422 {offsets = [0, 256], sizes = [16, 256], strides = [1, 1]} : vector<16x512xf32> to vector<16x256xf32>
    %425 = vector.extract_strided_slice %414 {offsets = [0, 512], sizes = [16, 256], strides = [1, 1]} : vector<16x768xf32> to vector<16x256xf32>
    %426 = vector.extract_strided_slice %402 {offsets = [0, 512], sizes = [16, 256], strides = [1, 1]} : vector<16x768xf32> to vector<16x256xf32>
    %427 = vector.broadcast %28 : vector<1x256xf32> to vector<16x256xf32>
    %428 = arith.addf %426, %427 : vector<16x256xf32>
    %429 = arith.mulf %423, %428 : vector<16x256xf32>
    %430 = arith.addf %425, %429 : vector<16x256xf32>
    %431 = math.tanh %430 : vector<16x256xf32>
    %cst_150 = arith.constant 1.000000e+00 : f32
    %432 = vector.broadcast %cst_150 : f32 to vector<16x256xf32>
    %433 = arith.subf %432, %424 : vector<16x256xf32>
    %434 = arith.mulf %433, %431 : vector<16x256xf32>
    %435 = arith.mulf %424, %375 : vector<16x256xf32>
    %436 = arith.addf %434, %435 : vector<16x256xf32>
    %437 = arith.extf %413 : vector<16x768xbf16> to vector<16x768xf32>
    %438 = vector.extract_strided_slice %437 {offsets = [0, 0], sizes = [16, 512], strides = [1, 1]} : vector<16x768xf32> to vector<16x512xf32>
    %439 = vector.extract_strided_slice %406 {offsets = [0, 0], sizes = [16, 512], strides = [1, 1]} : vector<16x768xf32> to vector<16x512xf32>
    %440 = arith.addf %438, %439 : vector<16x512xf32>
    %441 = arith.negf %440 : vector<16x512xf32>
    %442 = math.exp %441 : vector<16x512xf32>
    %cst_151 = arith.constant 1.000000e+00 : f32
    %443 = vector.broadcast %cst_151 : f32 to vector<16x512xf32>
    %444 = arith.addf %443, %442 : vector<16x512xf32>
    %445 = arith.divf %443, %444 : vector<16x512xf32>
    %446 = vector.extract_strided_slice %445 {offsets = [0, 0], sizes = [16, 256], strides = [1, 1]} : vector<16x512xf32> to vector<16x256xf32>
    %447 = vector.extract_strided_slice %445 {offsets = [0, 256], sizes = [16, 256], strides = [1, 1]} : vector<16x512xf32> to vector<16x256xf32>
    %448 = vector.extract_strided_slice %437 {offsets = [0, 512], sizes = [16, 256], strides = [1, 1]} : vector<16x768xf32> to vector<16x256xf32>
    %449 = vector.extract_strided_slice %406 {offsets = [0, 512], sizes = [16, 256], strides = [1, 1]} : vector<16x768xf32> to vector<16x256xf32>
    %450 = vector.broadcast %30 : vector<1x256xf32> to vector<16x256xf32>
    %451 = arith.addf %449, %450 : vector<16x256xf32>
    %452 = arith.mulf %446, %451 : vector<16x256xf32>
    %453 = arith.addf %448, %452 : vector<16x256xf32>
    %454 = math.tanh %453 : vector<16x256xf32>
    %cst_152 = arith.constant 1.000000e+00 : f32
    %455 = vector.broadcast %cst_152 : f32 to vector<16x256xf32>
    %456 = arith.subf %455, %447 : vector<16x256xf32>
    %457 = arith.mulf %456, %454 : vector<16x256xf32>
    %458 = arith.mulf %447, %398 : vector<16x256xf32>
    %459 = arith.addf %457, %458 : vector<16x256xf32>
    %c7_i32_153 = arith.constant 7 : i32
    %460 = arith.truncf %436 : vector<16x256xf32> to vector<16x256xbf16>
    %c0_154 = arith.constant 0 : index
    %c0_155 = arith.constant 0 : index
    %c0_156 = arith.constant 0 : index
    %461 = vector.load %arg4[%c0_154, %c0_155, %c0_156] : memref<2x256x768xbf16, #tpu.memory_space<vmem>>, vector<1x256x768xbf16>
    %462 = vector.shape_cast %461 : vector<1x256x768xbf16> to vector<256x768xbf16>
    %cst_157 = arith.constant dense<0.000000e+00> : vector<16x768xf32>
    %463 = tpu.matmul %460, %462, %cst_157 {dimension_numbers = #tpu.dot_dimension_numbers<[1], [0], [0], [1], [0, 0, 1, 1], [], []>} : vector<16x256xbf16>, vector<256x768xbf16>, vector<16x768xf32> -> vector<16x768xf32>
    %464 = arith.truncf %459 : vector<16x256xf32> to vector<16x256xbf16>
    %c1_158 = arith.constant 1 : index
    %c0_159 = arith.constant 0 : index
    %c0_160 = arith.constant 0 : index
    %465 = vector.load %arg4[%c1_158, %c0_159, %c0_160] : memref<2x256x768xbf16, #tpu.memory_space<vmem>>, vector<1x256x768xbf16>
    %466 = vector.shape_cast %465 : vector<1x256x768xbf16> to vector<256x768xbf16>
    %cst_161 = arith.constant dense<0.000000e+00> : vector<16x768xf32>
    %467 = tpu.matmul %464, %466, %cst_161 {dimension_numbers = #tpu.dot_dimension_numbers<[1], [0], [0], [1], [0, 0, 1, 1], [], []>} : vector<16x256xbf16>, vector<256x768xbf16>, vector<16x768xf32> -> vector<16x768xf32>
    %468 = arith.index_cast %c7_i32_153 : i32 to index
    %c0_162 = arith.constant 0 : index
    %c0_163 = arith.constant 0 : index
    %469 = vector.load %arg10[%468, %c0_162, %c0_163] : memref<8x16x768xbf16, #tpu.memory_space<vmem>>, vector<1x16x768xbf16>
    %470 = vector.shape_cast %469 : vector<1x16x768xbf16> to vector<16x768xbf16>
    %c7_i32_164 = arith.constant 7 : i32
    %471 = arith.subi %c7_i32_164, %c7_i32_153 : i32
    %472 = arith.index_cast %471 : i32 to index
    %c0_165 = arith.constant 0 : index
    %c0_166 = arith.constant 0 : index
    %473 = vector.load %arg11[%472, %c0_165, %c0_166] : memref<8x16x768xbf16, #tpu.memory_space<vmem>>, vector<1x16x768xbf16>
    %474 = vector.shape_cast %473 : vector<1x16x768xbf16> to vector<16x768xbf16>
    %475 = arith.extf %470 : vector<16x768xbf16> to vector<16x768xf32>
    %476 = vector.extract_strided_slice %475 {offsets = [0, 0], sizes = [16, 512], strides = [1, 1]} : vector<16x768xf32> to vector<16x512xf32>
    %477 = vector.extract_strided_slice %463 {offsets = [0, 0], sizes = [16, 512], strides = [1, 1]} : vector<16x768xf32> to vector<16x512xf32>
    %478 = arith.addf %476, %477 : vector<16x512xf32>
    %479 = arith.negf %478 : vector<16x512xf32>
    %480 = math.exp %479 : vector<16x512xf32>
    %cst_167 = arith.constant 1.000000e+00 : f32
    %481 = vector.broadcast %cst_167 : f32 to vector<16x512xf32>
    %482 = arith.addf %481, %480 : vector<16x512xf32>
    %483 = arith.divf %481, %482 : vector<16x512xf32>
    %484 = vector.extract_strided_slice %483 {offsets = [0, 0], sizes = [16, 256], strides = [1, 1]} : vector<16x512xf32> to vector<16x256xf32>
    %485 = vector.extract_strided_slice %483 {offsets = [0, 256], sizes = [16, 256], strides = [1, 1]} : vector<16x512xf32> to vector<16x256xf32>
    %486 = vector.extract_strided_slice %475 {offsets = [0, 512], sizes = [16, 256], strides = [1, 1]} : vector<16x768xf32> to vector<16x256xf32>
    %487 = vector.extract_strided_slice %463 {offsets = [0, 512], sizes = [16, 256], strides = [1, 1]} : vector<16x768xf32> to vector<16x256xf32>
    %488 = vector.broadcast %28 : vector<1x256xf32> to vector<16x256xf32>
    %489 = arith.addf %487, %488 : vector<16x256xf32>
    %490 = arith.mulf %484, %489 : vector<16x256xf32>
    %491 = arith.addf %486, %490 : vector<16x256xf32>
    %492 = math.tanh %491 : vector<16x256xf32>
    %cst_168 = arith.constant 1.000000e+00 : f32
    %493 = vector.broadcast %cst_168 : f32 to vector<16x256xf32>
    %494 = arith.subf %493, %485 : vector<16x256xf32>
    %495 = arith.mulf %494, %492 : vector<16x256xf32>
    %496 = arith.mulf %485, %436 : vector<16x256xf32>
    %497 = arith.addf %495, %496 : vector<16x256xf32>
    %498 = arith.extf %474 : vector<16x768xbf16> to vector<16x768xf32>
    %499 = vector.extract_strided_slice %498 {offsets = [0, 0], sizes = [16, 512], strides = [1, 1]} : vector<16x768xf32> to vector<16x512xf32>
    %500 = vector.extract_strided_slice %467 {offsets = [0, 0], sizes = [16, 512], strides = [1, 1]} : vector<16x768xf32> to vector<16x512xf32>
    %501 = arith.addf %499, %500 : vector<16x512xf32>
    %502 = arith.negf %501 : vector<16x512xf32>
    %503 = math.exp %502 : vector<16x512xf32>
    %cst_169 = arith.constant 1.000000e+00 : f32
    %504 = vector.broadcast %cst_169 : f32 to vector<16x512xf32>
    %505 = arith.addf %504, %503 : vector<16x512xf32>
    %506 = arith.divf %504, %505 : vector<16x512xf32>
    %507 = vector.extract_strided_slice %506 {offsets = [0, 0], sizes = [16, 256], strides = [1, 1]} : vector<16x512xf32> to vector<16x256xf32>
    %508 = vector.extract_strided_slice %506 {offsets = [0, 256], sizes = [16, 256], strides = [1, 1]} : vector<16x512xf32> to vector<16x256xf32>
    %509 = vector.extract_strided_slice %498 {offsets = [0, 512], sizes = [16, 256], strides = [1, 1]} : vector<16x768xf32> to vector<16x256xf32>
    %510 = vector.extract_strided_slice %467 {offsets = [0, 512], sizes = [16, 256], strides = [1, 1]} : vector<16x768xf32> to vector<16x256xf32>
    %511 = vector.broadcast %30 : vector<1x256xf32> to vector<16x256xf32>
    %512 = arith.addf %510, %511 : vector<16x256xf32>
    %513 = arith.mulf %507, %512 : vector<16x256xf32>
    %514 = arith.addf %509, %513 : vector<16x256xf32>
    %515 = math.tanh %514 : vector<16x256xf32>
    %cst_170 = arith.constant 1.000000e+00 : f32
    %516 = vector.broadcast %cst_170 : f32 to vector<16x256xf32>
    %517 = arith.subf %516, %508 : vector<16x256xf32>
    %518 = arith.mulf %517, %515 : vector<16x256xf32>
    %519 = arith.mulf %508, %459 : vector<16x256xf32>
    %520 = arith.addf %518, %519 : vector<16x256xf32>
    %c8_i32 = arith.constant 8 : i32
    %c0_171 = arith.constant 0 : index
    %c0_172 = arith.constant 0 : index
    %521 = vector.load %arg12[%c0_171, %c0_172] : memref<16x256xf32, #tpu.memory_space<vmem>>, vector<16x256xf32>
    tpu.vector_store %arg12[%c0_171, %c0_172], %497 {strides = array<i32>} : memref<16x256xf32, #tpu.memory_space<vmem>>, vector<16x256xf32>,
    %c0_173 = arith.constant 0 : index
    %c0_174 = arith.constant 0 : index
    %522 = vector.load %arg13[%c0_173, %c0_174] : memref<16x256xf32, #tpu.memory_space<vmem>>, vector<16x256xf32>
    tpu.vector_store %arg13[%c0_173, %c0_174], %520 {strides = array<i32>} : memref<16x256xf32, #tpu.memory_space<vmem>>, vector<16x256xf32>,
    %c0_i32_175 = arith.constant 0 : i32
    %523 = arith.cmpi eq, %arg0, %c0_i32_175 : i32
    %524 = arith.extui %523 : i1 to i32
    %c0_i32_176 = arith.constant 0 : i32
    %525 = arith.cmpi ne, %524, %c0_i32_176 : i32
    scf.if %525 {
      %526 = tpu.concatenate %497, %520 in 1 : vector<16x256xf32>, vector<16x256xf32> -> vector<16x512xf32>
      %527 = arith.truncf %526 : vector<16x512xf32> to vector<16x512xbf16>
      %c0_177 = arith.constant 0 : index
      %c0_178 = arith.constant 0 : index
      %528 = vector.load %arg7[%c0_177, %c0_178] : memref<512x128xbf16, #tpu.memory_space<vmem>>, vector<512x128xbf16>
      %cst_179 = arith.constant dense<0.000000e+00> : vector<16x128xf32>
      %529 = tpu.matmul %527, %528, %cst_179 {dimension_numbers = #tpu.dot_dimension_numbers<[1], [0], [0], [1], [0, 0, 1, 1], [], []>} : vector<16x512xbf16>, vector<512x128xbf16>, vector<16x128xf32> -> vector<16x128xf32>
      %c0_180 = arith.constant 0 : index
      %c0_181 = arith.constant 0 : index
      %530 = vector.load %arg8[%c0_180, %c0_181] : memref<1x128xf32, #tpu.memory_space<vmem>>, vector<1x128xf32>
      %531 = vector.broadcast %530 : vector<1x128xf32> to vector<16x128xf32>
      %532 = arith.addf %529, %531 : vector<16x128xf32>
      %c0_182 = arith.constant 0 : index
      %c0_183 = arith.constant 0 : index
      %533 = vector.load %arg9[%c0_182, %c0_183] : memref<16x128xf32, #tpu.memory_space<vmem>>, vector<16x128xf32>
      tpu.vector_store %arg9[%c0_182, %c0_183], %532 {strides = array<i32>} : memref<16x128xf32, #tpu.memory_space<vmem>>, vector<16x128xf32>,
    } else {
    }
    return
  }
  func.func @transform_0(%arg0: i32) -> (i32, i32, i32) {
    %c0_i32 = arith.constant 0 : i32
    %c0_i32_0 = arith.constant 0 : i32
    %c0_i32_1 = arith.constant 0 : i32
    return %arg0, %c0_i32, %c0_i32_0 : i32, i32, i32
  }
  func.func @transform_1(%arg0: i32) -> (i32, i32, i32) {
    %c0_i32 = arith.constant 0 : i32
    %0 = arith.subi %c0_i32, %arg0 : i32
    %c0_i32_0 = arith.constant 0 : i32
    %c0_i32_1 = arith.constant 0 : i32
    %c0_i32_2 = arith.constant 0 : i32
    return %0, %c0_i32_0, %c0_i32_1 : i32, i32, i32
  }
  func.func @transform_2(%arg0: i32) -> (i32, i32, i32) {
    %c0_i32 = arith.constant 0 : i32
    %c0_i32_0 = arith.constant 0 : i32
    %c0_i32_1 = arith.constant 0 : i32
    %c0_i32_2 = arith.constant 0 : i32
    return %c0_i32, %c0_i32_0, %c0_i32_1 : i32, i32, i32
  }
  func.func @transform_3(%arg0: i32) -> (i32, i32, i32) {
    %c0_i32 = arith.constant 0 : i32
    %c0_i32_0 = arith.constant 0 : i32
    %c0_i32_1 = arith.constant 0 : i32
    %c0_i32_2 = arith.constant 0 : i32
    return %c0_i32, %c0_i32_0, %c0_i32_1 : i32, i32, i32
  }
  func.func @transform_4(%arg0: i32) -> (i32, i32, i32) {
    %c0_i32 = arith.constant 0 : i32
    %c0_i32_0 = arith.constant 0 : i32
    %c0_i32_1 = arith.constant 0 : i32
    %c0_i32_2 = arith.constant 0 : i32
    return %c0_i32, %c0_i32_0, %c0_i32_1 : i32, i32, i32
  }
  func.func @transform_5(%arg0: i32) -> (i32, i32, i32) {
    %c0_i32 = arith.constant 0 : i32
    %c0_i32_0 = arith.constant 0 : i32
    %c0_i32_1 = arith.constant 0 : i32
    %c0_i32_2 = arith.constant 0 : i32
    return %c0_i32, %c0_i32_0, %c0_i32_1 : i32, i32, i32
  }
  func.func @transform_6(%arg0: i32) -> (i32, i32) {
    %c0_i32 = arith.constant 0 : i32
    %c0_i32_0 = arith.constant 0 : i32
    %c0_i32_1 = arith.constant 0 : i32
    return %c0_i32, %c0_i32_0 : i32, i32
  }
  func.func @transform_7(%arg0: i32) -> (i32, i32) {
    %c0_i32 = arith.constant 0 : i32
    %c0_i32_0 = arith.constant 0 : i32
    %c0_i32_1 = arith.constant 0 : i32
    return %c0_i32, %c0_i32_0 : i32, i32
  }
  func.func @transform_8(%arg0: i32) -> (i32, i32) {
    %c0_i32 = arith.constant 0 : i32
    %c0_i32_0 = arith.constant 0 : i32
    %c0_i32_1 = arith.constant 0 : i32
    return %c0_i32, %c0_i32_0 : i32, i32
  }
}

</mosaic_0001>

<bundles_post_ra>
// kernel: gru_rnn_forward.1
= control target key start
LH: loop header
LB: loop body
LE: loop exit
PB: predicated region body
PF: predicated region fallthrough
CT: control target
= control target key end

     0   :  { %s18478_s2 = inlined_call_operand.vmem [shape: bf16[2,256,768], index: 2, kind: input, shape index: {}]   ;;  %s18479_s0 = inlined_call_operand.vmem [shape: bf16[8,16,256], index: 0, kind: input, shape index: {}, may-alias: {0,1}]   ;;  %s18480_s1 = inlined_call_operand.vmem [shape: bf16[8,16,256], index: 1, kind: input, shape index: {}, may-alias: {0,1}]   ;;  %s18481_s3 = inlined_call_operand.vmem [shape: bf16[2,256,768], index: 3, kind: input, shape index: {}]   ;;  %s18482_s4 = inlined_call_operand.vmem [shape: f32[2,1,768], index: 4, kind: input, shape index: {}]   ;;  %s18483_s5 = inlined_call_operand.vmem [shape: f32[2,1,256], index: 5, kind: input, shape index: {}]   ;;  %s18484_s6 = inlined_call_operand.vmem [shape: bf16[512,128], index: 6, kind: input, shape index: {}]   ;;  %s18485_s7 = inlined_call_operand.vmem [shape: f32[1,128], index: 7, kind: input, shape index: {}]   ;;  %s18486_s8 = inlined_call_operand.vmem [shape: f32[16,128], index: 8, kind: output, shape index: {}]  }
   0x1   :  { %v9199_v0 = vld [vmem:[%s18478_s2 + $0x154] ss:$24 sps:$4 sm:$0xff]   ;;  %v9203_v2 = vld [vmem:[%s18478_s2 + $0x150] ss:$24 sps:$4 sm:$0xff]   ;;  %v9205_v4 = vld [vmem:[%s18478_s2 + $0x124] ss:$24 sps:$4 sm:$0xff]  }
   0x2   :  { %v9201_v1 = vld [vmem:[%s18478_s2 + $0x15c] ss:$24 sps:$4 sm:$0xff]   ;;  %787 = vmatprep.subr.bf16.mxu0 %v9199_v0  ;;  %v9204_v3 = vld [vmem:[%s18478_s2 + $0x158] ss:$24 sps:$4 sm:$0xff]   ;;  %v9207_v5 = vld [vmem:[%s18478_s2 + $0x12c] ss:$24 sps:$4 sm:$0xff]  }
   0x3   :  { %900 = vmatprep.subr.bf16.mxu1 %v9201_v1  ;;  %788 = vmatpush1.bf16.msra.mxu0 %v9203_v2  ;;  %v9209_v6 = vld [vmem:[%s18478_s2 + $0x120] ss:$24 sps:$4 sm:$0xff]   ;;  %v9211_v8 = vld [vmem:[%s18478_s2 + $0xf4] ss:$24 sps:$4 sm:$0xff]   ;;  %v9215_v10 = vld [vmem:[%s18478_s2 + $0xf0] ss:$24 sps:$4 sm:$0xff]  }
   0x4   :  { %901 = vmatpush1.bf16.msra.mxu1 %v9204_v3  ;;  %789 = vmatprep.subr.bf16.mxu0 %v9205_v4  ;;  %v9210_v7 = vld [vmem:[%s18478_s2 + $0x128] ss:$24 sps:$4 sm:$0xff]   ;;  %v9213_v9 = vld [vmem:[%s18478_s2 + $0xfc] ss:$24 sps:$4 sm:$0xff]   ;;  %v9216_v11 = vld [vmem:[%s18478_s2 + $0xf8] ss:$24 sps:$4 sm:$0xff]  }
   0x5   :  { %902 = vmatprep.subr.bf16.mxu1 %v9207_v5  ;;  %v9217_v12 = vld [vmem:[%s18478_s2 + $0xc4] ss:$24 sps:$4 sm:$0xff]   ;;  %v9221_v14 = vld [vmem:[%s18478_s2 + $0xc0] ss:$24 sps:$4 sm:$0xff]   ;;  %v9223_v16 = vld [vmem:[%s18478_s2 + $0x94] ss:$24 sps:$4 sm:$0xff]  }
   0x6   :  { %v9219_v13 = vld [vmem:[%s18478_s2 + $0xcc] ss:$24 sps:$4 sm:$0xff]   ;;  %v9222_v15 = vld [vmem:[%s18478_s2 + $0xc8] ss:$24 sps:$4 sm:$0xff]   ;;  %v9225_v17 = vld [vmem:[%s18478_s2 + $0x9c] ss:$24 sps:$4 sm:$0xff]  }
   0x7   :  { %790 = vmatpush1.bf16.msra.mxu0 %v9209_v6  ;;  %v9227_v18 = vld [vmem:[%s18478_s2 + $0x90] ss:$24 sps:$4 sm:$0xff]   ;;  %v9229_v20 = vld [vmem:[%s18478_s2 + $0x64] ss:$24 sps:$4 sm:$0xff]   ;;  %v9233_v22 = vld [vmem:[%s18478_s2 + $0x60] ss:$24 sps:$4 sm:$0xff]  }
   0x8   :  { %903 = vmatpush1.bf16.msra.mxu1 %v9210_v7  ;;  %791 = vmatprep.subr.bf16.mxu0 %v9211_v8  ;;  %v9228_v19 = vld [vmem:[%s18478_s2 + $0x98] ss:$24 sps:$4 sm:$0xff]   ;;  %v9231_v21 = vld [vmem:[%s18478_s2 + $0x6c] ss:$24 sps:$4 sm:$0xff]   ;;  %v9234_v23 = vld [vmem:[%s18478_s2 + $0x68] ss:$24 sps:$4 sm:$0xff]  }
   0x9   :  { %904 = vmatprep.subr.bf16.mxu1 %v9213_v9  ;;  %v9235_v24 = vld [vmem:[%s18478_s2 + $0x34] ss:$24 sps:$4 sm:$0xff]   ;;  %v9239_v26 = vld [vmem:[%s18478_s2 + $0x30] ss:$24 sps:$4 sm:$0xff]   ;;  %v9241_v28 = vld [vmem:[%s18478_s2 + $0x4] ss:$24 sps:$4 sm:$0xff]  }
   0xa   :  { %v9237_v25 = vld [vmem:[%s18478_s2 + $0x3c] ss:$24 sps:$4 sm:$0xff]   ;;  %v9240_v27 = vld [vmem:[%s18478_s2 + $0x38] ss:$24 sps:$4 sm:$0xff]   ;;  %v9243_v29 = vld [vmem:[%s18478_s2 + $0xc] ss:$24 sps:$4 sm:$0xff]  }
   0xb   :  { %792 = vmatpush1.bf16.msra.mxu0 %v9215_v10  ;;  %v9245_v30 = vld [vmem:[%s18478_s2] ss:$24 sps:$4 sm:$0xff]   ;;  %v9247_v32 = vld [vmem:[%s18478_s2 + $0x2d4] ss:$24 sps:$4 sm:$0xff]   ;;  %v9251_v34 = vld [vmem:[%s18478_s2 + $0x2d0] ss:$24 sps:$4 sm:$0xff]  }
   0xc   :  { %905 = vmatpush1.bf16.msra.mxu1 %v9216_v11  ;;  %793 = vmatprep.subr.bf16.mxu0 %v9217_v12  ;;  %v9246_v31 = vld [vmem:[%s18478_s2 + $0x8] ss:$24 sps:$4 sm:$0xff]   ;;  %v9249_v33 = vld [vmem:[%s18478_s2 + $0x2dc] ss:$24 sps:$4 sm:$0xff]   ;;  %v9252_v35 = vld [vmem:[%s18478_s2 + $0x2d8] ss:$24 sps:$4 sm:$0xff]  }
   0xd   :  { %906 = vmatprep.subr.bf16.mxu1 %v9219_v13  ;;  %v9253_v36 = vld [vmem:[%s18478_s2 + $0x2a4] ss:$24 sps:$4 sm:$0xff]   ;;  %v9257_v38 = vld [vmem:[%s18478_s2 + $0x2a0] ss:$24 sps:$4 sm:$0xff]   ;;  %v9259_v40 = vld [vmem:[%s18478_s2 + $0x274] ss:$24 sps:$4 sm:$0xff]  }
   0xe   :  { %v9255_v37 = vld [vmem:[%s18478_s2 + $0x2ac] ss:$24 sps:$4 sm:$0xff]   ;;  %v9258_v39 = vld [vmem:[%s18478_s2 + $0x2a8] ss:$24 sps:$4 sm:$0xff]   ;;  %v9261_v41 = vld [vmem:[%s18478_s2 + $0x27c] ss:$24 sps:$4 sm:$0xff]  }
   0xf   :  { %794 = vmatpush1.bf16.msra.mxu0 %v9221_v14  ;;  %v9263_v42 = vld [vmem:[%s18478_s2 + $0x270] ss:$24 sps:$4 sm:$0xff]   ;;  %v9265_v44 = vld [vmem:[%s18478_s2 + $0x244] ss:$24 sps:$4 sm:$0xff]   ;;  %v9269_v46 = vld [vmem:[%s18478_s2 + $0x240] ss:$24 sps:$4 sm:$0xff]  }
  0x10   :  { %907 = vmatpush1.bf16.msra.mxu1 %v9222_v15  ;;  %795 = vmatprep.subr.bf16.mxu0 %v9223_v16  ;;  %v9264_v43 = vld [vmem:[%s18478_s2 + $0x278] ss:$24 sps:$4 sm:$0xff]   ;;  %v9267_v45 = vld [vmem:[%s18478_s2 + $0x24c] ss:$24 sps:$4 sm:$0xff]   ;;  %v9270_v47 = vld [vmem:[%s18478_s2 + $0x248] ss:$24 sps:$4 sm:$0xff]  }
  0x11   :  { %908 = vmatprep.subr.bf16.mxu1 %v9225_v17  ;;  %v11456_v48 = vld [vmem:[%s18479_s0 + $0x4] ss:$8 sps:$4 sm:$0xff]   ;;  %v9273_v50 = vld [vmem:[%s18478_s2 + $0x21c] ss:$24 sps:$4 sm:$0xff]   ;;  %v9275_v51 = vld [vmem:[%s18478_s2 + $0x210] ss:$24 sps:$4 sm:$0xff]  }
  0x12   :  { %v9271_v49 = vld [vmem:[%s18478_s2 + $0x214] ss:$24 sps:$4 sm:$0xff]   ;;  %819 = vmatprep.mubr.bf16.mxu0 %v11456_v48  ;;  %932 = vmatprep.mubr.bf16.mxu1 %v11456_v48  ;;  %v9276_v52 = vld [vmem:[%s18478_s2 + $0x218] ss:$24 sps:$4 sm:$0xff]   ;;  %v9277_v53 = vld [vmem:[%s18478_s2 + $0x1e4] ss:$24 sps:$4 sm:$0xff]  }
  0x13   :  { %796 = vmatpush1.bf16.msra.mxu0 %v9227_v18  ;;  %v9279_v54 = vld [vmem:[%s18478_s2 + $0x1ec] ss:$24 sps:$4 sm:$0xff]   ;;  %v9281_v55 = vld [vmem:[%s18478_s2 + $0x1e0] ss:$24 sps:$4 sm:$0xff]   ;;  %v9285_v58 = vld [vmem:[%s18478_s2 + $0x1bc] ss:$24 sps:$4 sm:$0xff]  }
  0x14   :  { %909 = vmatpush1.bf16.msra.mxu1 %v9228_v19  ;;  %797 = vmatprep.subr.bf16.mxu0 %v9229_v20  ;;  %v9282_v56 = vld [vmem:[%s18478_s2 + $0x1e8] ss:$24 sps:$4 sm:$0xff]   ;;  %v9283_v57 = vld [vmem:[%s18478_s2 + $0x1b4] ss:$24 sps:$4 sm:$0xff]   ;;  %v9288_v60 = vld [vmem:[%s18478_s2 + $0x1b8] ss:$24 sps:$4 sm:$0xff]  }
  0x15   :  { %910 = vmatprep.subr.bf16.mxu1 %v9231_v21  ;;  %v9287_v59 = vld [vmem:[%s18478_s2 + $0x1b0] ss:$24 sps:$4 sm:$0xff]   ;;  %v9289_v61 = vld [vmem:[%s18478_s2 + $0x184] ss:$24 sps:$4 sm:$0xff]   ;;  %v9293_v63 = vld [vmem:[%s18478_s2 + $0x180] ss:$24 sps:$4 sm:$0xff]  }
  0x16   :  { %v9291_v62 = vld [vmem:[%s18478_s2 + $0x18c] ss:$24 sps:$4 sm:$0xff]   ;;  %v9294_v0 = vld [vmem:[%s18478_s2 + $0x188] ss:$24 sps:$4 sm:$0xff]   ;;  %v11534_v8 = vld [vmem:[%s18479_s0 + $0x14] ss:$8 sps:$4 sm:$0xff]  }
  0x17   :  { %798 = vmatpush1.bf16.msra.mxu0 %v9233_v22  ;;  %v9300_v1 = vld [vmem:[%s18478_s2 + $0x164] ss:$24 sps:$4 sm:$0xff]   ;;  %v9303_v2 = vld [vmem:[%s18478_s2 + $0x454] ss:$24 sps:$4 sm:$0xff]   ;;  %v11517_v3 = vld [vmem:[%s18479_s0] ss:$8 sps:$4 sm:$0xff]  }
  0x18   :  { %911 = vmatpush1.bf16.msra.mxu1 %v9234_v23  ;;  %799 = vmatprep.subr.bf16.mxu0 %v9235_v24  ;;  %v9298_v4 = vld [vmem:[%s18478_s2 + $0x160] ss:$24 sps:$4 sm:$0xff]   ;;  %v9301_v5 = vld [vmem:[%s18478_s2 + $0x450] ss:$24 sps:$4 sm:$0xff]   ;;  %v9306_v6 = vld [vmem:[%s18478_s2 + $0x134] ss:$24 sps:$4 sm:$0xff]  }
  0x19   :  { %912 = vmatprep.subr.bf16.mxu1 %v9237_v25  ;;  %v9309_v7 = vld [vmem:[%s18478_s2 + $0x424] ss:$24 sps:$4 sm:$0xff]   ;;  %v9304_v9 = vld [vmem:[%s18478_s2 + $0x130] ss:$24 sps:$4 sm:$0xff]   ;;  %v9307_v10 = vld [vmem:[%s18478_s2 + $0x420] ss:$24 sps:$4 sm:$0xff]  }
  0x1a   :  { %v9315_v11 = vld [vmem:[%s18478_s2 + $0x104] ss:$24 sps:$4 sm:$0xff]   ;;  %v9318_v12 = vld [vmem:[%s18478_s2 + $0x3f4] ss:$24 sps:$4 sm:$0xff]   ;;  %v11555_v13 = vld [vmem:[%s18479_s0 + $0x10] ss:$8 sps:$4 sm:$0xff]  }
  0x1b   :  { %800 = vmatpush1.bf16.msra.mxu0 %v9239_v26  ;;  %v9313_v14 = vld [vmem:[%s18478_s2 + $0x100] ss:$24 sps:$4 sm:$0xff]   ;;  %v9316_v15 = vld [vmem:[%s18478_s2 + $0x3f0] ss:$24 sps:$4 sm:$0xff]   ;;  %v9321_v16 = vld [vmem:[%s18478_s2 + $0xd4] ss:$24 sps:$4 sm:$0xff]  }
  0x1c   :  { %913 = vmatpush1.bf16.msra.mxu1 %v9240_v27  ;;  %801 = vmatprep.subr.bf16.mxu0 %v9241_v28  ;;  %v9324_v17 = vld [vmem:[%s18478_s2 + $0x3c4] ss:$24 sps:$4 sm:$0xff]   ;;  %v9319_v19 = vld [vmem:[%s18478_s2 + $0xd0] ss:$24 sps:$4 sm:$0xff]   ;;  %v9322_v20 = vld [vmem:[%s18478_s2 + $0x3c0] ss:$24 sps:$4 sm:$0xff]  }
  0x1d   :  { %914 = vmatprep.subr.bf16.mxu1 %v9243_v29  ;;  %v11572_v18 = vld [vmem:[%s18479_s0 + $0x24] ss:$8 sps:$4 sm:$0xff]   ;;  %v11593_v23 = vld [vmem:[%s18479_s0 + $0x20] ss:$8 sps:$4 sm:$0xff]   ;;  %v11610_v28 = vld [vmem:[%s18479_s0 + $0x34] ss:$8 sps:$4 sm:$0xff]  }
  0x1e   :  { %v9330_v21 = vld [vmem:[%s18478_s2 + $0xa4] ss:$24 sps:$4 sm:$0xff]   ;;  %v9333_v22 = vld [vmem:[%s18478_s2 + $0x394] ss:$24 sps:$4 sm:$0xff]   ;;  %v9328_v24 = vld [vmem:[%s18478_s2 + $0xa0] ss:$24 sps:$4 sm:$0xff]  }
  0x1f   :  { %802 = vmatpush1.bf16.msra.mxu0 %v9245_v30  ;;  %v9331_v25 = vld [vmem:[%s18478_s2 + $0x390] ss:$24 sps:$4 sm:$0xff]   ;;  %v9336_v26 = vld [vmem:[%s18478_s2 + $0x74] ss:$24 sps:$4 sm:$0xff]   ;;  %v9339_v27 = vld [vmem:[%s18478_s2 + $0x364] ss:$24 sps:$4 sm:$0xff]  }
  0x20   :  { %915 = vmatpush1.bf16.msra.mxu1 %v9246_v31  ;;  %803 = vmatprep.subr.bf16.mxu0 %v9247_v32  ;;  %v9334_v29 = vld [vmem:[%s18478_s2 + $0x70] ss:$24 sps:$4 sm:$0xff]   ;;  %v9337_v30 = vld [vmem:[%s18478_s2 + $0x360] ss:$24 sps:$4 sm:$0xff]   ;;  %v9345_v31 = vld [vmem:[%s18478_s2 + $0x44] ss:$24 sps:$4 sm:$0xff]  }
  0x21   :  { %916 = vmatprep.subr.bf16.mxu1 %v9249_v33  ;;  %v9348_v32 = vld [vmem:[%s18478_s2 + $0x334] ss:$24 sps:$4 sm:$0xff]   ;;  %v11631_v33 = vld [vmem:[%s18479_s0 + $0x30] ss:$8 sps:$4 sm:$0xff]  }
  0x23   :  { %804 = vmatpush2.bf16.msra.mxu0 %v9251_v34  ;;  %v9343_v34 = vld [vmem:[%s18478_s2 + $0x40] ss:$24 sps:$4 sm:$0xff]  }
  0x24   :  { %917 = vmatpush2.bf16.msra.mxu1 %v9252_v35  ;;  %805 = vmatprep.subr.bf16.mxu0 %v9253_v36  ;;  %v9346_v35 = vld [vmem:[%s18478_s2 + $0x330] ss:$24 sps:$4 sm:$0xff]   ;;  %v9351_v36 = vld [vmem:[%s18478_s2 + $0x14] ss:$24 sps:$4 sm:$0xff]  }
  0x25   :  { %918 = vmatprep.subr.bf16.mxu1 %v9255_v37  ;;  %v9354_v37 = vld [vmem:[%s18478_s2 + $0x304] ss:$24 sps:$4 sm:$0xff]  }
  0x27   :  { %806 = vmatpush2.bf16.msra.mxu0 %v9257_v38  ;;  %v11648_v38 = vld [vmem:[%s18479_s0 + $0x44] ss:$8 sps:$4 sm:$0xff]  }
  0x28   :  { %919 = vmatpush2.bf16.msra.mxu1 %v9258_v39  ;;  %807 = vmatprep.subr.bf16.mxu0 %v9259_v40  ;;  %v9349_v39 = vld [vmem:[%s18478_s2 + $0x10] ss:$24 sps:$4 sm:$0xff]   ;;  %v9352_v40 = vld [vmem:[%s18478_s2 + $0x300] ss:$24 sps:$4 sm:$0xff]  }
  0x29   :  { %920 = vmatprep.subr.bf16.mxu1 %v9261_v41  ;;  %v9360_v41 = vld [vmem:[%s18478_s2 + $0x2e4] ss:$24 sps:$4 sm:$0xff]  }
  0x2b   :  { %808 = vmatpush2.bf16.msra.mxu0 %v9263_v42  ;;  %v9363_v42 = vld [vmem:[%s18478_s2 + $0x5d4] ss:$24 sps:$4 sm:$0xff]  }
  0x2c   :  { %921 = vmatpush2.bf16.msra.mxu1 %v9264_v43  ;;  %809 = vmatprep.subr.bf16.mxu0 %v9265_v44  ;;  %v11669_v43 = vld [vmem:[%s18479_s0 + $0x40] ss:$8 sps:$4 sm:$0xff]  }
  0x2d   :  { %922 = vmatprep.subr.bf16.mxu1 %v9267_v45  ;;  %v9358_v44 = vld [vmem:[%s18478_s2 + $0x2e0] ss:$24 sps:$4 sm:$0xff]   ;;  %v9361_v45 = vld [vmem:[%s18478_s2 + $0x5d0] ss:$24 sps:$4 sm:$0xff]  }
  0x2f   :  { %810 = vmatpush2.bf16.msra.mxu0 %v9269_v46  ;;  %v9366_v46 = vld [vmem:[%s18478_s2 + $0x2b4] ss:$24 sps:$4 sm:$0xff]  }
  0x30   :  { %923 = vmatpush2.bf16.msra.mxu1 %v9270_v47  ;;  %811 = vmatprep.subr.bf16.mxu0 %v9271_v49  ;;  %v9369_v47 = vld [vmem:[%s18478_s2 + $0x5a4] ss:$24 sps:$4 sm:$0xff]  }
  0x31   :  { %924 = vmatprep.subr.bf16.mxu1 %v9273_v50  ;;  %v11686_v49 = vld [vmem:[%s18479_s0 + $0x54] ss:$8 sps:$4 sm:$0xff]   ;;  %v9364_v50 = vld [vmem:[%s18478_s2 + $0x2b0] ss:$24 sps:$4 sm:$0xff]  }
  0x33   :  { %812 = vmatpush2.bf16.msra.mxu0 %v9275_v51  ;;  %v9367_v51 = vld [vmem:[%s18478_s2 + $0x5a0] ss:$24 sps:$4 sm:$0xff]  }
  0x34   :  { %925 = vmatpush2.bf16.msra.mxu1 %v9276_v52  ;;  %813 = vmatprep.subr.bf16.mxu0 %v9277_v53  ;;  %v9375_v52 = vld [vmem:[%s18478_s2 + $0x284] ss:$24 sps:$4 sm:$0xff]   ;;  %v9378_v53 = vld [vmem:[%s18478_s2 + $0x574] ss:$24 sps:$4 sm:$0xff]  }
  0x35   :  { %926 = vmatprep.subr.bf16.mxu1 %v9279_v54  ;;  %v11707_v54 = vld [vmem:[%s18479_s0 + $0x50] ss:$8 sps:$4 sm:$0xff]  }
  0x37   :  { %814 = vmatpush2.bf16.msra.mxu0 %v9281_v55  ;;  %v9373_v55 = vld [vmem:[%s18478_s2 + $0x280] ss:$24 sps:$4 sm:$0xff]  }
  0x38   :  { %927 = vmatpush2.bf16.msra.mxu1 %v9282_v56  ;;  %815 = vmatprep.subr.bf16.mxu0 %v9283_v57  ;;  %v9376_v56 = vld [vmem:[%s18478_s2 + $0x570] ss:$24 sps:$4 sm:$0xff]   ;;  %v9381_v57 = vld [vmem:[%s18478_s2 + $0x254] ss:$24 sps:$4 sm:$0xff]  }
  0x39   :  { %928 = vmatprep.subr.bf16.mxu1 %v9285_v58  ;;  %v9384_v58 = vld [vmem:[%s18478_s2 + $0x544] ss:$24 sps:$4 sm:$0xff]  }
  0x3b   :  { %816 = vmatpush2.bf16.msra.mxu0 %v9287_v59  ;;  %v11724_v59 = vld [vmem:[%s18479_s0 + $0x64] ss:$8 sps:$4 sm:$0xff]  }
  0x3c   :  { %929 = vmatpush2.bf16.msra.mxu1 %v9288_v60  ;;  %817 = vmatprep.subr.bf16.mxu0 %v9289_v61  ;;  %v9379_v60 = vld [vmem:[%s18478_s2 + $0x250] ss:$24 sps:$4 sm:$0xff]   ;;  %v9382_v61 = vld [vmem:[%s18478_s2 + $0x540] ss:$24 sps:$4 sm:$0xff]  }
  0x3d   :  { %930 = vmatprep.subr.bf16.mxu1 %v9291_v62  ;;  %v9390_v62 = vld [vmem:[%s18478_s2 + $0x224] ss:$24 sps:$4 sm:$0xff]  }
  0x3f   :  { %818 = vmatpush2.bf16.msra.mxu0 %v9293_v63  ;;  %v9393_v63 = vld [vmem:[%s18478_s2 + $0x514] ss:$24 sps:$4 sm:$0xff]  }
  0x40   :  { %931 = vmatpush2.bf16.msra.mxu1 %v9294_v0  ;;  %1013 = vmatprep.subr.bf16.mxu0 %v9300_v1  ;;  %v11745_v0 = vld [vmem:[%s18479_s0 + $0x60] ss:$8 sps:$4 sm:$0xff]  }
  0x41   :  { %1816 = vmatprep.subr.bf16.mxu1 %v9303_v2  ;;  %v9388_v1 = vld [vmem:[%s18478_s2 + $0x220] ss:$24 sps:$4 sm:$0xff]   ;;  %v9391_v2 = vld [vmem:[%s18478_s2 + $0x510] ss:$24 sps:$4 sm:$0xff]  }
  0x42   :  { %820 = vmatmul.mubr.bf16.vlgmr.msra.gmra.mxu0 %v11517_v3 }
  0x43   :  { %933 = vmatmul.mubr.bf16.vlgmr.msra.gmra.mxu1 %v11517_v3  ;;  %1014 = vmatpush1.bf16.msra.mxu0 %v9298_v4  ;;  %v9396_v4 = vld [vmem:[%s18478_s2 + $0x1f4] ss:$24 sps:$4 sm:$0xff]  }
  0x44   :  { %1817 = vmatpush1.bf16.msra.mxu1 %v9301_v5  ;;  %1015 = vmatprep.subr.bf16.mxu0 %v9306_v6  ;;  %v9399_v5 = vld [vmem:[%s18478_s2 + $0x4e4] ss:$24 sps:$4 sm:$0xff]  }
  0x45   :  { %1818 = vmatprep.subr.bf16.mxu1 %v9309_v7  ;;  %829 = vmatprep.mubr.bf16.mxu0 %v11534_v8  ;;  %v11762_v6 = vld [vmem:[%s18479_s0 + $0x74] ss:$8 sps:$4 sm:$0xff]   ;;  %v9394_v7 = vld [vmem:[%s18478_s2 + $0x1f0] ss:$24 sps:$4 sm:$0xff]  }
  0x46   :  { %942 = vmatprep.mubr.bf16.mxu1 %v11534_v8 }
  0x47   :  { %1016 = vmatpush1.bf16.msra.mxu0 %v9304_v9  ;;  %v9397_v9 = vld [vmem:[%s18478_s2 + $0x4e0] ss:$24 sps:$4 sm:$0xff]  }
  0x48   :  { %1819 = vmatpush1.bf16.msra.mxu1 %v9307_v10  ;;  %1017 = vmatprep.subr.bf16.mxu0 %v9315_v11  ;;  %v9405_v10 = vld [vmem:[%s18478_s2 + $0x1c4] ss:$24 sps:$4 sm:$0xff]   ;;  %v9408_v11 = vld [vmem:[%s18478_s2 + $0x4b4] ss:$24 sps:$4 sm:$0xff]  }
  0x49   :  { %1820 = vmatprep.subr.bf16.mxu1 %v9318_v12  ;;  %v11783_v12 = vld [vmem:[%s18479_s0 + $0x70] ss:$8 sps:$4 sm:$0xff]  }
  0x4a   :  { %830 = vmatmul.mubr.bf16.gmra.mxu0 %v11555_v13 }
  0x4b   :  { %943 = vmatmul.mubr.bf16.gmra.mxu1 %v11555_v13  ;;  %1018 = vmatpush1.bf16.msra.mxu0 %v9313_v14  ;;  %v9403_v14 = vld [vmem:[%s18478_s2 + $0x1c0] ss:$24 sps:$4 sm:$0xff]  }
  0x4c   :  { %1821 = vmatpush1.bf16.msra.mxu1 %v9316_v15  ;;  %1019 = vmatprep.subr.bf16.mxu0 %v9321_v16  ;;  %v9406_v15 = vld [vmem:[%s18478_s2 + $0x4b0] ss:$24 sps:$4 sm:$0xff]   ;;  %v9411_v16 = vld [vmem:[%s18478_s2 + $0x194] ss:$24 sps:$4 sm:$0xff]  }
  0x4d   :  { %1822 = vmatprep.subr.bf16.mxu1 %v9324_v17  ;;  %839 = vmatprep.mubr.bf16.mxu0 %v11572_v18  ;;  %v9414_v17 = vld [vmem:[%s18478_s2 + $0x484] ss:$24 sps:$4 sm:$0xff]  }
  0x4e   :  { %952 = vmatprep.mubr.bf16.mxu1 %v11572_v18 }
  0x4f   :  { %1020 = vmatpush1.bf16.msra.mxu0 %v9319_v19  ;;  %v11800_v19 = vld [vmem:[%s18480_s1 + $0x4] ss:$8 sps:$4 sm:$0xff]  }
  0x50   :  { %1823 = vmatpush1.bf16.msra.mxu1 %v9322_v20  ;;  %1021 = vmatprep.subr.bf16.mxu0 %v9330_v21  ;;  %v9409_v20 = vld [vmem:[%s18478_s2 + $0x190] ss:$24 sps:$4 sm:$0xff]   ;;  %v9412_v21 = vld [vmem:[%s18478_s2 + $0x480] ss:$24 sps:$4 sm:$0xff]  }
  0x51   :  { %1824 = vmatprep.subr.bf16.mxu1 %v9333_v22  ;;  %v9420_v22 = vld [vmem:[%s18478_s2 + $0x45c] ss:$24 sps:$4 sm:$0xff]  }
  0x52   :  { %840 = vmatmul.mubr.bf16.gmra.mxu0 %v11593_v23 }
  0x53   :  { %953 = vmatmul.mubr.bf16.gmra.mxu1 %v11593_v23  ;;  %1022 = vmatpush1.bf16.msra.mxu0 %v9328_v24  ;;  %v9423_v24 = vld [vmem:[%s18478_s2 + $0x464] ss:$24 sps:$4 sm:$0xff]  }
  0x54   :  { %1825 = vmatpush1.bf16.msra.mxu1 %v9331_v25  ;;  %1023 = vmatprep.subr.bf16.mxu0 %v9336_v26  ;;  %v11820_v25 = vld [vmem:[%s18480_s1] ss:$8 sps:$4 sm:$0xff]   ;;  %v9418_v26 = vld [vmem:[%s18478_s2 + $0x458] ss:$24 sps:$4 sm:$0xff]  }
  0x55   :  { %1826 = vmatprep.subr.bf16.mxu1 %v9339_v27  ;;  %849 = vmatprep.mubr.bf16.mxu0 %v11610_v28  ;;  %v9421_v27 = vld [vmem:[%s18478_s2 + $0x460] ss:$24 sps:$4 sm:$0xff]  }
  0x56   :  { %962 = vmatprep.mubr.bf16.mxu1 %v11610_v28 }
  0x57   :  { %1024 = vmatpush1.bf16.msra.mxu0 %v9334_v29  ;;  %v9429_v29 = vld [vmem:[%s18478_s2 + $0x434] ss:$24 sps:$4 sm:$0xff]  }
  0x58   :  { %1827 = vmatpush1.bf16.msra.mxu1 %v9337_v30  ;;  %1025 = vmatprep.subr.bf16.mxu0 %v9345_v31  ;;  %v11838_v30 = vld [vmem:[%s18480_s1 + $0x14] ss:$8 sps:$4 sm:$0xff]   ;;  %v9424_v31 = vld [vmem:[%s18478_s2 + $0x428] ss:$24 sps:$4 sm:$0xff]  }
  0x59   :  { %1828 = vmatprep.subr.bf16.mxu1 %v9348_v32  ;;  %v9427_v32 = vld [vmem:[%s18478_s2 + $0x430] ss:$24 sps:$4 sm:$0xff]  }
  0x5a   :  { %850 = vmatmul.mubr.bf16.gmra.mxu0 %v11631_v33 }
  0x5b   :  { %963 = vmatmul.mubr.bf16.gmra.mxu1 %v11631_v33  ;;  %1026 = vmatpush1.bf16.msra.mxu0 %v9343_v34  ;;  %v9435_v34 = vld [vmem:[%s18478_s2 + $0x3fc] ss:$24 sps:$4 sm:$0xff]  }
  0x5c   :  { %1829 = vmatpush1.bf16.msra.mxu1 %v9346_v35  ;;  %1027 = vmatprep.subr.bf16.mxu0 %v9351_v36  ;;  %v11859_v35 = vld [vmem:[%s18480_s1 + $0x10] ss:$8 sps:$4 sm:$0xff]  }
  0x5d   :  { %1830 = vmatprep.subr.bf16.mxu1 %v9354_v37  ;;  %859 = vmatprep.mubr.bf16.mxu0 %v11648_v38  ;;  %v9433_v36 = vld [vmem:[%s18478_s2 + $0x3f8] ss:$24 sps:$4 sm:$0xff]  }
  0x5e   :  { %972 = vmatprep.mubr.bf16.mxu1 %v11648_v38  ;;  %v9436_v37 = vld [vmem:[%s18478_s2 + $0x400] ss:$24 sps:$4 sm:$0xff]  }
  0x5f   :  { %1028 = vmatpush1.bf16.msra.mxu0 %v9349_v39  ;;  %v9444_v39 = vld [vmem:[%s18478_s2 + $0x3d4] ss:$24 sps:$4 sm:$0xff]  }
  0x60   :  { %1831 = vmatpush1.bf16.msra.mxu1 %v9352_v40  ;;  %1029 = vmatprep.subr.bf16.mxu0 %v9360_v41  ;;  %v11876_v40 = vld [vmem:[%s18480_s1 + $0x24] ss:$8 sps:$4 sm:$0xff]   ;;  %v9439_v41 = vld [vmem:[%s18478_s2 + $0x3c8] ss:$24 sps:$4 sm:$0xff]  }
  0x61   :  { %1832 = vmatprep.subr.bf16.mxu1 %v9363_v42  ;;  %v9442_v42 = vld [vmem:[%s18478_s2 + $0x3d0] ss:$24 sps:$4 sm:$0xff]  }
  0x62   :  { %860 = vmatmul.mubr.bf16.gmra.mxu0 %v11669_v43 }
  0x63   :  { %973 = vmatmul.mubr.bf16.gmra.mxu1 %v11669_v43  ;;  %1030 = vmatpush2.bf16.msra.mxu0 %v9358_v44  ;;  %v9450_v44 = vld [vmem:[%s18478_s2 + $0x39c] ss:$24 sps:$4 sm:$0xff]  }
  0x64   :  { %1833 = vmatpush2.bf16.msra.mxu1 %v9361_v45  ;;  %1031 = vmatprep.subr.bf16.mxu0 %v9366_v46  ;;  %v11897_v45 = vld [vmem:[%s18480_s1 + $0x20] ss:$8 sps:$4 sm:$0xff]   ;;  %v9448_v46 = vld [vmem:[%s18478_s2 + $0x398] ss:$24 sps:$4 sm:$0xff]  }
  0x65   :  { %1834 = vmatprep.subr.bf16.mxu1 %v9369_v47  ;;  %869 = vmatprep.mubr.bf16.mxu0 %v11686_v49  ;;  %v9451_v47 = vld [vmem:[%s18478_s2 + $0x3a0] ss:$24 sps:$4 sm:$0xff]  }
  0x66   :  { %982 = vmatprep.mubr.bf16.mxu1 %v11686_v49 }
  0x67   :  { %1032 = vmatpush2.bf16.msra.mxu0 %v9364_v50  ;;  %v9459_v50 = vld [vmem:[%s18478_s2 + $0x374] ss:$24 sps:$4 sm:$0xff]  }
  0x68   :  { %1835 = vmatpush2.bf16.msra.mxu1 %v9367_v51  ;;  %1033 = vmatprep.subr.bf16.mxu0 %v9375_v52  ;;  %v11914_v51 = vld [vmem:[%s18480_s1 + $0x34] ss:$8 sps:$4 sm:$0xff]   ;;  %v9454_v52 = vld [vmem:[%s18478_s2 + $0x368] ss:$24 sps:$4 sm:$0xff]  }
  0x69   :  { %1836 = vmatprep.subr.bf16.mxu1 %v9378_v53  ;;  %v9457_v53 = vld [vmem:[%s18478_s2 + $0x370] ss:$24 sps:$4 sm:$0xff]  }
  0x6a   :  { %870 = vmatmul.mubr.bf16.gmra.mxu0 %v11707_v54 }
  0x6b   :  { %983 = vmatmul.mubr.bf16.gmra.mxu1 %v11707_v54  ;;  %1034 = vmatpush2.bf16.msra.mxu0 %v9373_v55  ;;  %v9465_v55 = vld [vmem:[%s18478_s2 + $0x33c] ss:$24 sps:$4 sm:$0xff]  }
  0x6c   :  { %1837 = vmatpush2.bf16.msra.mxu1 %v9376_v56  ;;  %1035 = vmatprep.subr.bf16.mxu0 %v9381_v57  ;;  %v11935_v56 = vld [vmem:[%s18480_s1 + $0x30] ss:$8 sps:$4 sm:$0xff]  }
  0x6d   :  { %1838 = vmatprep.subr.bf16.mxu1 %v9384_v58  ;;  %879 = vmatprep.mubr.bf16.mxu0 %v11724_v59  ;;  %v9463_v57 = vld [vmem:[%s18478_s2 + $0x338] ss:$24 sps:$4 sm:$0xff]  }
  0x6e   :  { %992 = vmatprep.mubr.bf16.mxu1 %v11724_v59  ;;  %v9466_v58 = vld [vmem:[%s18478_s2 + $0x340] ss:$24 sps:$4 sm:$0xff]  }
  0x6f   :  { %1036 = vmatpush2.bf16.msra.mxu0 %v9379_v60  ;;  %v9474_v60 = vld [vmem:[%s18478_s2 + $0x314] ss:$24 sps:$4 sm:$0xff]  }
  0x70   :  { %1839 = vmatpush2.bf16.msra.mxu1 %v9382_v61  ;;  %1037 = vmatprep.subr.bf16.mxu0 %v9390_v62  ;;  %v11952_v61 = vld [vmem:[%s18480_s1 + $0x44] ss:$8 sps:$4 sm:$0xff]   ;;  %v9469_v62 = vld [vmem:[%s18478_s2 + $0x308] ss:$24 sps:$4 sm:$0xff]  }
  0x71   :  { %1840 = vmatprep.subr.bf16.mxu1 %v9393_v63  ;;  %v9472_v63 = vld [vmem:[%s18478_s2 + $0x310] ss:$24 sps:$4 sm:$0xff]  }
  0x72   :  { %880 = vmatmul.mubr.bf16.gmra.mxu0 %v11745_v0 }
  0x73   :  { %993 = vmatmul.mubr.bf16.gmra.mxu1 %v11745_v0  ;;  %1038 = vmatpush2.bf16.msra.mxu0 %v9388_v1  ;;  %v9480_v1 = vld [vmem:[%s18478_s2 + $0x5dc] ss:$24 sps:$4 sm:$0xff]  }
  0x74   :  { %1841 = vmatpush2.bf16.msra.mxu1 %v9391_v2  ;;  %1039 = vmatprep.subr.bf16.mxu0 %v9396_v4  ;;  %v11973_v2 = vld [vmem:[%s18480_s1 + $0x40] ss:$8 sps:$4 sm:$0xff]   ;;  %v9478_v4 = vld [vmem:[%s18478_s2 + $0x5d8] ss:$24 sps:$4 sm:$0xff]  }
  0x75   :  { %1842 = vmatprep.subr.bf16.mxu1 %v9399_v5  ;;  %889 = vmatprep.mubr.bf16.mxu0 %v11762_v6  ;;  %v9481_v5 = vld [vmem:[%s18478_s2 + $0x5e0] ss:$24 sps:$4 sm:$0xff]  }
  0x76   :  { %1002 = vmatprep.mubr.bf16.mxu1 %v11762_v6 }
  0x77   :  { %1040 = vmatpush2.bf16.msra.mxu0 %v9394_v7  ;;  %v9489_v7 = vld [vmem:[%s18478_s2 + $0x5b4] ss:$24 sps:$4 sm:$0xff]  }
  0x78   :  { %1843 = vmatpush2.bf16.msra.mxu1 %v9397_v9  ;;  %1041 = vmatprep.subr.bf16.mxu0 %v9405_v10  ;;  %v11990_v9 = vld [vmem:[%s18480_s1 + $0x54] ss:$8 sps:$4 sm:$0xff]   ;;  %v9484_v10 = vld [vmem:[%s18478_s2 + $0x5a8] ss:$24 sps:$4 sm:$0xff]  }
  0x79   :  { %1844 = vmatprep.subr.bf16.mxu1 %v9408_v11  ;;  %v9487_v11 = vld [vmem:[%s18478_s2 + $0x5b0] ss:$24 sps:$4 sm:$0xff]  }
  0x7a   :  { %890 = vmatmul.mubr.bf16.gmra.mxu0 %v11783_v12 }
  0x7b   :  { %1003 = vmatmul.mubr.bf16.gmra.mxu1 %v11783_v12  ;;  %1042 = vmatpush2.bf16.msra.mxu0 %v9403_v14  ;;  %v9495_v14 = vld [vmem:[%s18478_s2 + $0x57c] ss:$24 sps:$4 sm:$0xff]  }
  0x7c   :  { %1845 = vmatpush2.bf16.msra.mxu1 %v9406_v15  ;;  %1043 = vmatprep.subr.bf16.mxu0 %v9411_v16  ;;  %v12011_v15 = vld [vmem:[%s18480_s1 + $0x50] ss:$8 sps:$4 sm:$0xff]  }
  0x7d   :  { %1846 = vmatprep.subr.bf16.mxu1 %v9414_v17  ;;  %1045 = vmatprep.mubr.bf16.mxu0 %v11456_v48  ;;  %v9426_v48 = vld [vmem:[%s18478_s2 + $0x42c] ss:$24 sps:$4 sm:$0xff]   ;;  %v9493_v16 = vld [vmem:[%s18478_s2 + $0x578] ss:$24 sps:$4 sm:$0xff]  }
  0x7e   :  { %1848 = vmatprep.mubr.bf16.mxu1 %v11800_v19  ;;  %v9496_v17 = vld [vmem:[%s18478_s2 + $0x580] ss:$24 sps:$4 sm:$0xff]  }
  0x7f   :  { %1044 = vmatpush2.bf16.msra.mxu0 %v9409_v20  ;;  %v9504_v20 = vld [vmem:[%s18478_s2 + $0x554] ss:$24 sps:$4 sm:$0xff]  }
  0x80   :  { %1847 = vmatpush2.bf16.msra.mxu1 %v9412_v21  ;;  %1929 = vmatprep.subr.bf16.mxu0 %v9420_v22  ;;  %v12028_v21 = vld [vmem:[%s18480_s1 + $0x64] ss:$8 sps:$4 sm:$0xff]   ;;  %v9499_v22 = vld [vmem:[%s18478_s2 + $0x548] ss:$24 sps:$4 sm:$0xff]  }
  0x81   :  { %2042 = vmatprep.subr.bf16.mxu1 %v9423_v24  ;;  %v9502_v24 = vld [vmem:[%s18478_s2 + $0x550] ss:$24 sps:$4 sm:$0xff]  }
  0x82   :  { %1046 = vmatmul.mubr.bf16.vlgmr.msra.gmra.mxu0 %v11517_v3  ;;  %v9438_v3 = vld [vmem:[%s18478_s2 + $0x404] ss:$24 sps:$4 sm:$0xff]  }
  0x83   :  { %1849 = vmatmul.mubr.bf16.vlgmr.msra.gmra.mxu1 %v11820_v25  ;;  %1930 = vmatpush1.bf16.msra.mxu0 %v9418_v26  ;;  %v9510_v26 = vld [vmem:[%s18478_s2 + $0x51c] ss:$24 sps:$4 sm:$0xff]  }
  0x84   :  { %2043 = vmatpush1.bf16.msra.mxu1 %v9421_v27  ;;  %1931 = vmatprep.subr.bf16.mxu0 %v9426_v48  ;;  %v12049_v27 = vld [vmem:[%s18480_s1 + $0x60] ss:$8 sps:$4 sm:$0xff]   ;;  %v9508_v48 = vld [vmem:[%s18478_s2 + $0x518] ss:$24 sps:$4 sm:$0xff]  }
  0x85   :  { %2044 = vmatprep.subr.bf16.mxu1 %v9429_v29  ;;  %1055 = vmatprep.mubr.bf16.mxu0 %v11534_v8  ;;  %v9441_v8 = vld [vmem:[%s18478_s2 + $0x3cc] ss:$24 sps:$4 sm:$0xff]   ;;  %v9511_v29 = vld [vmem:[%s18478_s2 + $0x520] ss:$24 sps:$4 sm:$0xff]  }
  0x86   :  { %1858 = vmatprep.mubr.bf16.mxu1 %v11838_v30 }
  0x87   :  { %1932 = vmatpush1.bf16.msra.mxu0 %v9424_v31  ;;  %v9519_v31 = vld [vmem:[%s18478_s2 + $0x4f4] ss:$24 sps:$4 sm:$0xff]  }
  0x88   :  { %2045 = vmatpush1.bf16.msra.mxu1 %v9427_v32  ;;  %1933 = vmatprep.subr.bf16.mxu0 %v9435_v34  ;;  %v12066_v32 = vld [vmem:[%s18480_s1 + $0x74] ss:$8 sps:$4 sm:$0xff]   ;;  %v9514_v34 = vld [vmem:[%s18478_s2 + $0x4e8] ss:$24 sps:$4 sm:$0xff]  }
  0x89   :  { %2046 = vmatprep.subr.bf16.mxu1 %v9438_v3  ;;  %v9517_v3 = vld [vmem:[%s18478_s2 + $0x4f0] ss:$24 sps:$4 sm:$0xff]  }
  0x8a   :  { %1056 = vmatmul.mubr.bf16.gmra.mxu0 %v11555_v13  ;;  %v9453_v13 = vld [vmem:[%s18478_s2 + $0x3a4] ss:$24 sps:$4 sm:$0xff]  }
  0x8b   :  { %1859 = vmatmul.mubr.bf16.gmra.mxu1 %v11859_v35  ;;  %1934 = vmatpush1.bf16.msra.mxu0 %v9433_v36  ;;  %v9525_v36 = vld [vmem:[%s18478_s2 + $0x4bc] ss:$24 sps:$4 sm:$0xff]  }
  0x8c   :  { %2047 = vmatpush1.bf16.msra.mxu1 %v9436_v37  ;;  %1935 = vmatprep.subr.bf16.mxu0 %v9441_v8  ;;  %v12087_v37 = vld [vmem:[%s18480_s1 + $0x70] ss:$8 sps:$4 sm:$0xff]  }
  0x8d   :  { %2048 = vmatprep.subr.bf16.mxu1 %v9444_v39  ;;  %1065 = vmatprep.mubr.bf16.mxu0 %v11572_v18  ;;  %v9456_v18 = vld [vmem:[%s18478_s2 + $0x36c] ss:$24 sps:$4 sm:$0xff]   ;;  %v9523_v8 = vld [vmem:[%s18478_s2 + $0x4b8] ss:$24 sps:$4 sm:$0xff]  }
  0x8e   :  { %1868 = vmatprep.mubr.bf16.mxu1 %v11876_v40  ;;  %v9526_v39 = vld [vmem:[%s18478_s2 + $0x4c0] ss:$24 sps:$4 sm:$0xff]  }
  0x8f   :  { %1936 = vmatpush1.bf16.msra.mxu0 %v9439_v41  ;;  %v9534_v41 = vld [vmem:[%s18478_s2 + $0x494] ss:$24 sps:$4 sm:$0xff]  }
  0x90   :  { %2049 = vmatpush1.bf16.msra.mxu1 %v9442_v42  ;;  %1937 = vmatprep.subr.bf16.mxu0 %v9450_v44  ;;  %v9529_v42 = vld [vmem:[%s18478_s2 + $0x488] ss:$24 sps:$4 sm:$0xff]  }
  0x91   :  { %2050 = vmatprep.subr.bf16.mxu1 %v9453_v13  ;;  %v9532_v44 = vld [vmem:[%s18478_s2 + $0x490] ss:$24 sps:$4 sm:$0xff]   ;;  %v9535_v13 = vld [vmem:[%s18481_s3 + $0x154] ss:$24 sps:$4 sm:$0xff]  }
  0x92   :  { %1066 = vmatmul.mubr.bf16.gmra.mxu0 %v11593_v23  ;;  %v9468_v23 = vld [vmem:[%s18478_s2 + $0x344] ss:$24 sps:$4 sm:$0xff]  }
  0x93   :  { %1869 = vmatmul.mubr.bf16.gmra.mxu1 %v11897_v45  ;;  %1938 = vmatpush1.bf16.msra.mxu0 %v9448_v46  ;;  %v9539_v46 = vld [vmem:[%s18481_s3 + $0x150] ss:$24 sps:$4 sm:$0xff]  }
  0x94   :  { %2051 = vmatpush1.bf16.msra.mxu1 %v9451_v47  ;;  %1939 = vmatprep.subr.bf16.mxu0 %v9456_v18  ;;  %v9540_v47 = vld [vmem:[%s18481_s3 + $0x158] ss:$24 sps:$4 sm:$0xff]   ;;  %v9541_v18 = vld [vmem:[%s18481_s3 + $0x124] ss:$24 sps:$4 sm:$0xff]  }
  0x95   :  { %2052 = vmatprep.subr.bf16.mxu1 %v9459_v50  ;;  %1075 = vmatprep.mubr.bf16.mxu0 %v11610_v28  ;;  %v9471_v28 = vld [vmem:[%s18478_s2 + $0x30c] ss:$24 sps:$4 sm:$0xff]   ;;  %v9545_v50 = vld [vmem:[%s18481_s3 + $0x120] ss:$24 sps:$4 sm:$0xff]  }
  0x96   :  { %1878 = vmatprep.mubr.bf16.mxu1 %v11914_v51 }
  0x97   :  { %1940 = vmatpush1.bf16.msra.mxu0 %v9454_v52  ;;  %v9546_v52 = vld [vmem:[%s18481_s3 + $0x128] ss:$24 sps:$4 sm:$0xff]  }
  0x98   :  { %2053 = vmatpush1.bf16.msra.mxu1 %v9457_v53  ;;  %1941 = vmatprep.subr.bf16.mxu0 %v9465_v55  ;;  %v9547_v53 = vld [vmem:[%s18481_s3 + $0xf4] ss:$24 sps:$4 sm:$0xff]   ;;  %v9551_v55 = vld [vmem:[%s18481_s3 + $0xf0] ss:$24 sps:$4 sm:$0xff]  }
  0x99   :  { %2054 = vmatprep.subr.bf16.mxu1 %v9468_v23  ;;  %v9552_v23 = vld [vmem:[%s18481_s3 + $0xf8] ss:$24 sps:$4 sm:$0xff]  }
  0x9a   :  { %1076 = vmatmul.mubr.bf16.gmra.mxu0 %v11631_v33  ;;  %v9483_v33 = vld [vmem:[%s18478_s2 + $0x5e4] ss:$24 sps:$4 sm:$0xff]  }
  0x9b   :  { %1879 = vmatmul.mubr.bf16.gmra.mxu1 %v11935_v56  ;;  %1942 = vmatpush1.bf16.msra.mxu0 %v9463_v57  ;;  %v9553_v57 = vld [vmem:[%s18481_s3 + $0xc4] ss:$24 sps:$4 sm:$0xff]  }
  0x9c   :  { %2055 = vmatpush1.bf16.msra.mxu1 %v9466_v58  ;;  %1943 = vmatprep.subr.bf16.mxu0 %v9471_v28  ;;  %v9557_v58 = vld [vmem:[%s18481_s3 + $0xc0] ss:$24 sps:$4 sm:$0xff]  }
  0x9d   :  { %2056 = vmatprep.subr.bf16.mxu1 %v9474_v60  ;;  %1085 = vmatprep.mubr.bf16.mxu0 %v11648_v38  ;;  %v9486_v38 = vld [vmem:[%s18478_s2 + $0x5ac] ss:$24 sps:$4 sm:$0xff]   ;;  %v9558_v28 = vld [vmem:[%s18481_s3 + $0xc8] ss:$24 sps:$4 sm:$0xff]  }
  0x9e   :  { %1888 = vmatprep.mubr.bf16.mxu1 %v11952_v61  ;;  %v9559_v60 = vld [vmem:[%s18481_s3 + $0x94] ss:$24 sps:$4 sm:$0xff]  }
  0x9f   :  { %1944 = vmatpush1.bf16.msra.mxu0 %v9469_v62  ;;  %v9563_v62 = vld [vmem:[%s18481_s3 + $0x90] ss:$24 sps:$4 sm:$0xff]  }
  0xa0   :  { %2057 = vmatpush1.bf16.msra.mxu1 %v9472_v63  ;;  %1945 = vmatprep.subr.bf16.mxu0 %v9480_v1  ;;  %v9564_v63 = vld [vmem:[%s18481_s3 + $0x98] ss:$24 sps:$4 sm:$0xff]   ;;  %v9565_v1 = vld [vmem:[%s18481_s3 + $0x64] ss:$24 sps:$4 sm:$0xff]  }
  0xa1   :  { %2058 = vmatprep.subr.bf16.mxu1 %v9483_v33  ;;  %v9569_v33 = vld [vmem:[%s18481_s3 + $0x60] ss:$24 sps:$4 sm:$0xff]  }
  0xa2   :  { %1086 = vmatmul.mubr.bf16.gmra.mxu0 %v11669_v43  ;;  %v9498_v43 = vld [vmem:[%s18478_s2 + $0x584] ss:$24 sps:$4 sm:$0xff]  }
  0xa3   :  { %1889 = vmatmul.mubr.bf16.gmra.mxu1 %v11973_v2  ;;  %1946 = vmatpush2.bf16.msra.mxu0 %v9478_v4  ;;  %v9570_v4 = vld [vmem:[%s18481_s3 + $0x68] ss:$24 sps:$4 sm:$0xff]  }
  0xa4   :  { %2059 = vmatpush2.bf16.msra.mxu1 %v9481_v5  ;;  %1947 = vmatprep.subr.bf16.mxu0 %v9486_v38  ;;  %v9571_v5 = vld [vmem:[%s18481_s3 + $0x34] ss:$24 sps:$4 sm:$0xff]   ;;  %v9575_v38 = vld [vmem:[%s18481_s3 + $0x30] ss:$24 sps:$4 sm:$0xff]  }
  0xa5   :  { %2060 = vmatprep.subr.bf16.mxu1 %v9489_v7  ;;  %1095 = vmatprep.mubr.bf16.mxu0 %v11686_v49  ;;  %v9501_v49 = vld [vmem:[%s18478_s2 + $0x54c] ss:$24 sps:$4 sm:$0xff]   ;;  %v9576_v7 = vld [vmem:[%s18481_s3 + $0x38] ss:$24 sps:$4 sm:$0xff]  }
  0xa6   :  { %1898 = vmatprep.mubr.bf16.mxu1 %v11990_v9 }
  0xa7   :  { %1948 = vmatpush2.bf16.msra.mxu0 %v9484_v10  ;;  %v9577_v10 = vld [vmem:[%s18481_s3 + $0x4] ss:$24 sps:$4 sm:$0xff]  }
  0xa8   :  { %2061 = vmatpush2.bf16.msra.mxu1 %v9487_v11  ;;  %1949 = vmatprep.subr.bf16.mxu0 %v9495_v14  ;;  %v9581_v11 = vld [vmem:[%s18481_s3] ss:$24 sps:$4 sm:$0xff]  }
  0xa9   :  { %2062 = vmatprep.subr.bf16.mxu1 %v9498_v43  ;;  %v9582_v14 = vld [vmem:[%s18481_s3 + $0x8] ss:$24 sps:$4 sm:$0xff]   ;;  %v9583_v43 = vld [vmem:[%s18481_s3 + $0x2d4] ss:$24 sps:$4 sm:$0xff]  }
  0xaa   :  { %1096 = vmatmul.mubr.bf16.gmra.mxu0 %v11707_v54  ;;  %v9513_v54 = vld [vmem:[%s18478_s2 + $0x524] ss:$24 sps:$4 sm:$0xff]  }
  0xab   :  { %1899 = vmatmul.mubr.bf16.gmra.mxu1 %v12011_v15  ;;  %1950 = vmatpush2.bf16.msra.mxu0 %v9493_v16  ;;  %v9587_v16 = vld [vmem:[%s18481_s3 + $0x2d0] ss:$24 sps:$4 sm:$0xff]  }
  0xac   :  { %2063 = vmatpush2.bf16.msra.mxu1 %v9496_v17  ;;  %1951 = vmatprep.subr.bf16.mxu0 %v9501_v49  ;;  %v9588_v17 = vld [vmem:[%s18481_s3 + $0x2d8] ss:$24 sps:$4 sm:$0xff]   ;;  %v9589_v49 = vld [vmem:[%s18481_s3 + $0x2a4] ss:$24 sps:$4 sm:$0xff]  }
  0xad   :  { %2064 = vmatprep.subr.bf16.mxu1 %v9504_v20  ;;  %1105 = vmatprep.mubr.bf16.mxu0 %v11724_v59  ;;  %v9516_v59 = vld [vmem:[%s18478_s2 + $0x4ec] ss:$24 sps:$4 sm:$0xff]   ;;  %v9593_v20 = vld [vmem:[%s18481_s3 + $0x2a0] ss:$24 sps:$4 sm:$0xff]  }
  0xae   :  { %1908 = vmatprep.mubr.bf16.mxu1 %v12028_v21 }
  0xaf   :  { %1952 = vmatpush2.bf16.msra.mxu0 %v9499_v22  ;;  %v9594_v22 = vld [vmem:[%s18481_s3 + $0x2a8] ss:$24 sps:$4 sm:$0xff]  }
  0xb0   :  { %2065 = vmatpush2.bf16.msra.mxu1 %v9502_v24  ;;  %1953 = vmatprep.subr.bf16.mxu0 %v9510_v26  ;;  %v9595_v24 = vld [vmem:[%s18481_s3 + $0x274] ss:$24 sps:$4 sm:$0xff]   ;;  %v9599_v26 = vld [vmem:[%s18481_s3 + $0x270] ss:$24 sps:$4 sm:$0xff]  }
  0xb1   :  { %2066 = vmatprep.subr.bf16.mxu1 %v9513_v54  ;;  %v9600_v54 = vld [vmem:[%s18481_s3 + $0x278] ss:$24 sps:$4 sm:$0xff]  }
  0xb2   :  { %1106 = vmatmul.mubr.bf16.gmra.mxu0 %v11745_v0  ;;  %v9528_v0 = vld [vmem:[%s18478_s2 + $0x4c4] ss:$24 sps:$4 sm:$0xff]  }
  0xb3   :  { %1909 = vmatmul.mubr.bf16.gmra.mxu1 %v12049_v27  ;;  %1954 = vmatpush2.bf16.msra.mxu0 %v9508_v48  ;;  %v9601_v48 = vld [vmem:[%s18481_s3 + $0x244] ss:$24 sps:$4 sm:$0xff]  }
  0xb4   :  { %2067 = vmatpush2.bf16.msra.mxu1 %v9511_v29  ;;  %1955 = vmatprep.subr.bf16.mxu0 %v9516_v59  ;;  %v9605_v29 = vld [vmem:[%s18481_s3 + $0x240] ss:$24 sps:$4 sm:$0xff]  }
  0xb5   :  { %2068 = vmatprep.subr.bf16.mxu1 %v9519_v31  ;;  %1115 = vmatprep.mubr.bf16.mxu0 %v11762_v6  ;;  %v9531_v6 = vld [vmem:[%s18478_s2 + $0x48c] ss:$24 sps:$4 sm:$0xff]   ;;  %v9606_v59 = vld [vmem:[%s18481_s3 + $0x248] ss:$24 sps:$4 sm:$0xff]  }
  0xb6   :  { %1918 = vmatprep.mubr.bf16.mxu1 %v12066_v32  ;;  %v9607_v31 = vld [vmem:[%s18481_s3 + $0x214] ss:$24 sps:$4 sm:$0xff]  }
  0xb7   :  { %1956 = vmatpush2.bf16.msra.mxu0 %v9514_v34  ;;  %v9611_v34 = vld [vmem:[%s18481_s3 + $0x210] ss:$24 sps:$4 sm:$0xff]  }
  0xb8   :  { %2069 = vmatpush2.bf16.msra.mxu1 %v9517_v3  ;;  %1957 = vmatprep.subr.bf16.mxu0 %v9525_v36  ;;  %v9612_v3 = vld [vmem:[%s18481_s3 + $0x218] ss:$24 sps:$4 sm:$0xff]   ;;  %v9613_v36 = vld [vmem:[%s18481_s3 + $0x1e4] ss:$24 sps:$4 sm:$0xff]  }
  0xb9   :  { %2070 = vmatprep.subr.bf16.mxu1 %v9528_v0  ;;  %v9617_v0 = vld [vmem:[%s18481_s3 + $0x1e0] ss:$24 sps:$4 sm:$0xff]  }
  0xba   :  { %1116 = vmatmul.mubr.bf16.gmra.mxu0 %v11783_v12  ;;  %v9537_v12 = vld [vmem:[%s18481_s3 + $0x15c] ss:$24 sps:$4 sm:$0xff]  }
  0xbb   :  { %1919 = vmatmul.mubr.bf16.gmra.mxu1 %v12087_v37  ;;  %1958 = vmatpush2.bf16.msra.mxu0 %v9523_v8  ;;  %v9618_v8 = vld [vmem:[%s18481_s3 + $0x1e8] ss:$24 sps:$4 sm:$0xff]  }
  0xbc   :  { %2071 = vmatpush2.bf16.msra.mxu1 %v9526_v39  ;;  %1959 = vmatprep.subr.bf16.mxu0 %v9531_v6  ;;  %v197_v39 = vlaneseq  ;;  %v9619_v6 = vld [vmem:[%s18481_s3 + $0x1b4] ss:$24 sps:$4 sm:$0xff]  }
  0xbd   :  { %2072 = vmatprep.subr.bf16.mxu1 %v9534_v41  ;;  %1961 = vmatprep.mubr.bf16.mxu0 %v11800_v19  ;;  %v9623_v41 = vld [vmem:[%s18481_s3 + $0x1b0] ss:$24 sps:$4 sm:$0xff]  }
  0xbe   :  { %2074 = vmatprep.mubr.bf16.mxu1 %v11800_v19  ;;  %v9543_v19 = vld [vmem:[%s18481_s3 + $0x12c] ss:$24 sps:$4 sm:$0xff]  }
  0xbf   :  { %1960 = vmatpush2.bf16.msra.mxu0 %v9529_v42  ;;  %v9624_v42 = vld [vmem:[%s18481_s3 + $0x1b8] ss:$24 sps:$4 sm:$0xff]  }
  0xc0   :  { %2073 = vmatpush2.bf16.msra.mxu1 %v9532_v44  ;;  %3416 = vmatprep.subr.bf16.mxu0 %v9535_v13  ;;  %v9625_v44 = vld [vmem:[%s18481_s3 + $0x184] ss:$24 sps:$4 sm:$0xff]   ;;  %v12322_v13 = vshrl.u32 %v197_v39, 7 }
  0xc1   :  { %3459 = vmatprep.subr.bf16.mxu1 %v9537_v12  ;;  %v9629_v12 = vld [vmem:[%s18481_s3 + $0x180] ss:$24 sps:$4 sm:$0xff]  }
  0xc2   :  { %1962 = vmatmul.mubr.bf16.vlgmr.msra.gmra.mxu0 %v11820_v25 }
  0xc3   :  { %2075 = vmatmul.mubr.bf16.vlgmr.msra.gmra.mxu1 %v11820_v25  ;;  %3417 = vmatpush1.bf16.msra.mxu0 %v9539_v46  ;;  %v9549_v25 = vld [vmem:[%s18481_s3 + $0xfc] ss:$24 sps:$4 sm:$0xff]   ;;  %v9630_v46 = vld [vmem:[%s18481_s3 + $0x188] ss:$24 sps:$4 sm:$0xff]  }
  0xc4   :  { %3460 = vmatpush1.bf16.msra.mxu1 %v9540_v47  ;;  %3418 = vmatprep.subr.bf16.mxu0 %v9541_v18  ;;  %v12336_v47 = vsub.s32 0, %v12322_v13  ;;  %v18490_v18 = vsub.s32 2, %v12322_v13 }
  0xc5   :  { %3461 = vmatprep.subr.bf16.mxu1 %v9543_v19  ;;  %1971 = vmatprep.mubr.bf16.mxu0 %v11838_v30  ;;  %v9631_v19 = vld [vmem:[%s18481_s3 + $0x164] ss:$24 sps:$4 sm:$0xff]  }
  0xc6   :  { %2084 = vmatprep.mubr.bf16.mxu1 %v11838_v30  ;;  %v9555_v30 = vld [vmem:[%s18481_s3 + $0xcc] ss:$24 sps:$4 sm:$0xff]  }
  0xc7   :  { %3419 = vmatpush1.bf16.msra.mxu0 %v9545_v50  ;;  %v9633_v50 = vld [vmem:[%s18481_s3 + $0x454] ss:$24 sps:$4 sm:$0xff]  }
  0xc8   :  { %3462 = vmatpush1.bf16.msra.mxu1 %v9546_v52  ;;  %3420 = vmatprep.subr.bf16.mxu0 %v9547_v53  ;;  %v18491_v52 = vmov 0.0|0.0   ;;  %v12353_v53 = vsub.s32 1, %v12322_v13 }
  0xc9   :  { %3463 = vmatprep.subr.bf16.mxu1 %v9549_v25  ;;  %v18488_v25 = vsub.s32 3, %v12322_v13 }
  0xca   :  { %1972 = vmatmul.mubr.bf16.gmra.mxu0 %v11859_v35 }
  0xcb   :  { %2085 = vmatmul.mubr.bf16.gmra.mxu1 %v11859_v35  ;;  %3421 = vmatpush1.bf16.msra.mxu0 %v9551_v55  ;;  %v9561_v35 = vld [vmem:[%s18481_s3 + $0x9c] ss:$24 sps:$4 sm:$0xff]   ;;  %v9635_v55 = vld [vmem:[%s18481_s3 + $0x160] ss:$24 sps:$4 sm:$0xff]  }
  0xcc   :  { %3464 = vmatpush1.bf16.msra.mxu1 %v9552_v23  ;;  %3422 = vmatprep.subr.bf16.mxu0 %v9553_v57 }
  0xcd   :  { %3465 = vmatprep.subr.bf16.mxu1 %v9555_v30  ;;  %1981 = vmatprep.mubr.bf16.mxu0 %v11876_v40  ;;  %v9636_v30 = vld [vmem:[%s18481_s3 + $0x450] ss:$24 sps:$4 sm:$0xff]  }
  0xce   :  { %2094 = vmatprep.mubr.bf16.mxu1 %v11876_v40  ;;  %v9567_v40 = vld [vmem:[%s18481_s3 + $0x6c] ss:$24 sps:$4 sm:$0xff]  }
  0xcf   :  { %3423 = vmatpush1.bf16.msra.mxu0 %v9557_v58  ;;  %v9637_v58 = vld [vmem:[%s18481_s3 + $0x134] ss:$24 sps:$4 sm:$0xff]  }
  0xd0   :  { %3466 = vmatpush1.bf16.msra.mxu1 %v9558_v28  ;;  %3424 = vmatprep.subr.bf16.mxu0 %v9559_v60  ;;  %v9639_v28 = vld [vmem:[%s18481_s3 + $0x424] ss:$24 sps:$4 sm:$0xff]  }
  0xd1   :  { %3467 = vmatprep.subr.bf16.mxu1 %v9561_v35 }
  0xd2   :  { %1982 = vmatmul.mubr.bf16.gmra.mxu0 %v11897_v45 }
  0xd3   :  { %2095 = vmatmul.mubr.bf16.gmra.mxu1 %v11897_v45  ;;  %3425 = vmatpush1.bf16.msra.mxu0 %v9563_v62  ;;  %v9573_v45 = vld [vmem:[%s18481_s3 + $0x3c] ss:$24 sps:$4 sm:$0xff]  }
  0xd4   :  { %3468 = vmatpush1.bf16.msra.mxu1 %v9564_v63  ;;  %3426 = vmatprep.subr.bf16.mxu0 %v9565_v1 }
  0xd5   :  { %3469 = vmatprep.subr.bf16.mxu1 %v9567_v40  ;;  %1991 = vmatprep.mubr.bf16.mxu0 %v11914_v51 }
  0xd6   :  { %2104 = vmatprep.mubr.bf16.mxu1 %v11914_v51  ;;  %v9579_v51 = vld [vmem:[%s18481_s3 + $0xc] ss:$24 sps:$4 sm:$0xff]  }
  0xd7   :  { %3427 = vmatpush1.bf16.msra.mxu0 %v9569_v33  ;;  %v9641_v33 = vld [vmem:[%s18481_s3 + $0x130] ss:$24 sps:$4 sm:$0xff]  }
  0xd8   :  { %3470 = vmatpush1.bf16.msra.mxu1 %v9570_v4  ;;  %3428 = vmatprep.subr.bf16.mxu0 %v9571_v5 }
  0xd9   :  { %3471 = vmatprep.subr.bf16.mxu1 %v9573_v45  ;;  %v9642_v45 = vld [vmem:[%s18481_s3 + $0x420] ss:$24 sps:$4 sm:$0xff]  }
  0xda   :  { %1992 = vmatmul.mubr.bf16.gmra.mxu0 %v11935_v56 }
  0xdb   :  { %2105 = vmatmul.mubr.bf16.gmra.mxu1 %v11935_v56  ;;  %3429 = vmatpush1.bf16.msra.mxu0 %v9575_v38  ;;  %v9585_v56 = vld [vmem:[%s18481_s3 + $0x2dc] ss:$24 sps:$4 sm:$0xff]  }
  0xdc   :  { %3472 = vmatpush1.bf16.msra.mxu1 %v9576_v7  ;;  %3430 = vmatprep.subr.bf16.mxu0 %v9577_v10  ;;  %v9643_v38 = vld [vmem:[%s18481_s3 + $0x104] ss:$24 sps:$4 sm:$0xff]  }
  0xdd   :  { %3473 = vmatprep.subr.bf16.mxu1 %v9579_v51  ;;  %2001 = vmatprep.mubr.bf16.mxu0 %v11952_v61  ;;  %v9645_v51 = vld [vmem:[%s18481_s3 + $0x3f4] ss:$24 sps:$4 sm:$0xff]  }
  0xde   :  { %2114 = vmatprep.mubr.bf16.mxu1 %v11952_v61  ;;  %v9591_v61 = vld [vmem:[%s18481_s3 + $0x2ac] ss:$24 sps:$4 sm:$0xff]  }
  0xdf   :  { %3431 = vmatpush1.bf16.msra.mxu0 %v9581_v11 }
  0xe0   :  { %3474 = vmatpush1.bf16.msra.mxu1 %v9582_v14  ;;  %3432 = vmatprep.subr.bf16.mxu0 %v9583_v43 }
  0xe1   :  { %3475 = vmatprep.subr.bf16.mxu1 %v9585_v56 }
  0xe2   :  { %2002 = vmatmul.mubr.bf16.gmra.mxu0 %v11973_v2 }
  0xe3   :  { %2115 = vmatmul.mubr.bf16.gmra.mxu1 %v11973_v2  ;;  %3433 = vmatpush2.bf16.msra.mxu0 %v9587_v16  ;;  %v9597_v2 = vld [vmem:[%s18481_s3 + $0x27c] ss:$24 sps:$4 sm:$0xff]   ;;  %v9647_v16 = vld [vmem:[%s18481_s3 + $0x100] ss:$24 sps:$4 sm:$0xff]  }
  0xe4   :  { %3476 = vmatpush2.bf16.msra.mxu1 %v9588_v17  ;;  %3434 = vmatprep.subr.bf16.mxu0 %v9589_v49  ;;  %v9648_v17 = vld [vmem:[%s18481_s3 + $0x3f0] ss:$24 sps:$4 sm:$0xff]  }
  0xe5   :  { %3477 = vmatprep.subr.bf16.mxu1 %v9591_v61  ;;  %2011 = vmatprep.mubr.bf16.mxu0 %v11990_v9 }
  0xe6   :  { %2124 = vmatprep.mubr.bf16.mxu1 %v11990_v9  ;;  %v9603_v9 = vld [vmem:[%s18481_s3 + $0x24c] ss:$24 sps:$4 sm:$0xff]  }
  0xe7   :  { %3435 = vmatpush2.bf16.msra.mxu0 %v9593_v20  ;;  %v9649_v20 = vld [vmem:[%s18481_s3 + $0xd4] ss:$24 sps:$4 sm:$0xff]  }
  0xe8   :  { %3478 = vmatpush2.bf16.msra.mxu1 %v9594_v22  ;;  %3436 = vmatprep.subr.bf16.mxu0 %v9595_v24  ;;  %v9651_v22 = vld [vmem:[%s18481_s3 + $0x3c4] ss:$24 sps:$4 sm:$0xff]  }
  0xe9   :  { %3479 = vmatprep.subr.bf16.mxu1 %v9597_v2 }
  0xea   :  { %2012 = vmatmul.mubr.bf16.gmra.mxu0 %v12011_v15 }
  0xeb   :  { %2125 = vmatmul.mubr.bf16.gmra.mxu1 %v12011_v15  ;;  %3437 = vmatpush2.bf16.msra.mxu0 %v9599_v26  ;;  %v9609_v15 = vld [vmem:[%s18481_s3 + $0x21c] ss:$24 sps:$4 sm:$0xff]  }
  0xec   :  { %3480 = vmatpush2.bf16.msra.mxu1 %v9600_v54  ;;  %3438 = vmatprep.subr.bf16.mxu0 %v9601_v48  ;;  %v9653_v48 = vld [vmem:[%s18481_s3 + $0xd0] ss:$24 sps:$4 sm:$0xff]  }
  0xed   :  { %3481 = vmatprep.subr.bf16.mxu1 %v9603_v9  ;;  %2021 = vmatprep.mubr.bf16.mxu0 %v12028_v21 }
  0xee   :  { %2134 = vmatprep.mubr.bf16.mxu1 %v12028_v21  ;;  %v9615_v21 = vld [vmem:[%s18481_s3 + $0x1ec] ss:$24 sps:$4 sm:$0xff]  }
  0xef   :  { %3439 = vmatpush2.bf16.msra.mxu0 %v9605_v29 }
  0xf0   :  { %3482 = vmatpush2.bf16.msra.mxu1 %v9606_v59  ;;  %3440 = vmatprep.subr.bf16.mxu0 %v9607_v31  ;;  %v9654_v59 = vld [vmem:[%s18481_s3 + $0x3c0] ss:$24 sps:$4 sm:$0xff]   ;;  %v9655_v31 = vld [vmem:[%s18481_s3 + $0xa4] ss:$24 sps:$4 sm:$0xff]  }
  0xf1   :  { %3483 = vmatprep.subr.bf16.mxu1 %v9609_v15 }
  0xf2   :  { %2022 = vmatmul.mubr.bf16.gmra.mxu0 %v12049_v27 }
  0xf3   :  { %2135 = vmatmul.mubr.bf16.gmra.mxu1 %v12049_v27  ;;  %3441 = vmatpush2.bf16.msra.mxu0 %v9611_v34  ;;  %v9621_v27 = vld [vmem:[%s18481_s3 + $0x1bc] ss:$24 sps:$4 sm:$0xff]  }
  0xf4   :  { %3484 = vmatpush2.bf16.msra.mxu1 %v9612_v3  ;;  %3442 = vmatprep.subr.bf16.mxu0 %v9613_v36  ;;  %v9657_v3 = vld [vmem:[%s18481_s3 + $0x394] ss:$24 sps:$4 sm:$0xff]  }
  0xf5   :  { %3485 = vmatprep.subr.bf16.mxu1 %v9615_v21  ;;  %2031 = vmatprep.mubr.bf16.mxu0 %v12066_v32 }
  0xf6   :  { %2144 = vmatprep.mubr.bf16.mxu1 %v12066_v32  ;;  %v9627_v32 = vld [vmem:[%s18481_s3 + $0x18c] ss:$24 sps:$4 sm:$0xff]  }
  0xf7   :  { %3443 = vmatpush2.bf16.msra.mxu0 %v9617_v0 }
  0xf8   :  { %3486 = vmatpush2.bf16.msra.mxu1 %v9618_v8  ;;  %3444 = vmatprep.subr.bf16.mxu0 %v9619_v6 }
  0xf9   :  { %3487 = vmatprep.subr.bf16.mxu1 %v9621_v27  ;;  %v9659_v27 = vld [vmem:[%s18481_s3 + $0xa0] ss:$24 sps:$4 sm:$0xff]  }
  0xfa   :  { %2032 = vmatmul.mubr.bf16.gmra.mxu0 %v12087_v37 }
  0xfb   :  { %2145 = vmatmul.mubr.bf16.gmra.mxu1 %v12087_v37  ;;  %3445 = vmatpush2.bf16.msra.mxu0 %v9623_v41  ;;  %v12342_v37 = vld [vmem:[%s18482_s4] sm:$0x3f]  ;;  %v9660_v41 = vld [vmem:[%s18481_s3 + $0x390] ss:$24 sps:$4 sm:$0xff]  }
  0xfc   :  { %3488 = vmatpush2.bf16.msra.mxu1 %v9624_v42  ;;  %3446 = vmatprep.subr.bf16.mxu0 %v9625_v44  ;;  %v12361_v23 = vrot.slane %v12342_v37, %v12336_v47  ;;  %v12366_v57 = vrot.slane %v12342_v37, %v18490_v18  ;;  %v12379_v60 = vrot.slane %v12342_v37, %v12353_v53  ;;  %v9744_v18 = vld [vmem:[%s18481_s3 + $0x400] ss:$24 sps:$4 sm:$0xff]  }
  0xfd   :  { %3489 = vmatprep.subr.bf16.mxu1 %v9627_v32  ;;  %3448 = vmatprep.mubr.bf16.mxu0 %v18491_v52  ;;  %v12384_v35 = vrot.slane %v12342_v37, %v18488_v25  ;;  %v9661_v32 = vld [vmem:[%s18481_s3 + $0x74] ss:$24 sps:$4 sm:$0xff]   ;;  %v9737_v25 = vld [vmem:[%s18481_s3 + $0x428] ss:$24 sps:$4 sm:$0xff]  }
  0xfe   :  { %3491 = vmatprep.mubr.bf16.mxu1 %v18491_v52 }
  0xff   :  { %3447 = vmatpush2.bf16.msra.mxu0 %v9629_v12 }
 0x100   :  { %3490 = vmatpush2.bf16.msra.mxu1 %v9630_v46  ;;  %3502 = vmatprep.subr.bf16.mxu0 %v9631_v19  ;;  %v9663_v19 = vld [vmem:[%s18481_s3 + $0x364] ss:$24 sps:$4 sm:$0xff]  }
 0x101   :  { %4124 = vmatprep.subr.bf16.mxu1 %v9633_v50 }
 0x102   :  { %v821_v62 = vpop.f32.mrf.mxu0  ;;  %3449 = vmatmul.mubr.bf16.vlgmr.msra.gmra.mxu0 %v18491_v52 }
 0x103   :  { %v934_v63 = vpop.f32.mrf.mxu1  ;;  %3492 = vmatmul.mubr.bf16.vlgmr.msra.gmra.mxu1 %v18491_v52  ;;  %v822_v1 = vadd.f32 %v821_v62, %v12361_v23  ;;  %3503 = vmatpush1.bf16.msra.mxu0 %v9635_v55 }
 0x104   :  { %v935_v40 = vadd.f32 %v934_v63, %v12366_v57  ;;  %4125 = vmatpush1.bf16.msra.mxu1 %v9636_v30  ;;  %v823_v4 = vpop.f32.mrf.mxu0  ;;  %3504 = vmatprep.subr.bf16.mxu0 %v9637_v58  ;;  %v9665_v63 = vld [vmem:[%s18481_s3 + $0x70] ss:$24 sps:$4 sm:$0xff]  }
 0x105   :  { %v936_v5 = vpop.f32.mrf.mxu1  ;;  %4126 = vmatprep.subr.bf16.mxu1 %v9639_v28  ;;  %v824_v7 = vadd.f32 %v823_v4, %v12379_v60  ;;  %3534 = vmatprep.mubr.bf16.mxu0 %v18491_v52  ;;  %v9667_v4 = vld [vmem:[%s18481_s3 + $0x44] ss:$24 sps:$4 sm:$0xff]  }
 0x106   :  { %v937_v10 = vadd.f32 %v936_v5, %v12384_v35  ;;  %4156 = vmatprep.mubr.bf16.mxu1 %v18491_v52  ;;  %v12406_v11 = vpop.f32.mrf.mxu0 }
 0x107   :  { %v12408_v14 = vpop.f32.mrf.mxu1  ;;  %v12410_v43 = vpack.c.bf16 %v824_v7, %v822_v1  ;;  %3505 = vmatpush1.bf16.msra.mxu0 %v9641_v33  ;;  %v9666_v33 = vld [vmem:[%s18481_s3 + $0x360] ss:$24 sps:$4 sm:$0xff]  }
 0x108   :  { %v12412_v56 = vpack.c.bf16 %v937_v10, %v935_v40  ;;  %4127 = vmatpush1.bf16.msra.mxu1 %v9642_v45  ;;  %v12420_v49 = vpop.f32.mrf.mxu0  ;;  %3506 = vmatprep.subr.bf16.mxu0 %v9643_v38  ;;  %v9669_v38 = vld [vmem:[%s18481_s3 + $0x334] ss:$24 sps:$4 sm:$0xff]  }
 0x109   :  { %v12422_v61 = vpop.f32.mrf.mxu1  ;;  %4128 = vmatprep.subr.bf16.mxu1 %v9645_v51 }
 0x10a   :  { %v831_v24 = vpop.f32.mrf.mxu0 }
 0x10b   :  { %v944_v2 = vpop.f32.mrf.mxu1  ;;  %v832_v26 = vadd.f32 %v831_v24, %v12361_v23  ;;  %3507 = vmatpush1.bf16.msra.mxu0 %v9647_v16 }
 0x10c   :  { %v945_v54 = vadd.f32 %v944_v2, %v12366_v57  ;;  %4129 = vmatpush1.bf16.msra.mxu1 %v9648_v17  ;;  %v833_v9 = vpop.f32.mrf.mxu0  ;;  %3508 = vmatprep.subr.bf16.mxu0 %v9649_v20 }
 0x10d   :  { %v946_v29 = vpop.f32.mrf.mxu1  ;;  %v834_v15 = vadd.f32 %v833_v9, %v12379_v60  ;;  %4130 = vmatprep.subr.bf16.mxu1 %v9651_v22  ;;  %v9671_v22 = vld [vmem:[%s18481_s3 + $0x40] ss:$24 sps:$4 sm:$0xff]  }
 0x10e   :  { %v947_v34 = vadd.f32 %v946_v29, %v12384_v35  ;;  %v835_v36 = vpop.f32.mrf.mxu0  ;;  %v9675_v29 = vld [vmem:[%s18481_s3 + $0x304] ss:$24 sps:$4 sm:$0xff]  }
 0x10f   :  { %v948_v21 = vpop.f32.mrf.mxu1  ;;  %v12446_v0 = vpack.c.bf16 %v834_v15, %v832_v26  ;;  %v836_v39 = vadd.f32 %v835_v36, %v12361_v23  ;;  %3509 = vmatpush1.bf16.msra.mxu0 %v9653_v48  ;;  %v9672_v26 = vld [vmem:[%s18481_s3 + $0x330] ss:$24 sps:$4 sm:$0xff]  }
 0x110   :  { %v12448_v8 = vpack.c.bf16 %v947_v34, %v945_v54  ;;  %v949_v6 = vadd.f32 %v948_v21, %v12366_v57  ;;  %4131 = vmatpush1.bf16.msra.mxu1 %v9654_v59  ;;  %v837_v42 = vpop.f32.mrf.mxu0  ;;  %3510 = vmatprep.subr.bf16.mxu0 %v9655_v31  ;;  %v9673_v54 = vld [vmem:[%s18481_s3 + $0x14] ss:$24 sps:$4 sm:$0xff]   ;;  %v9677_v21 = vld [vmem:[%s18481_s3 + $0x10] ss:$24 sps:$4 sm:$0xff]  }
 0x111   :  { %v950_v44 = vpop.f32.mrf.mxu1  ;;  %v838_v12 = vadd.f32 %v837_v42, %v12379_v60  ;;  %4132 = vmatprep.subr.bf16.mxu1 %v9657_v3 }
 0x112   :  { %18995 = vst [vmem:[#allocation6_spill] sm:$0xff] %v12448_v8  ;;  %v951_v46 = vadd.f32 %v950_v44, %v12384_v35  ;;  %v841_v50 = vpop.f32.mrf.mxu0 }
 0x113   :  { %v954_v55 = vpop.f32.mrf.mxu1  ;;  %v12466_v30 = vpack.c.bf16 %v838_v12, %v836_v39  ;;  %v842_v28 = vadd.f32 %v841_v50, %v12361_v23  ;;  %3511 = vmatpush1.bf16.msra.mxu0 %v9659_v27  ;;  %v9678_v27 = vld [vmem:[%s18481_s3 + $0x300] ss:$24 sps:$4 sm:$0xff]  }
 0x114   :  { %v12468_v58 = vpack.c.bf16 %v951_v46, %v949_v6  ;;  %v955_v62 = vadd.f32 %v954_v55, %v12366_v57  ;;  %4133 = vmatpush1.bf16.msra.mxu1 %v9660_v41  ;;  %v843_v1 = vpop.f32.mrf.mxu0  ;;  %3512 = vmatprep.subr.bf16.mxu0 %v9661_v32  ;;  %v9679_v41 = vld [vmem:[%s18481_s3 + $0x2e4] ss:$24 sps:$4 sm:$0xff]   ;;  %v9681_v32 = vld [vmem:[%s18481_s3 + $0x5d4] ss:$24 sps:$4 sm:$0xff]  }
 0x115   :  { %18996 = vst [vmem:[#allocation7_spill] sm:$0xff] %v12466_v30  ;;  %v956_v40 = vpop.f32.mrf.mxu1  ;;  %v844_v5 = vadd.f32 %v843_v1, %v12379_v60  ;;  %4134 = vmatprep.subr.bf16.mxu1 %v9663_v19 }
 0x116   :  { %18997 = vst [vmem:[#allocation8_spill] sm:$0xff] %v12468_v58  ;;  %v957_v45 = vadd.f32 %v956_v40, %v12384_v35  ;;  %v845_v7 = vpop.f32.mrf.mxu0  ;;  %v9684_v40 = vld [vmem:[%s18481_s3 + $0x5d0] ss:$24 sps:$4 sm:$0xff]  }
 0x117   :  { %v958_v10 = vpop.f32.mrf.mxu1  ;;  %v12486_v51 = vpack.c.bf16 %v844_v5, %v842_v28  ;;  %v846_v17 = vadd.f32 %v845_v7, %v12361_v23  ;;  %3513 = vmatpush1.bf16.msra.mxu0 %v9665_v63 }
 0x118   :  { %v12488_v16 = vpack.c.bf16 %v957_v45, %v955_v62  ;;  %v959_v20 = vadd.f32 %v958_v10, %v12366_v57  ;;  %4135 = vmatpush1.bf16.msra.mxu1 %v9666_v33  ;;  %v847_v24 = vpop.f32.mrf.mxu0  ;;  %3514 = vmatprep.subr.bf16.mxu0 %v9667_v4  ;;  %v9683_v62 = vld [vmem:[%s18481_s3 + $0x2e0] ss:$24 sps:$4 sm:$0xff]   ;;  %v9685_v33 = vld [vmem:[%s18481_s3 + $0x2b4] ss:$24 sps:$4 sm:$0xff]   ;;  %v9687_v45 = vld [vmem:[%s18481_s3 + $0x5a4] ss:$24 sps:$4 sm:$0xff]  }
 0x119   :  { %18998 = vst [vmem:[#allocation9_spill] sm:$0xff] %v12486_v51  ;;  %v960_v2 = vpop.f32.mrf.mxu1  ;;  %v848_v48 = vadd.f32 %v847_v24, %v12379_v60  ;;  %4136 = vmatprep.subr.bf16.mxu1 %v9669_v38  ;;  %v9689_v24 = vld [vmem:[%s18481_s3 + $0x2b0] ss:$24 sps:$4 sm:$0xff]  }
 0x11a   :  { %18999 = vst [vmem:[#allocation10_spill] sm:$0xff] %v12488_v16  ;;  %v961_v9 = vadd.f32 %v960_v2, %v12384_v35  ;;  %v851_v59 = vpop.f32.mrf.mxu0 }
 0x11b   :  { %v964_v31 = vpop.f32.mrf.mxu1  ;;  %v12506_v15 = vpack.c.bf16 %v848_v48, %v846_v17  ;;  %v852_v3 = vadd.f32 %v851_v59, %v12361_v23  ;;  %3515 = vmatpush1.bf16.msra.mxu0 %v9671_v22  ;;  %v9691_v48 = vld [vmem:[%s18481_s3 + $0x284] ss:$24 sps:$4 sm:$0xff]   ;;  %v9693_v59 = vld [vmem:[%s18481_s3 + $0x574] ss:$24 sps:$4 sm:$0xff]  }
 0x11c   :  { %v12508_v34 = vpack.c.bf16 %v961_v9, %v959_v20  ;;  %v965_v36 = vadd.f32 %v964_v31, %v12366_v57  ;;  %4137 = vmatpush1.bf16.msra.mxu1 %v9672_v26  ;;  %v853_v39 = vpop.f32.mrf.mxu0  ;;  %3516 = vmatprep.subr.bf16.mxu0 %v9673_v54  ;;  %v9690_v54 = vld [vmem:[%s18481_s3 + $0x5a0] ss:$24 sps:$4 sm:$0xff]  }
 0x11d   :  { %19000 = vst [vmem:[#allocation11_spill] sm:$0xff] %v12506_v15  ;;  %v966_v6 = vpop.f32.mrf.mxu1  ;;  %v854_v42 = vadd.f32 %v853_v39, %v12379_v60  ;;  %4138 = vmatprep.subr.bf16.mxu1 %v9675_v29 }
 0x11e   :  { %19001 = vst [vmem:[#allocation12_spill] sm:$0xff] %v12508_v34  ;;  %v967_v44 = vadd.f32 %v966_v6, %v12384_v35  ;;  %v855_v12 = vpop.f32.mrf.mxu0  ;;  %v13399_v34 = vld [vmem:[%s18481_s3 + $0x1b0] ss:$24 sps:$4 sm:$0xff]  }
 0x11f   :  { %v968_v46 = vpop.f32.mrf.mxu1  ;;  %v12526_v19 = vpack.c.bf16 %v854_v42, %v852_v3  ;;  %v856_v55 = vadd.f32 %v855_v12, %v12361_v23  ;;  %3517 = vmatpush1.bf16.msra.mxu0 %v9677_v21 }
 0x120   :  { %v12528_v50 = vpack.c.bf16 %v967_v44, %v965_v36  ;;  %v969_v28 = vadd.f32 %v968_v46, %v12366_v57  ;;  %4139 = vmatpush1.bf16.msra.mxu1 %v9678_v27  ;;  %v857_v63 = vpop.f32.mrf.mxu0  ;;  %3518 = vmatprep.subr.bf16.mxu0 %v9679_v41  ;;  %v9695_v27 = vld [vmem:[%s18481_s3 + $0x280] ss:$24 sps:$4 sm:$0xff]   ;;  %v9696_v44 = vld [vmem:[%s18481_s3 + $0x570] ss:$24 sps:$4 sm:$0xff]  }
 0x121   :  { %19002 = vst [vmem:[#allocation13_spill] sm:$0xff] %v12526_v19  ;;  %v970_v1 = vpop.f32.mrf.mxu1  ;;  %v858_v4 = vadd.f32 %v857_v63, %v12379_v60  ;;  %4140 = vmatprep.subr.bf16.mxu1 %v9681_v32  ;;  %v9697_v32 = vld [vmem:[%s18481_s3 + $0x254] ss:$24 sps:$4 sm:$0xff]  }
 0x122   :  { %19003 = vst [vmem:[#allocation14_spill] sm:$0xff] %v12528_v50  ;;  %v971_v5 = vadd.f32 %v970_v1, %v12384_v35  ;;  %v861_v38 = vpop.f32.mrf.mxu0 }
 0x123   :  { %v974_v7 = vpop.f32.mrf.mxu1  ;;  %v12546_v10 = vpack.c.bf16 %v858_v4, %v856_v55  ;;  %v862_v20 = vadd.f32 %v861_v38, %v12361_v23  ;;  %3519 = vmatpush2.bf16.msra.mxu0 %v9683_v62  ;;  %v9699_v55 = vld [vmem:[%s18481_s3 + $0x544] ss:$24 sps:$4 sm:$0xff]   ;;  %v9701_v4 = vld [vmem:[%s18481_s3 + $0x250] ss:$24 sps:$4 sm:$0xff]   ;;  %v9702_v38 = vld [vmem:[%s18481_s3 + $0x540] ss:$24 sps:$4 sm:$0xff]  }
 0x124   :  { %v12548_v17 = vpack.c.bf16 %v971_v5, %v969_v28  ;;  %v975_v22 = vadd.f32 %v974_v7, %v12366_v57  ;;  %4141 = vmatpush2.bf16.msra.mxu1 %v9684_v40  ;;  %v863_v2 = vpop.f32.mrf.mxu0  ;;  %3520 = vmatprep.subr.bf16.mxu0 %v9685_v33  ;;  %v9703_v7 = vld [vmem:[%s18481_s3 + $0x224] ss:$24 sps:$4 sm:$0xff]  }
 0x125   :  { %19004 = vst [vmem:[#allocation15_spill] sm:$0xff] %v12546_v10  ;;  %v976_v26 = vpop.f32.mrf.mxu1  ;;  %v864_v9 = vadd.f32 %v863_v2, %v12379_v60  ;;  %4142 = vmatprep.subr.bf16.mxu1 %v9687_v45 }
 0x126   :  { %19005 = vst [vmem:[#allocation16_spill] sm:$0xff] %v12548_v17  ;;  %v977_v29 = vadd.f32 %v976_v26, %v12384_v35  ;;  %v865_v31 = vpop.f32.mrf.mxu0  ;;  %v13335_v17 = vld [vmem:[%s18481_s3 + $0x210] ss:$24 sps:$4 sm:$0xff]  }
 0x127   :  { %v978_v3 = vpop.f32.mrf.mxu1  ;;  %v12566_v36 = vpack.c.bf16 %v864_v9, %v862_v20  ;;  %v866_v39 = vadd.f32 %v865_v31, %v12361_v23  ;;  %3521 = vmatpush2.bf16.msra.mxu0 %v9689_v24  ;;  %v9705_v24 = vld [vmem:[%s18481_s3 + $0x514] ss:$24 sps:$4 sm:$0xff]  }
 0x128   :  { %v12568_v21 = vpack.c.bf16 %v977_v29, %v975_v22  ;;  %v979_v6 = vadd.f32 %v978_v3, %v12366_v57  ;;  %4143 = vmatpush2.bf16.msra.mxu1 %v9690_v54  ;;  %v867_v41 = vpop.f32.mrf.mxu0  ;;  %3522 = vmatprep.subr.bf16.mxu0 %v9691_v48 }
 0x129   :  { %19006 = vst [vmem:[#allocation17_spill] sm:$0xff] %v12566_v36  ;;  %v980_v42 = vpop.f32.mrf.mxu1  ;;  %v868_v12 = vadd.f32 %v867_v41, %v12379_v60  ;;  %4144 = vmatprep.subr.bf16.mxu1 %v9693_v59  ;;  %v9707_v59 = vld [vmem:[%s18481_s3 + $0x220] ss:$24 sps:$4 sm:$0xff]  }
 0x12a   :  { %19007 = vst [vmem:[#allocation18_spill] sm:$0xff] %v12568_v21  ;;  %v981_v46 = vadd.f32 %v980_v42, %v12384_v35  ;;  %v871_v28 = vpop.f32.mrf.mxu0  ;;  %v9711_v42 = vld [vmem:[%s18481_s3 + $0x4e4] ss:$24 sps:$4 sm:$0xff]   ;;  %v9822_v21 = vld [vmem:[%s18481_s3 + $0x490] ss:$24 sps:$4 sm:$0xff]  }
 0x12b   :  { %v984_v62 = vpop.f32.mrf.mxu1  ;;  %v12586_v63 = vpack.c.bf16 %v868_v12, %v866_v39  ;;  %v872_v40 = vadd.f32 %v871_v28, %v12361_v23  ;;  %3523 = vmatpush2.bf16.msra.mxu0 %v9695_v27  ;;  %v9708_v39 = vld [vmem:[%s18481_s3 + $0x510] ss:$24 sps:$4 sm:$0xff]  }
 0x12c   :  { %v12588_v1 = vpack.c.bf16 %v981_v46, %v979_v6  ;;  %v985_v33 = vadd.f32 %v984_v62, %v12366_v57  ;;  %4145 = vmatpush2.bf16.msra.mxu1 %v9696_v44  ;;  %v873_v5 = vpop.f32.mrf.mxu0  ;;  %3524 = vmatprep.subr.bf16.mxu0 %v9697_v32  ;;  %v9709_v6 = vld [vmem:[%s18481_s3 + $0x1f4] ss:$24 sps:$4 sm:$0xff]   ;;  %v9713_v62 = vld [vmem:[%s18481_s3 + $0x1f0] ss:$24 sps:$4 sm:$0xff]  }
 0x12d   :  { %19008 = vst [vmem:[#allocation19_spill] sm:$0xff] %v12586_v63  ;;  %v986_v45 = vpop.f32.mrf.mxu1  ;;  %v874_v20 = vadd.f32 %v873_v5, %v12379_v60  ;;  %4146 = vmatprep.subr.bf16.mxu1 %v9699_v55  ;;  %v9715_v5 = vld [vmem:[%s18481_s3 + $0x1c4] ss:$24 sps:$4 sm:$0xff]  }
 0x12e   :  { %19009 = vst [vmem:[#allocation20_spill] sm:$0xff] %v12588_v1  ;;  %v987_v22 = vadd.f32 %v986_v45, %v12384_v35  ;;  %v875_v2 = vpop.f32.mrf.mxu0  ;;  %v9816_v1 = vld [vmem:[%s18481_s3 + $0x4c0] ss:$24 sps:$4 sm:$0xff]  }
 0x12f   :  { %v988_v26 = vpop.f32.mrf.mxu1  ;;  %v12606_v54 = vpack.c.bf16 %v874_v20, %v872_v40  ;;  %v876_v9 = vadd.f32 %v875_v2, %v12361_v23  ;;  %3525 = vmatpush2.bf16.msra.mxu0 %v9701_v4  ;;  %v9714_v4 = vld [vmem:[%s18481_s3 + $0x4e0] ss:$24 sps:$4 sm:$0xff]  }
 0x130   :  { %v12608_v48 = vpack.c.bf16 %v987_v22, %v985_v33  ;;  %v989_v29 = vadd.f32 %v988_v26, %v12366_v57  ;;  %4147 = vmatpush2.bf16.msra.mxu1 %v9702_v38  ;;  %v877_v31 = vpop.f32.mrf.mxu0  ;;  %3526 = vmatprep.subr.bf16.mxu0 %v9703_v7  ;;  %v9717_v7 = vld [vmem:[%s18481_s3 + $0x4b4] ss:$24 sps:$4 sm:$0xff]  }
 0x131   :  { %19010 = vst [vmem:[#allocation21_spill] sm:$0xff] %v12606_v54  ;;  %v990_v3 = vpop.f32.mrf.mxu1  ;;  %v878_v27 = vadd.f32 %v877_v31, %v12379_v60  ;;  %4148 = vmatprep.subr.bf16.mxu1 %v9705_v24  ;;  %v9797_v54 = vld [vmem:[%s18481_s3 + $0x548] ss:$24 sps:$4 sm:$0xff]  }
 0x132   :  { %19011 = vst [vmem:[#allocation22_spill] sm:$0xff] %v12608_v48  ;;  %v991_v41 = vadd.f32 %v990_v3, %v12384_v35  ;;  %v881_v44 = vpop.f32.mrf.mxu0  ;;  %v9720_v3 = vld [vmem:[%s18481_s3 + $0x4b0] ss:$24 sps:$4 sm:$0xff]  }
 0x133   :  { %v994_v32 = vpop.f32.mrf.mxu1  ;;  %v12626_v12 = vpack.c.bf16 %v878_v27, %v876_v9  ;;  %v882_v55 = vadd.f32 %v881_v44, %v12361_v23  ;;  %3527 = vmatpush2.bf16.msra.mxu0 %v9707_v59  ;;  %v9791_v48 = vld [vmem:[%s18481_s3 + $0x578] ss:$24 sps:$4 sm:$0xff]  }
 0x134   :  { %v12628_v46 = vpack.c.bf16 %v991_v41, %v989_v29  ;;  %v995_v28 = vadd.f32 %v994_v32, %v12366_v57  ;;  %4149 = vmatpush2.bf16.msra.mxu1 %v9708_v39  ;;  %v883_v40 = vpop.f32.mrf.mxu0  ;;  %3528 = vmatprep.subr.bf16.mxu0 %v9709_v6  ;;  %v9719_v29 = vld [vmem:[%s18481_s3 + $0x1c0] ss:$24 sps:$4 sm:$0xff]   ;;  %v9721_v39 = vld [vmem:[%s18481_s3 + $0x194] ss:$24 sps:$4 sm:$0xff]   ;;  %v9723_v41 = vld [vmem:[%s18481_s3 + $0x484] ss:$24 sps:$4 sm:$0xff]  }
 0x135   :  { %19012 = vst [vmem:[#allocation23_spill] sm:$0xff] %v12626_v12  ;;  %v996_v33 = vpop.f32.mrf.mxu1  ;;  %v884_v45 = vadd.f32 %v883_v40, %v12379_v60  ;;  %4150 = vmatprep.subr.bf16.mxu1 %v9711_v42  ;;  %v18489_v32 = vsub.s32 4, %v12322_v13  ;;  %v9792_v12 = vld [vmem:[%s18481_s3 + $0x580] ss:$24 sps:$4 sm:$0xff]  }
 0x136   :  { %19013 = vst [vmem:[#allocation24_spill] sm:$0xff] %v12628_v46  ;;  %v997_v38 = vadd.f32 %v996_v33, %v12384_v35  ;;  %v885_v20 = vpop.f32.mrf.mxu0  ;;  %v9725_v33 = vld [vmem:[%s18481_s3 + $0x190] ss:$24 sps:$4 sm:$0xff]  }
 0x137   :  { %v998_v22 = vpop.f32.mrf.mxu1  ;;  %v12646_v24 = vpack.c.bf16 %v884_v45, %v882_v55  ;;  %v886_v26 = vadd.f32 %v885_v20, %v12361_v23  ;;  %3529 = vmatpush2.bf16.msra.mxu0 %v9713_v62  ;;  %v9786_v46 = vld [vmem:[%s18481_s3 + $0x5b0] ss:$24 sps:$4 sm:$0xff]  }
 0x138   :  { %v12648_v2 = vpack.c.bf16 %v997_v38, %v995_v28  ;;  %v999_v9 = vadd.f32 %v998_v22, %v12366_v57  ;;  %4151 = vmatpush2.bf16.msra.mxu1 %v9714_v4  ;;  %v887_v59 = vpop.f32.mrf.mxu0  ;;  %3530 = vmatprep.subr.bf16.mxu0 %v9715_v5  ;;  %v12679_v4 = vld [vmem:[%s18482_s4 + $0x6] sm:$0x3f]  ;;  %v9726_v38 = vld [vmem:[%s18481_s3 + $0x480] ss:$24 sps:$4 sm:$0xff]  }
 0x139   :  { %19014 = vst [vmem:[#allocation25_spill] sm:$0xff] %v12646_v24  ;;  %v1000_v31 = vpop.f32.mrf.mxu1  ;;  %v888_v6 = vadd.f32 %v887_v59, %v12379_v60  ;;  %4152 = vmatprep.subr.bf16.mxu1 %v9717_v7  ;;  %v9727_v7 = vld [vmem:[%s18481_s3 + $0x45c] ss:$24 sps:$4 sm:$0xff]   ;;  %v9779_v24 = vld [vmem:[%s18481_s3 + $0x5d8] ss:$24 sps:$4 sm:$0xff]  }
 0x13a   :  { %19015 = vst [vmem:[#allocation26_spill] sm:$0xff] %v12648_v2  ;;  %v1001_v27 = vadd.f32 %v1000_v31, %v12384_v35  ;;  %v891_v42 = vpop.f32.mrf.mxu0  ;;  %v12696_v31 = vrot.slane %v12342_v37, %v18489_v32  ;;  %v9743_v32 = vld [vmem:[%s18481_s3 + $0x3f8] ss:$24 sps:$4 sm:$0xff]   ;;  %v9773_v2 = vld [vmem:[%s18481_s3 + $0x308] ss:$24 sps:$4 sm:$0xff]  }
 0x13b   :  { %v1004_v44 = vpop.f32.mrf.mxu1  ;;  %v12667_v55 = vpack.c.bf16 %v888_v6, %v886_v26  ;;  %v892_v62 = vadd.f32 %v891_v42, %v12361_v23  ;;  %3531 = vmatpush2.bf16.msra.mxu0 %v9719_v29  ;;  %v9729_v26 = vld [vmem:[%s18481_s3 + $0x464] ss:$24 sps:$4 sm:$0xff]  }
 0x13c   :  { %v12669_v28 = vpack.c.bf16 %v1001_v27, %v999_v9  ;;  %v1005_v40 = vadd.f32 %v1004_v44, %v12366_v57  ;;  %4153 = vmatpush2.bf16.msra.mxu1 %v9720_v3  ;;  %v893_v5 = vpop.f32.mrf.mxu0  ;;  %3532 = vmatprep.subr.bf16.mxu0 %v9721_v39  ;;  %v18487_v9 = vsub.s32 5, %v12322_v13  ;;  %v12700_v3 = vrot.slane %v12679_v4, %v12336_v47 }
 0x13d   :  { %19016 = vst [vmem:[#allocation27_spill] sm:$0xff] %v12667_v55  ;;  %v1006_v45 = vpop.f32.mrf.mxu1  ;;  %v894_v20 = vadd.f32 %v893_v5, %v12379_v60  ;;  %4154 = vmatprep.subr.bf16.mxu1 %v9723_v41  ;;  %v9731_v5 = vld [vmem:[%s18481_s3 + $0x458] ss:$24 sps:$4 sm:$0xff]  }
 0x13e   :  { %19017 = vst [vmem:[#allocation28_spill] sm:$0xff] %v12669_v28  ;;  %v1007_v22 = vadd.f32 %v1006_v45, %v12384_v35  ;;  %v895_v29 = vpop.f32.mrf.mxu0  ;;  %v9768_v28 = vld [vmem:[%s18481_s3 + $0x340] ss:$24 sps:$4 sm:$0xff]   ;;  %v9774_v55 = vld [vmem:[%s18481_s3 + $0x310] ss:$24 sps:$4 sm:$0xff]  }
 0x13f   :  { %v1008_v59 = vpop.f32.mrf.mxu1  ;;  %v12702_v39 = vpack.c.bf16 %v894_v20, %v892_v62  ;;  %v896_v27 = vadd.f32 %v895_v29, %v12361_v23  ;;  %3533 = vmatpush2.bf16.msra.mxu0 %v9725_v33  ;;  %v9732_v62 = vld [vmem:[%s18481_s3 + $0x460] ss:$24 sps:$4 sm:$0xff]   ;;  %v12719_v33 = vrot.slane %v12342_v37, %v18487_v9  ;;  %v9735_v20 = vld [vmem:[%s18481_s3 + $0x434] ss:$24 sps:$4 sm:$0xff]  }
 0x140   :  { %v12704_v6 = vpack.c.bf16 %v1007_v22, %v1005_v40  ;;  %v1009_v41 = vadd.f32 %v1008_v59, %v12366_v57  ;;  %4155 = vmatpush2.bf16.msra.mxu1 %v9726_v38  ;;  %v897_v42 = vpop.f32.mrf.mxu0  ;;  %4167 = vmatprep.subr.bf16.mxu0 %v9727_v7  ;;  %v12723_v38 = vrot.slane %v12679_v4, %v12353_v53  ;;  %v9733_v7 = vld [vmem:[%s18481_s3 + $0x42c] ss:$24 sps:$4 sm:$0xff]  }
 0x141   :  { %19018 = vst [vmem:[#allocation29_spill] sm:$0xff] %v12702_v39  ;;  %v1010_v44 = vpop.f32.mrf.mxu1  ;;  %v898_v40 = vadd.f32 %v897_v42, %v12379_v60  ;;  %4210 = vmatprep.subr.bf16.mxu1 %v9729_v26  ;;  %v9761_v39 = vld [vmem:[%s18481_s3 + $0x368] ss:$24 sps:$4 sm:$0xff]  }
 0x142   :  { %19019 = vst [vmem:[#allocation30_spill] sm:$0xff] %v12704_v6  ;;  %v1011_v45 = vadd.f32 %v1010_v44, %v12384_v35  ;;  %v1047_v22 = vpop.f32.mrf.mxu0  ;;  %3535 = vmatmul.mubr.bf16.vlgmr.msra.gmra.mxu0 %v18491_v52  ;;  %v9755_v6 = vld [vmem:[%s18481_s3 + $0x398] ss:$24 sps:$4 sm:$0xff]  }
 0x143   :  { %v1850_v29 = vpop.f32.mrf.mxu1  ;;  %v12732_v26 = vpack.c.bf16 %v898_v40, %v896_v27  ;;  %v1048_v59 = vadd.f32 %v1047_v22, %v12696_v31  ;;  %4157 = vmatmul.mubr.bf16.vlgmr.msra.gmra.mxu1 %v18491_v52  ;;  %4168 = vmatpush1.bf16.msra.mxu0 %v9731_v5  ;;  %v9738_v27 = vld [vmem:[%s18481_s3 + $0x430] ss:$24 sps:$4 sm:$0xff]   ;;  %v9739_v5 = vld [vmem:[%s18481_s3 + $0x3fc] ss:$24 sps:$4 sm:$0xff]  }
 0x144   :  { %v12734_v37 = vpack.c.bf16 %v1011_v45, %v1009_v41  ;;  %v1851_v42 = vadd.f32 %v1850_v29, %v12700_v3  ;;  %4211 = vmatpush1.bf16.msra.mxu1 %v9732_v62  ;;  %v1049_v44 = vpop.f32.mrf.mxu0  ;;  %4169 = vmatprep.subr.bf16.mxu0 %v9733_v7  ;;  %v9741_v62 = vld [vmem:[%s18481_s3 + $0x404] ss:$24 sps:$4 sm:$0xff]  }
 0x145   :  { %19020 = vst [vmem:[#allocation31_spill] sm:$0xff] %v12732_v26  ;;  %v1852_v9 = vpop.f32.mrf.mxu1  ;;  %v1050_v41 = vadd.f32 %v1049_v44, %v12719_v33  ;;  %4212 = vmatprep.subr.bf16.mxu1 %v9735_v20  ;;  %4199 = vmatprep.mubr.bf16.mxu0 %v18491_v52  ;;  %v9756_v26 = vld [vmem:[%s18481_s3 + $0x3a0] ss:$24 sps:$4 sm:$0xff]  }
 0x146   :  { %19021 = vst [vmem:[#allocation32_spill] sm:$0xff] %v12734_v37  ;;  %v1853_v40 = vadd.f32 %v1852_v9, %v12723_v38  ;;  %v12753_v45 = vpop.f32.mrf.mxu0  ;;  %4242 = vmatprep.mubr.bf16.mxu1 %v18491_v52 }
 0x147   :  { %v1854_v22 = vpop.f32.mrf.mxu1  ;;  %v12757_v29 = vpack.c.bf16 %v1050_v41, %v1048_v59  ;;  %4170 = vmatpush1.bf16.msra.mxu0 %v9737_v25  ;;  %v9745_v25 = vld [vmem:[%s18481_s3 + $0x3cc] ss:$24 sps:$4 sm:$0xff]  }
 0x148   :  { %v12759_v9 = vpack.c.bf16 %v1853_v40, %v1851_v42  ;;  %v1855_v7 = vadd.f32 %v1854_v22, %v12700_v3  ;;  %4213 = vmatpush1.bf16.msra.mxu1 %v9738_v27  ;;  %v12762_v20 = vpop.f32.mrf.mxu0  ;;  %4171 = vmatprep.subr.bf16.mxu0 %v9739_v5  ;;  %v9747_v42 = vld [vmem:[%s18481_s3 + $0x3d4] ss:$24 sps:$4 sm:$0xff]  }
 0x149   :  { %v1856_v44 = vpop.f32.mrf.mxu1  ;;  %4214 = vmatprep.subr.bf16.mxu1 %v9741_v62 }
 0x14a   :  { %19022 = vst [vmem:[#allocation33_spill] sm:$0xff] %v12759_v9  ;;  %v1857_v59 = vadd.f32 %v1856_v44, %v12723_v38  ;;  %v1057_v27 = vpop.f32.mrf.mxu0  ;;  %v9749_v44 = vld [vmem:[%s18481_s3 + $0x3c8] ss:$24 sps:$4 sm:$0xff]  }
 0x14b   :  { %v1860_v41 = vpop.f32.mrf.mxu1  ;;  %v1058_v22 = vadd.f32 %v1057_v27, %v12696_v31  ;;  %4172 = vmatpush1.bf16.msra.mxu0 %v9743_v32  ;;  %v9750_v9 = vld [vmem:[%s18481_s3 + $0x3d0] ss:$24 sps:$4 sm:$0xff]   ;;  %v9753_v32 = vld [vmem:[%s18481_s3 + $0x3a4] ss:$24 sps:$4 sm:$0xff]  }
 0x14c   :  { %v12777_v40 = vpack.c.bf16 %v1857_v59, %v1855_v7  ;;  %v1861_v52 = vadd.f32 %v1860_v41, %v12700_v3  ;;  %4215 = vmatpush1.bf16.msra.mxu1 %v9744_v18  ;;  %v1059_v5 = vpop.f32.mrf.mxu0  ;;  %4173 = vmatprep.subr.bf16.mxu0 %v9745_v25  ;;  %v9751_v18 = vld [vmem:[%s18481_s3 + $0x39c] ss:$24 sps:$4 sm:$0xff]  }
 0x14d   :  { %v1862_v62 = vpop.f32.mrf.mxu1  ;;  %v1060_v37 = vadd.f32 %v1059_v5, %v12719_v33  ;;  %4216 = vmatprep.subr.bf16.mxu1 %v9747_v42 }
 0x14e   :  { %19023 = vst [vmem:[#allocation34_spill] sm:$0xff] %v12777_v40  ;;  %v1863_v7 = vadd.f32 %v1862_v62, %v12723_v38  ;;  %v1061_v59 = vpop.f32.mrf.mxu0 }
 0x14f   :  { %v1864_v27 = vpop.f32.mrf.mxu1  ;;  %v12795_v41 = vpack.c.bf16 %v1060_v37, %v1058_v22  ;;  %v1062_v5 = vadd.f32 %v1061_v59, %v12696_v31  ;;  %4174 = vmatpush1.bf16.msra.mxu0 %v9749_v44  ;;  %v9759_v22 = vld [vmem:[%s18481_s3 + $0x374] ss:$24 sps:$4 sm:$0xff]  }
 0x150   :  { %v12797_v40 = vpack.c.bf16 %v1863_v7, %v1861_v52  ;;  %v1865_v62 = vadd.f32 %v1864_v27, %v12700_v3  ;;  %4217 = vmatpush1.bf16.msra.mxu1 %v9750_v9  ;;  %v1063_v25 = vpop.f32.mrf.mxu0  ;;  %4175 = vmatprep.subr.bf16.mxu0 %v9751_v18  ;;  %v9757_v9 = vld [vmem:[%s18481_s3 + $0x36c] ss:$24 sps:$4 sm:$0xff]  }
 0x151   :  { %19024 = vst [vmem:[#allocation35_spill] sm:$0xff] %v12795_v41  ;;  %v1866_v42 = vpop.f32.mrf.mxu1  ;;  %v1064_v37 = vadd.f32 %v1063_v25, %v12719_v33  ;;  %4218 = vmatprep.subr.bf16.mxu1 %v9753_v32 }
 0x152   :  { %19025 = vst [vmem:[#allocation36_spill] sm:$0xff] %v12797_v40  ;;  %v1867_v52 = vadd.f32 %v1866_v42, %v12723_v38  ;;  %v1067_v44 = vpop.f32.mrf.mxu0  ;;  %v9762_v40 = vld [vmem:[%s18481_s3 + $0x370] ss:$24 sps:$4 sm:$0xff]  }
 0x153   :  { %v1870_v7 = vpop.f32.mrf.mxu1  ;;  %v12815_v59 = vpack.c.bf16 %v1064_v37, %v1062_v5  ;;  %v1068_v25 = vadd.f32 %v1067_v44, %v12696_v31  ;;  %4176 = vmatpush1.bf16.msra.mxu0 %v9755_v6  ;;  %v9763_v6 = vld [vmem:[%s18481_s3 + $0x33c] ss:$24 sps:$4 sm:$0xff]  }
 0x154   :  { %v12817_v27 = vpack.c.bf16 %v1867_v52, %v1865_v62  ;;  %v1871_v42 = vadd.f32 %v1870_v7, %v12700_v3  ;;  %4219 = vmatpush1.bf16.msra.mxu1 %v9756_v26  ;;  %v1069_v18 = vpop.f32.mrf.mxu0  ;;  %4177 = vmatprep.subr.bf16.mxu0 %v9757_v9  ;;  %v9765_v26 = vld [vmem:[%s18481_s3 + $0x344] ss:$24 sps:$4 sm:$0xff]  }
 0x155   :  { %19026 = vst [vmem:[#allocation37_spill] sm:$0xff] %v12815_v59  ;;  %v1872_v32 = vpop.f32.mrf.mxu1  ;;  %v1070_v5 = vadd.f32 %v1069_v18, %v12719_v33  ;;  %4220 = vmatprep.subr.bf16.mxu1 %v9759_v22  ;;  %v4267_v59 = vunpack.c.h.bf16 %v12410_v43 }
 0x156   :  { %19027 = vst [vmem:[#allocation38_spill] sm:$0xff] %v12817_v27  ;;  %v1873_v62 = vadd.f32 %v1872_v32, %v12723_v38  ;;  %v1071_v37 = vpop.f32.mrf.mxu0  ;;  %v9767_v27 = vld [vmem:[%s18481_s3 + $0x338] ss:$24 sps:$4 sm:$0xff]  }
 0x157   :  { %v1874_v52 = vpop.f32.mrf.mxu1  ;;  %v12835_v44 = vpack.c.bf16 %v1070_v5, %v1068_v25  ;;  %v1072_v18 = vadd.f32 %v1071_v37, %v12696_v31  ;;  %4178 = vmatpush1.bf16.msra.mxu0 %v9761_v39  ;;  %v9769_v39 = vld [vmem:[%s18481_s3 + $0x30c] ss:$24 sps:$4 sm:$0xff]  }
 0x158   :  { %v12837_v7 = vpack.c.bf16 %v1873_v62, %v1871_v42  ;;  %v1875_v32 = vadd.f32 %v1874_v52, %v12700_v3  ;;  %4221 = vmatpush1.bf16.msra.mxu1 %v9762_v40  ;;  %v1073_v9 = vpop.f32.mrf.mxu0  ;;  %4179 = vmatprep.subr.bf16.mxu0 %v9763_v6  ;;  %v9771_v40 = vld [vmem:[%s18481_s3 + $0x314] ss:$24 sps:$4 sm:$0xff]  }
 0x159   :  { %19028 = vst [vmem:[#allocation39_spill] sm:$0xff] %v12835_v44  ;;  %v1876_v22 = vpop.f32.mrf.mxu1  ;;  %v1074_v25 = vadd.f32 %v1073_v9, %v12719_v33  ;;  %4222 = vmatprep.subr.bf16.mxu1 %v9765_v26 }
 0x15a   :  { %19029 = vst [vmem:[#allocation40_spill] sm:$0xff] %v12837_v7  ;;  %v1877_v42 = vadd.f32 %v1876_v22, %v12723_v38  ;;  %v1077_v5 = vpop.f32.mrf.mxu0  ;;  %v9785_v7 = vld [vmem:[%s18481_s3 + $0x5a8] ss:$24 sps:$4 sm:$0xff]  }
 0x15b   :  { %v1880_v62 = vpop.f32.mrf.mxu1  ;;  %v12855_v37 = vpack.c.bf16 %v1074_v25, %v1072_v18  ;;  %v1078_v9 = vadd.f32 %v1077_v5, %v12696_v31  ;;  %4180 = vmatpush1.bf16.msra.mxu0 %v9767_v27  ;;  %v9777_v27 = vld [vmem:[%s18481_s3 + $0x5e4] ss:$24 sps:$4 sm:$0xff]  }
 0x15c   :  { %v12857_v52 = vpack.c.bf16 %v1877_v42, %v1875_v32  ;;  %v1881_v22 = vadd.f32 %v1880_v62, %v12700_v3  ;;  %4223 = vmatpush1.bf16.msra.mxu1 %v9768_v28  ;;  %v1079_v6 = vpop.f32.mrf.mxu0  ;;  %4181 = vmatprep.subr.bf16.mxu0 %v9769_v39  ;;  %v9775_v28 = vld [vmem:[%s18481_s3 + $0x5dc] ss:$24 sps:$4 sm:$0xff]  }
 0x15d   :  { %19030 = vst [vmem:[#allocation41_spill] sm:$0xff] %v12855_v37  ;;  %v1882_v26 = vpop.f32.mrf.mxu1  ;;  %v1080_v18 = vadd.f32 %v1079_v6, %v12719_v33  ;;  %4224 = vmatprep.subr.bf16.mxu1 %v9771_v40 }
 0x15e   :  { %19031 = vst [vmem:[#allocation42_spill] sm:$0xff] %v12857_v52  ;;  %v1883_v32 = vadd.f32 %v1882_v26, %v12723_v38  ;;  %v1081_v25 = vpop.f32.mrf.mxu0  ;;  %v9780_v52 = vld [vmem:[%s18481_s3 + $0x5e0] ss:$24 sps:$4 sm:$0xff]  }
 0x15f   :  { %v1884_v42 = vpop.f32.mrf.mxu1  ;;  %v12875_v5 = vpack.c.bf16 %v1080_v18, %v1078_v9  ;;  %v1082_v6 = vadd.f32 %v1081_v25, %v12696_v31  ;;  %4182 = vmatpush1.bf16.msra.mxu0 %v9773_v2  ;;  %v9781_v2 = vld [vmem:[%s18481_s3 + $0x5ac] ss:$24 sps:$4 sm:$0xff]  }
 0x160   :  { %v12877_v62 = vpack.c.bf16 %v1883_v32, %v1881_v22  ;;  %v1885_v26 = vadd.f32 %v1884_v42, %v12700_v3  ;;  %4225 = vmatpush1.bf16.msra.mxu1 %v9774_v55  ;;  %v1083_v39 = vpop.f32.mrf.mxu0  ;;  %4183 = vmatprep.subr.bf16.mxu0 %v9775_v28  ;;  %v9783_v55 = vld [vmem:[%s18481_s3 + $0x5b4] ss:$24 sps:$4 sm:$0xff]  }
 0x161   :  { %19032 = vst [vmem:[#allocation43_spill] sm:$0xff] %v12875_v5  ;;  %v1886_v40 = vpop.f32.mrf.mxu1  ;;  %v1084_v9 = vadd.f32 %v1083_v39, %v12719_v33  ;;  %4226 = vmatprep.subr.bf16.mxu1 %v9777_v27 }
 0x162   :  { %19033 = vst [vmem:[#allocation44_spill] sm:$0xff] %v12877_v62  ;;  %v1887_v22 = vadd.f32 %v1886_v40, %v12723_v38  ;;  %v1087_v18 = vpop.f32.mrf.mxu0  ;;  %v9803_v62 = vld [vmem:[%s18481_s3 + $0x518] ss:$24 sps:$4 sm:$0xff]  }
 0x163   :  { %v1890_v32 = vpop.f32.mrf.mxu1  ;;  %v12895_v25 = vpack.c.bf16 %v1084_v9, %v1082_v6  ;;  %v1088_v39 = vadd.f32 %v1087_v18, %v12696_v31  ;;  %4184 = vmatpush2.bf16.msra.mxu0 %v9779_v24  ;;  %v9787_v24 = vld [vmem:[%s18481_s3 + $0x57c] ss:$24 sps:$4 sm:$0xff]  }
 0x164   :  { %v12897_v42 = vpack.c.bf16 %v1887_v22, %v1885_v26  ;;  %v1891_v40 = vadd.f32 %v1890_v32, %v12700_v3  ;;  %4227 = vmatpush2.bf16.msra.mxu1 %v9780_v52  ;;  %v1089_v28 = vpop.f32.mrf.mxu0  ;;  %4185 = vmatprep.subr.bf16.mxu0 %v9781_v2  ;;  %v9789_v52 = vld [vmem:[%s18481_s3 + $0x584] ss:$24 sps:$4 sm:$0xff]  }
 0x165   :  { %19034 = vst [vmem:[#allocation45_spill] sm:$0xff] %v12895_v25  ;;  %v1892_v27 = vpop.f32.mrf.mxu1  ;;  %v1090_v6 = vadd.f32 %v1089_v28, %v12719_v33  ;;  %4228 = vmatprep.subr.bf16.mxu1 %v9783_v55 }
 0x166   :  { %19035 = vst [vmem:[#allocation46_spill] sm:$0xff] %v12897_v42  ;;  %v1893_v26 = vadd.f32 %v1892_v27, %v12723_v38  ;;  %v1091_v9 = vpop.f32.mrf.mxu0  ;;  %v9798_v42 = vld [vmem:[%s18481_s3 + $0x550] ss:$24 sps:$4 sm:$0xff]  }
 0x167   :  { %v1894_v22 = vpop.f32.mrf.mxu1  ;;  %v12915_v18 = vpack.c.bf16 %v1090_v6, %v1088_v39  ;;  %v1092_v28 = vadd.f32 %v1091_v9, %v12696_v31  ;;  %4186 = vmatpush2.bf16.msra.mxu0 %v9785_v7  ;;  %v9795_v7 = vld [vmem:[%s18481_s3 + $0x554] ss:$24 sps:$4 sm:$0xff]  }
 0x168   :  { %v12917_v32 = vpack.c.bf16 %v1893_v26, %v1891_v40  ;;  %v1895_v27 = vadd.f32 %v1894_v22, %v12700_v3  ;;  %4229 = vmatpush2.bf16.msra.mxu1 %v9786_v46  ;;  %v1093_v2 = vpop.f32.mrf.mxu0  ;;  %4187 = vmatprep.subr.bf16.mxu0 %v9787_v24  ;;  %v9793_v46 = vld [vmem:[%s18481_s3 + $0x54c] ss:$24 sps:$4 sm:$0xff]  }
 0x169   :  { %19036 = vst [vmem:[#allocation47_spill] sm:$0xff] %v12915_v18  ;;  %v1896_v55 = vpop.f32.mrf.mxu1  ;;  %v1094_v39 = vadd.f32 %v1093_v2, %v12719_v33  ;;  %4230 = vmatprep.subr.bf16.mxu1 %v9789_v52  ;;  %v9810_v18 = vld [vmem:[%s18481_s3 + $0x4f0] ss:$24 sps:$4 sm:$0xff]  }
 0x16a   :  { %19037 = vst [vmem:[#allocation48_spill] sm:$0xff] %v12917_v32  ;;  %v1897_v40 = vadd.f32 %v1896_v55, %v12723_v38  ;;  %v1097_v6 = vpop.f32.mrf.mxu0 }
 0x16b   :  { %v1900_v26 = vpop.f32.mrf.mxu1  ;;  %v12935_v9 = vpack.c.bf16 %v1094_v39, %v1092_v28  ;;  %v1098_v2 = vadd.f32 %v1097_v6, %v12696_v31  ;;  %4188 = vmatpush2.bf16.msra.mxu0 %v9791_v48  ;;  %v9799_v48 = vld [vmem:[%s18481_s3 + $0x51c] ss:$24 sps:$4 sm:$0xff]  }
 0x16c   :  { %v12937_v22 = vpack.c.bf16 %v1897_v40, %v1895_v27  ;;  %v1901_v55 = vadd.f32 %v1900_v26, %v12700_v3  ;;  %4231 = vmatpush2.bf16.msra.mxu1 %v9792_v12  ;;  %v1099_v24 = vpop.f32.mrf.mxu0  ;;  %4189 = vmatprep.subr.bf16.mxu0 %v9793_v46  ;;  %v9801_v12 = vld [vmem:[%s18481_s3 + $0x524] ss:$24 sps:$4 sm:$0xff]  }
 0x16d   :  { %19038 = vst [vmem:[#allocation49_spill] sm:$0xff] %v12935_v9  ;;  %v1902_v52 = vpop.f32.mrf.mxu1  ;;  %v1100_v28 = vadd.f32 %v1099_v24, %v12719_v33  ;;  %4232 = vmatprep.subr.bf16.mxu1 %v9795_v7  ;;  %v9804_v9 = vld [vmem:[%s18481_s3 + $0x520] ss:$24 sps:$4 sm:$0xff]  }
 0x16e   :  { %19039 = vst [vmem:[#allocation50_spill] sm:$0xff] %v12937_v22  ;;  %v1903_v27 = vadd.f32 %v1902_v52, %v12723_v38  ;;  %v1101_v39 = vpop.f32.mrf.mxu0 }
 0x16f   :  { %v1904_v40 = vpop.f32.mrf.mxu1  ;;  %v12955_v6 = vpack.c.bf16 %v1100_v28, %v1098_v2  ;;  %v1102_v24 = vadd.f32 %v1101_v39, %v12696_v31  ;;  %4190 = vmatpush2.bf16.msra.mxu0 %v9797_v54  ;;  %v9805_v54 = vld [vmem:[%s18481_s3 + $0x4ec] ss:$24 sps:$4 sm:$0xff]  }
 0x170   :  { %v12957_v26 = vpack.c.bf16 %v1903_v27, %v1901_v55  ;;  %v1905_v52 = vadd.f32 %v1904_v40, %v12700_v3  ;;  %4233 = vmatpush2.bf16.msra.mxu1 %v9798_v42  ;;  %v1103_v46 = vpop.f32.mrf.mxu0  ;;  %4191 = vmatprep.subr.bf16.mxu0 %v9799_v48  ;;  %v9807_v42 = vld [vmem:[%s18481_s3 + $0x4f4] ss:$24 sps:$4 sm:$0xff]  }
 0x171   :  { %19040 = vst [vmem:[#allocation51_spill] sm:$0xff] %v12955_v6  ;;  %v1906_v7 = vpop.f32.mrf.mxu1  ;;  %v1104_v2 = vadd.f32 %v1103_v46, %v12719_v33  ;;  %4234 = vmatprep.subr.bf16.mxu1 %v9801_v12  ;;  %v9809_v6 = vld [vmem:[%s18481_s3 + $0x4e8] ss:$24 sps:$4 sm:$0xff]  }
 0x172   :  { %19041 = vst [vmem:[#allocation52_spill] sm:$0xff] %v12957_v26  ;;  %v1907_v55 = vadd.f32 %v1906_v7, %v12723_v38  ;;  %v1107_v28 = vpop.f32.mrf.mxu0 }
 0x173   :  { %v1910_v27 = vpop.f32.mrf.mxu1  ;;  %v12975_v39 = vpack.c.bf16 %v1104_v2, %v1102_v24  ;;  %v1108_v46 = vadd.f32 %v1107_v28, %v12696_v31  ;;  %4192 = vmatpush2.bf16.msra.mxu0 %v9803_v62  ;;  %v9811_v62 = vld [vmem:[%s18481_s3 + $0x4bc] ss:$24 sps:$4 sm:$0xff]  }
 0x174   :  { %v12977_v40 = vpack.c.bf16 %v1907_v55, %v1905_v52  ;;  %v1911_v7 = vadd.f32 %v1910_v27, %v12700_v3  ;;  %4235 = vmatpush2.bf16.msra.mxu1 %v9804_v9  ;;  %v1109_v48 = vpop.f32.mrf.mxu0  ;;  %4193 = vmatprep.subr.bf16.mxu0 %v9805_v54  ;;  %v9813_v9 = vld [vmem:[%s18481_s3 + $0x4c4] ss:$24 sps:$4 sm:$0xff]  }
 0x175   :  { %19042 = vst [vmem:[#allocation53_spill] sm:$0xff] %v12975_v39  ;;  %v1912_v12 = vpop.f32.mrf.mxu1  ;;  %v1110_v24 = vadd.f32 %v1109_v48, %v12719_v33  ;;  %4236 = vmatprep.subr.bf16.mxu1 %v9807_v42  ;;  %v9815_v39 = vld [vmem:[%s18481_s3 + $0x4b8] ss:$24 sps:$4 sm:$0xff]  }
 0x176   :  { %19043 = vst [vmem:[#allocation54_spill] sm:$0xff] %v12977_v40  ;;  %v1913_v52 = vadd.f32 %v1912_v12, %v12723_v38  ;;  %v1111_v2 = vpop.f32.mrf.mxu0 }
 0x177   :  { %v1914_v55 = vpop.f32.mrf.mxu1  ;;  %v12995_v28 = vpack.c.bf16 %v1110_v24, %v1108_v46  ;;  %v1112_v48 = vadd.f32 %v1111_v2, %v12696_v31  ;;  %4194 = vmatpush2.bf16.msra.mxu0 %v9809_v6  ;;  %v9819_v6 = vld [vmem:[%s18481_s3 + $0x494] ss:$24 sps:$4 sm:$0xff]  }
 0x178   :  { %v12997_v27 = vpack.c.bf16 %v1913_v52, %v1911_v7  ;;  %v1915_v12 = vadd.f32 %v1914_v55, %v12700_v3  ;;  %4237 = vmatpush2.bf16.msra.mxu1 %v9810_v18  ;;  %v1113_v54 = vpop.f32.mrf.mxu0  ;;  %4195 = vmatprep.subr.bf16.mxu0 %v9811_v62  ;;  %v9817_v18 = vld [vmem:[%s18481_s3 + $0x48c] ss:$24 sps:$4 sm:$0xff]  }
 0x179   :  { %19044 = vst [vmem:[#allocation55_spill] sm:$0xff] %v12995_v28  ;;  %v1916_v42 = vpop.f32.mrf.mxu1  ;;  %v1114_v46 = vadd.f32 %v1113_v54, %v12719_v33  ;;  %4238 = vmatprep.subr.bf16.mxu1 %v9813_v9  ;;  %v9821_v28 = vld [vmem:[%s18481_s3 + $0x488] ss:$24 sps:$4 sm:$0xff]  }
 0x17a   :  { %19045 = vst [vmem:[#allocation56_spill] sm:$0xff] %v12997_v27  ;;  %v1917_v7 = vadd.f32 %v1916_v42, %v12723_v38  ;;  %v1117_v24 = vpop.f32.mrf.mxu0 }
 0x17b   :  { %v1920_v52 = vpop.f32.mrf.mxu1  ;;  %v13015_v2 = vpack.c.bf16 %v1114_v46, %v1112_v48  ;;  %v1118_v54 = vadd.f32 %v1117_v24, %v12696_v31  ;;  %4196 = vmatpush2.bf16.msra.mxu0 %v9815_v39  ;;  %v19049_v24 = vsub.s32 4, %v12322_v13 }
 0x17c   :  { %v13017_v55 = vpack.c.bf16 %v1917_v7, %v1915_v12  ;;  %v1921_v42 = vadd.f32 %v1920_v52, %v12700_v3  ;;  %4239 = vmatpush2.bf16.msra.mxu1 %v9816_v1  ;;  %v1119_v62 = vpop.f32.mrf.mxu0  ;;  %4197 = vmatprep.subr.bf16.mxu0 %v9817_v18  ;;  %v19048_v1 = vsub.s32 2, %v12322_v13 }
 0x17d   :  { %19046 = vst [vmem:[#allocation57_spill] sm:$0xff] %v13015_v2  ;;  %v1922_v9 = vpop.f32.mrf.mxu1  ;;  %v1120_v48 = vadd.f32 %v1119_v62, %v12719_v33  ;;  %4240 = vmatprep.subr.bf16.mxu1 %v9819_v6  ;;  %v13037_v52 = vrot.slane %v12679_v4, %v19049_v24 }
 0x17e   :  { %19047 = vst [vmem:[#allocation58_spill] sm:$0xff] %v13017_v55  ;;  %v1923_v12 = vadd.f32 %v1922_v9, %v12723_v38  ;;  %v1121_v46 = vpop.f32.mrf.mxu0  ;;  %v13032_v39 = vrot.slane %v12679_v4, %v19048_v1  ;;  %v19051_v1 = vsub.s32 3, %v12322_v13 }
 0x17f   :  { %v1924_v7 = vpop.f32.mrf.mxu1  ;;  %v13039_v2 = vpack.c.bf16 %v1120_v48, %v1118_v54  ;;  %v1122_v62 = vadd.f32 %v1121_v46, %v12696_v31  ;;  %4198 = vmatpush2.bf16.msra.mxu0 %v9821_v28 }
 0x180   :  { %v13041_v63 = vpack.c.bf16 %v1923_v12, %v1921_v42  ;;  %v1925_v18 = vadd.f32 %v1924_v7, %v12700_v3  ;;  %4241 = vmatpush2.bf16.msra.mxu1 %v9822_v21  ;;  %v1123_v6 = vpop.f32.mrf.mxu0  ;;  %v13048_v36 = vrot.slane %v12679_v4, %v19051_v1  ;;  %v19052_v42 = vsub.s32 5, %v12322_v13  ;;  %v10495_v21 = vld [vmem:[%s18481_s3 + $0x154] ss:$24 sps:$4 sm:$0xff]   ;;  %v10497_v1 = vld [vmem:[%s18481_s3 + $0x150] ss:$24 sps:$4 sm:$0xff]  }
 0x181   :  { %19050 = vst [vmem:[#allocation59_spill] sm:$0xff] %v13039_v2  ;;  %v1926_v9 = vpop.f32.mrf.mxu1  ;;  %v1124_v24 = vadd.f32 %v1123_v6, %v12719_v33  ;;  %4490 = vmatprep.subr.bf16.mxu0 %v10495_v21  ;;  %v10496_v3 = vld [vmem:[%s18481_s3 + $0x15c] ss:$24 sps:$4 sm:$0xff]   ;;  %v19054_v7 = vmov 0.0|0.0  }
 0x182   :  { %v1927_v54 = vadd.f32 %v1926_v9, %v12723_v38  ;;  %v13055_v48 = vrot.slane %v12679_v4, %v19052_v42  ;;  %4533 = vmatprep.subr.bf16.mxu1 %v10496_v3  ;;  %v1963_v28 = vpop.f32.mrf.mxu0  ;;  %4200 = vmatmul.mubr.bf16.vlgmr.msra.gmra.mxu0 %v19054_v7  ;;  %v10500_v3 = vld [vmem:[%s18481_s3 + $0x12c] ss:$24 sps:$4 sm:$0xff]  }
 0x183   :  { %v2076_v12 = vpop.f32.mrf.mxu1  ;;  %v13063_v46 = vpack.c.bf16 %v1124_v24, %v1122_v62  ;;  %v1964_v13 = vadd.f32 %v1963_v28, %v13032_v39  ;;  %4243 = vmatmul.mubr.bf16.vlgmr.msra.gmra.mxu1 %v19054_v7  ;;  %4491 = vmatpush1.bf16.msra.mxu0 %v10497_v1  ;;  %v10498_v24 = vld [vmem:[%s18481_s3 + $0x158] ss:$24 sps:$4 sm:$0xff]  }
 0x184   :  { %v13065_v38 = vpack.c.bf16 %v1927_v54, %v1925_v18  ;;  %v2077_v4 = vadd.f32 %v2076_v12, %v13037_v52  ;;  %v1965_v6 = vpop.f32.mrf.mxu0  ;;  %4534 = vmatpush1.bf16.msra.mxu1 %v10498_v24  ;;  %v10499_v54 = vld [vmem:[%s18481_s3 + $0x124] ss:$24 sps:$4 sm:$0xff]   ;;  %v10501_v24 = vld [vmem:[%s18481_s3 + $0x120] ss:$24 sps:$4 sm:$0xff]  }
 0x185   :  { %19053 = vst [vmem:[#allocation60_spill] sm:$0xff] %v13063_v46  ;;  %v2078_v9 = vpop.f32.mrf.mxu1  ;;  %v1966_v62 = vadd.f32 %v1965_v6, %v13048_v36  ;;  %4492 = vmatprep.subr.bf16.mxu0 %v10499_v54  ;;  %4535 = vmatprep.subr.bf16.mxu1 %v10500_v3 }
 0x186   :  { %v2079_v18 = vadd.f32 %v2078_v9, %v13055_v48  ;;  %v1967_v42 = vpop.f32.mrf.mxu0 }
 0x187   :  { %v2080_v21 = vpop.f32.mrf.mxu1  ;;  %v13085_v28 = vpack.c.bf16 %v1966_v62, %v1964_v13  ;;  %v1968_v7 = vadd.f32 %v1967_v42, %v13032_v39  ;;  %4493 = vmatpush1.bf16.msra.mxu0 %v10501_v24  ;;  %v10502_v13 = vld [vmem:[%s18481_s3 + $0x128] ss:$24 sps:$4 sm:$0xff]   ;;  %v10504_v42 = vld [vmem:[%s18481_s3 + $0xfc] ss:$24 sps:$4 sm:$0xff]  }
 0x188   :  { %v13087_v12 = vpack.c.bf16 %v2079_v18, %v2077_v4  ;;  %v2081_v6 = vadd.f32 %v2080_v21, %v13037_v52  ;;  %v1969_v9 = vpop.f32.mrf.mxu0  ;;  %4536 = vmatpush1.bf16.msra.mxu1 %v10502_v13  ;;  %v10503_v4 = vld [vmem:[%s18481_s3 + $0xf4] ss:$24 sps:$4 sm:$0xff]  }
 0x189   :  { %19055 = vst [vmem:[#allocation61_spill] sm:$0xff] %v13085_v28  ;;  %v2082_v1 = vpop.f32.mrf.mxu1  ;;  %v1970_v54 = vadd.f32 %v1969_v9, %v13048_v36  ;;  %4494 = vmatprep.subr.bf16.mxu0 %v10503_v4  ;;  %4537 = vmatprep.subr.bf16.mxu1 %v10504_v42  ;;  %v10505_v4 = vld [vmem:[%s18481_s3 + $0xf0] ss:$24 sps:$4 sm:$0xff]  }
 0x18a   :  { %19056 = vst [vmem:[#allocation62_spill] sm:$0xff] %v13087_v12  ;;  %v2083_v46 = vadd.f32 %v2082_v1, %v13055_v48  ;;  %v1973_v62 = vpop.f32.mrf.mxu0 }
 0x18b   :  { %v2086_v18 = vpop.f32.mrf.mxu1  ;;  %v13105_v21 = vpack.c.bf16 %v1970_v54, %v1968_v7  ;;  %v1974_v9 = vadd.f32 %v1973_v62, %v13032_v39  ;;  %4495 = vmatpush1.bf16.msra.mxu0 %v10505_v4  ;;  %v10507_v7 = vld [vmem:[%s18481_s3 + $0xc4] ss:$24 sps:$4 sm:$0xff]  }
 0x18c   :  { %v13107_v3 = vpack.c.bf16 %v2083_v46, %v2081_v6  ;;  %v2087_v1 = vadd.f32 %v2086_v18, %v13037_v52  ;;  %v1975_v24 = vpop.f32.mrf.mxu0  ;;  %v10506_v46 = vld [vmem:[%s18481_s3 + $0xf8] ss:$24 sps:$4 sm:$0xff]   ;;  %4496 = vmatprep.subr.bf16.mxu0 %v10507_v7  ;;  %v10508_v62 = vld [vmem:[%s18481_s3 + $0xcc] ss:$24 sps:$4 sm:$0xff]  }
 0x18d   :  { %19057 = vst [vmem:[#allocation63_spill] sm:$0xff] %v13105_v21  ;;  %v2088_v13 = vpop.f32.mrf.mxu1  ;;  %v1976_v12 = vadd.f32 %v1975_v24, %v13048_v36  ;;  %4538 = vmatpush1.bf16.msra.mxu1 %v10506_v46  ;;  %v10509_v7 = vld [vmem:[%s18481_s3 + $0xc0] ss:$24 sps:$4 sm:$0xff]  }
 0x18e   :  { %19058 = vst [vmem:[#allocation64_spill] sm:$0xff] %v13107_v3  ;;  %v2089_v28 = vadd.f32 %v2088_v13, %v13055_v48  ;;  %v1977_v6 = vpop.f32.mrf.mxu0  ;;  %4539 = vmatprep.subr.bf16.mxu1 %v10508_v62 }
 0x18f   :  { %v2090_v54 = vpop.f32.mrf.mxu1  ;;  %v13125_v18 = vpack.c.bf16 %v1976_v12, %v1974_v9  ;;  %v1978_v24 = vadd.f32 %v1977_v6, %v13032_v39  ;;  %4497 = vmatpush1.bf16.msra.mxu0 %v10509_v7  ;;  %v10511_v12 = vld [vmem:[%s18481_s3 + $0x94] ss:$24 sps:$4 sm:$0xff]  }
 0x190   :  { %v13127_v42 = vpack.c.bf16 %v2089_v28, %v2087_v1  ;;  %v2091_v13 = vadd.f32 %v2090_v54, %v13037_v52  ;;  %v1979_v4 = vpop.f32.mrf.mxu0  ;;  %v10510_v28 = vld [vmem:[%s18481_s3 + $0xc8] ss:$24 sps:$4 sm:$0xff]   ;;  %4498 = vmatprep.subr.bf16.mxu0 %v10511_v12  ;;  %v10512_v6 = vld [vmem:[%s18481_s3 + $0x9c] ss:$24 sps:$4 sm:$0xff]  }
 0x191   :  { %19059 = vst [vmem:[#allocation65_spill] sm:$0xff] %v13125_v18  ;;  %v2092_v46 = vpop.f32.mrf.mxu1  ;;  %v1980_v3 = vadd.f32 %v1979_v4, %v13048_v36  ;;  %4540 = vmatpush1.bf16.msra.mxu1 %v10510_v28  ;;  %v10513_v12 = vld [vmem:[%s18481_s3 + $0x90] ss:$24 sps:$4 sm:$0xff]  }
 0x192   :  { %19060 = vst [vmem:[#allocation66_spill] sm:$0xff] %v13127_v42  ;;  %v2093_v21 = vadd.f32 %v2092_v46, %v13055_v48  ;;  %v1983_v9 = vpop.f32.mrf.mxu0  ;;  %4541 = vmatprep.subr.bf16.mxu1 %v10512_v6 }
 0x193   :  { %v2096_v1 = vpop.f32.mrf.mxu1  ;;  %v13145_v54 = vpack.c.bf16 %v1980_v3, %v1978_v24  ;;  %v1984_v4 = vadd.f32 %v1983_v9, %v13032_v39  ;;  %4499 = vmatpush1.bf16.msra.mxu0 %v10513_v12  ;;  %v10515_v3 = vld [vmem:[%s18481_s3 + $0x64] ss:$24 sps:$4 sm:$0xff]  }
 0x194   :  { %v13147_v62 = vpack.c.bf16 %v2093_v21, %v2091_v13  ;;  %v2097_v46 = vadd.f32 %v2096_v1, %v13037_v52  ;;  %v1985_v7 = vpop.f32.mrf.mxu0  ;;  %v10514_v21 = vld [vmem:[%s18481_s3 + $0x98] ss:$24 sps:$4 sm:$0xff]   ;;  %4500 = vmatprep.subr.bf16.mxu0 %v10515_v3  ;;  %v10516_v9 = vld [vmem:[%s18481_s3 + $0x6c] ss:$24 sps:$4 sm:$0xff]  }
 0x195   :  { %19061 = vst [vmem:[#allocation67_spill] sm:$0xff] %v13145_v54  ;;  %v2098_v28 = vpop.f32.mrf.mxu1  ;;  %v1986_v2 = vadd.f32 %v1985_v7, %v13048_v36  ;;  %4542 = vmatpush1.bf16.msra.mxu1 %v10514_v21  ;;  %v10517_v3 = vld [vmem:[%s18481_s3 + $0x60] ss:$24 sps:$4 sm:$0xff]  }
 0x196   :  { %19062 = vst [vmem:[#allocation68_spill] sm:$0xff] %v13147_v62  ;;  %v2099_v42 = vadd.f32 %v2098_v28, %v13055_v48  ;;  %v1987_v24 = vpop.f32.mrf.mxu0  ;;  %4543 = vmatprep.subr.bf16.mxu1 %v10516_v9 }
 0x197   :  { %v2100_v13 = vpop.f32.mrf.mxu1  ;;  %v13165_v1 = vpack.c.bf16 %v1986_v2, %v1984_v4  ;;  %v1988_v7 = vadd.f32 %v1987_v24, %v13032_v39  ;;  %4501 = vmatpush1.bf16.msra.mxu0 %v10517_v3  ;;  %v10518_v2 = vld [vmem:[%s18481_s3 + $0x68] ss:$24 sps:$4 sm:$0xff]   ;;  %v10520_v24 = vld [vmem:[%s18481_s3 + $0x3c] ss:$24 sps:$4 sm:$0xff]  }
 0x198   :  { %v13167_v6 = vpack.c.bf16 %v2099_v42, %v2097_v46  ;;  %v2101_v28 = vadd.f32 %v2100_v13, %v13037_v52  ;;  %v1989_v12 = vpop.f32.mrf.mxu0  ;;  %v10519_v42 = vld [vmem:[%s18481_s3 + $0x34] ss:$24 sps:$4 sm:$0xff]  }
 0x199   :  { %19063 = vst [vmem:[#allocation69_spill] sm:$0xff] %v13165_v1  ;;  %v2102_v21 = vpop.f32.mrf.mxu1  ;;  %v1990_v62 = vadd.f32 %v1989_v12, %v13048_v36  ;;  %4544 = vmatpush1.bf16.msra.mxu1 %v10518_v2  ;;  %4502 = vmatprep.subr.bf16.mxu0 %v10519_v42  ;;  %v10521_v42 = vld [vmem:[%s18481_s3 + $0x30] ss:$24 sps:$4 sm:$0xff]  }
 0x19a   :  { %19064 = vst [vmem:[#allocation70_spill] sm:$0xff] %v13167_v6  ;;  %v2103_v54 = vadd.f32 %v2102_v21, %v13055_v48  ;;  %v1993_v4 = vpop.f32.mrf.mxu0  ;;  %4545 = vmatprep.subr.bf16.mxu1 %v10520_v24 }
 0x19b   :  { %v2106_v46 = vpop.f32.mrf.mxu1  ;;  %v13185_v13 = vpack.c.bf16 %v1990_v62, %v1988_v7  ;;  %v1994_v12 = vadd.f32 %v1993_v4, %v13032_v39  ;;  %4503 = vmatpush1.bf16.msra.mxu0 %v10521_v42  ;;  %v10523_v62 = vld [vmem:[%s18481_s3 + $0x4] ss:$24 sps:$4 sm:$0xff]  }
 0x19c   :  { %v13187_v9 = vpack.c.bf16 %v2103_v54, %v2101_v28  ;;  %v2107_v21 = vadd.f32 %v2106_v46, %v13037_v52  ;;  %v1995_v3 = vpop.f32.mrf.mxu0  ;;  %v10522_v54 = vld [vmem:[%s18481_s3 + $0x38] ss:$24 sps:$4 sm:$0xff]   ;;  %4504 = vmatprep.subr.bf16.mxu0 %v10523_v62  ;;  %v10524_v4 = vld [vmem:[%s18481_s3 + $0xc] ss:$24 sps:$4 sm:$0xff]  }
 0x19d   :  { %19065 = vst [vmem:[#allocation71_spill] sm:$0xff] %v13185_v13  ;;  %v2108_v2 = vpop.f32.mrf.mxu1  ;;  %v1996_v18 = vadd.f32 %v1995_v3, %v13048_v36  ;;  %4546 = vmatpush1.bf16.msra.mxu1 %v10522_v54  ;;  %v10525_v62 = vld [vmem:[%s18481_s3] ss:$24 sps:$4 sm:$0xff]  }
 0x19e   :  { %19066 = vst [vmem:[#allocation72_spill] sm:$0xff] %v13187_v9  ;;  %v2109_v6 = vadd.f32 %v2108_v2, %v13055_v48  ;;  %v1997_v7 = vpop.f32.mrf.mxu0  ;;  %4547 = vmatprep.subr.bf16.mxu1 %v10524_v4 }
 0x19f   :  { %v2110_v28 = vpop.f32.mrf.mxu1  ;;  %v13205_v46 = vpack.c.bf16 %v1996_v18, %v1994_v12  ;;  %v1998_v3 = vadd.f32 %v1997_v7, %v13032_v39  ;;  %4505 = vmatpush1.bf16.msra.mxu0 %v10525_v62  ;;  %v10526_v18 = vld [vmem:[%s18481_s3 + $0x8] ss:$24 sps:$4 sm:$0xff]   ;;  %v10528_v7 = vld [vmem:[%s18481_s3 + $0x2dc] ss:$24 sps:$4 sm:$0xff]  }
 0x1a0   :  { %v13207_v24 = vpack.c.bf16 %v2109_v6, %v2107_v21  ;;  %v2111_v2 = vadd.f32 %v2110_v28, %v13037_v52  ;;  %v1999_v42 = vpop.f32.mrf.mxu0  ;;  %v10527_v6 = vld [vmem:[%s18481_s3 + $0x2d4] ss:$24 sps:$4 sm:$0xff]  }
 0x1a1   :  { %19067 = vst [vmem:[#allocation73_spill] sm:$0xff] %v13205_v46  ;;  %v2112_v54 = vpop.f32.mrf.mxu1  ;;  %v2000_v9 = vadd.f32 %v1999_v42, %v13048_v36  ;;  %4548 = vmatpush1.bf16.msra.mxu1 %v10526_v18  ;;  %4506 = vmatprep.subr.bf16.mxu0 %v10527_v6  ;;  %v10529_v6 = vld [vmem:[%s18481_s3 + $0x2d0] ss:$24 sps:$4 sm:$0xff]  }
 0x1a2   :  { %19068 = vst [vmem:[#allocation74_spill] sm:$0xff] %v13207_v24  ;;  %v2113_v13 = vadd.f32 %v2112_v54, %v13055_v48  ;;  %v2003_v12 = vpop.f32.mrf.mxu0  ;;  %4549 = vmatprep.subr.bf16.mxu1 %v10528_v7  ;;  %v13277_v46 = vld [vmem:[%s18481_s3 + $0x270] ss:$24 sps:$4 sm:$0xff]  }
 0x1a3   :  { %v2116_v21 = vpop.f32.mrf.mxu1  ;;  %v13225_v28 = vpack.c.bf16 %v2000_v9, %v1998_v3  ;;  %v2004_v42 = vadd.f32 %v2003_v12, %v13032_v39  ;;  %4507 = vmatpush2.bf16.msra.mxu0 %v10529_v6  ;;  %v10531_v9 = vld [vmem:[%s18481_s3 + $0x2a4] ss:$24 sps:$4 sm:$0xff]  }
 0x1a4   :  { %v13227_v4 = vpack.c.bf16 %v2113_v13, %v2111_v2  ;;  %v2117_v54 = vadd.f32 %v2116_v21, %v13037_v52  ;;  %v2005_v62 = vpop.f32.mrf.mxu0  ;;  %v10530_v13 = vld [vmem:[%s18481_s3 + $0x2d8] ss:$24 sps:$4 sm:$0xff]   ;;  %4508 = vmatprep.subr.bf16.mxu0 %v10531_v9  ;;  %v10532_v12 = vld [vmem:[%s18481_s3 + $0x2ac] ss:$24 sps:$4 sm:$0xff]  }
 0x1a5   :  { %19069 = vst [vmem:[#allocation75_spill] sm:$0xff] %v13225_v28  ;;  %v2118_v18 = vpop.f32.mrf.mxu1  ;;  %v2006_v1 = vadd.f32 %v2005_v62, %v13048_v36  ;;  %4550 = vmatpush2.bf16.msra.mxu1 %v10530_v13  ;;  %v10533_v9 = vld [vmem:[%s18481_s3 + $0x2a0] ss:$24 sps:$4 sm:$0xff]  }
 0x1a6   :  { %19070 = vst [vmem:[#allocation76_spill] sm:$0xff] %v13227_v4  ;;  %v2119_v24 = vadd.f32 %v2118_v18, %v13055_v48  ;;  %v2007_v3 = vpop.f32.mrf.mxu0  ;;  %4551 = vmatprep.subr.bf16.mxu1 %v10532_v12 }
 0x1a7   :  { %v2120_v2 = vpop.f32.mrf.mxu1  ;;  %v13245_v21 = vpack.c.bf16 %v2006_v1, %v2004_v42  ;;  %v2008_v62 = vadd.f32 %v2007_v3, %v13032_v39  ;;  %4509 = vmatpush2.bf16.msra.mxu0 %v10533_v9  ;;  %v10534_v1 = vld [vmem:[%s18481_s3 + $0x2a8] ss:$24 sps:$4 sm:$0xff]   ;;  %v10536_v3 = vld [vmem:[%s18481_s3 + $0x27c] ss:$24 sps:$4 sm:$0xff]  }
 0x1a8   :  { %v13247_v7 = vpack.c.bf16 %v2119_v24, %v2117_v54  ;;  %v2121_v18 = vadd.f32 %v2120_v2, %v13037_v52  ;;  %v2009_v6 = vpop.f32.mrf.mxu0  ;;  %v13262_v24 = vld [vmem:[%s18481_s3 + $0x274] ss:$24 sps:$4 sm:$0xff]  }
 0x1a9   :  { %19071 = vst [vmem:[#allocation77_spill] sm:$0xff] %v13245_v21  ;;  %v2122_v13 = vpop.f32.mrf.mxu1  ;;  %v2010_v4 = vadd.f32 %v2009_v6, %v13048_v36  ;;  %4552 = vmatpush2.bf16.msra.mxu1 %v10534_v1  ;;  %4510 = vmatprep.subr.bf16.mxu0 %v13262_v24  ;;  %v13303_v21 = vld [vmem:[%s18481_s3 + $0x240] ss:$24 sps:$4 sm:$0xff]  }
 0x1aa   :  { %19072 = vst [vmem:[#allocation78_spill] sm:$0xff] %v13247_v7  ;;  %v2123_v28 = vadd.f32 %v2122_v13, %v13055_v48  ;;  %v2013_v42 = vpop.f32.mrf.mxu0  ;;  %4553 = vmatprep.subr.bf16.mxu1 %v10536_v3 }
 0x1ab   :  { %v2126_v54 = vpop.f32.mrf.mxu1  ;;  %v13268_v2 = vpack.c.bf16 %v2010_v4, %v2008_v62  ;;  %v2014_v6 = vadd.f32 %v2013_v42, %v13032_v39  ;;  %4511 = vmatpush2.bf16.msra.mxu0 %v13277_v46  ;;  %v13288_v62 = vld [vmem:[%s18481_s3 + $0x244] ss:$24 sps:$4 sm:$0xff]  }
 0x1ac   :  { %v13270_v12 = vpack.c.bf16 %v2123_v28, %v2121_v18  ;;  %v2127_v13 = vadd.f32 %v2126_v54, %v13037_v52  ;;  %v2015_v9 = vpop.f32.mrf.mxu0  ;;  %v10538_v28 = vld [vmem:[%s18481_s3 + $0x278] ss:$24 sps:$4 sm:$0xff]   ;;  %4512 = vmatprep.subr.bf16.mxu0 %v13288_v62  ;;  %v10540_v54 = vld [vmem:[%s18481_s3 + $0x24c] ss:$24 sps:$4 sm:$0xff]  }
 0x1ad   :  { %19073 = vst [vmem:[#allocation79_spill] sm:$0xff] %v13268_v2  ;;  %v2128_v1 = vpop.f32.mrf.mxu1  ;;  %v2016_v7 = vadd.f32 %v2015_v9, %v13048_v36  ;;  %4554 = vmatpush2.bf16.msra.mxu1 %v10538_v28 }
 0x1ae   :  { %19074 = vst [vmem:[#allocation80_spill] sm:$0xff] %v13270_v12  ;;  %v2129_v4 = vadd.f32 %v2128_v1, %v13055_v48  ;;  %v2017_v18 = vpop.f32.mrf.mxu0  ;;  %4555 = vmatprep.subr.bf16.mxu1 %v10540_v54 }
 0x1af   :  { %v2130_v42 = vpop.f32.mrf.mxu1  ;;  %v13294_v3 = vpack.c.bf16 %v2016_v7, %v2014_v6  ;;  %v2018_v1 = vadd.f32 %v2017_v18, %v13032_v39  ;;  %4513 = vmatpush2.bf16.msra.mxu0 %v13303_v21  ;;  %v13311_v6 = vld [vmem:[%s18481_s3 + $0x248] ss:$24 sps:$4 sm:$0xff]  }
 0x1b0   :  { %v13296_v9 = vpack.c.bf16 %v2129_v4, %v2127_v13  ;;  %v2131_v28 = vadd.f32 %v2130_v42, %v13037_v52  ;;  %v2019_v12 = vpop.f32.mrf.mxu0  ;;  %v13317_v13 = vld [vmem:[%s18481_s3 + $0x214] ss:$24 sps:$4 sm:$0xff]  }
 0x1b1   :  { %19075 = vst [vmem:[#allocation81_spill] sm:$0xff] %v13294_v3  ;;  %v2132_v2 = vpop.f32.mrf.mxu1  ;;  %v2020_v22 = vadd.f32 %v2019_v12, %v13048_v36  ;;  %4556 = vmatpush2.bf16.msra.mxu1 %v13311_v6  ;;  %4514 = vmatprep.subr.bf16.mxu0 %v13317_v13 }
 0x1b2   :  { %19076 = vst [vmem:[#allocation82_spill] sm:$0xff] %v13296_v9  ;;  %v2133_v7 = vadd.f32 %v2132_v2, %v13055_v48  ;;  %v2023_v4 = vpop.f32.mrf.mxu0  ;;  %v13323_v2 = vld [vmem:[%s18481_s3 + $0x21c] ss:$24 sps:$4 sm:$0xff]  }
 0x1b3   :  { %v2136_v18 = vpop.f32.mrf.mxu1  ;;  %4557 = vmatprep.subr.bf16.mxu1 %v13323_v2  ;;  %v13326_v12 = vpack.c.bf16 %v2020_v22, %v2018_v1  ;;  %v2024_v54 = vadd.f32 %v2023_v4, %v13032_v39  ;;  %4515 = vmatpush2.bf16.msra.mxu0 %v13335_v17  ;;  %v13343_v1 = vld [vmem:[%s18481_s3 + $0x218] ss:$24 sps:$4 sm:$0xff]  }
 0x1b4   :  { %v13328_v42 = vpack.c.bf16 %v2133_v7, %v2131_v28  ;;  %v2137_v32 = vadd.f32 %v2136_v18, %v13037_v52  ;;  %v2025_v25 = vpop.f32.mrf.mxu0  ;;  %v13349_v28 = vld [vmem:[%s18481_s3 + $0x1e4] ss:$24 sps:$4 sm:$0xff]  }
 0x1b5   :  { %19077 = vst [vmem:[#allocation83_spill] sm:$0xff] %v13326_v12  ;;  %v2138_v5 = vpop.f32.mrf.mxu1  ;;  %v2026_v50 = vadd.f32 %v2025_v25, %v13048_v36  ;;  %4558 = vmatpush2.bf16.msra.mxu1 %v13343_v1  ;;  %4516 = vmatprep.subr.bf16.mxu0 %v13349_v28  ;;  %v13367_v12 = vld [vmem:[%s18481_s3 + $0x1e0] ss:$24 sps:$4 sm:$0xff]  }
 0x1b6   :  { %19078 = vst [vmem:[#allocation84_spill] sm:$0xff] %v13328_v42  ;;  %v2139_v22 = vadd.f32 %v2138_v5, %v13055_v48  ;;  %v2027_v7 = vpop.f32.mrf.mxu0  ;;  %v13355_v5 = vld [vmem:[%s18481_s3 + $0x1ec] ss:$24 sps:$4 sm:$0xff]  }
 0x1b7   :  { %v2140_v4 = vpop.f32.mrf.mxu1  ;;  %4559 = vmatprep.subr.bf16.mxu1 %v13355_v5  ;;  %v13358_v25 = vpack.c.bf16 %v2026_v50, %v2024_v54  ;;  %v2028_v10 = vadd.f32 %v2027_v7, %v13032_v39  ;;  %4517 = vmatpush2.bf16.msra.mxu0 %v13367_v12  ;;  %v13381_v54 = vld [vmem:[%s18481_s3 + $0x1b4] ss:$24 sps:$4 sm:$0xff]  }
 0x1b8   :  { %v13360_v18 = vpack.c.bf16 %v2139_v22, %v2137_v32  ;;  %v2141_v19 = vadd.f32 %v2140_v4, %v13037_v52  ;;  %v2029_v42 = vpop.f32.mrf.mxu0  ;;  %v13375_v32 = vld [vmem:[%s18481_s3 + $0x1e8] ss:$24 sps:$4 sm:$0xff]   ;;  %4518 = vmatprep.subr.bf16.mxu0 %v13381_v54 }
 0x1b9   :  { %19079 = vst [vmem:[#allocation85_spill] sm:$0xff] %v13358_v25  ;;  %v2142_v9 = vpop.f32.mrf.mxu1  ;;  %v2030_v3 = vadd.f32 %v2029_v42, %v13048_v36  ;;  %4560 = vmatpush2.bf16.msra.mxu1 %v13375_v32 }
 0x1ba   :  { %19080 = vst [vmem:[#allocation86_spill] sm:$0xff] %v13360_v18  ;;  %v2143_v50 = vadd.f32 %v2142_v9, %v13055_v48  ;;  %v2033_v22 = vpop.f32.mrf.mxu0  ;;  %v13387_v9 = vld [vmem:[%s18481_s3 + $0x1bc] ss:$24 sps:$4 sm:$0xff]  }
 0x1bb   :  { %v2146_v7 = vpop.f32.mrf.mxu1  ;;  %4561 = vmatprep.subr.bf16.mxu1 %v13387_v9  ;;  %v13390_v42 = vpack.c.bf16 %v2030_v3, %v2028_v10  ;;  %v2034_v40 = vadd.f32 %v2033_v22, %v13032_v39  ;;  %4519 = vmatpush2.bf16.msra.mxu0 %v13399_v34  ;;  %v13413_v3 = vld [vmem:[%s18481_s3 + $0x184] ss:$24 sps:$4 sm:$0xff]  }
 0x1bc   :  { %v13392_v4 = vpack.c.bf16 %v2143_v50, %v2141_v19  ;;  %v2147_v26 = vadd.f32 %v2146_v7, %v13037_v52  ;;  %v2035_v37 = vpop.f32.mrf.mxu0  ;;  %v13407_v19 = vld [vmem:[%s18481_s3 + $0x1b8] ss:$24 sps:$4 sm:$0xff]   ;;  %4520 = vmatprep.subr.bf16.mxu0 %v13413_v3 }
 0x1bd   :  { %19081 = vst [vmem:[#allocation87_spill] sm:$0xff] %v13390_v42  ;;  %v2148_v44 = vpop.f32.mrf.mxu1  ;;  %v2036_v16 = vadd.f32 %v2035_v37, %v13048_v36  ;;  %4562 = vmatpush2.bf16.msra.mxu1 %v13407_v19  ;;  %v13431_v42 = vld [vmem:[%s18481_s3 + $0x180] ss:$24 sps:$4 sm:$0xff]  }
 0x1be   :  { %19082 = vst [vmem:[#allocation88_spill] sm:$0xff] %v13392_v4  ;;  %v2149_v10 = vadd.f32 %v2148_v44, %v13055_v48  ;;  %v2037_v50 = vpop.f32.mrf.mxu0  ;;  %v13419_v44 = vld [vmem:[%s18481_s3 + $0x18c] ss:$24 sps:$4 sm:$0xff]  }
 0x1bf   :  { %v2150_v22 = vpop.f32.mrf.mxu1  ;;  %4563 = vmatprep.subr.bf16.mxu1 %v13419_v44  ;;  %v13422_v37 = vpack.c.bf16 %v2036_v16, %v2034_v40  ;;  %v2038_v15 = vadd.f32 %v2037_v50, %v13032_v39  ;;  %4521 = vmatpush2.bf16.msra.mxu0 %v13431_v42  ;;  %v13445_v40 = vld [vmem:[%s18481_s3 + $0x164] ss:$24 sps:$4 sm:$0xff]  }
 0x1c0   :  { %v13424_v7 = vpack.c.bf16 %v2149_v10, %v2147_v26  ;;  %v2151_v51 = vadd.f32 %v2150_v22, %v13037_v52  ;;  %v2039_v4 = vpop.f32.mrf.mxu0  ;;  %v13439_v26 = vld [vmem:[%s18481_s3 + $0x188] ss:$24 sps:$4 sm:$0xff]   ;;  %4576 = vmatprep.subr.bf16.mxu0 %v13445_v40  ;;  %v826_v10 = vadd.f32 %v12406_v11, %v12361_v23  ;;  %v4266_v22 = vunpack.c.l.bf16 %v12410_v43 }
 0x1c1   :  { %v2152_v18 = vpop.f32.mrf.mxu1  ;;  %v2040_v25 = vadd.f32 %v2039_v4, %v13048_v36  ;;  %4564 = vmatpush2.bf16.msra.mxu1 %v13439_v26  ;;  %v13451_v36 = vld [vmem:[%s18481_s3 + $0x454] ss:$24 sps:$4 sm:$0xff]   ;;  %v941_v23 = vadd.f32 %v12422_v61, %v12384_v35 }
 0x1c2   :  { %v2153_v16 = vadd.f32 %v2152_v18, %v13055_v48  ;;  %4621 = vmatprep.subr.bf16.mxu1 %v13451_v36  ;;  %v3450_v48 = vpop.f32.mrf.mxu0  ;;  %v828_v18 = vadd.f32 %v12420_v49, %v12379_v60  ;;  %v939_v49 = vadd.f32 %v12408_v14, %v12366_v57 }
 0x1c3   :  { %v13454_v39 = vpack.c.bf16 %v2040_v25, %v2038_v15  ;;  %v4278_v27 = vadd.f32 %v4266_v22, %v3450_v48 }
 0x1c4   :  { %v13456_v52 = vpack.c.bf16 %v2153_v16, %v2151_v51  ;;  %v3452_v4 = vpop.f32.mrf.mxu0  ;;  %v9061_v50 = vpack.c.bf16 %v828_v18, %v826_v10  ;;  %v3493_v16 = vpop.f32.mrf.mxu1  ;;  %v4268_v18 = vunpack.c.l.bf16 %v12412_v56 }
 0x1c5   :  { %v4279_v41 = vadd.f32 %v4267_v59, %v3452_v4  ;;  %v8897_v51 = vmul.f32 -1.442695, %v4278_v27  ;;  %v9062_v59 = vpack.c.bf16 %v941_v23, %v939_v49  ;;  %v2827_v23 = vld [vmem:[%s18483_s5] sm:$0x3] }
 0x1c6   :  { %v3454_v55 = vpop.f32.mrf.mxu0  ;;  %v4272_v15 = vunpack.c.l.bf16 %v9061_v50  ;;  %v4273_v8 = vunpack.c.h.bf16 %v9061_v50  ;;  %v3495_v11 = vpop.f32.mrf.mxu1 }
 0x1c7   :  { %v8898_v30 = vmul.f32 -1.442695, %v4279_v41  ;;  %9855 = vpow2.f32 %v8897_v51  ;;  %v4269_v41 = vunpack.c.h.bf16 %v12412_v56  ;;  %v4275_v10 = vunpack.c.h.bf16 %v9062_v59 }
 0x1c8   :  { %v3456_v25 = vpop.f32.mrf.mxu0  ;;  %v4282_v58 = vadd.f32 %v4272_v15, %v3454_v55  ;;  %v3497_v27 = vpop.f32.mrf.mxu1  ;;  %v4280_v55 = vadd.f32 %v4268_v18, %v3493_v16 }
 0x1c9   :  { %v4283_v60 = vadd.f32 %v4273_v8, %v3456_v25  ;;  %9857 = vpow2.f32 %v8898_v30  ;;  %v4274_v8 = vunpack.c.l.bf16 %v9062_v59  ;;  %v4281_v4 = vadd.f32 %v4269_v41, %v3495_v11 }
 0x1ca   :  { %v8901_v48 = vmul.f32 -1.442695, %v4282_v58  ;;  %v3499_v57 = vpop.f32.mrf.mxu1  ;;  %v8899_v35 = vmul.f32 -1.442695, %v4280_v55  ;;  %v1054_v59 = vadd.f32 %v12762_v20, %v12719_v33  ;;  %v13479_v55 = vrot.slane %v2827_v23, %v12353_v53 }
 0x1cb   :  { %v8902_v43 = vmul.f32 -1.442695, %v4283_v60  ;;  %v4284_v14 = vadd.f32 %v4274_v8, %v3497_v27  ;;  %v4285_v61 = vadd.f32 %v4275_v10, %v3499_v57  ;;  %v8900_v50 = vmul.f32 -1.442695, %v4281_v4 }
 0x1cc   :  { %9859 = vpow2.f32 %v8901_v48  ;;  %v13474_v48 = vrot.slane %v2827_v23, %v12336_v47  ;;  %v1052_v41 = vadd.f32 %v12753_v45, %v12696_v31 }
 0x1cd   :  { %9861 = vpow2.f32 %v8902_v43  ;;  %v8903_v30 = vmul.f32 -1.442695, %v4284_v14  ;;  %v8904_v15 = vmul.f32 -1.442695, %v4285_v61 }
 0x1ce   :  { %9863 = vpow2.f32 %v8899_v35  ;;  %v9063_v35 = vpack.c.bf16 %v1054_v59, %v1052_v41 }
 0x1cf   :  { %9865 = vpow2.f32 %v8900_v50 }
 0x1d0   :  { %9867 = vpow2.f32 %v8903_v30  ;;  %v4277_v59 = vunpack.c.h.bf16 %v9063_v35 }
 0x1d1   :  { %9869 = vpow2.f32 %v8904_v15 }
 0x1d4   :  { %v9856_v58 = vpop.eup %9855 }
 0x1d5   :  { %v4310_v25 = vadd.f32 1.0, %v9856_v58  ;;  %v4270_v58 = vunpack.c.l.bf16 %v12757_v29 }
 0x1d6   :  { %v9858_v22 = vpop.eup %9857 }
 0x1d7   :  { %v4311_v16 = vadd.f32 1.0, %v9858_v22  ;;  %9871 = vrcp.f32 %v4310_v25  ;;  %v4271_v22 = vunpack.c.h.bf16 %v12757_v29 }
 0x1d9   :  { %v9860_v51 = vpop.eup %9859  ;;  %9873 = vrcp.f32 %v4311_v16 }
 0x1da   :  { %v9862_v56 = vpop.eup %9861  ;;  %v4314_v60 = vadd.f32 1.0, %v9860_v51 }
 0x1db   :  { %v4315_v49 = vadd.f32 1.0, %v9862_v56  ;;  %v9864_v11 = vpop.eup %9863  ;;  %v4276_v56 = vunpack.c.l.bf16 %v9063_v35 }
 0x1dc   :  { %9875 = vrcp.f32 %v4314_v60  ;;  %v9866_v43 = vpop.eup %9865  ;;  %v4312_v27 = vadd.f32 1.0, %v9864_v11 }
 0x1dd   :  { %9877 = vrcp.f32 %v4315_v49  ;;  %v9868_v18 = vpop.eup %9867  ;;  %v4313_v57 = vadd.f32 1.0, %v9866_v43 }
 0x1de   :  { %v9870_v4 = vpop.eup %9869  ;;  %v4316_v61 = vadd.f32 1.0, %v9868_v18  ;;  %9879 = vrcp.f32 %v4312_v27 }
 0x1df   :  { %v4317_v15 = vadd.f32 1.0, %v9870_v4  ;;  %9881 = vrcp.f32 %v4313_v57 }
 0x1e0   :  { %9883 = vrcp.f32 %v4316_v61 }
 0x1e4   :  { %v9872_v10 = vpop.eup %9871 }
 0x1e6   :  { %v9874_v30 = vpop.eup %9873 }
 0x1e9   :  { %v9876_v16 = vpop.eup %9875 }
 0x1ea   :  { %v9878_v43 = vpop.eup %9877 }
 0x1eb   :  { %v9880_v41 = vpop.eup %9879 }
 0x202   :  { %v3536_v8 = vpop.f32.mrf.mxu0 }
 0x203   :  { %v4345_v14 = vadd.f32 %v13474_v48, %v3536_v8  ;;  %v9882_v8 = vpop.eup %9881  ;;  %v4158_v4 = vpop.f32.mrf.mxu1 }
 0x204   :  { %v3538_v50 = vpop.f32.mrf.mxu0  ;;  %v9884_v57 = vpop.eup %9883  ;;  %v4370_v35 = vmul.f32 0.0, %v9882_v8 }
 0x205   :  { %v4349_v33 = vmul.f32 %v9872_v10, %v4345_v14  ;;  %v4346_v20 = vadd.f32 %v13479_v55, %v3538_v50  ;;  %v4361_v14 = vsub.f32 1.0, %v9880_v41  ;;  %v4362_v50 = vsub.f32 1.0, %v9882_v8 }
 0x206   :  { %v3540_v31 = vpop.f32.mrf.mxu0 }
 0x207   :  { %v4353_v45 = vadd.f32 %v4349_v33, %v4270_v58  ;;  %v4350_v25 = vmul.f32 %v9874_v30, %v4346_v20  ;;  %v4347_v51 = vadd.f32 %v13474_v48, %v3540_v31  ;;  %v4369_v33 = vmul.f32 0.0, %v9880_v41  ;;  %v4160_v30 = vpop.f32.mrf.mxu1 }
 0x208   :  { %v3542_v60 = vpop.f32.mrf.mxu0  ;;  %v4383_v41 = vunpack.c.l.bf16 %v13065_v38 }
 0x209   :  { %9885 = vtanh.f32 %v4353_v45  ;;  %v4354_v49 = vadd.f32 %v4350_v25, %v4271_v22  ;;  %v4351_v23 = vmul.f32 %v9876_v16, %v4347_v51  ;;  %v4348_v11 = vadd.f32 %v13479_v55, %v3542_v60 }
 0x20a   :  { %9887 = vrcp.f32 %v4317_v15  ;;  %v4363_v15 = vsub.f32 1.0, %v9884_v57  ;;  %v4377_v25 = vunpack.c.l.bf16 %v13041_v63  ;;  %v4371_v60 = vmul.f32 0.0, %v9884_v57 }
 0x20b   :  { %9889 = vtanh.f32 %v4354_v49  ;;  %v4355_v29 = vadd.f32 %v4351_v23, %v4276_v56  ;;  %v4352_v18 = vmul.f32 %v9878_v43, %v4348_v11  ;;  %v4378_v23 = vunpack.c.h.bf16 %v13041_v63  ;;  %v4162_v11 = vpop.f32.mrf.mxu1 }
 0x20c   :  { %v4389_v43 = vadd.f32 %v4377_v25, %v4158_v4  ;;  %v13548_v25 = vld [vmem:[%s18481_s3 + $0x420] ss:$24 sps:$4 sm:$0xff]  }
 0x20d   :  { %9891 = vtanh.f32 %v4355_v29  ;;  %v4356_v27 = vadd.f32 %v4352_v18, %v4277_v59 }
 0x20f   :  { %9893 = vtanh.f32 %v4356_v27  ;;  %v4390_v27 = vadd.f32 %v4378_v23, %v4160_v30  ;;  %v13524_v30 = vld [vmem:[%s18481_s3 + $0x450] ss:$24 sps:$4 sm:$0xff]   ;;  %v13578_v23 = vld [vmem:[%s18481_s3 + $0x3c4] ss:$24 sps:$4 sm:$0xff]  }
 0x210   :  { %19085 = vst [vmem:[#allocation91_spill] sm:$0xff] %v13578_v23 }
 0x211   :  { %v8906_v4 = vmul.f32 -1.442695, %v4390_v27  ;;  %v13602_v27 = vld [vmem:[%s18481_s3 + $0x394] ss:$24 sps:$4 sm:$0xff]  }
 0x212   :  { %19089 = vst [vmem:[#allocation95_spill] sm:$0xff] %v13602_v27 }
 0x216   :  { %v9886_v10 = vpop.eup %9885 }
 0x217   :  { %v9888_v61 = vpop.eup %9887  ;;  %v4365_v58 = vmul.f32 %v9886_v10, %v4361_v14  ;;  %v4164_v14 = vpop.f32.mrf.mxu1  ;;  %v8905_v10 = vmul.f32 -1.442695, %v4389_v43 }
 0x218   :  { %v9890_v20 = vpop.eup %9889  ;;  %v4364_v51 = vsub.f32 1.0, %v9888_v61  ;;  %v4372_v29 = vmul.f32 0.0, %v9888_v61 }
 0x219   :  { %v4366_v22 = vmul.f32 %v9890_v20, %v4362_v50  ;;  %v13489_v31 = vadd.f32 %v4369_v33, %v4365_v58  ;;  %v4393_v50 = vadd.f32 %v4383_v41, %v4162_v11  ;;  %v4384_v58 = vunpack.c.h.bf16 %v13065_v38  ;;  %v13512_v38 = vld [vmem:[%s18481_s3 + $0x160] ss:$24 sps:$4 sm:$0xff]   ;;  %v13518_v20 = vld [vmem:[%s18481_s3 + $0x134] ss:$24 sps:$4 sm:$0xff]   ;;  %v13584_v11 = vld [vmem:[%s18481_s3 + $0xd0] ss:$24 sps:$4 sm:$0xff]  }
 0x21a   :  { %v9892_v45 = vpop.eup %9891  ;;  %9895 = vpow2.f32 %v8905_v10  ;;  %19086 = vst [vmem:[#allocation92_spill] sm:$0xff] %v13584_v11  ;;  %v13608_v10 = vld [vmem:[%s18481_s3 + $0xa0] ss:$24 sps:$4 sm:$0xff]  }
 0x21b   :  { %v13492_v16 = vadd.f32 %v4370_v35, %v4366_v22  ;;  %v4367_v56 = vmul.f32 %v9892_v45, %v4363_v15  ;;  %v4394_v61 = vadd.f32 %v4384_v58, %v4164_v14  ;;  %v8909_v33 = vmul.f32 -1.442695, %v4393_v50  ;;  %v13530_v35 = vld [vmem:[%s18481_s3 + $0x424] ss:$24 sps:$4 sm:$0xff]   ;;  %v13536_v15 = vld [vmem:[%s18481_s3 + $0x130] ss:$24 sps:$4 sm:$0xff]  }
 0x21c   :  { %v9894_v49 = vpop.eup %9893  ;;  %9897 = vpow2.f32 %v8906_v4  ;;  %v13542_v45 = vld [vmem:[%s18481_s3 + $0x104] ss:$24 sps:$4 sm:$0xff]   ;;  %19090 = vst [vmem:[#allocation96_spill] sm:$0xff] %v13608_v10  ;;  %v13614_v58 = vld [vmem:[%s18481_s3 + $0x74] ss:$24 sps:$4 sm:$0xff]  }
 0x21d   :  { %v4368_v59 = vmul.f32 %v9894_v49, %v4364_v51  ;;  %v13495_v18 = vadd.f32 %v4371_v60, %v4367_v56  ;;  %v8910_v22 = vmul.f32 -1.442695, %v4394_v61  ;;  %9899 = vpow2.f32 %v8909_v33  ;;  %v13554_v51 = vld [vmem:[%s18481_s3 + $0x3f4] ss:$24 sps:$4 sm:$0xff]   ;;  %v13560_v56 = vld [vmem:[%s18481_s3 + $0x100] ss:$24 sps:$4 sm:$0xff]  }
 0x21e   :  { %v13566_v60 = vld [vmem:[%s18481_s3 + $0xd4] ss:$24 sps:$4 sm:$0xff]   ;;  %v13572_v49 = vld [vmem:[%s18481_s3 + $0x3f0] ss:$24 sps:$4 sm:$0xff]   ;;  %19091 = vst [vmem:[#allocation97_spill] sm:$0xff] %v13614_v58 }
 0x21f   :  { %v13498_v8 = vadd.f32 %v4372_v29, %v4368_v59  ;;  %v13505_v63 = vpack.c.bf16 %v13495_v18, %v13489_v31  ;;  %9901 = vpow2.f32 %v8910_v22  ;;  %19083 = vst [vmem:[#allocation89_spill] sm:$0xff] %v13566_v60  ;;  %19084 = vst [vmem:[#allocation90_spill] sm:$0xff] %v13572_v49  ;;  %v13590_v59 = vld [vmem:[%s18481_s3 + $0xa4] ss:$24 sps:$4 sm:$0xff]   ;;  %v13596_v29 = vld [vmem:[%s18481_s3 + $0x3c0] ss:$24 sps:$4 sm:$0xff]  }
 0x220   :  { %19087 = vst [vmem:[#allocation93_spill] sm:$0xff] %v13590_v59  ;;  %19088 = vst [vmem:[#allocation94_spill] sm:$0xff] %v13596_v29  ;;  %v13626_v61 = vld [vmem:[%s18481_s3 + $0x364] ss:$24 sps:$4 sm:$0xff]  }
 0x221   :  { %v4489_v57 = vpack.c.bf16 %v13498_v8, %v13492_v16  ;;  %19093 = vst [vmem:[#allocation99_spill] sm:$0xff] %v13626_v61 }
 0x223   :  { %4522 = vmatprep.mubr.bf16.mxu0 %v4489_v57  ;;  %4565 = vmatprep.mubr.bf16.mxu1 %v4489_v57 }
 0x224   :  { %4523 = vmatmul.mubr.bf16.vlgmr.msra.gmra.mxu0 %v13505_v63  ;;  %4566 = vmatmul.mubr.bf16.vlgmr.msra.gmra.mxu1 %v13505_v63 }
 0x225   :  { %4577 = vmatpush1.bf16.msra.mxu0 %v13512_v38  ;;  %4608 = vmatprep.mubr.bf16.mxu0 %v4489_v57  ;;  %v13620_v57 = vld [vmem:[%s18481_s3 + $0x390] ss:$24 sps:$4 sm:$0xff]  }
 0x226   :  { %4578 = vmatprep.subr.bf16.mxu0 %v13518_v20  ;;  %4622 = vmatpush1.bf16.msra.mxu1 %v13524_v30  ;;  %19092 = vst [vmem:[#allocation98_spill] sm:$0xff] %v13620_v57 }
 0x227   :  { %4623 = vmatprep.subr.bf16.mxu1 %v13530_v35  ;;  %v9896_v43 = vpop.eup %9895 }
 0x228   :  { %v4421_v14 = vadd.f32 1.0, %v9896_v43  ;;  %v13632_v43 = vld [vmem:[%s18481_s3 + $0x70] ss:$24 sps:$4 sm:$0xff]  }
 0x229   :  { %4579 = vmatpush1.bf16.msra.mxu0 %v13536_v15  ;;  %v9898_v41 = vpop.eup %9897  ;;  %19094 = vst [vmem:[#allocation100_spill] sm:$0xff] %v13632_v43 }
 0x22a   :  { %4580 = vmatprep.subr.bf16.mxu0 %v13542_v45  ;;  %4624 = vmatpush1.bf16.msra.mxu1 %v13548_v25  ;;  %v9900_v50 = vpop.eup %9899  ;;  %v4422_v4 = vadd.f32 1.0, %v9898_v41  ;;  %9903 = vrcp.f32 %v4421_v14  ;;  %v13638_v41 = vld [vmem:[%s18481_s3 + $0x44] ss:$24 sps:$4 sm:$0xff]  }
 0x22b   :  { %4625 = vmatprep.subr.bf16.mxu1 %v13554_v51  ;;  %v4425_v22 = vadd.f32 1.0, %v9900_v50  ;;  %19095 = vst [vmem:[#allocation101_spill] sm:$0xff] %v13638_v41  ;;  %v13650_v50 = vld [vmem:[%s18481_s3 + $0x334] ss:$24 sps:$4 sm:$0xff]  }
 0x22c   :  { %v9902_v33 = vpop.eup %9901  ;;  %9905 = vrcp.f32 %v4422_v4  ;;  %19097 = vst [vmem:[#allocation103_spill] sm:$0xff] %v13650_v50  ;;  %v13662_v4 = vld [vmem:[%s18481_s3 + $0x14] ss:$24 sps:$4 sm:$0xff]  }
 0x22d   :  { %4581 = vmatpush1.bf16.msra.mxu0 %v13560_v56  ;;  %v4426_v14 = vadd.f32 1.0, %v9902_v33  ;;  %9907 = vrcp.f32 %v4425_v22  ;;  %19099 = vst [vmem:[#allocation105_spill] sm:$0xff] %v13662_v4  ;;  %v8608_v33 = vld [vmem:[%s18483_s5 + $0x2] sm:$0x3]  ;;  %v13671_v22 = vld [vmem:[%s18481_s3 + $0x330] ss:$24 sps:$4 sm:$0xff]  }
 0x22e   :  { %4582 = vmatprep.subr.bf16.mxu0 %v13566_v60  ;;  %4626 = vmatpush1.bf16.msra.mxu1 %v13572_v49  ;;  %19100 = vst [vmem:[#allocation106_spill] sm:$0xff] %v13671_v22  ;;  %v13746_v60 = vld [vmem:[%s18481_s3 + $0x2b0] ss:$24 sps:$4 sm:$0xff]  }
 0x22f   :  { %4627 = vmatprep.subr.bf16.mxu1 %v13578_v23  ;;  %9909 = vrcp.f32 %v4426_v14  ;;  %v13693_v14 = vld [vmem:[%s18481_s3 + $0x2e4] ss:$24 sps:$4 sm:$0xff]   ;;  %v4382_v23 = vunpack.c.h.bf16 %v13424_v7 }
 0x230   :  { %19104 = vst [vmem:[#allocation110_spill] sm:$0xff] %v13693_v14 }
 0x231   :  { %4583 = vmatpush1.bf16.msra.mxu0 %v13584_v11 }
 0x232   :  { %4584 = vmatprep.subr.bf16.mxu0 %v13590_v59  ;;  %4628 = vmatpush1.bf16.msra.mxu1 %v13596_v29 }
 0x233   :  { %4629 = vmatprep.subr.bf16.mxu1 %v13602_v27 }
 0x235   :  { %4585 = vmatpush1.bf16.msra.mxu0 %v13608_v10 }
 0x236   :  { %4586 = vmatprep.subr.bf16.mxu0 %v13614_v58  ;;  %4630 = vmatpush1.bf16.msra.mxu1 %v13620_v57  ;;  %v4380_v57 = vunpack.c.h.bf16 %v13422_v37 }
 0x237   :  { %4631 = vmatprep.subr.bf16.mxu1 %v13626_v61  ;;  %v13644_v61 = vld [vmem:[%s18481_s3 + $0x360] ss:$24 sps:$4 sm:$0xff]  }
 0x238   :  { %19096 = vst [vmem:[#allocation102_spill] sm:$0xff] %v13644_v61 }
 0x239   :  { %4587 = vmatpush1.bf16.msra.mxu0 %v13632_v43 }
 0x23a   :  { %4588 = vmatprep.subr.bf16.mxu0 %v13638_v41  ;;  %4632 = vmatpush1.bf16.msra.mxu1 %v13644_v61  ;;  %v13656_v41 = vld [vmem:[%s18481_s3 + $0x40] ss:$24 sps:$4 sm:$0xff]   ;;  %v13708_v61 = vld [vmem:[%s18481_s3 + $0x5d4] ss:$24 sps:$4 sm:$0xff]  }
 0x23b   :  { %4633 = vmatprep.subr.bf16.mxu1 %v13650_v50  ;;  %19098 = vst [vmem:[#allocation104_spill] sm:$0xff] %v13656_v41  ;;  %v13687_v50 = vrot.slane %v8608_v33, %v12336_v47  ;;  %v13703_v47 = vrot.slane %v8608_v33, %v12353_v53  ;;  %19107 = vst [vmem:[#allocation113_spill] sm:$0xff] %v13708_v61  ;;  %v9904_v53 = vpop.eup %9903 }
 0x23d   :  { %4589 = vmatpush1.bf16.msra.mxu0 %v13656_v41  ;;  %v13677_v41 = vld [vmem:[%s18481_s3 + $0x304] ss:$24 sps:$4 sm:$0xff]   ;;  %19103 = vst [vmem:[#allocation109_spill] sm:$0xff] %v13687_v50  ;;  %19106 = vst [vmem:[#allocation112_spill] sm:$0xff] %v13703_v47 }
 0x23e   :  { %4590 = vmatprep.subr.bf16.mxu0 %v13662_v4  ;;  %4634 = vmatpush1.bf16.msra.mxu1 %v13671_v22  ;;  %19101 = vst [vmem:[#allocation107_spill] sm:$0xff] %v13677_v41  ;;  %v13683_v4 = vld [vmem:[%s18481_s3 + $0x10] ss:$24 sps:$4 sm:$0xff]   ;;  %v4379_v22 = vunpack.c.l.bf16 %v13422_v37  ;;  %v13723_v37 = vld [vmem:[%s18481_s3 + $0x2b4] ss:$24 sps:$4 sm:$0xff]  }
 0x23f   :  { %4635 = vmatprep.subr.bf16.mxu1 %v13677_v41  ;;  %19102 = vst [vmem:[#allocation108_spill] sm:$0xff] %v13683_v4  ;;  %v13699_v41 = vld [vmem:[%s18481_s3 + $0x300] ss:$24 sps:$4 sm:$0xff]   ;;  %19109 = vst [vmem:[#allocation115_spill] sm:$0xff] %v13723_v37 }
 0x240   :  { %19105 = vst [vmem:[#allocation111_spill] sm:$0xff] %v13699_v41 }
 0x241   :  { %4591 = vmatpush1.bf16.msra.mxu0 %v13683_v4 }
 0x242   :  { %4592 = vmatprep.subr.bf16.mxu0 %v13693_v14  ;;  %4636 = vmatpush1.bf16.msra.mxu1 %v13699_v41  ;;  %v4201_v4 = vpop.f32.mrf.mxu0  ;;  %v13716_v41 = vld [vmem:[%s18481_s3 + $0x2e0] ss:$24 sps:$4 sm:$0xff]  }
 0x243   :  { %4637 = vmatprep.subr.bf16.mxu1 %v13708_v61  ;;  %v4391_v43 = vadd.f32 %v4379_v22, %v4201_v4  ;;  %v4244_v14 = vpop.f32.mrf.mxu1  ;;  %19108 = vst [vmem:[#allocation114_spill] sm:$0xff] %v13716_v41  ;;  %v4385_v61 = vunpack.c.l.bf16 %v13454_v39  ;;  %v13729_v4 = vld [vmem:[%s18481_s3 + $0x5d0] ss:$24 sps:$4 sm:$0xff]  }
 0x244   :  { %v4456_v58 = vadd.f32 %v13687_v50, %v4244_v14  ;;  %v4203_v10 = vpop.f32.mrf.mxu0  ;;  %19110 = vst [vmem:[#allocation116_spill] sm:$0xff] %v13729_v4  ;;  %v13737_v14 = vld [vmem:[%s18481_s3 + $0x5a4] ss:$24 sps:$4 sm:$0xff]  }
 0x245   :  { %4593 = vmatpush2.bf16.msra.mxu0 %v13716_v41  ;;  %v8907_v33 = vmul.f32 -1.442695, %v4391_v43  ;;  %v4392_v27 = vadd.f32 %v4380_v57, %v4203_v10  ;;  %v4246_v29 = vpop.f32.mrf.mxu1  ;;  %v4381_v43 = vunpack.c.l.bf16 %v13424_v7  ;;  %v13752_v7 = vld [vmem:[%s18481_s3 + $0x284] ss:$24 sps:$4 sm:$0xff]  }
 0x246   :  { %4594 = vmatprep.subr.bf16.mxu0 %v13723_v37  ;;  %4638 = vmatpush2.bf16.msra.mxu1 %v13729_v4  ;;  %v4460_v10 = vmul.f32 %v9904_v53, %v4456_v58  ;;  %v4457_v57 = vadd.f32 %v13703_v47, %v4246_v29  ;;  %v4205_v22 = vpop.f32.mrf.mxu0  ;;  %v9906_v37 = vpop.eup %9905  ;;  %v4386_v4 = vunpack.c.h.bf16 %v13454_v39  ;;  %v13758_v39 = vld [vmem:[%s18481_s3 + $0x5a0] ss:$24 sps:$4 sm:$0xff]  }
 0x247   :  { %4639 = vmatprep.subr.bf16.mxu1 %v13737_v14  ;;  %9911 = vpow2.f32 %v8907_v33  ;;  %v8908_v41 = vmul.f32 -1.442695, %v4392_v27  ;;  %v4395_v59 = vadd.f32 %v4385_v61, %v4205_v22  ;;  %v4248_v11 = vpop.f32.mrf.mxu1  ;;  %v9908_v33 = vpop.eup %9907 }
 0x248   :  { %v4464_v58 = vadd.f32 %v4460_v10, %v4381_v43  ;;  %v4461_v53 = vmul.f32 %v9906_v37, %v4457_v57  ;;  %v4458_v29 = vadd.f32 %v13687_v50, %v4248_v11  ;;  %v4207_v49 = vpop.f32.mrf.mxu0  ;;  %v4387_v11 = vunpack.c.l.bf16 %v13456_v52  ;;  %v13766_v37 = vld [vmem:[%s18481_s3 + $0x574] ss:$24 sps:$4 sm:$0xff]  }
 0x249   :  { %4595 = vmatpush2.bf16.msra.mxu0 %v13746_v60  ;;  %9913 = vpow2.f32 %v8908_v41  ;;  %v8911_v27 = vmul.f32 -1.442695, %v4395_v59  ;;  %v4396_v61 = vadd.f32 %v4386_v4, %v4207_v49  ;;  %v4250_v22 = vpop.f32.mrf.mxu1  ;;  %v9910_v4 = vpop.eup %9909  ;;  %v4388_v10 = vunpack.c.h.bf16 %v13456_v52  ;;  %v13785_v52 = vld [vmem:[%s18481_s3 + $0x570] ss:$24 sps:$4 sm:$0xff]  }
 0x24a   :  { %4596 = vmatprep.subr.bf16.mxu0 %v13752_v7  ;;  %4640 = vmatpush2.bf16.msra.mxu1 %v13758_v39  ;;  %v4465_v41 = vadd.f32 %v4461_v53, %v4382_v23  ;;  %v4462_v59 = vmul.f32 %v9908_v33, %v4458_v29  ;;  %v4459_v49 = vadd.f32 %v13703_v47, %v4250_v22  ;;  %v13773_v23 = vld [vmem:[%s18481_s3 + $0x280] ss:$24 sps:$4 sm:$0xff]   ;;  %v13779_v53 = vld [vmem:[%s18481_s3 + $0x254] ss:$24 sps:$4 sm:$0xff]   ;;  %v13791_v33 = vld [vmem:[%s18481_s3 + $0x544] ss:$24 sps:$4 sm:$0xff]  }
 0x24b   :  { %4641 = vmatprep.subr.bf16.mxu1 %v13766_v37  ;;  %9915 = vpow2.f32 %v8911_v27  ;;  %v8912_v43 = vmul.f32 -1.442695, %v4396_v61  ;;  %19111 = vst [vmem:[#allocation117_spill] sm:$0xff] %v13779_v53  ;;  %19112 = vst [vmem:[#allocation118_spill] sm:$0xff] %v13785_v52  ;;  %v13797_v27 = vld [vmem:[%s18481_s3 + $0x250] ss:$24 sps:$4 sm:$0xff]  }
 0x24c   :  { %v4466_v57 = vadd.f32 %v4462_v59, %v4387_v11  ;;  %v4463_v50 = vmul.f32 %v9910_v4, %v4459_v49  ;;  %19113 = vst [vmem:[#allocation119_spill] sm:$0xff] %v13791_v33  ;;  %19114 = vst [vmem:[#allocation120_spill] sm:$0xff] %v13797_v27  ;;  %v13803_v61 = vld [vmem:[%s18481_s3 + $0x224] ss:$24 sps:$4 sm:$0xff]   ;;  %v13815_v22 = vld [vmem:[%s18481_s3 + $0x514] ss:$24 sps:$4 sm:$0xff]  }
 0x24d   :  { %4597 = vmatpush2.bf16.msra.mxu0 %v13773_v23  ;;  %9917 = vpow2.f32 %v8912_v43  ;;  %19115 = vst [vmem:[#allocation121_spill] sm:$0xff] %v13803_v61  ;;  %19117 = vst [vmem:[#allocation123_spill] sm:$0xff] %v13815_v22  ;;  %v13821_v59 = vld [vmem:[%s18481_s3 + $0x220] ss:$24 sps:$4 sm:$0xff]   ;;  %v13827_v4 = vld [vmem:[%s18481_s3 + $0x1f4] ss:$24 sps:$4 sm:$0xff]  }
 0x24e   :  { %4598 = vmatprep.subr.bf16.mxu0 %v13779_v53  ;;  %4642 = vmatpush2.bf16.msra.mxu1 %v13785_v52  ;;  %v4467_v29 = vadd.f32 %v4463_v50, %v4388_v10  ;;  %v13809_v50 = vld [vmem:[%s18481_s3 + $0x540] ss:$24 sps:$4 sm:$0xff]   ;;  %19118 = vst [vmem:[#allocation124_spill] sm:$0xff] %v13821_v59  ;;  %19119 = vst [vmem:[#allocation125_spill] sm:$0xff] %v13827_v4  ;;  %v13833_v43 = vld [vmem:[%s18481_s3 + $0x510] ss:$24 sps:$4 sm:$0xff]  }
 0x24f   :  { %4643 = vmatprep.subr.bf16.mxu1 %v13791_v33  ;;  %19116 = vst [vmem:[#allocation122_spill] sm:$0xff] %v13809_v50  ;;  %19120 = vst [vmem:[#allocation126_spill] sm:$0xff] %v13833_v43  ;;  %v13839_v47 = vld [vmem:[%s18481_s3 + $0x4e4] ss:$24 sps:$4 sm:$0xff]   ;;  %v13946_v53 = vld [vmem:[%s18481_s3 + $0x3f8] ss:$24 sps:$4 sm:$0xff]  }
 0x250   :  { %19121 = vst [vmem:[#allocation127_spill] sm:$0xff] %v13839_v47 }
 0x251   :  { %4599 = vmatpush2.bf16.msra.mxu0 %v13797_v27 }
 0x252   :  { %4600 = vmatprep.subr.bf16.mxu0 %v13803_v61  ;;  %4644 = vmatpush2.bf16.msra.mxu1 %v13809_v50 }
 0x253   :  { %4645 = vmatprep.subr.bf16.mxu1 %v13815_v22  ;;  %v13851_v22 = vld [vmem:[%s18481_s3 + $0x1c4] ss:$24 sps:$4 sm:$0xff]  }
 0x254   :  { %v9912_v11 = vpop.eup %9911  ;;  %19123 = vst [vmem:[#allocation129_spill] sm:$0xff] %v13851_v22 }
 0x255   :  { %4601 = vmatpush2.bf16.msra.mxu0 %v13821_v59  ;;  %v4423_v49 = vadd.f32 1.0, %v9912_v11 }
 0x256   :  { %4602 = vmatprep.subr.bf16.mxu0 %v13827_v4  ;;  %4646 = vmatpush2.bf16.msra.mxu1 %v13833_v43  ;;  %v9914_v10 = vpop.eup %9913  ;;  %v13845_v4 = vld [vmem:[%s18481_s3 + $0x1f0] ss:$24 sps:$4 sm:$0xff]  }
 0x257   :  { %4647 = vmatprep.subr.bf16.mxu1 %v13839_v47  ;;  %9919 = vrcp.f32 %v4423_v49  ;;  %v4424_v11 = vadd.f32 1.0, %v9914_v10  ;;  %19122 = vst [vmem:[#allocation128_spill] sm:$0xff] %v13845_v4  ;;  %v13936_v47 = vld [vmem:[%s18481_s3 + $0x3fc] ss:$24 sps:$4 sm:$0xff]  }
 0x258   :  { %v9916_v59 = vpop.eup %9915  ;;  %9921 = vtanh.f32 %v4464_v58  ;;  %v13857_v58 = vld [vmem:[%s18481_s3 + $0x4e0] ss:$24 sps:$4 sm:$0xff]  }
 0x259   :  { %4603 = vmatpush2.bf16.msra.mxu0 %v13845_v4  ;;  %9923 = vrcp.f32 %v4424_v11  ;;  %v4427_v43 = vadd.f32 1.0, %v9916_v59  ;;  %19124 = vst [vmem:[#allocation130_spill] sm:$0xff] %v13857_v58  ;;  %v13863_v59 = vld [vmem:[%s18481_s3 + $0x4b4] ss:$24 sps:$4 sm:$0xff]   ;;  %v13869_v11 = vld [vmem:[%s18481_s3 + $0x1c0] ss:$24 sps:$4 sm:$0xff]  }
 0x25a   :  { %4604 = vmatprep.subr.bf16.mxu0 %v13851_v22  ;;  %4648 = vmatpush2.bf16.msra.mxu1 %v13857_v58  ;;  %v9918_v49 = vpop.eup %9917  ;;  %9925 = vtanh.f32 %v4465_v41  ;;  %19125 = vst [vmem:[#allocation131_spill] sm:$0xff] %v13863_v59  ;;  %19126 = vst [vmem:[#allocation132_spill] sm:$0xff] %v13869_v11  ;;  %v13875_v41 = vld [vmem:[%s18481_s3 + $0x194] ss:$24 sps:$4 sm:$0xff]   ;;  %v13930_v4 = vld [vmem:[%s18481_s3 + $0x428] ss:$24 sps:$4 sm:$0xff]  }
 0x25b   :  { %4649 = vmatprep.subr.bf16.mxu1 %v13863_v59  ;;  %9927 = vrcp.f32 %v4427_v43  ;;  %v4428_v10 = vadd.f32 1.0, %v9918_v49  ;;  %19127 = vst [vmem:[#allocation133_spill] sm:$0xff] %v13875_v41  ;;  %v13881_v43 = vld [vmem:[%s18481_s3 + $0x4b0] ss:$24 sps:$4 sm:$0xff]   ;;  %19136 = vst [vmem:[#allocation142_spill] sm:$0xff] %v13930_v4 }
 0x25c   :  { %9929 = vtanh.f32 %v4466_v57  ;;  %19128 = vst [vmem:[#allocation134_spill] sm:$0xff] %v13881_v43  ;;  %v13887_v57 = vld [vmem:[%s18481_s3 + $0x484] ss:$24 sps:$4 sm:$0xff]   ;;  %v13893_v49 = vld [vmem:[%s18481_s3 + $0x190] ss:$24 sps:$4 sm:$0xff]  }
 0x25d   :  { %4605 = vmatpush2.bf16.msra.mxu0 %v13869_v11  ;;  %9931 = vrcp.f32 %v4428_v10  ;;  %19129 = vst [vmem:[#allocation135_spill] sm:$0xff] %v13887_v57  ;;  %19130 = vst [vmem:[#allocation136_spill] sm:$0xff] %v13893_v49  ;;  %v13899_v10 = vld [vmem:[%s18481_s3 + $0x45c] ss:$24 sps:$4 sm:$0xff]  }
 0x25e   :  { %4606 = vmatprep.subr.bf16.mxu0 %v13875_v41  ;;  %4650 = vmatpush2.bf16.msra.mxu1 %v13881_v43  ;;  %9933 = vtanh.f32 %v4467_v29  ;;  %19131 = vst [vmem:[#allocation137_spill] sm:$0xff] %v13899_v10  ;;  %v13905_v43 = vld [vmem:[%s18481_s3 + $0x480] ss:$24 sps:$4 sm:$0xff]   ;;  %v13911_v29 = vld [vmem:[%s18481_s3 + $0x464] ss:$24 sps:$4 sm:$0xff]  }
 0x25f   :  { %4651 = vmatprep.subr.bf16.mxu1 %v13887_v57  ;;  %19132 = vst [vmem:[#allocation138_spill] sm:$0xff] %v13905_v43  ;;  %19133 = vst [vmem:[#allocation139_spill] sm:$0xff] %v13911_v29 }
 0x261   :  { %4607 = vmatpush2.bf16.msra.mxu0 %v13893_v49 }
 0x262   :  { %4664 = vmatprep.subr.bf16.mxu0 %v13899_v10  ;;  %4652 = vmatpush2.bf16.msra.mxu1 %v13905_v43  ;;  %v13918_v10 = vld [vmem:[%s18481_s3 + $0x458] ss:$24 sps:$4 sm:$0xff]   ;;  %v13924_v43 = vld [vmem:[%s18481_s3 + $0x42c] ss:$24 sps:$4 sm:$0xff]  }
 0x263   :  { %4707 = vmatprep.subr.bf16.mxu1 %v13911_v29  ;;  %19134 = vst [vmem:[#allocation140_spill] sm:$0xff] %v13918_v10  ;;  %19135 = vst [vmem:[#allocation141_spill] sm:$0xff] %v13924_v43 }
 0x264   :  { %4609 = vmatmul.mubr.bf16.vlgmr.msra.gmra.mxu0 %v13505_v63  ;;  %v9920_v49 = vpop.eup %9919 }
 0x265   :  { %4665 = vmatpush1.bf16.msra.mxu0 %v13918_v10  ;;  %v9922_v57 = vpop.eup %9921  ;;  %v4472_v41 = vsub.f32 1.0, %v9920_v49  ;;  %v4480_v58 = vmul.f32 0.0, %v9920_v49 }
 0x266   :  { %4666 = vmatprep.subr.bf16.mxu0 %v13924_v43  ;;  %v9924_v29 = vpop.eup %9923 }
 0x267   :  { %v9926_v11 = vpop.eup %9925  ;;  %v4473_v63 = vsub.f32 1.0, %v9924_v29  ;;  %v4476_v59 = vmul.f32 %v9922_v57, %v4472_v41  ;;  %v4481_v50 = vmul.f32 0.0, %v9924_v29  ;;  %v13970_v29 = vld [vmem:[%s18481_s3 + $0x39c] ss:$24 sps:$4 sm:$0xff]  }
 0x268   :  { %v9928_v22 = vpop.eup %9927 }
 0x269   :  { %4667 = vmatpush1.bf16.msra.mxu0 %v13930_v4  ;;  %v9930_v10 = vpop.eup %9929  ;;  %v4477_v43 = vmul.f32 %v9926_v11, %v4473_v63  ;;  %v4474_v41 = vsub.f32 1.0, %v9928_v22  ;;  %v13939_v57 = vadd.f32 %v4480_v58, %v4476_v59  ;;  %v4482_v52 = vmul.f32 0.0, %v9928_v22  ;;  %v13952_v11 = vld [vmem:[%s18481_s3 + $0x3cc] ss:$24 sps:$4 sm:$0xff]  }
 0x26a   :  { %4668 = vmatprep.subr.bf16.mxu0 %v13936_v47  ;;  %v9932_v49 = vpop.eup %9931  ;;  %v13999_v63 = vld [vmem:[%s18481_s3 + $0x434] ss:$24 sps:$4 sm:$0xff]  }
 0x26b   :  { %v4475_v61 = vsub.f32 1.0, %v9932_v49  ;;  %v13941_v27 = vadd.f32 %v4481_v50, %v4477_v43  ;;  %v4478_v33 = vmul.f32 %v9930_v10, %v4474_v41  ;;  %v9934_v4 = vpop.eup %9933  ;;  %v4483_v50 = vmul.f32 0.0, %v9932_v49  ;;  %v13962_v43 = vld [vmem:[%s18481_s3 + $0x3c8] ss:$24 sps:$4 sm:$0xff]  }
 0x26c   :  { %v14005_v41 = vld [vmem:[%s18481_s3 + $0x368] ss:$24 sps:$4 sm:$0xff]  }
 0x26d   :  { %4669 = vmatpush1.bf16.msra.mxu0 %v13946_v53  ;;  %v4479_v58 = vmul.f32 %v9934_v4, %v4475_v61  ;;  %v13955_v59 = vadd.f32 %v4482_v52, %v4478_v33  ;;  %v13981_v33 = vld [vmem:[%s18481_s3 + $0x398] ss:$24 sps:$4 sm:$0xff]   ;;  %v13993_v4 = vld [vmem:[%s18481_s3 + $0x36c] ss:$24 sps:$4 sm:$0xff]  }
 0x26e   :  { %4670 = vmatprep.subr.bf16.mxu0 %v13952_v11  ;;  %v13987_v61 = vld [vmem:[%s18481_s3 + $0x460] ss:$24 sps:$4 sm:$0xff]   ;;  %v14011_v49 = vld [vmem:[%s18481_s3 + $0x430] ss:$24 sps:$4 sm:$0xff]  }
 0x26f   :  { %v13957_v22 = vadd.f32 %v4483_v50, %v4479_v58  ;;  %v13975_v52 = vpack.c.bf16 %v13955_v59, %v13939_v57  ;;  %19137 = vst [vmem:[#allocation143_spill] sm:$0xff] %v14011_v49  ;;  %v14017_v58 = vld [vmem:[%s18481_s3 + $0x33c] ss:$24 sps:$4 sm:$0xff]  }
 0x270   :  { %19138 = vst [vmem:[#allocation144_spill] sm:$0xff] %v14017_v58  ;;  %v14023_v50 = vld [vmem:[%s18481_s3 + $0x404] ss:$24 sps:$4 sm:$0xff]  }
 0x271   :  { %4671 = vmatpush1.bf16.msra.mxu0 %v13962_v43  ;;  %v4620_v10 = vpack.c.bf16 %v13957_v22, %v13941_v27  ;;  %19139 = vst [vmem:[#allocation145_spill] sm:$0xff] %v14023_v50 }
 0x272   :  { %4672 = vmatprep.subr.bf16.mxu0 %v13970_v29 }
 0x273   :  { %4653 = vmatprep.mubr.bf16.mxu1 %v4620_v10  ;;  %4696 = vmatprep.mubr.bf16.mxu0 %v4620_v10 }
 0x274   :  { %4654 = vmatmul.mubr.bf16.vlgmr.msra.gmra.mxu1 %v13975_v52 }
 0x275   :  { %4673 = vmatpush1.bf16.msra.mxu0 %v13981_v33  ;;  %4708 = vmatpush1.bf16.msra.mxu1 %v13987_v61 }
 0x276   :  { %4739 = vmatprep.mubr.bf16.mxu1 %v4620_v10  ;;  %4674 = vmatprep.subr.bf16.mxu0 %v13993_v4  ;;  %v14029_v10 = vld [vmem:[%s18481_s3 + $0x338] ss:$24 sps:$4 sm:$0xff]  }
 0x277   :  { %4709 = vmatprep.subr.bf16.mxu1 %v13999_v63  ;;  %19140 = vst [vmem:[#allocation146_spill] sm:$0xff] %v14029_v10 }
 0x279   :  { %4675 = vmatpush1.bf16.msra.mxu0 %v14005_v41  ;;  %4710 = vmatpush1.bf16.msra.mxu1 %v14011_v49  ;;  %v14035_v49 = vld [vmem:[%s18481_s3 + $0x400] ss:$24 sps:$4 sm:$0xff]  }
 0x27a   :  { %4676 = vmatprep.subr.bf16.mxu0 %v14017_v58  ;;  %4711 = vmatprep.subr.bf16.mxu1 %v14023_v50  ;;  %19141 = vst [vmem:[#allocation147_spill] sm:$0xff] %v14035_v49  ;;  %v14041_v58 = vld [vmem:[%s18481_s3 + $0x30c] ss:$24 sps:$4 sm:$0xff]  }
 0x27b   :  { %19142 = vst [vmem:[#allocation148_spill] sm:$0xff] %v14041_v58  ;;  %v14047_v50 = vld [vmem:[%s18481_s3 + $0x3d4] ss:$24 sps:$4 sm:$0xff]  }
 0x27c   :  { %19143 = vst [vmem:[#allocation149_spill] sm:$0xff] %v14047_v50 }
 0x27d   :  { %4677 = vmatpush1.bf16.msra.mxu0 %v14029_v10  ;;  %4712 = vmatpush1.bf16.msra.mxu1 %v14035_v49  ;;  %v14053_v10 = vld [vmem:[%s18481_s3 + $0x308] ss:$24 sps:$4 sm:$0xff]  }
 0x27e   :  { %4678 = vmatprep.subr.bf16.mxu0 %v14041_v58  ;;  %4713 = vmatprep.subr.bf16.mxu1 %v14047_v50  ;;  %19144 = vst [vmem:[#allocation150_spill] sm:$0xff] %v14053_v10  ;;  %v14059_v49 = vld [vmem:[%s18481_s3 + $0x3d0] ss:$24 sps:$4 sm:$0xff]   ;;  %v14065_v58 = vld [vmem:[%s18481_s3 + $0x5dc] ss:$24 sps:$4 sm:$0xff]  }
 0x27f   :  { %19145 = vst [vmem:[#allocation151_spill] sm:$0xff] %v14059_v49  ;;  %19146 = vst [vmem:[#allocation152_spill] sm:$0xff] %v14065_v58  ;;  %v14071_v50 = vld [vmem:[%s18481_s3 + $0x3a4] ss:$24 sps:$4 sm:$0xff]  }
 0x280   :  { %19147 = vst [vmem:[#allocation153_spill] sm:$0xff] %v14071_v50 }
 0x281   :  { %4679 = vmatpush1.bf16.msra.mxu0 %v14053_v10  ;;  %4714 = vmatpush1.bf16.msra.mxu1 %v14059_v49  ;;  %v14077_v10 = vld [vmem:[%s18481_s3 + $0x5d8] ss:$24 sps:$4 sm:$0xff]  }
 0x282   :  { %4680 = vmatprep.subr.bf16.mxu0 %v14065_v58  ;;  %4715 = vmatprep.subr.bf16.mxu1 %v14071_v50  ;;  %19148 = vst [vmem:[#allocation154_spill] sm:$0xff] %v14077_v10  ;;  %v14083_v49 = vld [vmem:[%s18481_s3 + $0x3a0] ss:$24 sps:$4 sm:$0xff]   ;;  %v14089_v58 = vld [vmem:[%s18481_s3 + $0x5ac] ss:$24 sps:$4 sm:$0xff]  }
 0x283   :  { %19149 = vst [vmem:[#allocation155_spill] sm:$0xff] %v14083_v49  ;;  %19150 = vst [vmem:[#allocation156_spill] sm:$0xff] %v14089_v58  ;;  %v14095_v50 = vld [vmem:[%s18481_s3 + $0x374] ss:$24 sps:$4 sm:$0xff]  }
 0x284   :  { %19151 = vst [vmem:[#allocation157_spill] sm:$0xff] %v14095_v50 }
 0x285   :  { %4681 = vmatpush2.bf16.msra.mxu0 %v14077_v10  ;;  %4716 = vmatpush1.bf16.msra.mxu1 %v14083_v49  ;;  %v14101_v10 = vld [vmem:[%s18481_s3 + $0x5a8] ss:$24 sps:$4 sm:$0xff]  }
 0x286   :  { %4682 = vmatprep.subr.bf16.mxu0 %v14089_v58  ;;  %4717 = vmatprep.subr.bf16.mxu1 %v14095_v50  ;;  %19152 = vst [vmem:[#allocation158_spill] sm:$0xff] %v14101_v10  ;;  %v14107_v49 = vld [vmem:[%s18481_s3 + $0x370] ss:$24 sps:$4 sm:$0xff]   ;;  %v14113_v58 = vld [vmem:[%s18481_s3 + $0x57c] ss:$24 sps:$4 sm:$0xff]  }
 0x287   :  { %19153 = vst [vmem:[#allocation159_spill] sm:$0xff] %v14107_v49  ;;  %19154 = vst [vmem:[#allocation160_spill] sm:$0xff] %v14113_v58  ;;  %v14119_v50 = vld [vmem:[%s18481_s3 + $0x344] ss:$24 sps:$4 sm:$0xff]  }
 0x288   :  { %19155 = vst [vmem:[#allocation161_spill] sm:$0xff] %v14119_v50 }
 0x289   :  { %4683 = vmatpush2.bf16.msra.mxu0 %v14101_v10  ;;  %4718 = vmatpush1.bf16.msra.mxu1 %v14107_v49  ;;  %v14125_v10 = vld [vmem:[%s18481_s3 + $0x578] ss:$24 sps:$4 sm:$0xff]  }
 0x28a   :  { %4684 = vmatprep.subr.bf16.mxu0 %v14113_v58  ;;  %4719 = vmatprep.subr.bf16.mxu1 %v14119_v50  ;;  %19156 = vst [vmem:[#allocation162_spill] sm:$0xff] %v14125_v10  ;;  %v14131_v49 = vld [vmem:[%s18481_s3 + $0x340] ss:$24 sps:$4 sm:$0xff]   ;;  %v14137_v58 = vld [vmem:[%s18481_s3 + $0x54c] ss:$24 sps:$4 sm:$0xff]  }
 0x28b   :  { %19157 = vst [vmem:[#allocation163_spill] sm:$0xff] %v14131_v49  ;;  %19158 = vst [vmem:[#allocation164_spill] sm:$0xff] %v14137_v58  ;;  %v14143_v50 = vld [vmem:[%s18481_s3 + $0x314] ss:$24 sps:$4 sm:$0xff]  }
 0x28c   :  { %19159 = vst [vmem:[#allocation165_spill] sm:$0xff] %v14143_v50 }
 0x28d   :  { %4685 = vmatpush2.bf16.msra.mxu0 %v14125_v10  ;;  %4720 = vmatpush1.bf16.msra.mxu1 %v14131_v49  ;;  %v14149_v10 = vld [vmem:[%s18481_s3 + $0x548] ss:$24 sps:$4 sm:$0xff]  }
 0x28e   :  { %4686 = vmatprep.subr.bf16.mxu0 %v14137_v58  ;;  %4721 = vmatprep.subr.bf16.mxu1 %v14143_v50  ;;  %19160 = vst [vmem:[#allocation166_spill] sm:$0xff] %v14149_v10  ;;  %v14155_v49 = vld [vmem:[%s18481_s3 + $0x310] ss:$24 sps:$4 sm:$0xff]   ;;  %v14161_v58 = vld [vmem:[%s18481_s3 + $0x51c] ss:$24 sps:$4 sm:$0xff]  }
 0x28f   :  { %19161 = vst [vmem:[#allocation167_spill] sm:$0xff] %v14155_v49  ;;  %19162 = vst [vmem:[#allocation168_spill] sm:$0xff] %v14161_v58  ;;  %v14167_v50 = vld [vmem:[%s18481_s3 + $0x5e4] ss:$24 sps:$4 sm:$0xff]  }
 0x290   :  { %19163 = vst [vmem:[#allocation169_spill] sm:$0xff] %v14167_v50 }
 0x291   :  { %4687 = vmatpush2.bf16.msra.mxu0 %v14149_v10  ;;  %4722 = vmatpush1.bf16.msra.mxu1 %v14155_v49  ;;  %v14173_v10 = vld [vmem:[%s18481_s3 + $0x518] ss:$24 sps:$4 sm:$0xff]  }
 0x292   :  { %4688 = vmatprep.subr.bf16.mxu0 %v14161_v58  ;;  %4723 = vmatprep.subr.bf16.mxu1 %v14167_v50  ;;  %19164 = vst [vmem:[#allocation170_spill] sm:$0xff] %v14173_v10  ;;  %v14179_v49 = vld [vmem:[%s18481_s3 + $0x5e0] ss:$24 sps:$4 sm:$0xff]   ;;  %v14185_v58 = vld [vmem:[%s18481_s3 + $0x4ec] ss:$24 sps:$4 sm:$0xff]  }
 0x293   :  { %19165 = vst [vmem:[#allocation171_spill] sm:$0xff] %v14179_v49  ;;  %19166 = vst [vmem:[#allocation172_spill] sm:$0xff] %v14185_v58  ;;  %v14191_v50 = vld [vmem:[%s18481_s3 + $0x5b4] ss:$24 sps:$4 sm:$0xff]  }
 0x294   :  { %19167 = vst [vmem:[#allocation173_spill] sm:$0xff] %v14191_v50 }
 0x295   :  { %4689 = vmatpush2.bf16.msra.mxu0 %v14173_v10  ;;  %4724 = vmatpush2.bf16.msra.mxu1 %v14179_v49  ;;  %v14197_v10 = vld [vmem:[%s18481_s3 + $0x4e8] ss:$24 sps:$4 sm:$0xff]  }
 0x296   :  { %4690 = vmatprep.subr.bf16.mxu0 %v14185_v58  ;;  %4725 = vmatprep.subr.bf16.mxu1 %v14191_v50  ;;  %19168 = vst [vmem:[#allocation174_spill] sm:$0xff] %v14197_v10  ;;  %v14203_v49 = vld [vmem:[%s18481_s3 + $0x5b0] ss:$24 sps:$4 sm:$0xff]   ;;  %v14209_v58 = vld [vmem:[%s18481_s3 + $0x4bc] ss:$24 sps:$4 sm:$0xff]  }
 0x297   :  { %19169 = vst [vmem:[#allocation175_spill] sm:$0xff] %v14203_v49  ;;  %19170 = vst [vmem:[#allocation176_spill] sm:$0xff] %v14209_v58  ;;  %v14215_v50 = vld [vmem:[%s18481_s3 + $0x584] ss:$24 sps:$4 sm:$0xff]  }
 0x298   :  { %19171 = vst [vmem:[#allocation177_spill] sm:$0xff] %v14215_v50 }
 0x299   :  { %4691 = vmatpush2.bf16.msra.mxu0 %v14197_v10  ;;  %4726 = vmatpush2.bf16.msra.mxu1 %v14203_v49  ;;  %v14221_v10 = vld [vmem:[%s18481_s3 + $0x4b8] ss:$24 sps:$4 sm:$0xff]  }
 0x29a   :  { %4692 = vmatprep.subr.bf16.mxu0 %v14209_v58  ;;  %4727 = vmatprep.subr.bf16.mxu1 %v14215_v50  ;;  %19172 = vst [vmem:[#allocation178_spill] sm:$0xff] %v14221_v10  ;;  %v14227_v49 = vld [vmem:[%s18481_s3 + $0x580] ss:$24 sps:$4 sm:$0xff]   ;;  %v14233_v58 = vld [vmem:[%s18481_s3 + $0x48c] ss:$24 sps:$4 sm:$0xff]  }
 0x29b   :  { %19173 = vst [vmem:[#allocation179_spill] sm:$0xff] %v14227_v49  ;;  %19174 = vst [vmem:[#allocation180_spill] sm:$0xff] %v14233_v58  ;;  %v14239_v50 = vld [vmem:[%s18481_s3 + $0x554] ss:$24 sps:$4 sm:$0xff]  }
 0x29c   :  { %19175 = vst [vmem:[#allocation181_spill] sm:$0xff] %v14239_v50 }
 0x29d   :  { %4693 = vmatpush2.bf16.msra.mxu0 %v14221_v10  ;;  %4728 = vmatpush2.bf16.msra.mxu1 %v14227_v49  ;;  %v14245_v10 = vld [vmem:[%s18481_s3 + $0x488] ss:$24 sps:$4 sm:$0xff]  }
 0x29e   :  { %4694 = vmatprep.subr.bf16.mxu0 %v14233_v58  ;;  %4729 = vmatprep.subr.bf16.mxu1 %v14239_v50  ;;  %19176 = vst [vmem:[#allocation182_spill] sm:$0xff] %v14245_v10  ;;  %v14251_v49 = vld [vmem:[%s18481_s3 + $0x550] ss:$24 sps:$4 sm:$0xff]   ;;  %v14257_v58 = vld [vmem:[%s18481_s3 + $0x154] ss:$24 sps:$4 sm:$0xff]  }
 0x29f   :  { %19177 = vst [vmem:[#allocation183_spill] sm:$0xff] %v14251_v49  ;;  %19178 = vst [vmem:[#allocation184_spill] sm:$0xff] %v14257_v58  ;;  %v14263_v50 = vld [vmem:[%s18481_s3 + $0x524] ss:$24 sps:$4 sm:$0xff]  }
 0x2a0   :  { %19179 = vst [vmem:[#allocation185_spill] sm:$0xff] %v14263_v50 }
 0x2a1   :  { %4695 = vmatpush2.bf16.msra.mxu0 %v14245_v10  ;;  %4730 = vmatpush2.bf16.msra.mxu1 %v14251_v49  ;;  %v14270_v49 = vld [vmem:[%s18481_s3 + $0x150] ss:$24 sps:$4 sm:$0xff]   ;;  %v14288_v10 = vld [vmem:[%s18481_s3 + $0x4f4] ss:$24 sps:$4 sm:$0xff]  }
 0x2a2   :  { %4966 = vmatprep.subr.bf16.mxu0 %v14257_v58  ;;  %4731 = vmatprep.subr.bf16.mxu1 %v14263_v50  ;;  %19180 = vst [vmem:[#allocation186_spill] sm:$0xff] %v14270_v49  ;;  %v14276_v58 = vld [vmem:[%s18481_s3 + $0x520] ss:$24 sps:$4 sm:$0xff]   ;;  %v14282_v50 = vld [vmem:[%s18481_s3 + $0x124] ss:$24 sps:$4 sm:$0xff]   ;;  %19183 = vst [vmem:[#allocation189_spill] sm:$0xff] %v14288_v10 }
 0x2a3   :  { %19181 = vst [vmem:[#allocation187_spill] sm:$0xff] %v14276_v58  ;;  %19182 = vst [vmem:[#allocation188_spill] sm:$0xff] %v14282_v50 }
 0x2a4   :  { %4697 = vmatmul.mubr.bf16.vlgmr.msra.gmra.mxu0 %v13975_v52 }
 0x2a5   :  { %4967 = vmatpush1.bf16.msra.mxu0 %v14270_v49  ;;  %4732 = vmatpush2.bf16.msra.mxu1 %v14276_v58  ;;  %v14294_v49 = vld [vmem:[%s18481_s3 + $0x120] ss:$24 sps:$4 sm:$0xff]   ;;  %v14300_v58 = vld [vmem:[%s18481_s3 + $0x4f0] ss:$24 sps:$4 sm:$0xff]  }
 0x2a6   :  { %4968 = vmatprep.subr.bf16.mxu0 %v14282_v50  ;;  %4733 = vmatprep.subr.bf16.mxu1 %v14288_v10  ;;  %19184 = vst [vmem:[#allocation190_spill] sm:$0xff] %v14294_v49  ;;  %19185 = vst [vmem:[#allocation191_spill] sm:$0xff] %v14300_v58  ;;  %v14306_v50 = vld [vmem:[%s18481_s3 + $0xf4] ss:$24 sps:$4 sm:$0xff]   ;;  %v14312_v10 = vld [vmem:[%s18481_s3 + $0x4c4] ss:$24 sps:$4 sm:$0xff]  }
 0x2a7   :  { %19186 = vst [vmem:[#allocation192_spill] sm:$0xff] %v14306_v50  ;;  %19187 = vst [vmem:[#allocation193_spill] sm:$0xff] %v14312_v10 }
 0x2a9   :  { %4969 = vmatpush1.bf16.msra.mxu0 %v14294_v49  ;;  %4734 = vmatpush2.bf16.msra.mxu1 %v14300_v58  ;;  %v14318_v49 = vld [vmem:[%s18481_s3 + $0xf0] ss:$24 sps:$4 sm:$0xff]   ;;  %v14324_v58 = vld [vmem:[%s18481_s3 + $0x4c0] ss:$24 sps:$4 sm:$0xff]  }
 0x2aa   :  { %4970 = vmatprep.subr.bf16.mxu0 %v14306_v50  ;;  %4735 = vmatprep.subr.bf16.mxu1 %v14312_v10  ;;  %19188 = vst [vmem:[#allocation194_spill] sm:$0xff] %v14318_v49  ;;  %19189 = vst [vmem:[#allocation195_spill] sm:$0xff] %v14324_v58  ;;  %v14330_v50 = vld [vmem:[%s18481_s3 + $0xc4] ss:$24 sps:$4 sm:$0xff]   ;;  %v14336_v10 = vld [vmem:[%s18481_s3 + $0x494] ss:$24 sps:$4 sm:$0xff]  }
 0x2ab   :  { %19190 = vst [vmem:[#allocation196_spill] sm:$0xff] %v14330_v50  ;;  %19191 = vst [vmem:[#allocation197_spill] sm:$0xff] %v14336_v10 }
 0x2ad   :  { %4971 = vmatpush1.bf16.msra.mxu0 %v14318_v49  ;;  %4736 = vmatpush2.bf16.msra.mxu1 %v14324_v58  ;;  %v14342_v49 = vld [vmem:[%s18481_s3 + $0xc0] ss:$24 sps:$4 sm:$0xff]   ;;  %v14348_v58 = vld [vmem:[%s18481_s3 + $0x490] ss:$24 sps:$4 sm:$0xff]  }
 0x2ae   :  { %4972 = vmatprep.subr.bf16.mxu0 %v14330_v50  ;;  %4737 = vmatprep.subr.bf16.mxu1 %v14336_v10  ;;  %19192 = vst [vmem:[#allocation198_spill] sm:$0xff] %v14348_v58  ;;  %v14354_v50 = vld [vmem:[%s18481_s3 + $0x94] ss:$24 sps:$4 sm:$0xff]  }
 0x2af   :  { %19193 = vst [vmem:[#allocation199_spill] sm:$0xff] %v14354_v50  ;;  %v14360_v10 = vld [vmem:[%s18481_s3 + $0x15c] ss:$24 sps:$4 sm:$0xff]  }
 0x2b0   :  { %19194 = vst [vmem:[#allocation200_spill] sm:$0xff] %v14360_v10 }
 0x2b1   :  { %4973 = vmatpush1.bf16.msra.mxu0 %v14342_v49  ;;  %4738 = vmatpush2.bf16.msra.mxu1 %v14348_v58  ;;  %v14367_v58 = vld [vmem:[%s18481_s3 + $0x90] ss:$24 sps:$4 sm:$0xff]  }
 0x2b2   :  { %4974 = vmatprep.subr.bf16.mxu0 %v14354_v50  ;;  %5009 = vmatprep.subr.bf16.mxu1 %v14360_v10  ;;  %19195 = vst [vmem:[#allocation201_spill] sm:$0xff] %v14367_v58  ;;  %v14373_v50 = vld [vmem:[%s18481_s3 + $0x158] ss:$24 sps:$4 sm:$0xff]   ;;  %v14379_v10 = vld [vmem:[%s18481_s3 + $0x64] ss:$24 sps:$4 sm:$0xff]  }
 0x2b3   :  { %19196 = vst [vmem:[#allocation202_spill] sm:$0xff] %v14373_v50  ;;  %19197 = vst [vmem:[#allocation203_spill] sm:$0xff] %v14379_v10 }
 0x2b4   :  { %4740 = vmatmul.mubr.bf16.vlgmr.msra.gmra.mxu1 %v13975_v52  ;;  %v14385_v52 = vld [vmem:[%s18481_s3 + $0x12c] ss:$24 sps:$4 sm:$0xff]  }
 0x2b5   :  { %4975 = vmatpush1.bf16.msra.mxu0 %v14367_v58  ;;  %5010 = vmatpush1.bf16.msra.mxu1 %v14373_v50  ;;  %19198 = vst [vmem:[#allocation204_spill] sm:$0xff] %v14385_v52  ;;  %v14391_v58 = vld [vmem:[%s18481_s3 + $0x60] ss:$24 sps:$4 sm:$0xff]  }
 0x2b6   :  { %4976 = vmatprep.subr.bf16.mxu0 %v14379_v10  ;;  %5011 = vmatprep.subr.bf16.mxu1 %v14385_v52  ;;  %19199 = vst [vmem:[#allocation205_spill] sm:$0xff] %v14391_v58  ;;  %v14397_v50 = vld [vmem:[%s18481_s3 + $0x128] ss:$24 sps:$4 sm:$0xff]   ;;  %v14403_v10 = vld [vmem:[%s18481_s3 + $0x34] ss:$24 sps:$4 sm:$0xff]  }
 0x2b7   :  { %19200 = vst [vmem:[#allocation206_spill] sm:$0xff] %v14397_v50  ;;  %19201 = vst [vmem:[#allocation207_spill] sm:$0xff] %v14403_v10  ;;  %v14409_v52 = vld [vmem:[%s18481_s3 + $0xfc] ss:$24 sps:$4 sm:$0xff]  }
 0x2b8   :  { %19202 = vst [vmem:[#allocation208_spill] sm:$0xff] %v14409_v52 }
 0x2b9   :  { %4977 = vmatpush1.bf16.msra.mxu0 %v14391_v58  ;;  %5012 = vmatpush1.bf16.msra.mxu1 %v14397_v50  ;;  %v14415_v58 = vld [vmem:[%s18481_s3 + $0x30] ss:$24 sps:$4 sm:$0xff]  }
 0x2ba   :  { %4978 = vmatprep.subr.bf16.mxu0 %v14403_v10  ;;  %5013 = vmatprep.subr.bf16.mxu1 %v14409_v52  ;;  %19203 = vst [vmem:[#allocation209_spill] sm:$0xff] %v14415_v58  ;;  %v14421_v50 = vld [vmem:[%s18481_s3 + $0xf8] ss:$24 sps:$4 sm:$0xff]   ;;  %v14427_v10 = vld [vmem:[%s18481_s3 + $0x4] ss:$24 sps:$4 sm:$0xff]  }
 0x2bb   :  { %19204 = vst [vmem:[#allocation210_spill] sm:$0xff] %v14421_v50  ;;  %19205 = vst [vmem:[#allocation211_spill] sm:$0xff] %v14427_v10  ;;  %v14433_v52 = vld [vmem:[%s18481_s3 + $0xcc] ss:$24 sps:$4 sm:$0xff]  }
 0x2bc   :  { %19206 = vst [vmem:[#allocation212_spill] sm:$0xff] %v14433_v52 }
 0x2bd   :  { %4979 = vmatpush1.bf16.msra.mxu0 %v14415_v58  ;;  %5014 = vmatpush1.bf16.msra.mxu1 %v14421_v50  ;;  %v14439_v58 = vld [vmem:[%s18481_s3] ss:$24 sps:$4 sm:$0xff]  }
 0x2be   :  { %4980 = vmatprep.subr.bf16.mxu0 %v14427_v10  ;;  %5015 = vmatprep.subr.bf16.mxu1 %v14433_v52  ;;  %19207 = vst [vmem:[#allocation213_spill] sm:$0xff] %v14439_v58  ;;  %v14445_v50 = vld [vmem:[%s18481_s3 + $0xc8] ss:$24 sps:$4 sm:$0xff]   ;;  %v14451_v10 = vld [vmem:[%s18481_s3 + $0x2d4] ss:$24 sps:$4 sm:$0xff]  }
 0x2bf   :  { %19208 = vst [vmem:[#allocation214_spill] sm:$0xff] %v14445_v50  ;;  %19209 = vst [vmem:[#allocation215_spill] sm:$0xff] %v14451_v10  ;;  %v14457_v52 = vld [vmem:[%s18481_s3 + $0x9c] ss:$24 sps:$4 sm:$0xff]  }
 0x2c0   :  { %19210 = vst [vmem:[#allocation216_spill] sm:$0xff] %v14457_v52 }
 0x2c1   :  { %4981 = vmatpush1.bf16.msra.mxu0 %v14439_v58  ;;  %5016 = vmatpush1.bf16.msra.mxu1 %v14445_v50  ;;  %v14463_v58 = vld [vmem:[%s18481_s3 + $0x2d0] ss:$24 sps:$4 sm:$0xff]  }
 0x2c2   :  { %4982 = vmatprep.subr.bf16.mxu0 %v14451_v10  ;;  %5017 = vmatprep.subr.bf16.mxu1 %v14457_v52  ;;  %19211 = vst [vmem:[#allocation217_spill] sm:$0xff] %v14463_v58  ;;  %v14469_v50 = vld [vmem:[%s18481_s3 + $0x98] ss:$24 sps:$4 sm:$0xff]   ;;  %v14475_v10 = vld [vmem:[%s18481_s3 + $0x2a4] ss:$24 sps:$4 sm:$0xff]  }
 0x2c3   :  { %19212 = vst [vmem:[#allocation218_spill] sm:$0xff] %v14469_v50  ;;  %v14481_v52 = vld [vmem:[%s18481_s3 + $0x6c] ss:$24 sps:$4 sm:$0xff]  }
 0x2c4   :  { %19213 = vst [vmem:[#allocation219_spill] sm:$0xff] %v14481_v52 }
 0x2c5   :  { %4983 = vmatpush2.bf16.msra.mxu0 %v14463_v58  ;;  %5018 = vmatpush1.bf16.msra.mxu1 %v14469_v50  ;;  %v14487_v58 = vld [vmem:[%s18481_s3 + $0x2a0] ss:$24 sps:$4 sm:$0xff]  }
 0x2c6   :  { %4984 = vmatprep.subr.bf16.mxu0 %v14475_v10  ;;  %5019 = vmatprep.subr.bf16.mxu1 %v14481_v52  ;;  %19214 = vst [vmem:[#allocation220_spill] sm:$0xff] %v14487_v58  ;;  %v14493_v50 = vld [vmem:[%s18481_s3 + $0x68] ss:$24 sps:$4 sm:$0xff]   ;;  %v14500_v52 = vld [vmem:[%s18481_s3 + $0x3c] ss:$24 sps:$4 sm:$0xff]  }
 0x2c9   :  { %4985 = vmatpush2.bf16.msra.mxu0 %v14487_v58  ;;  %5020 = vmatpush1.bf16.msra.mxu1 %v14493_v50  ;;  %v14507_v58 = vld [vmem:[%s18481_s3 + $0x38] ss:$24 sps:$4 sm:$0xff]  }
 0x2ca   :  { %4986 = vmatprep.subr.bf16.mxu0 %v13262_v24  ;;  %5021 = vmatprep.subr.bf16.mxu1 %v14500_v52  ;;  %v14514_v24 = vld [vmem:[%s18481_s3 + $0xc] ss:$24 sps:$4 sm:$0xff]  }
 0x2cd   :  { %4987 = vmatpush2.bf16.msra.mxu0 %v13277_v46  ;;  %5022 = vmatpush1.bf16.msra.mxu1 %v14507_v58  ;;  %v14521_v46 = vld [vmem:[%s18481_s3 + $0x8] ss:$24 sps:$4 sm:$0xff]  }
 0x2ce   :  { %4988 = vmatprep.subr.bf16.mxu0 %v13288_v62  ;;  %5023 = vmatprep.subr.bf16.mxu1 %v14514_v24  ;;  %v14528_v62 = vld [vmem:[%s18481_s3 + $0x2dc] ss:$24 sps:$4 sm:$0xff]  }
 0x2cf   :  { %19215 = vst [vmem:[#allocation221_spill] sm:$0xff] %v14528_v62 }
 0x2d1   :  { %4989 = vmatpush2.bf16.msra.mxu0 %v13303_v21  ;;  %5024 = vmatpush1.bf16.msra.mxu1 %v14521_v46  ;;  %v14535_v21 = vld [vmem:[%s18481_s3 + $0x2d8] ss:$24 sps:$4 sm:$0xff]  }
 0x2d2   :  { %4990 = vmatprep.subr.bf16.mxu0 %v13317_v13  ;;  %5025 = vmatprep.subr.bf16.mxu1 %v14528_v62  ;;  %19216 = vst [vmem:[#allocation222_spill] sm:$0xff] %v14535_v21  ;;  %v14542_v13 = vld [vmem:[%s18481_s3 + $0x2ac] ss:$24 sps:$4 sm:$0xff]  }
 0x2d3   :  { %19217 = vst [vmem:[#allocation223_spill] sm:$0xff] %v14542_v13 }
 0x2d5   :  { %4991 = vmatpush2.bf16.msra.mxu0 %v13335_v17  ;;  %5026 = vmatpush2.bf16.msra.mxu1 %v14535_v21  ;;  %v14549_v17 = vld [vmem:[%s18481_s3 + $0x2a8] ss:$24 sps:$4 sm:$0xff]  }
 0x2d6   :  { %4992 = vmatprep.subr.bf16.mxu0 %v13349_v28  ;;  %5027 = vmatprep.subr.bf16.mxu1 %v14542_v13  ;;  %19218 = vst [vmem:[#allocation224_spill] sm:$0xff] %v14549_v17  ;;  %v14556_v28 = vld [vmem:[%s18481_s3 + $0x27c] ss:$24 sps:$4 sm:$0xff]   ;;  %v19223_v21 = vld [vmem:[#allocation6_spill] sm:$0xff] }
 0x2d7   :  { %19219 = vst [vmem:[#allocation225_spill] sm:$0xff] %v14556_v28 }
 0x2d9   :  { %4993 = vmatpush2.bf16.msra.mxu0 %v13367_v12  ;;  %5028 = vmatpush2.bf16.msra.mxu1 %v14549_v17  ;;  %v14563_v12 = vld [vmem:[%s18481_s3 + $0x278] ss:$24 sps:$4 sm:$0xff]  }
 0x2da   :  { %4994 = vmatprep.subr.bf16.mxu0 %v13381_v54  ;;  %5029 = vmatprep.subr.bf16.mxu1 %v14556_v28  ;;  %19220 = vst [vmem:[#allocation226_spill] sm:$0xff] %v14563_v12  ;;  %v14570_v54 = vld [vmem:[%s18481_s3 + $0x24c] ss:$24 sps:$4 sm:$0xff]  }
 0x2db   :  { %19221 = vst [vmem:[#allocation227_spill] sm:$0xff] %v14570_v54 }
 0x2dd   :  { %4995 = vmatpush2.bf16.msra.mxu0 %v13399_v34  ;;  %5030 = vmatpush2.bf16.msra.mxu1 %v14563_v12 }
 0x2de   :  { %4996 = vmatprep.subr.bf16.mxu0 %v13413_v3  ;;  %5031 = vmatprep.subr.bf16.mxu1 %v14570_v54 }
 0x2e1   :  { %4997 = vmatpush2.bf16.msra.mxu0 %v13431_v42  ;;  %5032 = vmatpush2.bf16.msra.mxu1 %v13311_v6 }
 0x2e2   :  { %5052 = vmatprep.subr.bf16.mxu0 %v13445_v40  ;;  %5033 = vmatprep.subr.bf16.mxu1 %v13323_v2  ;;  %v4764_v2 = vunpack.c.l.bf16 %v12446_v0 }
 0x2e4   :  { %v4524_v34 = vpop.f32.mrf.mxu0 }
 0x2e5   :  { %5034 = vmatpush2.bf16.msra.mxu1 %v13343_v1  ;;  %v4776_v1 = vadd.f32 %v4764_v2, %v4524_v34  ;;  %v4766_v34 = vunpack.c.l.bf16 %v19223_v21  ;;  %v4767_v2 = vunpack.c.h.bf16 %v19223_v21 }
 0x2e6   :  { %5035 = vmatprep.subr.bf16.mxu1 %v13355_v5  ;;  %v4526_v6 = vpop.f32.mrf.mxu0  ;;  %v4765_v5 = vunpack.c.h.bf16 %v12446_v0 }
 0x2e7   :  { %v8913_v54 = vmul.f32 -1.442695, %v4776_v1  ;;  %v19224_v1 = vld [vmem:[#allocation8_spill] sm:$0xff] }
 0x2e8   :  { %v4528_v42 = vpop.f32.mrf.mxu0  ;;  %v4777_v3 = vadd.f32 %v4765_v5, %v4526_v6  ;;  %v4772_v5 = vunpack.c.l.bf16 %v19224_v1 }
 0x2e9   :  { %5036 = vmatpush2.bf16.msra.mxu1 %v13375_v32  ;;  %v19222_v32 = vld [vmem:[#allocation7_spill] sm:$0xff]  ;;  %9935 = vpow2.f32 %v8913_v54 }
 0x2ea   :  { %5037 = vmatprep.subr.bf16.mxu1 %v13387_v9  ;;  %v4770_v40 = vunpack.c.l.bf16 %v19222_v32  ;;  %v4530_v9 = vpop.f32.mrf.mxu0 }
 0x2ec   :  { %v4780_v12 = vadd.f32 %v4770_v40, %v4528_v42 }
 0x2ed   :  { %5038 = vmatpush2.bf16.msra.mxu1 %v13407_v19  ;;  %v4567_v19 = vpop.f32.mrf.mxu1 }
 0x2ee   :  { %5039 = vmatprep.subr.bf16.mxu1 %v13419_v44  ;;  %v4771_v44 = vunpack.c.h.bf16 %v19222_v32  ;;  %v8917_v17 = vmul.f32 -1.442695, %v4780_v12  ;;  %v4778_v6 = vadd.f32 %v4766_v34, %v4567_v19 }
 0x2f0   :  { %v4781_v28 = vadd.f32 %v4771_v44, %v4530_v9  ;;  %v8915_v54 = vmul.f32 -1.442695, %v4778_v6 }
 0x2f1   :  { %5040 = vmatpush2.bf16.msra.mxu1 %v13439_v26  ;;  %v8914_v26 = vmul.f32 -1.442695, %v4777_v3  ;;  %v4773_v3 = vunpack.c.h.bf16 %v19224_v1 }
 0x2f2   :  { %5097 = vmatprep.subr.bf16.mxu1 %v13451_v36  ;;  %v4569_v36 = vpop.f32.mrf.mxu1  ;;  %v8918_v13 = vmul.f32 -1.442695, %v4781_v28 }
 0x2f3   :  { %9937 = vpow2.f32 %v8914_v26  ;;  %v4779_v42 = vadd.f32 %v4767_v2, %v4569_v36 }
 0x2f4   :  { %9939 = vpow2.f32 %v8917_v17  ;;  %v4571_v0 = vpop.f32.mrf.mxu1 }
 0x2f5   :  { %9941 = vpow2.f32 %v8918_v13  ;;  %v4782_v32 = vadd.f32 %v4772_v5, %v4571_v0  ;;  %v8916_v12 = vmul.f32 -1.442695, %v4779_v42 }
 0x2f6   :  { %v4573_v40 = vpop.f32.mrf.mxu1  ;;  %v9936_v44 = vpop.eup %9935  ;;  %9943 = vpow2.f32 %v8915_v54 }
 0x2f7   :  { %v4783_v9 = vadd.f32 %v4773_v3, %v4573_v40  ;;  %v8919_v28 = vmul.f32 -1.442695, %v4782_v32  ;;  %v4808_v62 = vadd.f32 1.0, %v9936_v44  ;;  %9945 = vpow2.f32 %v8916_v12  ;;  %v19225_v12 = vld [vmem:[#allocation35_spill] sm:$0xff] }
 0x2f8   :  { %v4768_v44 = vunpack.c.l.bf16 %v19225_v12 }
 0x2f9   :  { %v8920_v17 = vmul.f32 -1.442695, %v4783_v9  ;;  %9947 = vpow2.f32 %v8919_v28 }
 0x2fb   :  { %9949 = vpow2.f32 %v8920_v17  ;;  %v4769_v17 = vunpack.c.h.bf16 %v19225_v12 }
 0x2fc   :  { %9951 = vrcp.f32 %v4808_v62 }
 0x300   :  { %v9938_v26 = vpop.eup %9937 }
 0x301   :  { %v9940_v19 = vpop.eup %9939  ;;  %v4809_v21 = vadd.f32 1.0, %v9938_v26 }
 0x302   :  { %v9942_v13 = vpop.eup %9941  ;;  %v4812_v36 = vadd.f32 1.0, %v9940_v19 }
 0x303   :  { %9953 = vrcp.f32 %v4809_v21  ;;  %v4813_v34 = vadd.f32 1.0, %v9942_v13  ;;  %v9944_v0 = vpop.eup %9943 }
 0x304   :  { %9955 = vrcp.f32 %v4812_v36  ;;  %v9946_v6 = vpop.eup %9945  ;;  %v4810_v1 = vadd.f32 1.0, %v9944_v0 }
 0x305   :  { %9957 = vrcp.f32 %v4813_v34  ;;  %v4811_v40 = vadd.f32 1.0, %v9946_v6  ;;  %v19226_v6 = vld [vmem:[#allocation37_spill] sm:$0xff] }
 0x306   :  { %v9948_v2 = vpop.eup %9947  ;;  %9959 = vrcp.f32 %v4810_v1 }
 0x307   :  { %v4814_v54 = vadd.f32 1.0, %v9948_v2  ;;  %9961 = vrcp.f32 %v4811_v40  ;;  %v4774_v2 = vunpack.c.l.bf16 %v19226_v6 }
 0x308   :  { %v9950_v42 = vpop.eup %9949 }
 0x309   :  { %v9952_v3 = vpop.eup %9951  ;;  %v4815_v19 = vadd.f32 1.0, %v9950_v42  ;;  %9963 = vrcp.f32 %v4814_v54  ;;  %v4775_v42 = vunpack.c.h.bf16 %v19226_v6 }
 0x310   :  { %v9954_v26 = vpop.eup %9953 }
 0x311   :  { %v9956_v0 = vpop.eup %9955 }
 0x324   :  { %v4610_v5 = vpop.f32.mrf.mxu0 }
 0x325   :  { %v4832_v32 = vadd.f32 %v4610_v5, %v13474_v48 }
 0x326   :  { %v4612_v9 = vpop.f32.mrf.mxu0 }
 0x327   :  { %v4836_v62 = vmul.f32 %v9952_v3, %v4832_v32  ;;  %v4833_v28 = vadd.f32 %v4612_v9, %v13479_v55  ;;  %v9958_v9 = vpop.eup %9957 }
 0x328   :  { %v4614_v21 = vpop.f32.mrf.mxu0 }
 0x329   :  { %v4840_v13 = vadd.f32 %v4836_v62, %v4768_v44  ;;  %v4837_v36 = vmul.f32 %v9954_v26, %v4833_v28  ;;  %v4834_v34 = vadd.f32 %v4614_v21, %v13474_v48  ;;  %v9960_v62 = vpop.eup %9959 }
 0x32a   :  { %v4616_v5 = vpop.f32.mrf.mxu0  ;;  %v9962_v28 = vpop.eup %9961  ;;  %v4848_v54 = vsub.f32 1.0, %v9960_v62 }
 0x32b   :  { %9965 = vtanh.f32 %v4840_v13  ;;  %v4841_v1 = vadd.f32 %v4837_v36, %v4769_v17  ;;  %v4838_v32 = vmul.f32 %v9956_v0, %v4834_v34  ;;  %v4835_v3 = vadd.f32 %v4616_v5, %v13479_v55  ;;  %v9964_v26 = vpop.eup %9963 }
 0x32c   :  { %9967 = vrcp.f32 %v4815_v19  ;;  %v4849_v17 = vsub.f32 1.0, %v9962_v28  ;;  %v4856_v34 = vmul.f32 %v9960_v62, %v13489_v31  ;;  %v4857_v6 = vmul.f32 %v9962_v28, %v13492_v16 }
 0x32d   :  { %9969 = vtanh.f32 %v4841_v1  ;;  %v4842_v40 = vadd.f32 %v4838_v32, %v4774_v2  ;;  %v4839_v12 = vmul.f32 %v9958_v9, %v4835_v3  ;;  %v4850_v5 = vsub.f32 1.0, %v9964_v26 }
 0x32f   :  { %9971 = vtanh.f32 %v4842_v40  ;;  %v4843_v44 = vadd.f32 %v4839_v12, %v4775_v42  ;;  %v4858_v42 = vmul.f32 %v9964_v26, %v13495_v18 }
 0x331   :  { %9973 = vtanh.f32 %v4843_v44 }
 0x334   :  { %v4655_v28 = vpop.f32.mrf.mxu1 }
 0x336   :  { %v4657_v18 = vpop.f32.mrf.mxu1 }
 0x338   :  { %v9966_v21 = vpop.eup %9965 }
 0x339   :  { %v9968_v13 = vpop.eup %9967  ;;  %v4852_v36 = vmul.f32 %v9966_v21, %v4848_v54  ;;  %v4659_v21 = vpop.f32.mrf.mxu1 }
 0x33a   :  { %v9970_v0 = vpop.eup %9969  ;;  %v4851_v32 = vsub.f32 1.0, %v9968_v13  ;;  %v4859_v44 = vmul.f32 %v9968_v13, %v13498_v8  ;;  %v19227_v8 = vld [vmem:[#allocation56_spill] sm:$0xff] }
 0x33b   :  { %v4853_v19 = vmul.f32 %v9970_v0, %v4849_v17  ;;  %v14603_v2 = vadd.f32 %v4856_v34, %v4852_v36  ;;  %v4864_v26 = vunpack.c.l.bf16 %v19227_v8  ;;  %v4865_v13 = vunpack.c.h.bf16 %v19227_v8  ;;  %v4661_v36 = vpop.f32.mrf.mxu1  ;;  %v19231_v34 = vld [vmem:[#allocation91_spill] sm:$0xff] }
 0x33c   :  { %v9972_v1 = vpop.eup %9971  ;;  %v19243_v8 = vld [vmem:[#allocation103_spill] sm:$0xff] }
 0x33d   :  { %v14605_v3 = vadd.f32 %v4857_v6, %v4853_v19  ;;  %v4854_v9 = vmul.f32 %v9972_v1, %v4850_v5  ;;  %v19233_v5 = vld [vmem:[#allocation93_spill] sm:$0xff]  ;;  %v19235_v1 = vld [vmem:[#allocation95_spill] sm:$0xff] }
 0x33e   :  { %v9974_v40 = vpop.eup %9973 }
 0x33f   :  { %v4855_v12 = vmul.f32 %v9974_v40, %v4851_v32  ;;  %v14609_v54 = vadd.f32 %v4858_v42, %v4854_v9  ;;  %v19236_v9 = vld [vmem:[#allocation96_spill] sm:$0xff]  ;;  %v19237_v40 = vld [vmem:[#allocation97_spill] sm:$0xff] }
 0x341   :  { %v14611_v31 = vadd.f32 %v4859_v44, %v4855_v12  ;;  %v14617_v62 = vpack.c.bf16 %v14609_v54, %v14603_v2  ;;  %v19238_v12 = vld [vmem:[#allocation98_spill] sm:$0xff]  ;;  %v19239_v44 = vld [vmem:[#allocation99_spill] sm:$0xff] }
 0x343   :  { %v4965_v16 = vpack.c.bf16 %v14611_v31, %v14605_v3 }
 0x345   :  { %4998 = vmatprep.mubr.bf16.mxu0 %v4965_v16  ;;  %5041 = vmatprep.mubr.bf16.mxu1 %v4965_v16 }
 0x346   :  { %4999 = vmatmul.mubr.bf16.vlgmr.msra.gmra.mxu0 %v14617_v62  ;;  %5042 = vmatmul.mubr.bf16.vlgmr.msra.gmra.mxu1 %v14617_v62 }
 0x347   :  { %5053 = vmatpush1.bf16.msra.mxu0 %v13512_v38  ;;  %5084 = vmatprep.mubr.bf16.mxu0 %v4965_v16  ;;  %v4876_v38 = vadd.f32 %v4864_v26, %v4655_v28  ;;  %v19240_v16 = vld [vmem:[#allocation100_spill] sm:$0xff]  ;;  %v19241_v28 = vld [vmem:[#allocation101_spill] sm:$0xff] }
 0x348   :  { %5054 = vmatprep.subr.bf16.mxu0 %v13518_v20  ;;  %5098 = vmatpush1.bf16.msra.mxu1 %v13524_v30  ;;  %v4877_v20 = vadd.f32 %v4865_v13, %v4657_v18  ;;  %v19228_v30 = vld [vmem:[#allocation58_spill] sm:$0xff]  ;;  %v19244_v26 = vld [vmem:[#allocation104_spill] sm:$0xff]  ;;  %v19247_v13 = vld [vmem:[#allocation107_spill] sm:$0xff] }
 0x349   :  { %5099 = vmatprep.subr.bf16.mxu1 %v13530_v35  ;;  %v4870_v17 = vunpack.c.l.bf16 %v19228_v30  ;;  %v19229_v35 = vld [vmem:[#allocation89_spill] sm:$0xff]  ;;  %v4871_v0 = vunpack.c.h.bf16 %v19228_v30  ;;  %v19242_v18 = vld [vmem:[#allocation102_spill] sm:$0xff]  ;;  %v19248_v30 = vld [vmem:[#allocation108_spill] sm:$0xff] }
 0x34a   :  { %v8922_v19 = vmul.f32 -1.442695, %v4877_v20 }
 0x34b   :  { %5055 = vmatpush1.bf16.msra.mxu0 %v13536_v15  ;;  %v19230_v15 = vld [vmem:[#allocation90_spill] sm:$0xff]  ;;  %v4881_v6 = vadd.f32 %v4871_v0, %v4661_v36 }
 0x34c   :  { %5056 = vmatprep.subr.bf16.mxu0 %v13542_v45  ;;  %5100 = vmatpush1.bf16.msra.mxu1 %v13548_v25  ;;  %v8921_v45 = vmul.f32 -1.442695, %v4876_v38  ;;  %v4880_v25 = vadd.f32 %v4870_v17, %v4659_v21  ;;  %v19245_v21 = vld [vmem:[#allocation105_spill] sm:$0xff]  ;;  %v19246_v38 = vld [vmem:[#allocation106_spill] sm:$0xff] }
 0x34d   :  { %5101 = vmatprep.subr.bf16.mxu1 %v13554_v51  ;;  %v19232_v51 = vld [vmem:[#allocation92_spill] sm:$0xff]  ;;  %v8926_v42 = vmul.f32 -1.442695, %v4881_v6  ;;  %v19249_v17 = vld [vmem:[#allocation85_spill] sm:$0xff]  ;;  %v19250_v36 = vld [vmem:[#allocation110_spill] sm:$0xff] }
 0x34e   :  { %9975 = vpow2.f32 %v8921_v45  ;;  %v8925_v32 = vmul.f32 -1.442695, %v4880_v25  ;;  %v4867_v0 = vunpack.c.h.bf16 %v19249_v17 }
 0x34f   :  { %5057 = vmatpush1.bf16.msra.mxu0 %v13560_v56  ;;  %v19234_v56 = vld [vmem:[#allocation94_spill] sm:$0xff]  ;;  %9977 = vpow2.f32 %v8922_v19 }
 0x350   :  { %5058 = vmatprep.subr.bf16.mxu0 %v19229_v35  ;;  %5102 = vmatpush1.bf16.msra.mxu1 %v19230_v15  ;;  %9979 = vpow2.f32 %v8925_v32  ;;  %v4866_v35 = vunpack.c.l.bf16 %v19249_v17  ;;  %v19253_v32 = vld [vmem:[#allocation114_spill] sm:$0xff] }
 0x351   :  { %5103 = vmatprep.subr.bf16.mxu1 %v19231_v34  ;;  %9981 = vpow2.f32 %v8926_v42  ;;  %v19251_v34 = vld [vmem:[#allocation111_spill] sm:$0xff] }
 0x353   :  { %5059 = vmatpush1.bf16.msra.mxu0 %v19232_v51  ;;  %v19252_v51 = vld [vmem:[#allocation113_spill] sm:$0xff] }
 0x354   :  { %5060 = vmatprep.subr.bf16.mxu0 %v19233_v5  ;;  %5104 = vmatpush1.bf16.msra.mxu1 %v19234_v56 }
 0x355   :  { %5105 = vmatprep.subr.bf16.mxu1 %v19235_v1 }
 0x357   :  { %5061 = vmatpush1.bf16.msra.mxu0 %v19236_v9  ;;  %v19254_v9 = vld [vmem:[#allocation87_spill] sm:$0xff] }
 0x358   :  { %5062 = vmatprep.subr.bf16.mxu0 %v19237_v40  ;;  %5106 = vmatpush1.bf16.msra.mxu1 %v19238_v12  ;;  %v4872_v42 = vunpack.c.l.bf16 %v19254_v9 }
 0x359   :  { %5107 = vmatprep.subr.bf16.mxu1 %v19239_v44  ;;  %v19255_v44 = vld [vmem:[#allocation115_spill] sm:$0xff] }
 0x35b   :  { %5063 = vmatpush1.bf16.msra.mxu0 %v19240_v16  ;;  %v9976_v20 = vpop.eup %9975  ;;  %v19256_v16 = vld [vmem:[#allocation116_spill] sm:$0xff] }
 0x35c   :  { %5064 = vmatprep.subr.bf16.mxu0 %v19241_v28  ;;  %5108 = vmatpush1.bf16.msra.mxu1 %v19242_v18  ;;  %v9978_v45 = vpop.eup %9977  ;;  %v4908_v19 = vadd.f32 1.0, %v9976_v20 }
 0x35d   :  { %5109 = vmatprep.subr.bf16.mxu1 %v19243_v8  ;;  %v9980_v5 = vpop.eup %9979  ;;  %v4909_v40 = vadd.f32 1.0, %v9978_v45  ;;  %v19264_v45 = vld [vmem:[#allocation109_spill] sm:$0xff] }
 0x35e   :  { %v9982_v28 = vpop.eup %9981 }
 0x35f   :  { %5065 = vmatpush1.bf16.msra.mxu0 %v19244_v26  ;;  %v4873_v26 = vunpack.c.h.bf16 %v19254_v9 }
 0x360   :  { %5066 = vmatprep.subr.bf16.mxu0 %v19245_v21  ;;  %5110 = vmatpush1.bf16.msra.mxu1 %v19246_v38  ;;  %v4912_v21 = vadd.f32 1.0, %v9980_v5  ;;  %v19266_v5 = vld [vmem:[#allocation86_spill] sm:$0xff] }
 0x361   :  { %5111 = vmatprep.subr.bf16.mxu1 %v19247_v13 }
 0x363   :  { %5067 = vmatpush1.bf16.msra.mxu0 %v19248_v30  ;;  %v4913_v30 = vadd.f32 1.0, %v9982_v28  ;;  %v19270_v28 = vld [vmem:[#allocation127_spill] sm:$0xff] }
 0x364   :  { %v4698_v15 = vpop.f32.mrf.mxu0  ;;  %5068 = vmatprep.subr.bf16.mxu0 %v19250_v36  ;;  %5112 = vmatpush1.bf16.msra.mxu1 %v19251_v34  ;;  %v19263_v34 = vld [vmem:[#allocation123_spill] sm:$0xff] }
 0x365   :  { %v4878_v25 = vadd.f32 %v4866_v35, %v4698_v15  ;;  %5113 = vmatprep.subr.bf16.mxu1 %v19252_v51  ;;  %v19258_v35 = vld [vmem:[#allocation118_spill] sm:$0xff]  ;;  %v19260_v15 = vld [vmem:[#allocation120_spill] sm:$0xff] }
 0x366   :  { %v4700_v6 = vpop.f32.mrf.mxu0 }
 0x367   :  { %v8923_v56 = vmul.f32 -1.442695, %v4878_v25  ;;  %v4879_v1 = vadd.f32 %v4867_v0, %v4700_v6  ;;  %5069 = vmatpush2.bf16.msra.mxu0 %v19253_v32  ;;  %v19267_v32 = vld [vmem:[#allocation112_spill] sm:$0xff] }
 0x368   :  { %v4702_v12 = vpop.f32.mrf.mxu0  ;;  %5070 = vmatprep.subr.bf16.mxu0 %v19255_v44  ;;  %5114 = vmatpush2.bf16.msra.mxu1 %v19256_v16 }
 0x369   :  { %9983 = vpow2.f32 %v8923_v56  ;;  %v8924_v18 = vmul.f32 -1.442695, %v4879_v1  ;;  %v4882_v8 = vadd.f32 %v4872_v42, %v4702_v12  ;;  %5115 = vmatprep.subr.bf16.mxu1 %v13737_v14  ;;  %v19257_v14 = vld [vmem:[#allocation117_spill] sm:$0xff]  ;;  %v4868_v56 = vunpack.c.l.bf16 %v19266_v5 }
 0x36a   :  { %9985 = vrcp.f32 %v4908_v19  ;;  %v4704_v38 = vpop.f32.mrf.mxu0  ;;  %v19265_v19 = vld [vmem:[#allocation124_spill] sm:$0xff]  ;;  %v19268_v42 = vld [vmem:[#allocation125_spill] sm:$0xff] }
 0x36b   :  { %9987 = vpow2.f32 %v8924_v18  ;;  %v8927_v13 = vmul.f32 -1.442695, %v4882_v8  ;;  %v4883_v20 = vadd.f32 %v4873_v26, %v4704_v38  ;;  %5071 = vmatpush2.bf16.msra.mxu0 %v13746_v60  ;;  %v19259_v60 = vld [vmem:[#allocation119_spill] sm:$0xff]  ;;  %v4869_v8 = vunpack.c.h.bf16 %v19266_v5 }
 0x36c   :  { %9989 = vrcp.f32 %v4909_v40  ;;  %5072 = vmatprep.subr.bf16.mxu0 %v13752_v7  ;;  %5116 = vmatpush2.bf16.msra.mxu1 %v13758_v39  ;;  %v19261_v7 = vld [vmem:[#allocation121_spill] sm:$0xff]  ;;  %v19262_v39 = vld [vmem:[#allocation122_spill] sm:$0xff] }
 0x36d   :  { %9991 = vpow2.f32 %v8927_v13  ;;  %v8928_v17 = vmul.f32 -1.442695, %v4883_v20  ;;  %5117 = vmatprep.subr.bf16.mxu1 %v13766_v37  ;;  %v19269_v40 = vld [vmem:[#allocation126_spill] sm:$0xff]  ;;  %v19271_v20 = vld [vmem:[#allocation88_spill] sm:$0xff] }
 0x36e   :  { %9993 = vrcp.f32 %v4912_v21 }
 0x36f   :  { %9995 = vpow2.f32 %v8928_v17  ;;  %5073 = vmatpush2.bf16.msra.mxu0 %v13773_v23 }
 0x370   :  { %9997 = vrcp.f32 %v4913_v30  ;;  %5074 = vmatprep.subr.bf16.mxu0 %v19257_v14  ;;  %5118 = vmatpush2.bf16.msra.mxu1 %v19258_v35  ;;  %v4874_v30 = vunpack.c.l.bf16 %v19271_v20  ;;  %v19272_v35 = vld [vmem:[#allocation128_spill] sm:$0xff] }
 0x371   :  { %5119 = vmatprep.subr.bf16.mxu1 %v19259_v60 }
 0x373   :  { %5075 = vmatpush2.bf16.msra.mxu0 %v19260_v15 }
 0x374   :  { %5076 = vmatprep.subr.bf16.mxu0 %v19261_v7  ;;  %5120 = vmatpush2.bf16.msra.mxu1 %v19262_v39  ;;  %v4741_v36 = vpop.f32.mrf.mxu1 }
 0x375   :  { %5121 = vmatprep.subr.bf16.mxu1 %v19263_v34  ;;  %v4932_v25 = vadd.f32 %v4741_v36, %v19264_v45  ;;  %v19273_v36 = vld [vmem:[#allocation129_spill] sm:$0xff]  ;;  %v19274_v34 = vld [vmem:[#allocation130_spill] sm:$0xff] }
 0x376   :  { %v9984_v37 = vpop.eup %9983  ;;  %v4743_v51 = vpop.f32.mrf.mxu1 }
 0x377   :  { %v9986_v23 = vpop.eup %9985  ;;  %v4910_v0 = vadd.f32 1.0, %v9984_v37  ;;  %5077 = vmatpush2.bf16.msra.mxu0 %v19265_v19  ;;  %v4933_v9 = vadd.f32 %v4743_v51, %v19267_v32 }
 0x378   :  { %v9988_v6 = vpop.eup %9987  ;;  %v4936_v1 = vmul.f32 %v9986_v23, %v4932_v25  ;;  %5078 = vmatprep.subr.bf16.mxu0 %v19268_v42  ;;  %5122 = vmatpush2.bf16.msra.mxu1 %v19269_v40  ;;  %v4745_v16 = vpop.f32.mrf.mxu1  ;;  %v19275_v23 = vld [vmem:[#allocation131_spill] sm:$0xff]  ;;  %v19280_v42 = vld [vmem:[#allocation136_spill] sm:$0xff]  ;;  %v19281_v40 = vld [vmem:[#allocation137_spill] sm:$0xff] }
 0x379   :  { %v9990_v12 = vpop.eup %9989  ;;  %9999 = vrcp.f32 %v4910_v0  ;;  %v4911_v44 = vadd.f32 1.0, %v9988_v6  ;;  %5123 = vmatprep.subr.bf16.mxu1 %v19270_v28  ;;  %v4934_v38 = vadd.f32 %v4745_v16, %v19264_v45  ;;  %v4875_v0 = vunpack.c.h.bf16 %v19271_v20  ;;  %v19276_v6 = vld [vmem:[#allocation132_spill] sm:$0xff] }
 0x37a   :  { %v9992_v18 = vpop.eup %9991  ;;  %v4940_v26 = vadd.f32 %v4936_v1, %v4868_v56  ;;  %v4937_v21 = vmul.f32 %v9990_v12, %v4933_v9  ;;  %v4747_v14 = vpop.f32.mrf.mxu1  ;;  %v19277_v56 = vld [vmem:[#allocation133_spill] sm:$0xff]  ;;  %v19278_v1 = vld [vmem:[#allocation134_spill] sm:$0xff]  ;;  %v19279_v9 = vld [vmem:[#allocation135_spill] sm:$0xff] }
 0x37b   :  { %v9994_v13 = vpop.eup %9993  ;;  %10001 = vrcp.f32 %v4911_v44  ;;  %v4914_v17 = vadd.f32 1.0, %v9992_v18  ;;  %5079 = vmatpush2.bf16.msra.mxu0 %v19272_v35  ;;  %v4935_v39 = vadd.f32 %v4747_v14, %v19267_v32  ;;  %v19282_v12 = vld [vmem:[#allocation138_spill] sm:$0xff]  ;;  %v19283_v44 = vld [vmem:[#allocation139_spill] sm:$0xff]  ;;  %v19284_v28 = vld [vmem:[#allocation140_spill] sm:$0xff] }
 0x37c   :  { %v9996_v60 = vpop.eup %9995  ;;  %10003 = vtanh.f32 %v4940_v26  ;;  %v4941_v15 = vadd.f32 %v4937_v21, %v4869_v8  ;;  %v4938_v7 = vmul.f32 %v9994_v13, %v4934_v38  ;;  %5080 = vmatprep.subr.bf16.mxu0 %v19273_v36  ;;  %5124 = vmatpush2.bf16.msra.mxu1 %v19274_v34  ;;  %v19285_v26 = vld [vmem:[#allocation141_spill] sm:$0xff]  ;;  %v19286_v14 = vld [vmem:[#allocation142_spill] sm:$0xff] }
 0x37d   :  { %v9998_v37 = vpop.eup %9997  ;;  %10005 = vrcp.f32 %v4914_v17  ;;  %v4915_v25 = vadd.f32 1.0, %v9996_v60  ;;  %5125 = vmatprep.subr.bf16.mxu1 %v19275_v23 }
 0x37e   :  { %10007 = vtanh.f32 %v4941_v15  ;;  %v4942_v51 = vadd.f32 %v4938_v7, %v4874_v30  ;;  %v4939_v19 = vmul.f32 %v9998_v37, %v4935_v39 }
 0x37f   :  { %10009 = vrcp.f32 %v4915_v25  ;;  %5081 = vmatpush2.bf16.msra.mxu0 %v19276_v6  ;;  %v19298_v6 = vld [vmem:[#allocation154_spill] sm:$0xff] }
 0x380   :  { %10011 = vtanh.f32 %v4942_v51  ;;  %v4943_v5 = vadd.f32 %v4939_v19, %v4875_v0  ;;  %5082 = vmatprep.subr.bf16.mxu0 %v19277_v56  ;;  %5126 = vmatpush2.bf16.msra.mxu1 %v19278_v1  ;;  %v19294_v19 = vld [vmem:[#allocation150_spill] sm:$0xff]  ;;  %v19300_v56 = vld [vmem:[#allocation156_spill] sm:$0xff]  ;;  %v19301_v1 = vld [vmem:[#allocation157_spill] sm:$0xff] }
 0x381   :  { %5127 = vmatprep.subr.bf16.mxu1 %v19279_v9  ;;  %v19302_v9 = vld [vmem:[#allocation158_spill] sm:$0xff] }
 0x382   :  { %10013 = vtanh.f32 %v4943_v5  ;;  %v19299_v5 = vld [vmem:[#allocation155_spill] sm:$0xff] }
 0x383   :  { %5083 = vmatpush2.bf16.msra.mxu0 %v19280_v42  ;;  %v19303_v42 = vld [vmem:[#allocation159_spill] sm:$0xff] }
 0x384   :  { %5140 = vmatprep.subr.bf16.mxu0 %v19281_v40  ;;  %5128 = vmatpush2.bf16.msra.mxu1 %v19282_v12  ;;  %v19304_v40 = vld [vmem:[#allocation160_spill] sm:$0xff]  ;;  %v19305_v12 = vld [vmem:[#allocation161_spill] sm:$0xff] }
 0x385   :  { %5183 = vmatprep.subr.bf16.mxu1 %v19283_v44  ;;  %v19306_v44 = vld [vmem:[#allocation162_spill] sm:$0xff] }
 0x386   :  { %v10000_v16 = vpop.eup %9999  ;;  %5085 = vmatmul.mubr.bf16.vlgmr.msra.gmra.mxu0 %v14617_v62 }
 0x387   :  { %5141 = vmatpush1.bf16.msra.mxu0 %v19284_v28  ;;  %v4948_v18 = vsub.f32 1.0, %v10000_v16  ;;  %v4956_v30 = vmul.f32 %v10000_v16, %v13939_v57  ;;  %v19307_v16 = vld [vmem:[#allocation163_spill] sm:$0xff]  ;;  %v19308_v28 = vld [vmem:[#allocation164_spill] sm:$0xff] }
 0x388   :  { %v10002_v8 = vpop.eup %10001  ;;  %5142 = vmatprep.subr.bf16.mxu0 %v19285_v26  ;;  %v19311_v26 = vld [vmem:[#allocation167_spill] sm:$0xff] }
 0x389   :  { %v10004_v21 = vpop.eup %10003  ;;  %v4949_v38 = vsub.f32 1.0, %v10002_v8  ;;  %v4957_v15 = vmul.f32 %v10002_v8, %v13941_v27  ;;  %v19310_v8 = vld [vmem:[#allocation166_spill] sm:$0xff] }
 0x38a   :  { %v10006_v13 = vpop.eup %10005  ;;  %v4952_v20 = vmul.f32 %v10004_v21, %v4948_v18  ;;  %v19309_v18 = vld [vmem:[#allocation165_spill] sm:$0xff]  ;;  %v19312_v21 = vld [vmem:[#allocation168_spill] sm:$0xff] }
 0x38b   :  { %v10008_v17 = vpop.eup %10007  ;;  %5143 = vmatpush1.bf16.msra.mxu0 %v19286_v14  ;;  %v4950_v35 = vsub.f32 1.0, %v10006_v13  ;;  %v4958_v25 = vmul.f32 %v10006_v13, %v13955_v59  ;;  %v19314_v13 = vld [vmem:[#allocation170_spill] sm:$0xff] }
 0x38c   :  { %v10010_v60 = vpop.eup %10009  ;;  %5144 = vmatprep.subr.bf16.mxu0 %v13936_v47  ;;  %v4953_v62 = vmul.f32 %v10008_v17, %v4949_v38  ;;  %v14708_v7 = vadd.f32 %v4956_v30, %v4952_v20  ;;  %v19313_v38 = vld [vmem:[#allocation169_spill] sm:$0xff]  ;;  %v19315_v20 = vld [vmem:[#allocation171_spill] sm:$0xff]  ;;  %v19316_v30 = vld [vmem:[#allocation172_spill] sm:$0xff] }
 0x38d   :  { %v10012_v39 = vpop.eup %10011  ;;  %v4951_v36 = vsub.f32 1.0, %v10010_v60  ;;  %v4959_v47 = vmul.f32 %v10010_v60, %v13957_v22  ;;  %v19289_v22 = vld [vmem:[#allocation145_spill] sm:$0xff]  ;;  %v19318_v14 = vld [vmem:[#allocation174_spill] sm:$0xff]  ;;  %v19320_v60 = vld [vmem:[#allocation176_spill] sm:$0xff] }
 0x38e   :  { %v14710_v34 = vadd.f32 %v4957_v15, %v4953_v62  ;;  %v4954_v37 = vmul.f32 %v10012_v39, %v4950_v35  ;;  %v19317_v17 = vld [vmem:[#allocation173_spill] sm:$0xff]  ;;  %v19319_v35 = vld [vmem:[#allocation175_spill] sm:$0xff]  ;;  %v19322_v15 = vld [vmem:[#allocation178_spill] sm:$0xff] }
 0x38f   :  { %v10014_v57 = vpop.eup %10013  ;;  %5145 = vmatpush1.bf16.msra.mxu0 %v13946_v53  ;;  %v19287_v53 = vld [vmem:[#allocation143_spill] sm:$0xff]  ;;  %v19321_v62 = vld [vmem:[#allocation177_spill] sm:$0xff] }
 0x390   :  { %5146 = vmatprep.subr.bf16.mxu0 %v13952_v11  ;;  %v4955_v23 = vmul.f32 %v10014_v57, %v4951_v36  ;;  %v14716_v0 = vadd.f32 %v4958_v25, %v4954_v37  ;;  %v19288_v11 = vld [vmem:[#allocation144_spill] sm:$0xff]  ;;  %v19323_v39 = vld [vmem:[#allocation179_spill] sm:$0xff]  ;;  %v19325_v37 = vld [vmem:[#allocation181_spill] sm:$0xff] }
 0x391   :  { %v19324_v36 = vld [vmem:[#allocation180_spill] sm:$0xff]  ;;  %v19326_v25 = vld [vmem:[#allocation182_spill] sm:$0xff]  ;;  %v19327_v57 = vld [vmem:[#allocation183_spill] sm:$0xff] }
 0x392   :  { %v14718_v27 = vadd.f32 %v4959_v47, %v4955_v23  ;;  %v14726_v59 = vpack.c.bf16 %v14716_v0, %v14708_v7  ;;  %v19328_v23 = vld [vmem:[#allocation184_spill] sm:$0xff]  ;;  %v19329_v47 = vld [vmem:[#allocation185_spill] sm:$0xff] }
 0x393   :  { %5147 = vmatpush1.bf16.msra.mxu0 %v13962_v43  ;;  %v19290_v43 = vld [vmem:[#allocation146_spill] sm:$0xff] }
 0x394   :  { %v5096_v51 = vpack.c.bf16 %v14718_v27, %v14710_v34  ;;  %5148 = vmatprep.subr.bf16.mxu0 %v13970_v29  ;;  %v19291_v29 = vld [vmem:[#allocation147_spill] sm:$0xff] }
 0x396   :  { %5129 = vmatprep.mubr.bf16.mxu1 %v5096_v51  ;;  %5172 = vmatprep.mubr.bf16.mxu0 %v5096_v51 }
 0x397   :  { %5130 = vmatmul.mubr.bf16.vlgmr.msra.gmra.mxu1 %v14726_v59  ;;  %5149 = vmatpush1.bf16.msra.mxu0 %v13981_v33  ;;  %v19292_v33 = vld [vmem:[#allocation148_spill] sm:$0xff] }
 0x398   :  { %5184 = vmatpush1.bf16.msra.mxu1 %v13987_v61  ;;  %5215 = vmatprep.mubr.bf16.mxu1 %v5096_v51  ;;  %v19293_v61 = vld [vmem:[#allocation149_spill] sm:$0xff]  ;;  %v19330_v51 = vld [vmem:[#allocation186_spill] sm:$0xff] }
 0x399   :  { %5150 = vmatprep.subr.bf16.mxu0 %v13993_v4  ;;  %5185 = vmatprep.subr.bf16.mxu1 %v13999_v63  ;;  %v19295_v4 = vld [vmem:[#allocation151_spill] sm:$0xff]  ;;  %v19296_v63 = vld [vmem:[#allocation152_spill] sm:$0xff] }
 0x39b   :  { %5151 = vmatpush1.bf16.msra.mxu0 %v14005_v41  ;;  %v19297_v41 = vld [vmem:[#allocation153_spill] sm:$0xff] }
 0x39c   :  { %5186 = vmatpush1.bf16.msra.mxu1 %v19287_v53  ;;  %5152 = vmatprep.subr.bf16.mxu0 %v19288_v11  ;;  %v19331_v53 = vld [vmem:[#allocation187_spill] sm:$0xff]  ;;  %v19332_v11 = vld [vmem:[#allocation188_spill] sm:$0xff] }
 0x39d   :  { %5187 = vmatprep.subr.bf16.mxu1 %v19289_v22  ;;  %v19333_v22 = vld [vmem:[#allocation189_spill] sm:$0xff] }
 0x39f   :  { %5153 = vmatpush1.bf16.msra.mxu0 %v19290_v43  ;;  %v19334_v43 = vld [vmem:[#allocation190_spill] sm:$0xff] }
 0x3a0   :  { %5188 = vmatpush1.bf16.msra.mxu1 %v19291_v29  ;;  %5154 = vmatprep.subr.bf16.mxu0 %v19292_v33  ;;  %v19335_v29 = vld [vmem:[#allocation191_spill] sm:$0xff]  ;;  %v19336_v33 = vld [vmem:[#allocation192_spill] sm:$0xff] }
 0x3a1   :  { %5189 = vmatprep.subr.bf16.mxu1 %v19293_v61  ;;  %v19337_v61 = vld [vmem:[#allocation193_spill] sm:$0xff] }
 0x3a3   :  { %5155 = vmatpush1.bf16.msra.mxu0 %v19294_v19  ;;  %v19338_v19 = vld [vmem:[#allocation194_spill] sm:$0xff] }
 0x3a4   :  { %5190 = vmatpush1.bf16.msra.mxu1 %v19295_v4  ;;  %5156 = vmatprep.subr.bf16.mxu0 %v19296_v63  ;;  %v19339_v4 = vld [vmem:[#allocation195_spill] sm:$0xff]  ;;  %v19340_v63 = vld [vmem:[#allocation196_spill] sm:$0xff] }
 0x3a5   :  { %5191 = vmatprep.subr.bf16.mxu1 %v19297_v41  ;;  %v19341_v41 = vld [vmem:[#allocation197_spill] sm:$0xff] }
 0x3a7   :  { %5157 = vmatpush2.bf16.msra.mxu0 %v19298_v6  ;;  %v19342_v6 = vld [vmem:[#allocation198_spill] sm:$0xff] }
 0x3a8   :  { %5192 = vmatpush1.bf16.msra.mxu1 %v19299_v5  ;;  %5158 = vmatprep.subr.bf16.mxu0 %v19300_v56  ;;  %v19343_v5 = vld [vmem:[#allocation199_spill] sm:$0xff]  ;;  %v19344_v56 = vld [vmem:[#allocation200_spill] sm:$0xff] }
 0x3a9   :  { %5193 = vmatprep.subr.bf16.mxu1 %v19301_v1  ;;  %v19345_v1 = vld [vmem:[#allocation201_spill] sm:$0xff] }
 0x3ab   :  { %5159 = vmatpush2.bf16.msra.mxu0 %v19302_v9  ;;  %v19346_v9 = vld [vmem:[#allocation202_spill] sm:$0xff] }
 0x3ac   :  { %5194 = vmatpush1.bf16.msra.mxu1 %v19303_v42  ;;  %5160 = vmatprep.subr.bf16.mxu0 %v19304_v40  ;;  %v19347_v42 = vld [vmem:[#allocation203_spill] sm:$0xff]  ;;  %v19348_v40 = vld [vmem:[#allocation204_spill] sm:$0xff] }
 0x3ad   :  { %5195 = vmatprep.subr.bf16.mxu1 %v19305_v12  ;;  %v19349_v12 = vld [vmem:[#allocation205_spill] sm:$0xff] }
 0x3af   :  { %5161 = vmatpush2.bf16.msra.mxu0 %v19306_v44  ;;  %v19350_v44 = vld [vmem:[#allocation206_spill] sm:$0xff] }
 0x3b0   :  { %5196 = vmatpush1.bf16.msra.mxu1 %v19307_v16  ;;  %5162 = vmatprep.subr.bf16.mxu0 %v19308_v28  ;;  %v19352_v16 = vld [vmem:[#allocation208_spill] sm:$0xff]  ;;  %v19353_v28 = vld [vmem:[#allocation209_spill] sm:$0xff] }
 0x3b1   :  { %5197 = vmatprep.subr.bf16.mxu1 %v19309_v18  ;;  %v19354_v18 = vld [vmem:[#allocation210_spill] sm:$0xff] }
 0x3b3   :  { %5163 = vmatpush2.bf16.msra.mxu0 %v19310_v8  ;;  %v19356_v8 = vld [vmem:[#allocation212_spill] sm:$0xff] }
 0x3b4   :  { %5198 = vmatpush1.bf16.msra.mxu1 %v19311_v26  ;;  %5164 = vmatprep.subr.bf16.mxu0 %v19312_v21  ;;  %v19357_v26 = vld [vmem:[#allocation213_spill] sm:$0xff]  ;;  %v19358_v21 = vld [vmem:[#allocation214_spill] sm:$0xff] }
 0x3b5   :  { %5199 = vmatprep.subr.bf16.mxu1 %v19313_v38  ;;  %v19359_v38 = vld [vmem:[#allocation215_spill] sm:$0xff] }
 0x3b7   :  { %5165 = vmatpush2.bf16.msra.mxu0 %v19314_v13  ;;  %v19360_v13 = vld [vmem:[#allocation216_spill] sm:$0xff] }
 0x3b8   :  { %5200 = vmatpush2.bf16.msra.mxu1 %v19315_v20  ;;  %5166 = vmatprep.subr.bf16.mxu0 %v19316_v30  ;;  %v19361_v20 = vld [vmem:[#allocation217_spill] sm:$0xff]  ;;  %v19362_v30 = vld [vmem:[#allocation218_spill] sm:$0xff] }
 0x3b9   :  { %5201 = vmatprep.subr.bf16.mxu1 %v19317_v17  ;;  %v19363_v17 = vld [vmem:[#allocation219_spill] sm:$0xff] }
 0x3bb   :  { %5167 = vmatpush2.bf16.msra.mxu0 %v19318_v14  ;;  %v19364_v14 = vld [vmem:[#allocation220_spill] sm:$0xff] }
 0x3bc   :  { %5202 = vmatpush2.bf16.msra.mxu1 %v19319_v35  ;;  %5168 = vmatprep.subr.bf16.mxu0 %v19320_v60  ;;  %v14820_v35 = vld [vmem:[%s18481_s3 + $0x274] ss:$24 sps:$4 sm:$0xff]   ;;  %v14827_v60 = vld [vmem:[%s18481_s3 + $0x270] ss:$24 sps:$4 sm:$0xff]  }
 0x3bd   :  { %5203 = vmatprep.subr.bf16.mxu1 %v19321_v62  ;;  %v19366_v62 = vld [vmem:[#allocation222_spill] sm:$0xff] }
 0x3bf   :  { %5169 = vmatpush2.bf16.msra.mxu0 %v19322_v15  ;;  %v19367_v15 = vld [vmem:[#allocation223_spill] sm:$0xff] }
 0x3c0   :  { %5204 = vmatpush2.bf16.msra.mxu1 %v19323_v39  ;;  %5170 = vmatprep.subr.bf16.mxu0 %v19324_v36  ;;  %v14869_v39 = vld [vmem:[%s18481_s3 + $0x1e0] ss:$24 sps:$4 sm:$0xff]   ;;  %v19368_v36 = vld [vmem:[#allocation224_spill] sm:$0xff] }
 0x3c1   :  { %5205 = vmatprep.subr.bf16.mxu1 %v19325_v37  ;;  %v14876_v37 = vld [vmem:[%s18481_s3 + $0x1b4] ss:$24 sps:$4 sm:$0xff]  }
 0x3c3   :  { %5171 = vmatpush2.bf16.msra.mxu0 %v19326_v25  ;;  %v19369_v25 = vld [vmem:[#allocation225_spill] sm:$0xff] }
 0x3c4   :  { %5206 = vmatpush2.bf16.msra.mxu1 %v19327_v57  ;;  %5442 = vmatprep.subr.bf16.mxu0 %v19328_v23  ;;  %v14883_v57 = vld [vmem:[%s18481_s3 + $0x1b0] ss:$24 sps:$4 sm:$0xff]   ;;  %v19370_v23 = vld [vmem:[#allocation226_spill] sm:$0xff] }
 0x3c5   :  { %5207 = vmatprep.subr.bf16.mxu1 %v19329_v47  ;;  %v14890_v47 = vld [vmem:[%s18481_s3 + $0x184] ss:$24 sps:$4 sm:$0xff]  }
 0x3c6   :  { %5173 = vmatmul.mubr.bf16.vlgmr.msra.gmra.mxu0 %v14726_v59 }
 0x3c7   :  { %5443 = vmatpush1.bf16.msra.mxu0 %v19330_v51  ;;  %v19371_v51 = vld [vmem:[#allocation227_spill] sm:$0xff] }
 0x3c8   :  { %5208 = vmatpush2.bf16.msra.mxu1 %v19331_v53  ;;  %5444 = vmatprep.subr.bf16.mxu0 %v19332_v11  ;;  %v14897_v53 = vld [vmem:[%s18481_s3 + $0x180] ss:$24 sps:$4 sm:$0xff]  }
 0x3c9   :  { %5209 = vmatprep.subr.bf16.mxu1 %v19333_v22  ;;  %v14903_v11 = vld [vmem:[%s18481_s3 + $0x248] ss:$24 sps:$4 sm:$0xff]   ;;  %v14909_v22 = vld [vmem:[%s18481_s3 + $0x164] ss:$24 sps:$4 sm:$0xff]  }
 0x3cb   :  { %5445 = vmatpush1.bf16.msra.mxu0 %v19334_v43  ;;  %v14915_v43 = vld [vmem:[%s18481_s3 + $0x21c] ss:$24 sps:$4 sm:$0xff]  }
 0x3cc   :  { %5210 = vmatpush2.bf16.msra.mxu1 %v19335_v29  ;;  %5446 = vmatprep.subr.bf16.mxu0 %v19336_v33  ;;  %v14921_v29 = vld [vmem:[%s18481_s3 + $0x218] ss:$24 sps:$4 sm:$0xff]   ;;  %v14927_v33 = vld [vmem:[%s18481_s3 + $0x1ec] ss:$24 sps:$4 sm:$0xff]  }
 0x3cd   :  { %5211 = vmatprep.subr.bf16.mxu1 %v19337_v61  ;;  %v14933_v61 = vld [vmem:[%s18481_s3 + $0x1e8] ss:$24 sps:$4 sm:$0xff]  }
 0x3cf   :  { %5447 = vmatpush1.bf16.msra.mxu0 %v19338_v19  ;;  %v14939_v19 = vld [vmem:[%s18481_s3 + $0x1bc] ss:$24 sps:$4 sm:$0xff]  }
 0x3d0   :  { %5212 = vmatpush2.bf16.msra.mxu1 %v19339_v4  ;;  %5448 = vmatprep.subr.bf16.mxu0 %v19340_v63  ;;  %v14945_v4 = vld [vmem:[%s18481_s3 + $0x1b8] ss:$24 sps:$4 sm:$0xff]   ;;  %v14951_v63 = vld [vmem:[%s18481_s3 + $0x18c] ss:$24 sps:$4 sm:$0xff]  }
 0x3d1   :  { %5213 = vmatprep.subr.bf16.mxu1 %v19341_v41  ;;  %v14957_v41 = vld [vmem:[%s18481_s3 + $0x188] ss:$24 sps:$4 sm:$0xff]  }
 0x3d3   :  { %5449 = vmatpush1.bf16.msra.mxu0 %v14342_v49  ;;  %v19351_v49 = vld [vmem:[#allocation207_spill] sm:$0xff] }
 0x3d4   :  { %5214 = vmatpush2.bf16.msra.mxu1 %v19342_v6  ;;  %5450 = vmatprep.subr.bf16.mxu0 %v19343_v5  ;;  %v14963_v6 = vld [vmem:[%s18481_s3 + $0x454] ss:$24 sps:$4 sm:$0xff]  }
 0x3d5   :  { %5485 = vmatprep.subr.bf16.mxu1 %v19344_v56 }
 0x3d7   :  { %5216 = vmatmul.mubr.bf16.vlgmr.msra.gmra.mxu1 %v14726_v59  ;;  %5451 = vmatpush1.bf16.msra.mxu0 %v19345_v1  ;;  %v19355_v59 = vld [vmem:[#allocation211_spill] sm:$0xff]  ;;  %v19372_v1 = vld [vmem:[#allocation9_spill] sm:$0xff] }
 0x3d8   :  { %5486 = vmatpush1.bf16.msra.mxu1 %v19346_v9  ;;  %5452 = vmatprep.subr.bf16.mxu0 %v19347_v42  ;;  %v5240_v9 = vunpack.c.l.bf16 %v19372_v1 }
 0x3d9   :  { %5487 = vmatprep.subr.bf16.mxu1 %v19348_v40 }
 0x3db   :  { %5453 = vmatpush1.bf16.msra.mxu0 %v19349_v12  ;;  %v5241_v12 = vunpack.c.h.bf16 %v19372_v1 }
 0x3dc   :  { %5488 = vmatpush1.bf16.msra.mxu1 %v19350_v44  ;;  %5454 = vmatprep.subr.bf16.mxu0 %v19351_v49  ;;  %v19373_v49 = vld [vmem:[#allocation11_spill] sm:$0xff] }
 0x3dd   :  { %5489 = vmatprep.subr.bf16.mxu1 %v19352_v16  ;;  %v5246_v16 = vunpack.c.l.bf16 %v19373_v49 }
 0x3df   :  { %5455 = vmatpush1.bf16.msra.mxu0 %v19353_v28 }
 0x3e0   :  { %5490 = vmatpush1.bf16.msra.mxu1 %v19354_v18  ;;  %5456 = vmatprep.subr.bf16.mxu0 %v19355_v59 }
 0x3e1   :  { %5491 = vmatprep.subr.bf16.mxu1 %v19356_v8 }
 0x3e3   :  { %5457 = vmatpush1.bf16.msra.mxu0 %v19357_v26  ;;  %v5247_v26 = vunpack.c.h.bf16 %v19373_v49 }
 0x3e4   :  { %5492 = vmatpush1.bf16.msra.mxu1 %v19358_v21  ;;  %5458 = vmatprep.subr.bf16.mxu0 %v19359_v38 }
 0x3e5   :  { %5493 = vmatprep.subr.bf16.mxu1 %v19360_v13 }
 0x3e7   :  { %5459 = vmatpush2.bf16.msra.mxu0 %v19361_v20 }
 0x3e8   :  { %5494 = vmatpush1.bf16.msra.mxu1 %v19362_v30  ;;  %5460 = vmatprep.subr.bf16.mxu0 %v14475_v10  ;;  %v14841_v10 = vld [vmem:[%s18481_s3 + $0x240] ss:$24 sps:$4 sm:$0xff]  }
 0x3e9   :  { %5495 = vmatprep.subr.bf16.mxu1 %v19363_v17  ;;  %v19374_v17 = vld [vmem:[#allocation10_spill] sm:$0xff] }
 0x3eb   :  { %5461 = vmatpush2.bf16.msra.mxu0 %v19364_v14  ;;  %v5242_v14 = vunpack.c.l.bf16 %v19374_v17 }
 0x3ec   :  { %5496 = vmatpush1.bf16.msra.mxu1 %v14493_v50  ;;  %5462 = vmatprep.subr.bf16.mxu0 %v14820_v35  ;;  %v14834_v50 = vld [vmem:[%s18481_s3 + $0x244] ss:$24 sps:$4 sm:$0xff]  }
 0x3ed   :  { %5497 = vmatprep.subr.bf16.mxu1 %v14500_v52  ;;  %v19365_v52 = vld [vmem:[#allocation221_spill] sm:$0xff] }
 0x3ef   :  { %5463 = vmatpush2.bf16.msra.mxu0 %v14827_v60 }
 0x3f0   :  { %5498 = vmatpush1.bf16.msra.mxu1 %v14507_v58  ;;  %5464 = vmatprep.subr.bf16.mxu0 %v14834_v50  ;;  %v14848_v58 = vld [vmem:[%s18481_s3 + $0x214] ss:$24 sps:$4 sm:$0xff]  }
 0x3f1   :  { %5499 = vmatprep.subr.bf16.mxu1 %v14514_v24  ;;  %v14855_v24 = vld [vmem:[%s18481_s3 + $0x210] ss:$24 sps:$4 sm:$0xff]  }
 0x3f3   :  { %5465 = vmatpush2.bf16.msra.mxu0 %v14841_v10 }
 0x3f4   :  { %5500 = vmatpush1.bf16.msra.mxu1 %v14521_v46  ;;  %5466 = vmatprep.subr.bf16.mxu0 %v14848_v58  ;;  %v14862_v46 = vld [vmem:[%s18481_s3 + $0x1e4] ss:$24 sps:$4 sm:$0xff]  }
 0x3f5   :  { %5501 = vmatprep.subr.bf16.mxu1 %v19365_v52 }
 0x3f7   :  { %5467 = vmatpush2.bf16.msra.mxu0 %v14855_v24 }
 0x3f8   :  { %5502 = vmatpush2.bf16.msra.mxu1 %v19366_v62  ;;  %5468 = vmatprep.subr.bf16.mxu0 %v14862_v46 }
 0x3f9   :  { %5503 = vmatprep.subr.bf16.mxu1 %v19367_v15  ;;  %v5243_v15 = vunpack.c.h.bf16 %v19374_v17 }
 0x3fb   :  { %5469 = vmatpush2.bf16.msra.mxu0 %v14869_v39 }
 0x3fc   :  { %5504 = vmatpush2.bf16.msra.mxu1 %v19368_v36  ;;  %5470 = vmatprep.subr.bf16.mxu0 %v14876_v37  ;;  %v19375_v36 = vld [vmem:[#allocation12_spill] sm:$0xff] }
 0x3fd   :  { %5505 = vmatprep.subr.bf16.mxu1 %v19369_v25  ;;  %v5248_v25 = vunpack.c.l.bf16 %v19375_v36 }
 0x3ff   :  { %5471 = vmatpush2.bf16.msra.mxu0 %v14883_v57 }
 0x400   :  { %5506 = vmatpush2.bf16.msra.mxu1 %v19370_v23  ;;  %5472 = vmatprep.subr.bf16.mxu0 %v14890_v47 }
 0x401   :  { %5507 = vmatprep.subr.bf16.mxu1 %v19371_v51 }
 0x403   :  { %5473 = vmatpush2.bf16.msra.mxu0 %v14897_v53 }
 0x404   :  { %5508 = vmatpush2.bf16.msra.mxu1 %v14903_v11  ;;  %5528 = vmatprep.subr.bf16.mxu0 %v14909_v22 }
 0x405   :  { %5509 = vmatprep.subr.bf16.mxu1 %v14915_v43 }
 0x406   :  { %v5000_v5 = vpop.f32.mrf.mxu0  ;;  %v5043_v59 = vpop.f32.mrf.mxu1 }
 0x407   :  { %v5252_v40 = vadd.f32 %v5240_v9, %v5000_v5  ;;  %v5254_v62 = vadd.f32 %v5242_v14, %v5043_v59 }
 0x408   :  { %5510 = vmatpush2.bf16.msra.mxu1 %v14921_v29  ;;  %v5002_v56 = vpop.f32.mrf.mxu0  ;;  %v5045_v13 = vpop.f32.mrf.mxu1 }
 0x409   :  { %5511 = vmatprep.subr.bf16.mxu1 %v14927_v33  ;;  %v5253_v44 = vadd.f32 %v5241_v12, %v5002_v56  ;;  %v8929_v18 = vmul.f32 -1.442695, %v5252_v40  ;;  %v5255_v23 = vadd.f32 %v5243_v15, %v5045_v13  ;;  %v5249_v56 = vunpack.c.h.bf16 %v19375_v36 }
 0x40a   :  { %v5004_v42 = vpop.f32.mrf.mxu0  ;;  %v5047_v52 = vpop.f32.mrf.mxu1  ;;  %v8931_v1 = vmul.f32 -1.442695, %v5254_v62 }
 0x40b   :  { %v5256_v8 = vadd.f32 %v5246_v16, %v5004_v42  ;;  %v8930_v21 = vmul.f32 -1.442695, %v5253_v44  ;;  %10015 = vpow2.f32 %v8929_v18  ;;  %v5258_v5 = vadd.f32 %v5248_v25, %v5047_v52  ;;  %v19376_v25 = vld [vmem:[#allocation39_spill] sm:$0xff] }
 0x40c   :  { %5512 = vmatpush2.bf16.msra.mxu1 %v14933_v61  ;;  %v5006_v28 = vpop.f32.mrf.mxu0  ;;  %v5049_v51 = vpop.f32.mrf.mxu1  ;;  %v8932_v42 = vmul.f32 -1.442695, %v5255_v23  ;;  %v5244_v23 = vunpack.c.l.bf16 %v19376_v25 }
 0x40d   :  { %5513 = vmatprep.subr.bf16.mxu1 %v14939_v19  ;;  %v5257_v38 = vadd.f32 %v5247_v26, %v5006_v28  ;;  %v8933_v20 = vmul.f32 -1.442695, %v5256_v8  ;;  %10017 = vpow2.f32 %v8930_v21  ;;  %v5259_v9 = vadd.f32 %v5249_v56, %v5049_v51 }
 0x40e   :  { %v8935_v12 = vmul.f32 -1.442695, %v5258_v5 }
 0x40f   :  { %v8934_v30 = vmul.f32 -1.442695, %v5257_v38  ;;  %10019 = vpow2.f32 %v8933_v20  ;;  %v8936_v49 = vmul.f32 -1.442695, %v5259_v9 }
 0x410   :  { %5514 = vmatpush2.bf16.msra.mxu1 %v14945_v4 }
 0x411   :  { %5515 = vmatprep.subr.bf16.mxu1 %v14951_v63  ;;  %10021 = vpow2.f32 %v8934_v30 }
 0x412   :  { %10023 = vpow2.f32 %v8931_v1  ;;  %v5245_v1 = vunpack.c.h.bf16 %v19376_v25 }
 0x413   :  { %10025 = vpow2.f32 %v8932_v42 }
 0x414   :  { %5516 = vmatpush2.bf16.msra.mxu1 %v14957_v41  ;;  %10027 = vpow2.f32 %v8935_v12 }
 0x415   :  { %5573 = vmatprep.subr.bf16.mxu1 %v14963_v6  ;;  %10029 = vpow2.f32 %v8936_v49 }
 0x418   :  { %v10016_v40 = vpop.eup %10015 }
 0x419   :  { %v5284_v16 = vadd.f32 1.0, %v10016_v40 }
 0x41a   :  { %v10018_v44 = vpop.eup %10017 }
 0x41b   :  { %v5285_v18 = vadd.f32 1.0, %v10018_v44  ;;  %10031 = vrcp.f32 %v5284_v16  ;;  %v19377_v16 = vld [vmem:[#allocation41_spill] sm:$0xff] }
 0x41c   :  { %v10020_v28 = vpop.eup %10019 }
 0x41d   :  { %v5288_v8 = vadd.f32 1.0, %v10020_v28  ;;  %10033 = vrcp.f32 %v5285_v18  ;;  %v5250_v28 = vunpack.c.l.bf16 %v19377_v16 }
 0x41e   :  { %v10022_v59 = vpop.eup %10021 }
 0x41f   :  { %v5289_v26 = vadd.f32 1.0, %v10022_v59  ;;  %10035 = vrcp.f32 %v5288_v8  ;;  %v10024_v21 = vpop.eup %10023 }
 0x420   :  { %v10026_v38 = vpop.eup %10025  ;;  %v5286_v20 = vadd.f32 1.0, %v10024_v21 }
 0x421   :  { %10037 = vrcp.f32 %v5289_v26  ;;  %v10028_v13 = vpop.eup %10027  ;;  %v5287_v14 = vadd.f32 1.0, %v10026_v38  ;;  %v5251_v38 = vunpack.c.h.bf16 %v19377_v16 }
 0x422   :  { %v10030_v17 = vpop.eup %10029  ;;  %v5290_v15 = vadd.f32 1.0, %v10028_v13  ;;  %10039 = vrcp.f32 %v5286_v20 }
 0x423   :  { %v5291_v9 = vadd.f32 1.0, %v10030_v17  ;;  %10041 = vrcp.f32 %v5287_v14 }
 0x424   :  { %10043 = vrcp.f32 %v5290_v15 }
 0x428   :  { %v10032_v62 = vpop.eup %10031 }
 0x42a   :  { %v10034_v56 = vpop.eup %10033 }
 0x42c   :  { %v10036_v49 = vpop.eup %10035 }
 0x42e   :  { %v10038_v21 = vpop.eup %10037 }
 0x42f   :  { %v10040_v17 = vpop.eup %10039 }
 0x430   :  { %v10042_v14 = vpop.eup %10041 }
 0x431   :  { %v5325_v25 = vsub.f32 1.0, %v10042_v14 }
 0x446   :  { %v5086_v30 = vpop.f32.mrf.mxu0 }
 0x447   :  { %v5308_v52 = vadd.f32 %v5086_v30, %v13474_v48 }
 0x448   :  { %v5088_v36 = vpop.f32.mrf.mxu0 }
 0x449   :  { %v5312_v51 = vmul.f32 %v10032_v62, %v5308_v52  ;;  %v5309_v5 = vadd.f32 %v5088_v36, %v13479_v55  ;;  %v10044_v52 = vpop.eup %10043  ;;  %v5324_v62 = vsub.f32 1.0, %v10040_v17 }
 0x44a   :  { %v5090_v42 = vpop.f32.mrf.mxu0  ;;  %v5334_v16 = vmul.f32 %v10044_v52, %v14609_v54  ;;  %v15005_v54 = vld [vmem:[%s18481_s3 + $0x160] ss:$24 sps:$4 sm:$0xff]  }
 0x44b   :  { %v5316_v40 = vadd.f32 %v5312_v51, %v5244_v23  ;;  %v5313_v12 = vmul.f32 %v10034_v56, %v5309_v5  ;;  %v5310_v44 = vadd.f32 %v5090_v42, %v13474_v48  ;;  %v5332_v51 = vmul.f32 %v10040_v17, %v14603_v2  ;;  %v19378_v17 = vld [vmem:[#allocation52_spill] sm:$0xff] }
 0x44c   :  { %v5092_v18 = vpop.f32.mrf.mxu0 }
 0x44d   :  { %10045 = vtanh.f32 %v5316_v40  ;;  %v5317_v59 = vadd.f32 %v5313_v12, %v5245_v1  ;;  %v5314_v8 = vmul.f32 %v10036_v49, %v5310_v44  ;;  %v5311_v26 = vadd.f32 %v5092_v18, %v13479_v55 }
 0x44e   :  { %10047 = vrcp.f32 %v5291_v9  ;;  %v5333_v1 = vmul.f32 %v10042_v14, %v14605_v3  ;;  %v5326_v9 = vsub.f32 1.0, %v10044_v52  ;;  %v5340_v14 = vunpack.c.l.bf16 %v19378_v17  ;;  %v15036_v52 = vld [vmem:[%s18481_s3 + $0x104] ss:$24 sps:$4 sm:$0xff]  }
 0x44f   :  { %10049 = vtanh.f32 %v5317_v59  ;;  %v5318_v13 = vadd.f32 %v5314_v8, %v5250_v28  ;;  %v5315_v20 = vmul.f32 %v10038_v21, %v5311_v26 }
 0x451   :  { %10051 = vtanh.f32 %v5318_v13  ;;  %v5319_v30 = vadd.f32 %v5315_v20, %v5251_v38  ;;  %v15017_v38 = vld [vmem:[%s18481_s3 + $0x450] ss:$24 sps:$4 sm:$0xff]   ;;  %v15023_v20 = vld [vmem:[%s18481_s3 + $0x424] ss:$24 sps:$4 sm:$0xff]  }
 0x453   :  { %10053 = vtanh.f32 %v5319_v30  ;;  %v15029_v30 = vld [vmem:[%s18481_s3 + $0x130] ss:$24 sps:$4 sm:$0xff]  }
 0x457   :  { %v5131_v21 = vpop.f32.mrf.mxu1 }
 0x459   :  { %v5133_v13 = vpop.f32.mrf.mxu1 }
 0x45a   :  { %v10046_v15 = vpop.eup %10045 }
 0x45b   :  { %v10048_v36 = vpop.eup %10047  ;;  %v5328_v23 = vmul.f32 %v10046_v15, %v5324_v62  ;;  %v15042_v62 = vld [vmem:[%s18481_s3 + $0x420] ss:$24 sps:$4 sm:$0xff]   ;;  %v5135_v15 = vpop.f32.mrf.mxu1 }
 0x45c   :  { %v10050_v5 = vpop.eup %10049  ;;  %v5327_v12 = vsub.f32 1.0, %v10048_v36  ;;  %v5335_v59 = vmul.f32 %v10048_v36, %v14611_v31  ;;  %v15011_v31 = vld [vmem:[%s18481_s3 + $0x134] ss:$24 sps:$4 sm:$0xff]  }
 0x45d   :  { %v5329_v56 = vmul.f32 %v10050_v5, %v5325_v25  ;;  %v14984_v42 = vadd.f32 %v5332_v51, %v5328_v23  ;;  %v15048_v36 = vld [vmem:[%s18481_s3 + $0x3f4] ss:$24 sps:$4 sm:$0xff]   ;;  %v5352_v25 = vadd.f32 %v5340_v14, %v5131_v21  ;;  %v5341_v23 = vunpack.c.h.bf16 %v19378_v17  ;;  %v15055_v51 = vld [vmem:[%s18481_s3 + $0x100] ss:$24 sps:$4 sm:$0xff]  }
 0x45e   :  { %v10052_v40 = vpop.eup %10051  ;;  %v15093_v17 = vld [vmem:[%s18481_s3 + $0x3c0] ss:$24 sps:$4 sm:$0xff]   ;;  %v15099_v14 = vld [vmem:[%s18481_s3 + $0x394] ss:$24 sps:$4 sm:$0xff]  }
 0x45f   :  { %v14986_v44 = vadd.f32 %v5333_v1, %v5329_v56  ;;  %v5330_v49 = vmul.f32 %v10052_v40, %v5326_v9  ;;  %v5353_v5 = vadd.f32 %v5341_v23, %v5133_v13  ;;  %v19379_v56 = vld [vmem:[#allocation54_spill] sm:$0xff]  ;;  %v15062_v9 = vld [vmem:[%s18481_s3 + $0xd4] ss:$24 sps:$4 sm:$0xff]   ;;  %v15068_v40 = vld [vmem:[%s18481_s3 + $0x3f0] ss:$24 sps:$4 sm:$0xff]   ;;  %19385 = vst [vmem:[#allocation56_spill] sm:$0xff] %v15093_v17 }
 0x460   :  { %v10054_v28 = vpop.eup %10053  ;;  %v5346_v1 = vunpack.c.l.bf16 %v19379_v56  ;;  %19380 = vst [vmem:[#allocation7_spill] sm:$0xff] %v15062_v9  ;;  %19381 = vst [vmem:[#allocation6_spill] sm:$0xff] %v15068_v40  ;;  %v15087_v13 = vld [vmem:[%s18481_s3 + $0xa4] ss:$24 sps:$4 sm:$0xff]  }
 0x461   :  { %v5331_v18 = vmul.f32 %v10054_v28, %v5327_v12  ;;  %v14990_v8 = vadd.f32 %v5334_v16, %v5330_v49  ;;  %v5137_v12 = vpop.f32.mrf.mxu1  ;;  %v15074_v49 = vld [vmem:[%s18481_s3 + $0x3c4] ss:$24 sps:$4 sm:$0xff]   ;;  %v8937_v16 = vmul.f32 -1.442695, %v5352_v25  ;;  %19384 = vst [vmem:[#allocation37_spill] sm:$0xff] %v15087_v13  ;;  %19386 = vst [vmem:[#allocation58_spill] sm:$0xff] %v15099_v14 }
 0x462   :  { %19382 = vst [vmem:[#allocation8_spill] sm:$0xff] %v15074_v49  ;;  %v5356_v28 = vadd.f32 %v5346_v1, %v5135_v15  ;;  %v15105_v25 = vld [vmem:[%s18481_s3 + $0xa0] ss:$24 sps:$4 sm:$0xff]   ;;  %v15123_v1 = vld [vmem:[%s18481_s3 + $0x364] ss:$24 sps:$4 sm:$0xff]  }
 0x463   :  { %v14992_v2 = vadd.f32 %v5335_v59, %v5331_v18  ;;  %v14998_v26 = vpack.c.bf16 %v14990_v8, %v14984_v42  ;;  %v5347_v18 = vunpack.c.h.bf16 %v19379_v56  ;;  %v15081_v59 = vld [vmem:[%s18481_s3 + $0xd0] ss:$24 sps:$4 sm:$0xff]   ;;  %10055 = vpow2.f32 %v8937_v16  ;;  %19387 = vst [vmem:[#allocation89_spill] sm:$0xff] %v15105_v25  ;;  %19390 = vst [vmem:[#allocation92_spill] sm:$0xff] %v15123_v1  ;;  %v15135_v16 = vld [vmem:[%s18481_s3 + $0x44] ss:$24 sps:$4 sm:$0xff]  }
 0x464   :  { %19383 = vst [vmem:[#allocation35_spill] sm:$0xff] %v15081_v59  ;;  %v8941_v15 = vmul.f32 -1.442695, %v5356_v28  ;;  %v15117_v56 = vld [vmem:[%s18481_s3 + $0x390] ss:$24 sps:$4 sm:$0xff]   ;;  %19392 = vst [vmem:[#allocation94_spill] sm:$0xff] %v15135_v16 }
 0x465   :  { %v5441_v3 = vpack.c.bf16 %v14992_v2, %v14986_v44  ;;  %v5357_v21 = vadd.f32 %v5347_v18, %v5137_v12  ;;  %19389 = vst [vmem:[#allocation91_spill] sm:$0xff] %v15117_v56  ;;  %v15129_v12 = vld [vmem:[%s18481_s3 + $0x70] ss:$24 sps:$4 sm:$0xff]   ;;  %v15141_v28 = vld [vmem:[%s18481_s3 + $0x360] ss:$24 sps:$4 sm:$0xff]  }
 0x466   :  { %19391 = vst [vmem:[#allocation93_spill] sm:$0xff] %v15129_v12  ;;  %19393 = vst [vmem:[#allocation95_spill] sm:$0xff] %v15141_v28  ;;  %v15147_v18 = vld [vmem:[%s18481_s3 + $0x334] ss:$24 sps:$4 sm:$0xff]  }
 0x467   :  { %5474 = vmatprep.mubr.bf16.mxu0 %v5441_v3  ;;  %5517 = vmatprep.mubr.bf16.mxu1 %v5441_v3  ;;  %v8942_v23 = vmul.f32 -1.442695, %v5357_v21  ;;  %19394 = vst [vmem:[#allocation96_spill] sm:$0xff] %v15147_v18  ;;  %v15159_v21 = vld [vmem:[%s18481_s3 + $0x14] ss:$24 sps:$4 sm:$0xff]  }
 0x468   :  { %5475 = vmatmul.mubr.bf16.vlgmr.msra.gmra.mxu0 %v14998_v26  ;;  %5518 = vmatmul.mubr.bf16.vlgmr.msra.gmra.mxu1 %v14998_v26  ;;  %19396 = vst [vmem:[#allocation98_spill] sm:$0xff] %v15159_v21 }
 0x469   :  { %5529 = vmatpush1.bf16.msra.mxu0 %v15005_v54  ;;  %5560 = vmatprep.mubr.bf16.mxu0 %v5441_v3  ;;  %v8938_v3 = vmul.f32 -1.442695, %v5353_v5  ;;  %v15111_v5 = vld [vmem:[%s18481_s3 + $0x74] ss:$24 sps:$4 sm:$0xff]  }
 0x46a   :  { %5530 = vmatprep.subr.bf16.mxu0 %v15011_v31  ;;  %5574 = vmatpush1.bf16.msra.mxu1 %v15017_v38  ;;  %19388 = vst [vmem:[#allocation90_spill] sm:$0xff] %v15111_v5 }
 0x46b   :  { %5575 = vmatprep.subr.bf16.mxu1 %v15023_v20  ;;  %10057 = vpow2.f32 %v8938_v3  ;;  %v15153_v3 = vld [vmem:[%s18481_s3 + $0x40] ss:$24 sps:$4 sm:$0xff]  }
 0x46c   :  { %10059 = vpow2.f32 %v8941_v15  ;;  %19395 = vst [vmem:[#allocation97_spill] sm:$0xff] %v15153_v3  ;;  %v15165_v15 = vld [vmem:[%s18481_s3 + $0x330] ss:$24 sps:$4 sm:$0xff]  }
 0x46d   :  { %5531 = vmatpush1.bf16.msra.mxu0 %v15029_v30  ;;  %10061 = vpow2.f32 %v8942_v23  ;;  %19397 = vst [vmem:[#allocation99_spill] sm:$0xff] %v15165_v15  ;;  %v15171_v23 = vld [vmem:[%s18481_s3 + $0x304] ss:$24 sps:$4 sm:$0xff]  }
 0x46e   :  { %5532 = vmatprep.subr.bf16.mxu0 %v15036_v52  ;;  %5576 = vmatpush1.bf16.msra.mxu1 %v15042_v62  ;;  %19398 = vst [vmem:[#allocation100_spill] sm:$0xff] %v15171_v23 }
 0x46f   :  { %5577 = vmatprep.subr.bf16.mxu1 %v15048_v36 }
 0x471   :  { %5533 = vmatpush1.bf16.msra.mxu0 %v15055_v51 }
 0x472   :  { %5534 = vmatprep.subr.bf16.mxu0 %v15062_v9  ;;  %5578 = vmatpush1.bf16.msra.mxu1 %v15068_v40  ;;  %v15331_v9 = vld [vmem:[%s18481_s3 + $0x1f0] ss:$24 sps:$4 sm:$0xff]  }
 0x473   :  { %5579 = vmatprep.subr.bf16.mxu1 %v15074_v49 }
 0x475   :  { %5535 = vmatpush1.bf16.msra.mxu0 %v15081_v59 }
 0x476   :  { %5536 = vmatprep.subr.bf16.mxu0 %v15087_v13  ;;  %5580 = vmatpush1.bf16.msra.mxu1 %v15093_v17 }
 0x477   :  { %5581 = vmatprep.subr.bf16.mxu1 %v15099_v14 }
 0x479   :  { %5537 = vmatpush1.bf16.msra.mxu0 %v15105_v25 }
 0x47a   :  { %5538 = vmatprep.subr.bf16.mxu0 %v15111_v5  ;;  %5582 = vmatpush1.bf16.msra.mxu1 %v15117_v56  ;;  %v15197_v56 = vld [vmem:[%s18481_s3 + $0x5d4] ss:$24 sps:$4 sm:$0xff]  }
 0x47b   :  { %5583 = vmatprep.subr.bf16.mxu1 %v15123_v1  ;;  %19403 = vst [vmem:[#allocation104_spill] sm:$0xff] %v15197_v56 }
 0x47d   :  { %5539 = vmatpush1.bf16.msra.mxu0 %v15129_v12 }
 0x47e   :  { %5540 = vmatprep.subr.bf16.mxu0 %v15135_v16  ;;  %5584 = vmatpush1.bf16.msra.mxu1 %v15141_v28 }
 0x47f   :  { %5585 = vmatprep.subr.bf16.mxu1 %v15147_v18  ;;  %v15177_v18 = vld [vmem:[%s18481_s3 + $0x10] ss:$24 sps:$4 sm:$0xff]  }
 0x480   :  { %19399 = vst [vmem:[#allocation101_spill] sm:$0xff] %v15177_v18 }
 0x481   :  { %5541 = vmatpush1.bf16.msra.mxu0 %v15153_v3  ;;  %v10056_v3 = vpop.eup %10055 }
 0x482   :  { %5542 = vmatprep.subr.bf16.mxu0 %v15159_v21  ;;  %5586 = vmatpush1.bf16.msra.mxu1 %v15165_v15  ;;  %v19400_v21 = vld [vmem:[#allocation81_spill] sm:$0xff]  ;;  %v10058_v12 = vpop.eup %10057  ;;  %v5384_v5 = vadd.f32 1.0, %v10056_v3 }
 0x483   :  { %5587 = vmatprep.subr.bf16.mxu1 %v15171_v23  ;;  %v5342_v28 = vunpack.c.l.bf16 %v19400_v21  ;;  %v15184_v15 = vld [vmem:[%s18481_s3 + $0x2e4] ss:$24 sps:$4 sm:$0xff]   ;;  %v15190_v23 = vld [vmem:[%s18481_s3 + $0x300] ss:$24 sps:$4 sm:$0xff]   ;;  %v10060_v25 = vpop.eup %10059 }
 0x484   :  { %19401 = vst [vmem:[#allocation102_spill] sm:$0xff] %v15184_v15  ;;  %19402 = vst [vmem:[#allocation103_spill] sm:$0xff] %v15190_v23 }
 0x485   :  { %5543 = vmatpush1.bf16.msra.mxu0 %v15177_v18  ;;  %v5343_v18 = vunpack.c.h.bf16 %v19400_v21  ;;  %v5385_v21 = vadd.f32 1.0, %v10058_v12 }
 0x486   :  { %v5174_v16 = vpop.f32.mrf.mxu0  ;;  %5544 = vmatprep.subr.bf16.mxu0 %v15184_v15  ;;  %5588 = vmatpush1.bf16.msra.mxu1 %v15190_v23  ;;  %v15203_v23 = vld [vmem:[%s18481_s3 + $0x2e0] ss:$24 sps:$4 sm:$0xff]  }
 0x487   :  { %v5354_v1 = vadd.f32 %v5342_v28, %v5174_v16  ;;  %5589 = vmatprep.subr.bf16.mxu1 %v15197_v56  ;;  %19404 = vst [vmem:[#allocation105_spill] sm:$0xff] %v15203_v23  ;;  %v19405_v16 = vld [vmem:[#allocation83_spill] sm:$0xff] }
 0x488   :  { %v5176_v15 = vpop.f32.mrf.mxu0  ;;  %v5348_v28 = vunpack.c.l.bf16 %v19405_v16  ;;  %v15210_v56 = vld [vmem:[%s18481_s3 + $0x2b4] ss:$24 sps:$4 sm:$0xff]   ;;  %v5349_v12 = vunpack.c.h.bf16 %v19405_v16  ;;  %v15253_v16 = vld [vmem:[%s18481_s3 + $0x280] ss:$24 sps:$4 sm:$0xff]  }
 0x489   :  { %v8939_v14 = vmul.f32 -1.442695, %v5354_v1  ;;  %v5355_v17 = vadd.f32 %v5343_v18, %v5176_v15  ;;  %5545 = vmatpush2.bf16.msra.mxu0 %v15203_v23  ;;  %19406 = vst [vmem:[#allocation106_spill] sm:$0xff] %v15210_v56  ;;  %v15216_v1 = vld [vmem:[%s18481_s3 + $0x5d0] ss:$24 sps:$4 sm:$0xff]   ;;  %v10062_v18 = vpop.eup %10061  ;;  %19413 = vst [vmem:[#allocation114_spill] sm:$0xff] %v15253_v16 }
 0x48a   :  { %v5178_v13 = vpop.f32.mrf.mxu0  ;;  %5546 = vmatprep.subr.bf16.mxu0 %v15210_v56  ;;  %19407 = vst [vmem:[#allocation107_spill] sm:$0xff] %v15216_v1  ;;  %5590 = vmatpush2.bf16.msra.mxu1 %v15216_v1  ;;  %v15223_v23 = vld [vmem:[%s18481_s3 + $0x5a4] ss:$24 sps:$4 sm:$0xff]   ;;  %v5388_v56 = vadd.f32 1.0, %v10060_v25 }
 0x48b   :  { %10063 = vpow2.f32 %v8939_v14  ;;  %v8940_v3 = vmul.f32 -1.442695, %v5355_v17  ;;  %v5358_v15 = vadd.f32 %v5348_v28, %v5178_v13  ;;  %19408 = vst [vmem:[#allocation108_spill] sm:$0xff] %v15223_v23  ;;  %5591 = vmatprep.subr.bf16.mxu1 %v15223_v23  ;;  %v15229_v17 = vld [vmem:[%s18481_s3 + $0x2b0] ss:$24 sps:$4 sm:$0xff]   ;;  %v5389_v13 = vadd.f32 1.0, %v10062_v18 }
 0x48c   :  { %10065 = vrcp.f32 %v5384_v5  ;;  %v5180_v59 = vpop.f32.mrf.mxu0  ;;  %19409 = vst [vmem:[#allocation85_spill] sm:$0xff] %v15229_v17  ;;  %v15235_v14 = vld [vmem:[%s18481_s3 + $0x284] ss:$24 sps:$4 sm:$0xff]   ;;  %v15247_v5 = vld [vmem:[%s18481_s3 + $0x574] ss:$24 sps:$4 sm:$0xff]  }
 0x48d   :  { %10067 = vpow2.f32 %v8940_v3  ;;  %v8943_v49 = vmul.f32 -1.442695, %v5358_v15  ;;  %v5359_v40 = vadd.f32 %v5349_v12, %v5180_v59  ;;  %5547 = vmatpush2.bf16.msra.mxu0 %v15229_v17  ;;  %19410 = vst [vmem:[#allocation110_spill] sm:$0xff] %v15235_v14  ;;  %v15241_v59 = vld [vmem:[%s18481_s3 + $0x5a0] ss:$24 sps:$4 sm:$0xff]   ;;  %19412 = vst [vmem:[#allocation113_spill] sm:$0xff] %v15247_v5 }
 0x48e   :  { %10069 = vrcp.f32 %v5385_v21  ;;  %5548 = vmatprep.subr.bf16.mxu0 %v15235_v14  ;;  %19411 = vst [vmem:[#allocation111_spill] sm:$0xff] %v15241_v59  ;;  %5592 = vmatpush2.bf16.msra.mxu1 %v15241_v59  ;;  %v15277_v28 = vld [vmem:[%s18481_s3 + $0x250] ss:$24 sps:$4 sm:$0xff]   ;;  %v15283_v21 = vld [vmem:[%s18481_s3 + $0x224] ss:$24 sps:$4 sm:$0xff]  }
 0x48f   :  { %10071 = vpow2.f32 %v8943_v49  ;;  %v8944_v25 = vmul.f32 -1.442695, %v5359_v40  ;;  %5593 = vmatprep.subr.bf16.mxu1 %v15247_v5  ;;  %v15259_v40 = vld [vmem:[%s18481_s3 + $0x254] ss:$24 sps:$4 sm:$0xff]   ;;  %v15265_v49 = vld [vmem:[%s18481_s3 + $0x570] ss:$24 sps:$4 sm:$0xff]  }
 0x490   :  { %10073 = vrcp.f32 %v5388_v56  ;;  %19414 = vst [vmem:[#allocation87_spill] sm:$0xff] %v15259_v40  ;;  %19415 = vst [vmem:[#allocation115_spill] sm:$0xff] %v15265_v49  ;;  %v15271_v56 = vld [vmem:[%s18481_s3 + $0x544] ss:$24 sps:$4 sm:$0xff]   ;;  %v15289_v18 = vld [vmem:[%s18481_s3 + $0x540] ss:$24 sps:$4 sm:$0xff]  }
 0x491   :  { %10075 = vpow2.f32 %v8944_v25  ;;  %5549 = vmatpush2.bf16.msra.mxu0 %v15253_v16  ;;  %19416 = vst [vmem:[#allocation116_spill] sm:$0xff] %v15271_v56  ;;  %19417 = vst [vmem:[#allocation117_spill] sm:$0xff] %v15277_v28  ;;  %v15295_v15 = vld [vmem:[%s18481_s3 + $0x514] ss:$24 sps:$4 sm:$0xff]  }
 0x492   :  { %10077 = vrcp.f32 %v5389_v13  ;;  %5550 = vmatprep.subr.bf16.mxu0 %v15259_v40  ;;  %5594 = vmatpush2.bf16.msra.mxu1 %v15265_v49  ;;  %19418 = vst [vmem:[#allocation118_spill] sm:$0xff] %v15283_v21  ;;  %19419 = vst [vmem:[#allocation119_spill] sm:$0xff] %v15289_v18  ;;  %v19422_v49 = vld [vmem:[#allocation82_spill] sm:$0xff] }
 0x493   :  { %5595 = vmatprep.subr.bf16.mxu1 %v15271_v56  ;;  %19420 = vst [vmem:[#allocation120_spill] sm:$0xff] %v15295_v15  ;;  %v15302_v56 = vld [vmem:[%s18481_s3 + $0x220] ss:$24 sps:$4 sm:$0xff]   ;;  %v5344_v40 = vunpack.c.l.bf16 %v19422_v49 }
 0x494   :  { %19421 = vst [vmem:[#allocation121_spill] sm:$0xff] %v15302_v56 }
 0x495   :  { %5551 = vmatpush2.bf16.msra.mxu0 %v15277_v28 }
 0x496   :  { %5552 = vmatprep.subr.bf16.mxu0 %v15283_v21  ;;  %5596 = vmatpush2.bf16.msra.mxu1 %v15289_v18 }
 0x497   :  { %v5217_v3 = vpop.f32.mrf.mxu1  ;;  %5597 = vmatprep.subr.bf16.mxu1 %v15295_v15 }
 0x498   :  { %v10064_v12 = vpop.eup %10063  ;;  %v5408_v13 = vadd.f32 %v5217_v3, %v19264_v45  ;;  %v15310_v3 = vld [vmem:[%s18481_s3 + $0x1f4] ss:$24 sps:$4 sm:$0xff]  }
 0x499   :  { %v10066_v25 = vpop.eup %10065  ;;  %v5386_v21 = vadd.f32 1.0, %v10064_v12  ;;  %v5219_v28 = vpop.f32.mrf.mxu1  ;;  %5553 = vmatpush2.bf16.msra.mxu0 %v15302_v56  ;;  %19423 = vst [vmem:[#allocation122_spill] sm:$0xff] %v15310_v3  ;;  %v15316_v12 = vld [vmem:[%s18481_s3 + $0x510] ss:$24 sps:$4 sm:$0xff]  }
 0x49a   :  { %v10068_v18 = vpop.eup %10067  ;;  %v5412_v16 = vmul.f32 %v10066_v25, %v5408_v13  ;;  %v5409_v5 = vadd.f32 %v5219_v28, %v19267_v32  ;;  %5554 = vmatprep.subr.bf16.mxu0 %v15310_v3  ;;  %19424 = vst [vmem:[#allocation123_spill] sm:$0xff] %v15316_v12  ;;  %5598 = vmatpush2.bf16.msra.mxu1 %v15316_v12  ;;  %v15322_v28 = vld [vmem:[%s18481_s3 + $0x4e4] ss:$24 sps:$4 sm:$0xff]   ;;  %v5345_v3 = vunpack.c.h.bf16 %v19422_v49  ;;  %v19426_v12 = vld [vmem:[#allocation84_spill] sm:$0xff] }
 0x49b   :  { %v10070_v56 = vpop.eup %10069  ;;  %10079 = vrcp.f32 %v5386_v21  ;;  %v5387_v15 = vadd.f32 1.0, %v10068_v18  ;;  %v5221_v13 = vpop.f32.mrf.mxu1  ;;  %19425 = vst [vmem:[#allocation109_spill] sm:$0xff] %v15322_v28  ;;  %5599 = vmatprep.subr.bf16.mxu1 %v15322_v28  ;;  %v5350_v1 = vunpack.c.l.bf16 %v19426_v12 }
 0x49c   :  { %v10072_v25 = vpop.eup %10071  ;;  %v5416_v59 = vadd.f32 %v5412_v16, %v5344_v40  ;;  %v5413_v14 = vmul.f32 %v10070_v56, %v5409_v5  ;;  %v5410_v17 = vadd.f32 %v5221_v13, %v19264_v45  ;;  %v15338_v40 = vld [vmem:[%s18481_s3 + $0x1c4] ss:$24 sps:$4 sm:$0xff]   ;;  %v15344_v56 = vld [vmem:[%s18481_s3 + $0x4e0] ss:$24 sps:$4 sm:$0xff]  }
 0x49d   :  { %v10074_v23 = vpop.eup %10073  ;;  %10081 = vrcp.f32 %v5387_v15  ;;  %v5390_v21 = vadd.f32 1.0, %v10072_v25  ;;  %v5223_v18 = vpop.f32.mrf.mxu1  ;;  %5555 = vmatpush2.bf16.msra.mxu0 %v15331_v9  ;;  %19427 = vst [vmem:[#allocation124_spill] sm:$0xff] %v15344_v56  ;;  %v15357_v13 = vld [vmem:[%s18481_s3 + $0x1c0] ss:$24 sps:$4 sm:$0xff]   ;;  %v15363_v25 = vld [vmem:[%s18481_s3 + $0x194] ss:$24 sps:$4 sm:$0xff]  }
 0x49e   :  { %v10076_v28 = vpop.eup %10075  ;;  %10083 = vtanh.f32 %v5416_v59  ;;  %v5417_v49 = vadd.f32 %v5413_v14, %v5345_v3  ;;  %v5414_v16 = vmul.f32 %v10074_v23, %v5410_v17  ;;  %v5411_v5 = vadd.f32 %v5223_v18, %v19267_v32  ;;  %5556 = vmatprep.subr.bf16.mxu0 %v15338_v40  ;;  %5600 = vmatpush2.bf16.msra.mxu1 %v15344_v56  ;;  %v15350_v23 = vld [vmem:[%s18481_s3 + $0x4b4] ss:$24 sps:$4 sm:$0xff]   ;;  %v15437_v56 = vld [vmem:[%s18481_s3 + $0x3f8] ss:$24 sps:$4 sm:$0xff]  }
 0x49f   :  { %v10078_v15 = vpop.eup %10077  ;;  %10085 = vrcp.f32 %v5390_v21  ;;  %v5391_v14 = vadd.f32 1.0, %v10076_v28  ;;  %19428 = vst [vmem:[#allocation86_spill] sm:$0xff] %v15350_v23  ;;  %5601 = vmatprep.subr.bf16.mxu1 %v15350_v23  ;;  %v5351_v17 = vunpack.c.h.bf16 %v19426_v12  ;;  %19429 = vst [vmem:[#allocation112_spill] sm:$0xff] %v15357_v13  ;;  %v15375_v12 = vld [vmem:[%s18481_s3 + $0x484] ss:$24 sps:$4 sm:$0xff]  }
 0x4a0   :  { %10087 = vtanh.f32 %v5417_v49  ;;  %v5418_v59 = vadd.f32 %v5414_v16, %v5350_v1  ;;  %v5415_v3 = vmul.f32 %v10078_v15, %v5411_v5  ;;  %19430 = vst [vmem:[#allocation125_spill] sm:$0xff] %v15363_v25  ;;  %v15369_v1 = vld [vmem:[%s18481_s3 + $0x4b0] ss:$24 sps:$4 sm:$0xff]   ;;  %19432 = vst [vmem:[#allocation127_spill] sm:$0xff] %v15375_v12  ;;  %v15387_v18 = vld [vmem:[%s18481_s3 + $0x45c] ss:$24 sps:$4 sm:$0xff]  }
 0x4a1   :  { %10089 = vrcp.f32 %v5391_v14  ;;  %5557 = vmatpush2.bf16.msra.mxu0 %v15357_v13  ;;  %19431 = vst [vmem:[#allocation126_spill] sm:$0xff] %v15369_v1  ;;  %v15381_v21 = vld [vmem:[%s18481_s3 + $0x190] ss:$24 sps:$4 sm:$0xff]   ;;  %19434 = vst [vmem:[#allocation128_spill] sm:$0xff] %v15387_v18  ;;  %v15393_v49 = vld [vmem:[%s18481_s3 + $0x480] ss:$24 sps:$4 sm:$0xff]  }
 0x4a2   :  { %10091 = vtanh.f32 %v5418_v59  ;;  %v5419_v28 = vadd.f32 %v5415_v3, %v5351_v17  ;;  %5558 = vmatprep.subr.bf16.mxu0 %v15363_v25  ;;  %5602 = vmatpush2.bf16.msra.mxu1 %v15369_v1  ;;  %19433 = vst [vmem:[#allocation88_spill] sm:$0xff] %v15381_v21  ;;  %19435 = vst [vmem:[#allocation129_spill] sm:$0xff] %v15393_v49  ;;  %v15399_v16 = vld [vmem:[%s18481_s3 + $0x464] ss:$24 sps:$4 sm:$0xff]   ;;  %v15406_v15 = vld [vmem:[%s18481_s3 + $0x458] ss:$24 sps:$4 sm:$0xff]  }
 0x4a3   :  { %5603 = vmatprep.subr.bf16.mxu1 %v15375_v12  ;;  %19436 = vst [vmem:[#allocation130_spill] sm:$0xff] %v15399_v16  ;;  %19437 = vst [vmem:[#allocation131_spill] sm:$0xff] %v15406_v15  ;;  %v15412_v59 = vld [vmem:[%s18481_s3 + $0x42c] ss:$24 sps:$4 sm:$0xff]  }
 0x4a4   :  { %10093 = vtanh.f32 %v5419_v28  ;;  %19438 = vst [vmem:[#allocation132_spill] sm:$0xff] %v15412_v59 }
 0x4a5   :  { %5559 = vmatpush2.bf16.msra.mxu0 %v15381_v21 }
 0x4a6   :  { %5616 = vmatprep.subr.bf16.mxu0 %v15387_v18  ;;  %5604 = vmatpush2.bf16.msra.mxu1 %v15393_v49 }
 0x4a7   :  { %5659 = vmatprep.subr.bf16.mxu1 %v15399_v16 }
 0x4a8   :  { %v10080_v5 = vpop.eup %10079  ;;  %5561 = vmatmul.mubr.bf16.vlgmr.msra.gmra.mxu0 %v14998_v26 }
 0x4a9   :  { %5617 = vmatpush1.bf16.msra.mxu0 %v15406_v15  ;;  %v5424_v14 = vsub.f32 1.0, %v10080_v5  ;;  %v5432_v49 = vmul.f32 %v10080_v5, %v14708_v7  ;;  %v15419_v15 = vld [vmem:[%s18481_s3 + $0x428] ss:$24 sps:$4 sm:$0xff]  }
 0x4aa   :  { %v10082_v17 = vpop.eup %10081  ;;  %5618 = vmatprep.subr.bf16.mxu0 %v15412_v59  ;;  %19439 = vst [vmem:[#allocation133_spill] sm:$0xff] %v15419_v15  ;;  %v15425_v59 = vld [vmem:[%s18481_s3 + $0x3fc] ss:$24 sps:$4 sm:$0xff]  }
 0x4ab   :  { %v10084_v3 = vpop.eup %10083  ;;  %v5425_v28 = vsub.f32 1.0, %v10082_v17  ;;  %v5433_v7 = vmul.f32 %v10082_v17, %v14710_v34  ;;  %v15443_v34 = vld [vmem:[%s18481_s3 + $0x3cc] ss:$24 sps:$4 sm:$0xff]  }
 0x4ac   :  { %v10086_v16 = vpop.eup %10085  ;;  %v5428_v26 = vmul.f32 %v10084_v3, %v5424_v14 }
 0x4ad   :  { %v10088_v18 = vpop.eup %10087  ;;  %5619 = vmatpush1.bf16.msra.mxu0 %v15419_v15  ;;  %v5426_v21 = vsub.f32 1.0, %v10086_v16  ;;  %v5434_v15 = vmul.f32 %v10086_v16, %v14716_v0  ;;  %v15454_v16 = vld [vmem:[%s18481_s3 + $0x3c8] ss:$24 sps:$4 sm:$0xff]  }
 0x4ae   :  { %v10090_v12 = vpop.eup %10089  ;;  %5620 = vmatprep.subr.bf16.mxu0 %v15425_v59  ;;  %v5429_v14 = vmul.f32 %v10088_v18, %v5425_v28  ;;  %v15429_v5 = vadd.f32 %v5432_v49, %v5428_v26  ;;  %v15497_v28 = vld [vmem:[%s18481_s3 + $0x368] ss:$24 sps:$4 sm:$0xff]  }
 0x4af   :  { %v10092_v3 = vpop.eup %10091  ;;  %v5427_v1 = vsub.f32 1.0, %v10090_v12  ;;  %v15503_v26 = vld [vmem:[%s18481_s3 + $0x430] ss:$24 sps:$4 sm:$0xff]  }
 0x4b0   :  { %v15431_v25 = vadd.f32 %v5433_v7, %v5429_v14  ;;  %v5430_v13 = vmul.f32 %v10092_v3, %v5426_v21  ;;  %v5435_v21 = vmul.f32 %v10090_v12, %v14718_v27  ;;  %v15485_v12 = vld [vmem:[%s18481_s3 + $0x36c] ss:$24 sps:$4 sm:$0xff]   ;;  %v15509_v14 = vld [vmem:[%s18481_s3 + $0x33c] ss:$24 sps:$4 sm:$0xff]   ;;  %v15521_v3 = vld [vmem:[%s18481_s3 + $0x338] ss:$24 sps:$4 sm:$0xff]  }
 0x4b1   :  { %v10094_v23 = vpop.eup %10093  ;;  %5621 = vmatpush1.bf16.msra.mxu0 %v15437_v56  ;;  %v15515_v7 = vld [vmem:[%s18481_s3 + $0x404] ss:$24 sps:$4 sm:$0xff]   ;;  %19440 = vst [vmem:[#allocation134_spill] sm:$0xff] %v15521_v3 }
 0x4b2   :  { %5622 = vmatprep.subr.bf16.mxu0 %v15443_v34  ;;  %v5431_v18 = vmul.f32 %v10094_v23, %v5427_v1  ;;  %v15447_v49 = vadd.f32 %v5434_v15, %v5430_v13  ;;  %v15462_v23 = vld [vmem:[%s18481_s3 + $0x39c] ss:$24 sps:$4 sm:$0xff]   ;;  %v15473_v13 = vld [vmem:[%s18481_s3 + $0x398] ss:$24 sps:$4 sm:$0xff]  }
 0x4b3   :  { %v15479_v1 = vld [vmem:[%s18481_s3 + $0x460] ss:$24 sps:$4 sm:$0xff]   ;;  %v15491_v15 = vld [vmem:[%s18481_s3 + $0x434] ss:$24 sps:$4 sm:$0xff]  }
 0x4b4   :  { %v15449_v0 = vadd.f32 %v5435_v21, %v5431_v18  ;;  %v15467_v27 = vpack.c.bf16 %v15447_v49, %v15429_v5  ;;  %v15527_v18 = vld [vmem:[%s18481_s3 + $0x400] ss:$24 sps:$4 sm:$0xff]   ;;  %v15533_v21 = vld [vmem:[%s18481_s3 + $0x30c] ss:$24 sps:$4 sm:$0xff]  }
 0x4b5   :  { %5623 = vmatpush1.bf16.msra.mxu0 %v15454_v16  ;;  %19441 = vst [vmem:[#allocation135_spill] sm:$0xff] %v15527_v18  ;;  %19442 = vst [vmem:[#allocation136_spill] sm:$0xff] %v15533_v21 }
 0x4b6   :  { %v5572_v17 = vpack.c.bf16 %v15449_v0, %v15431_v25  ;;  %5624 = vmatprep.subr.bf16.mxu0 %v15462_v23 }
 0x4b8   :  { %5605 = vmatprep.mubr.bf16.mxu1 %v5572_v17  ;;  %5648 = vmatprep.mubr.bf16.mxu0 %v5572_v17 }
 0x4b9   :  { %5606 = vmatmul.mubr.bf16.vlgmr.msra.gmra.mxu1 %v15467_v27  ;;  %5625 = vmatpush1.bf16.msra.mxu0 %v15473_v13 }
 0x4ba   :  { %5660 = vmatpush1.bf16.msra.mxu1 %v15479_v1  ;;  %5691 = vmatprep.mubr.bf16.mxu1 %v5572_v17  ;;  %v15539_v17 = vld [vmem:[%s18481_s3 + $0x3d4] ss:$24 sps:$4 sm:$0xff]  }
 0x4bb   :  { %5626 = vmatprep.subr.bf16.mxu0 %v15485_v12  ;;  %5661 = vmatprep.subr.bf16.mxu1 %v15491_v15  ;;  %19443 = vst [vmem:[#allocation137_spill] sm:$0xff] %v15539_v17 }
 0x4bd   :  { %5627 = vmatpush1.bf16.msra.mxu0 %v15497_v28 }
 0x4be   :  { %5662 = vmatpush1.bf16.msra.mxu1 %v15503_v26  ;;  %5628 = vmatprep.subr.bf16.mxu0 %v15509_v14 }
 0x4bf   :  { %5663 = vmatprep.subr.bf16.mxu1 %v15515_v7 }
 0x4c1   :  { %5629 = vmatpush1.bf16.msra.mxu0 %v15521_v3  ;;  %v15545_v3 = vld [vmem:[%s18481_s3 + $0x308] ss:$24 sps:$4 sm:$0xff]  }
 0x4c2   :  { %5664 = vmatpush1.bf16.msra.mxu1 %v15527_v18  ;;  %5630 = vmatprep.subr.bf16.mxu0 %v15533_v21  ;;  %19444 = vst [vmem:[#allocation138_spill] sm:$0xff] %v15545_v3  ;;  %v15551_v18 = vld [vmem:[%s18481_s3 + $0x3d0] ss:$24 sps:$4 sm:$0xff]   ;;  %v15557_v21 = vld [vmem:[%s18481_s3 + $0x5dc] ss:$24 sps:$4 sm:$0xff]  }
 0x4c3   :  { %5665 = vmatprep.subr.bf16.mxu1 %v15539_v17  ;;  %19445 = vst [vmem:[#allocation139_spill] sm:$0xff] %v15551_v18  ;;  %19446 = vst [vmem:[#allocation140_spill] sm:$0xff] %v15557_v21  ;;  %v15563_v17 = vld [vmem:[%s18481_s3 + $0x3a4] ss:$24 sps:$4 sm:$0xff]  }
 0x4c4   :  { %19447 = vst [vmem:[#allocation141_spill] sm:$0xff] %v15563_v17 }
 0x4c5   :  { %5631 = vmatpush1.bf16.msra.mxu0 %v15545_v3  ;;  %v15569_v3 = vld [vmem:[%s18481_s3 + $0x5d8] ss:$24 sps:$4 sm:$0xff]  }
 0x4c6   :  { %5666 = vmatpush1.bf16.msra.mxu1 %v15551_v18  ;;  %5632 = vmatprep.subr.bf16.mxu0 %v15557_v21  ;;  %19448 = vst [vmem:[#allocation142_spill] sm:$0xff] %v15569_v3  ;;  %v15575_v18 = vld [vmem:[%s18481_s3 + $0x3a0] ss:$24 sps:$4 sm:$0xff]   ;;  %v15581_v21 = vld [vmem:[%s18481_s3 + $0x5ac] ss:$24 sps:$4 sm:$0xff]  }
 0x4c7   :  { %5667 = vmatprep.subr.bf16.mxu1 %v15563_v17  ;;  %19449 = vst [vmem:[#allocation143_spill] sm:$0xff] %v15575_v18  ;;  %19450 = vst [vmem:[#allocation144_spill] sm:$0xff] %v15581_v21  ;;  %v15587_v17 = vld [vmem:[%s18481_s3 + $0x374] ss:$24 sps:$4 sm:$0xff]  }
 0x4c8   :  { %19451 = vst [vmem:[#allocation145_spill] sm:$0xff] %v15587_v17 }
 0x4c9   :  { %5633 = vmatpush2.bf16.msra.mxu0 %v15569_v3  ;;  %v15593_v3 = vld [vmem:[%s18481_s3 + $0x5a8] ss:$24 sps:$4 sm:$0xff]  }
 0x4ca   :  { %5668 = vmatpush1.bf16.msra.mxu1 %v15575_v18  ;;  %5634 = vmatprep.subr.bf16.mxu0 %v15581_v21  ;;  %19452 = vst [vmem:[#allocation146_spill] sm:$0xff] %v15593_v3  ;;  %v15599_v18 = vld [vmem:[%s18481_s3 + $0x370] ss:$24 sps:$4 sm:$0xff]   ;;  %v15605_v21 = vld [vmem:[%s18481_s3 + $0x57c] ss:$24 sps:$4 sm:$0xff]  }
 0x4cb   :  { %5669 = vmatprep.subr.bf16.mxu1 %v15587_v17  ;;  %19453 = vst [vmem:[#allocation147_spill] sm:$0xff] %v15599_v18  ;;  %19454 = vst [vmem:[#allocation148_spill] sm:$0xff] %v15605_v21  ;;  %v15611_v17 = vld [vmem:[%s18481_s3 + $0x344] ss:$24 sps:$4 sm:$0xff]  }
 0x4cc   :  { %19455 = vst [vmem:[#allocation149_spill] sm:$0xff] %v15611_v17 }
 0x4cd   :  { %5635 = vmatpush2.bf16.msra.mxu0 %v15593_v3  ;;  %v15617_v3 = vld [vmem:[%s18481_s3 + $0x578] ss:$24 sps:$4 sm:$0xff]  }
 0x4ce   :  { %5670 = vmatpush1.bf16.msra.mxu1 %v15599_v18  ;;  %5636 = vmatprep.subr.bf16.mxu0 %v15605_v21  ;;  %19456 = vst [vmem:[#allocation150_spill] sm:$0xff] %v15617_v3  ;;  %v15623_v18 = vld [vmem:[%s18481_s3 + $0x340] ss:$24 sps:$4 sm:$0xff]   ;;  %v15629_v21 = vld [vmem:[%s18481_s3 + $0x54c] ss:$24 sps:$4 sm:$0xff]  }
 0x4cf   :  { %5671 = vmatprep.subr.bf16.mxu1 %v15611_v17  ;;  %19457 = vst [vmem:[#allocation151_spill] sm:$0xff] %v15623_v18  ;;  %19458 = vst [vmem:[#allocation152_spill] sm:$0xff] %v15629_v21  ;;  %v15635_v17 = vld [vmem:[%s18481_s3 + $0x314] ss:$24 sps:$4 sm:$0xff]  }
 0x4d0   :  { %19459 = vst [vmem:[#allocation153_spill] sm:$0xff] %v15635_v17 }
 0x4d1   :  { %5637 = vmatpush2.bf16.msra.mxu0 %v15617_v3  ;;  %v15641_v3 = vld [vmem:[%s18481_s3 + $0x548] ss:$24 sps:$4 sm:$0xff]  }
 0x4d2   :  { %5672 = vmatpush1.bf16.msra.mxu1 %v15623_v18  ;;  %5638 = vmatprep.subr.bf16.mxu0 %v15629_v21  ;;  %19460 = vst [vmem:[#allocation154_spill] sm:$0xff] %v15641_v3  ;;  %v15647_v18 = vld [vmem:[%s18481_s3 + $0x310] ss:$24 sps:$4 sm:$0xff]   ;;  %v15653_v21 = vld [vmem:[%s18481_s3 + $0x51c] ss:$24 sps:$4 sm:$0xff]  }
 0x4d3   :  { %5673 = vmatprep.subr.bf16.mxu1 %v15635_v17  ;;  %19461 = vst [vmem:[#allocation155_spill] sm:$0xff] %v15647_v18  ;;  %19462 = vst [vmem:[#allocation156_spill] sm:$0xff] %v15653_v21  ;;  %v15659_v17 = vld [vmem:[%s18481_s3 + $0x5e4] ss:$24 sps:$4 sm:$0xff]  }
 0x4d4   :  { %19463 = vst [vmem:[#allocation157_spill] sm:$0xff] %v15659_v17 }
 0x4d5   :  { %5639 = vmatpush2.bf16.msra.mxu0 %v15641_v3  ;;  %v15665_v3 = vld [vmem:[%s18481_s3 + $0x518] ss:$24 sps:$4 sm:$0xff]  }
 0x4d6   :  { %5674 = vmatpush1.bf16.msra.mxu1 %v15647_v18  ;;  %5640 = vmatprep.subr.bf16.mxu0 %v15653_v21  ;;  %19464 = vst [vmem:[#allocation158_spill] sm:$0xff] %v15665_v3  ;;  %v15671_v18 = vld [vmem:[%s18481_s3 + $0x5e0] ss:$24 sps:$4 sm:$0xff]   ;;  %v15677_v21 = vld [vmem:[%s18481_s3 + $0x4ec] ss:$24 sps:$4 sm:$0xff]  }
 0x4d7   :  { %5675 = vmatprep.subr.bf16.mxu1 %v15659_v17  ;;  %19465 = vst [vmem:[#allocation159_spill] sm:$0xff] %v15671_v18  ;;  %19466 = vst [vmem:[#allocation160_spill] sm:$0xff] %v15677_v21  ;;  %v15683_v17 = vld [vmem:[%s18481_s3 + $0x5b4] ss:$24 sps:$4 sm:$0xff]  }
 0x4d8   :  { %19467 = vst [vmem:[#allocation161_spill] sm:$0xff] %v15683_v17 }
 0x4d9   :  { %5641 = vmatpush2.bf16.msra.mxu0 %v15665_v3  ;;  %v15689_v3 = vld [vmem:[%s18481_s3 + $0x4e8] ss:$24 sps:$4 sm:$0xff]  }
 0x4da   :  { %5676 = vmatpush2.bf16.msra.mxu1 %v15671_v18  ;;  %5642 = vmatprep.subr.bf16.mxu0 %v15677_v21  ;;  %19468 = vst [vmem:[#allocation162_spill] sm:$0xff] %v15689_v3  ;;  %v15695_v18 = vld [vmem:[%s18481_s3 + $0x5b0] ss:$24 sps:$4 sm:$0xff]   ;;  %v15701_v21 = vld [vmem:[%s18481_s3 + $0x4bc] ss:$24 sps:$4 sm:$0xff]  }
 0x4db   :  { %5677 = vmatprep.subr.bf16.mxu1 %v15683_v17  ;;  %19469 = vst [vmem:[#allocation163_spill] sm:$0xff] %v15695_v18  ;;  %19470 = vst [vmem:[#allocation164_spill] sm:$0xff] %v15701_v21  ;;  %v15707_v17 = vld [vmem:[%s18481_s3 + $0x584] ss:$24 sps:$4 sm:$0xff]  }
 0x4dc   :  { %19471 = vst [vmem:[#allocation165_spill] sm:$0xff] %v15707_v17 }
 0x4dd   :  { %5643 = vmatpush2.bf16.msra.mxu0 %v15689_v3  ;;  %v15713_v3 = vld [vmem:[%s18481_s3 + $0x4b8] ss:$24 sps:$4 sm:$0xff]  }
 0x4de   :  { %5678 = vmatpush2.bf16.msra.mxu1 %v15695_v18  ;;  %5644 = vmatprep.subr.bf16.mxu0 %v15701_v21  ;;  %19472 = vst [vmem:[#allocation166_spill] sm:$0xff] %v15713_v3  ;;  %v15719_v18 = vld [vmem:[%s18481_s3 + $0x580] ss:$24 sps:$4 sm:$0xff]   ;;  %v15725_v21 = vld [vmem:[%s18481_s3 + $0x48c] ss:$24 sps:$4 sm:$0xff]  }
 0x4df   :  { %5679 = vmatprep.subr.bf16.mxu1 %v15707_v17  ;;  %19473 = vst [vmem:[#allocation167_spill] sm:$0xff] %v15719_v18  ;;  %19474 = vst [vmem:[#allocation168_spill] sm:$0xff] %v15725_v21  ;;  %v15731_v17 = vld [vmem:[%s18481_s3 + $0x554] ss:$24 sps:$4 sm:$0xff]  }
 0x4e0   :  { %19475 = vst [vmem:[#allocation169_spill] sm:$0xff] %v15731_v17 }
 0x4e1   :  { %5645 = vmatpush2.bf16.msra.mxu0 %v15713_v3  ;;  %v15737_v3 = vld [vmem:[%s18481_s3 + $0x488] ss:$24 sps:$4 sm:$0xff]  }
 0x4e2   :  { %5680 = vmatpush2.bf16.msra.mxu1 %v15719_v18  ;;  %5646 = vmatprep.subr.bf16.mxu0 %v15725_v21  ;;  %19476 = vst [vmem:[#allocation170_spill] sm:$0xff] %v15737_v3  ;;  %v15743_v18 = vld [vmem:[%s18481_s3 + $0x550] ss:$24 sps:$4 sm:$0xff]   ;;  %v15749_v21 = vld [vmem:[%s18481_s3 + $0x154] ss:$24 sps:$4 sm:$0xff]  }
 0x4e3   :  { %5681 = vmatprep.subr.bf16.mxu1 %v15731_v17  ;;  %19477 = vst [vmem:[#allocation171_spill] sm:$0xff] %v15743_v18  ;;  %19478 = vst [vmem:[#allocation172_spill] sm:$0xff] %v15749_v21  ;;  %v15755_v17 = vld [vmem:[%s18481_s3 + $0x524] ss:$24 sps:$4 sm:$0xff]  }
 0x4e4   :  { %19479 = vst [vmem:[#allocation173_spill] sm:$0xff] %v15755_v17 }
 0x4e5   :  { %5647 = vmatpush2.bf16.msra.mxu0 %v15737_v3  ;;  %v15780_v3 = vld [vmem:[%s18481_s3 + $0x4f4] ss:$24 sps:$4 sm:$0xff]  }
 0x4e6   :  { %5682 = vmatpush2.bf16.msra.mxu1 %v15743_v18  ;;  %5918 = vmatprep.subr.bf16.mxu0 %v15749_v21  ;;  %v15762_v18 = vld [vmem:[%s18481_s3 + $0x150] ss:$24 sps:$4 sm:$0xff]   ;;  %v15768_v21 = vld [vmem:[%s18481_s3 + $0x520] ss:$24 sps:$4 sm:$0xff]   ;;  %19483 = vst [vmem:[#allocation177_spill] sm:$0xff] %v15780_v3 }
 0x4e7   :  { %5683 = vmatprep.subr.bf16.mxu1 %v15755_v17  ;;  %19480 = vst [vmem:[#allocation174_spill] sm:$0xff] %v15762_v18  ;;  %19481 = vst [vmem:[#allocation175_spill] sm:$0xff] %v15768_v21  ;;  %v15774_v17 = vld [vmem:[%s18481_s3 + $0x124] ss:$24 sps:$4 sm:$0xff]  }
 0x4e8   :  { %5649 = vmatmul.mubr.bf16.vlgmr.msra.gmra.mxu0 %v15467_v27  ;;  %19482 = vst [vmem:[#allocation176_spill] sm:$0xff] %v15774_v17 }
 0x4e9   :  { %5919 = vmatpush1.bf16.msra.mxu0 %v15762_v18  ;;  %v15786_v18 = vld [vmem:[%s18481_s3 + $0x120] ss:$24 sps:$4 sm:$0xff]  }
 0x4ea   :  { %5684 = vmatpush2.bf16.msra.mxu1 %v15768_v21  ;;  %5920 = vmatprep.subr.bf16.mxu0 %v15774_v17  ;;  %19484 = vst [vmem:[#allocation178_spill] sm:$0xff] %v15786_v18  ;;  %v15792_v21 = vld [vmem:[%s18481_s3 + $0x4f0] ss:$24 sps:$4 sm:$0xff]   ;;  %v15798_v17 = vld [vmem:[%s18481_s3 + $0xf4] ss:$24 sps:$4 sm:$0xff]  }
 0x4eb   :  { %5685 = vmatprep.subr.bf16.mxu1 %v15780_v3  ;;  %19485 = vst [vmem:[#allocation179_spill] sm:$0xff] %v15792_v21  ;;  %19486 = vst [vmem:[#allocation180_spill] sm:$0xff] %v15798_v17  ;;  %v15804_v3 = vld [vmem:[%s18481_s3 + $0x4c4] ss:$24 sps:$4 sm:$0xff]  }
 0x4ec   :  { %19487 = vst [vmem:[#allocation181_spill] sm:$0xff] %v15804_v3 }
 0x4ed   :  { %5921 = vmatpush1.bf16.msra.mxu0 %v15786_v18  ;;  %v15810_v18 = vld [vmem:[%s18481_s3 + $0xf0] ss:$24 sps:$4 sm:$0xff]  }
 0x4ee   :  { %5686 = vmatpush2.bf16.msra.mxu1 %v15792_v21  ;;  %5922 = vmatprep.subr.bf16.mxu0 %v15798_v17  ;;  %19488 = vst [vmem:[#allocation182_spill] sm:$0xff] %v15810_v18  ;;  %v15816_v21 = vld [vmem:[%s18481_s3 + $0x4c0] ss:$24 sps:$4 sm:$0xff]   ;;  %v15822_v17 = vld [vmem:[%s18481_s3 + $0xc4] ss:$24 sps:$4 sm:$0xff]  }
 0x4ef   :  { %5687 = vmatprep.subr.bf16.mxu1 %v15804_v3  ;;  %19489 = vst [vmem:[#allocation183_spill] sm:$0xff] %v15816_v21  ;;  %19490 = vst [vmem:[#allocation184_spill] sm:$0xff] %v15822_v17  ;;  %v15828_v3 = vld [vmem:[%s18481_s3 + $0x494] ss:$24 sps:$4 sm:$0xff]  }
 0x4f0   :  { %19491 = vst [vmem:[#allocation185_spill] sm:$0xff] %v15828_v3 }
 0x4f1   :  { %5923 = vmatpush1.bf16.msra.mxu0 %v15810_v18  ;;  %v15834_v18 = vld [vmem:[%s18481_s3 + $0xc0] ss:$24 sps:$4 sm:$0xff]  }
 0x4f2   :  { %5688 = vmatpush2.bf16.msra.mxu1 %v15816_v21  ;;  %5924 = vmatprep.subr.bf16.mxu0 %v15822_v17  ;;  %v15840_v21 = vld [vmem:[%s18481_s3 + $0x490] ss:$24 sps:$4 sm:$0xff]   ;;  %v15846_v17 = vld [vmem:[%s18481_s3 + $0x94] ss:$24 sps:$4 sm:$0xff]  }
 0x4f3   :  { %5689 = vmatprep.subr.bf16.mxu1 %v15828_v3  ;;  %19492 = vst [vmem:[#allocation186_spill] sm:$0xff] %v15840_v21  ;;  %19493 = vst [vmem:[#allocation187_spill] sm:$0xff] %v15846_v17  ;;  %v15852_v3 = vld [vmem:[%s18481_s3 + $0x15c] ss:$24 sps:$4 sm:$0xff]  }
 0x4f4   :  { %19494 = vst [vmem:[#allocation188_spill] sm:$0xff] %v15852_v3 }
 0x4f5   :  { %5925 = vmatpush1.bf16.msra.mxu0 %v15834_v18 }
 0x4f6   :  { %5690 = vmatpush2.bf16.msra.mxu1 %v15840_v21  ;;  %5926 = vmatprep.subr.bf16.mxu0 %v15846_v17  ;;  %v15859_v21 = vld [vmem:[%s18481_s3 + $0x90] ss:$24 sps:$4 sm:$0xff]  }
 0x4f7   :  { %5961 = vmatprep.subr.bf16.mxu1 %v15852_v3  ;;  %19495 = vst [vmem:[#allocation189_spill] sm:$0xff] %v15859_v21  ;;  %v15865_v17 = vld [vmem:[%s18481_s3 + $0x158] ss:$24 sps:$4 sm:$0xff]   ;;  %v15871_v3 = vld [vmem:[%s18481_s3 + $0x64] ss:$24 sps:$4 sm:$0xff]  }
 0x4f8   :  { %19496 = vst [vmem:[#allocation190_spill] sm:$0xff] %v15865_v17  ;;  %19497 = vst [vmem:[#allocation191_spill] sm:$0xff] %v15871_v3 }
 0x4f9   :  { %5692 = vmatmul.mubr.bf16.vlgmr.msra.gmra.mxu1 %v15467_v27  ;;  %5927 = vmatpush1.bf16.msra.mxu0 %v15859_v21  ;;  %v15877_v27 = vld [vmem:[%s18481_s3 + $0x12c] ss:$24 sps:$4 sm:$0xff]   ;;  %v15883_v21 = vld [vmem:[%s18481_s3 + $0x60] ss:$24 sps:$4 sm:$0xff]  }
 0x4fa   :  { %5962 = vmatpush1.bf16.msra.mxu1 %v15865_v17  ;;  %5928 = vmatprep.subr.bf16.mxu0 %v15871_v3  ;;  %19498 = vst [vmem:[#allocation192_spill] sm:$0xff] %v15877_v27  ;;  %19499 = vst [vmem:[#allocation193_spill] sm:$0xff] %v15883_v21  ;;  %v15889_v17 = vld [vmem:[%s18481_s3 + $0x128] ss:$24 sps:$4 sm:$0xff]   ;;  %v15895_v3 = vld [vmem:[%s18481_s3 + $0x34] ss:$24 sps:$4 sm:$0xff]  }
 0x4fb   :  { %5963 = vmatprep.subr.bf16.mxu1 %v15877_v27  ;;  %19500 = vst [vmem:[#allocation194_spill] sm:$0xff] %v15889_v17  ;;  %19501 = vst [vmem:[#allocation195_spill] sm:$0xff] %v15895_v3  ;;  %v15901_v27 = vld [vmem:[%s18481_s3 + $0xfc] ss:$24 sps:$4 sm:$0xff]  }
 0x4fc   :  { %19502 = vst [vmem:[#allocation196_spill] sm:$0xff] %v15901_v27 }
 0x4fd   :  { %5929 = vmatpush1.bf16.msra.mxu0 %v15883_v21  ;;  %v15907_v21 = vld [vmem:[%s18481_s3 + $0x30] ss:$24 sps:$4 sm:$0xff]  }
 0x4fe   :  { %5964 = vmatpush1.bf16.msra.mxu1 %v15889_v17  ;;  %5930 = vmatprep.subr.bf16.mxu0 %v15895_v3  ;;  %19503 = vst [vmem:[#allocation197_spill] sm:$0xff] %v15907_v21  ;;  %v15913_v17 = vld [vmem:[%s18481_s3 + $0xf8] ss:$24 sps:$4 sm:$0xff]   ;;  %v15919_v3 = vld [vmem:[%s18481_s3 + $0x4] ss:$24 sps:$4 sm:$0xff]  }
 0x4ff   :  { %5965 = vmatprep.subr.bf16.mxu1 %v15901_v27  ;;  %19504 = vst [vmem:[#allocation198_spill] sm:$0xff] %v15913_v17  ;;  %19505 = vst [vmem:[#allocation199_spill] sm:$0xff] %v15919_v3  ;;  %v15925_v27 = vld [vmem:[%s18481_s3 + $0xcc] ss:$24 sps:$4 sm:$0xff]  }
 0x500   :  { %19506 = vst [vmem:[#allocation200_spill] sm:$0xff] %v15925_v27 }
 0x501   :  { %5931 = vmatpush1.bf16.msra.mxu0 %v15907_v21  ;;  %v15931_v21 = vld [vmem:[%s18481_s3] ss:$24 sps:$4 sm:$0xff]  }
 0x502   :  { %5966 = vmatpush1.bf16.msra.mxu1 %v15913_v17  ;;  %5932 = vmatprep.subr.bf16.mxu0 %v15919_v3  ;;  %19507 = vst [vmem:[#allocation201_spill] sm:$0xff] %v15931_v21  ;;  %v15937_v17 = vld [vmem:[%s18481_s3 + $0xc8] ss:$24 sps:$4 sm:$0xff]   ;;  %v15943_v3 = vld [vmem:[%s18481_s3 + $0x2d4] ss:$24 sps:$4 sm:$0xff]  }
 0x503   :  { %5967 = vmatprep.subr.bf16.mxu1 %v15925_v27  ;;  %19508 = vst [vmem:[#allocation202_spill] sm:$0xff] %v15937_v17  ;;  %19509 = vst [vmem:[#allocation203_spill] sm:$0xff] %v15943_v3  ;;  %v15949_v27 = vld [vmem:[%s18481_s3 + $0x9c] ss:$24 sps:$4 sm:$0xff]  }
 0x504   :  { %19510 = vst [vmem:[#allocation204_spill] sm:$0xff] %v15949_v27 }
 0x505   :  { %5933 = vmatpush1.bf16.msra.mxu0 %v15931_v21  ;;  %v15955_v21 = vld [vmem:[%s18481_s3 + $0x2d0] ss:$24 sps:$4 sm:$0xff]  }
 0x506   :  { %5968 = vmatpush1.bf16.msra.mxu1 %v15937_v17  ;;  %5934 = vmatprep.subr.bf16.mxu0 %v15943_v3  ;;  %19511 = vst [vmem:[#allocation205_spill] sm:$0xff] %v15955_v21  ;;  %v15961_v17 = vld [vmem:[%s18481_s3 + $0x98] ss:$24 sps:$4 sm:$0xff]   ;;  %v15967_v3 = vld [vmem:[%s18481_s3 + $0x2a4] ss:$24 sps:$4 sm:$0xff]  }
 0x507   :  { %5969 = vmatprep.subr.bf16.mxu1 %v15949_v27  ;;  %19512 = vst [vmem:[#allocation206_spill] sm:$0xff] %v15961_v17  ;;  %v15973_v27 = vld [vmem:[%s18481_s3 + $0x6c] ss:$24 sps:$4 sm:$0xff]  }
 0x508   :  { %19513 = vst [vmem:[#allocation207_spill] sm:$0xff] %v15973_v27 }
 0x509   :  { %5935 = vmatpush2.bf16.msra.mxu0 %v15955_v21  ;;  %v15979_v21 = vld [vmem:[%s18481_s3 + $0x2a0] ss:$24 sps:$4 sm:$0xff]  }
 0x50a   :  { %5970 = vmatpush1.bf16.msra.mxu1 %v15961_v17  ;;  %5936 = vmatprep.subr.bf16.mxu0 %v15967_v3  ;;  %19514 = vst [vmem:[#allocation208_spill] sm:$0xff] %v15979_v21  ;;  %v15985_v17 = vld [vmem:[%s18481_s3 + $0x68] ss:$24 sps:$4 sm:$0xff]  }
 0x50b   :  { %5971 = vmatprep.subr.bf16.mxu1 %v15973_v27  ;;  %v15992_v27 = vld [vmem:[%s18481_s3 + $0x3c] ss:$24 sps:$4 sm:$0xff]  }
 0x50d   :  { %5937 = vmatpush2.bf16.msra.mxu0 %v15979_v21  ;;  %v15999_v21 = vld [vmem:[%s18481_s3 + $0x38] ss:$24 sps:$4 sm:$0xff]  }
 0x50e   :  { %5972 = vmatpush1.bf16.msra.mxu1 %v15985_v17  ;;  %5938 = vmatprep.subr.bf16.mxu0 %v14820_v35  ;;  %v16006_v35 = vld [vmem:[%s18481_s3 + $0xc] ss:$24 sps:$4 sm:$0xff]  }
 0x50f   :  { %5973 = vmatprep.subr.bf16.mxu1 %v15992_v27 }
 0x511   :  { %5939 = vmatpush2.bf16.msra.mxu0 %v14827_v60  ;;  %v16013_v60 = vld [vmem:[%s18481_s3 + $0x8] ss:$24 sps:$4 sm:$0xff]  }
 0x512   :  { %5974 = vmatpush1.bf16.msra.mxu1 %v15999_v21  ;;  %5940 = vmatprep.subr.bf16.mxu0 %v14834_v50  ;;  %19515 = vst [vmem:[#allocation209_spill] sm:$0xff] %v16013_v60  ;;  %v16020_v50 = vld [vmem:[%s18481_s3 + $0x2dc] ss:$24 sps:$4 sm:$0xff]  }
 0x513   :  { %5975 = vmatprep.subr.bf16.mxu1 %v16006_v35  ;;  %19516 = vst [vmem:[#allocation210_spill] sm:$0xff] %v16020_v50 }
 0x515   :  { %5941 = vmatpush2.bf16.msra.mxu0 %v14841_v10  ;;  %v16027_v10 = vld [vmem:[%s18481_s3 + $0x2d8] ss:$24 sps:$4 sm:$0xff]  }
 0x516   :  { %5976 = vmatpush1.bf16.msra.mxu1 %v16013_v60  ;;  %5942 = vmatprep.subr.bf16.mxu0 %v14848_v58  ;;  %19517 = vst [vmem:[#allocation211_spill] sm:$0xff] %v16027_v10  ;;  %v16034_v58 = vld [vmem:[%s18481_s3 + $0x2ac] ss:$24 sps:$4 sm:$0xff]  }
 0x517   :  { %5977 = vmatprep.subr.bf16.mxu1 %v16020_v50  ;;  %19518 = vst [vmem:[#allocation212_spill] sm:$0xff] %v16034_v58  ;;  %v19525_v50 = vld [vmem:[#allocation14_spill] sm:$0xff] }
 0x519   :  { %5943 = vmatpush2.bf16.msra.mxu0 %v14855_v24  ;;  %v16041_v24 = vld [vmem:[%s18481_s3 + $0x2a8] ss:$24 sps:$4 sm:$0xff]  }
 0x51a   :  { %5978 = vmatpush2.bf16.msra.mxu1 %v16027_v10  ;;  %5944 = vmatprep.subr.bf16.mxu0 %v14862_v46  ;;  %19519 = vst [vmem:[#allocation213_spill] sm:$0xff] %v16041_v24  ;;  %v16048_v46 = vld [vmem:[%s18481_s3 + $0x27c] ss:$24 sps:$4 sm:$0xff]  }
 0x51b   :  { %5979 = vmatprep.subr.bf16.mxu1 %v16034_v58  ;;  %19520 = vst [vmem:[#allocation214_spill] sm:$0xff] %v16048_v46 }
 0x51d   :  { %5945 = vmatpush2.bf16.msra.mxu0 %v14869_v39  ;;  %v16055_v39 = vld [vmem:[%s18481_s3 + $0x278] ss:$24 sps:$4 sm:$0xff]  }
 0x51e   :  { %5980 = vmatpush2.bf16.msra.mxu1 %v16041_v24  ;;  %5946 = vmatprep.subr.bf16.mxu0 %v14876_v37  ;;  %19521 = vst [vmem:[#allocation215_spill] sm:$0xff] %v16055_v39  ;;  %v16062_v37 = vld [vmem:[%s18481_s3 + $0x24c] ss:$24 sps:$4 sm:$0xff]  }
 0x51f   :  { %5981 = vmatprep.subr.bf16.mxu1 %v16048_v46  ;;  %19522 = vst [vmem:[#allocation216_spill] sm:$0xff] %v16062_v37 }
 0x521   :  { %5947 = vmatpush2.bf16.msra.mxu0 %v14883_v57 }
 0x522   :  { %5982 = vmatpush2.bf16.msra.mxu1 %v16055_v39  ;;  %5948 = vmatprep.subr.bf16.mxu0 %v14890_v47 }
 0x523   :  { %5983 = vmatprep.subr.bf16.mxu1 %v16062_v37 }
 0x525   :  { %5949 = vmatpush2.bf16.msra.mxu0 %v14897_v53  ;;  %v19523_v53 = vld [vmem:[#allocation13_spill] sm:$0xff] }
 0x526   :  { %5984 = vmatpush2.bf16.msra.mxu1 %v14903_v11  ;;  %6004 = vmatprep.subr.bf16.mxu0 %v14909_v22  ;;  %v5716_v11 = vunpack.c.l.bf16 %v19523_v53 }
 0x527   :  { %5985 = vmatprep.subr.bf16.mxu1 %v14915_v43 }
 0x528   :  { %v5476_v57 = vpop.f32.mrf.mxu0 }
 0x529   :  { %v5728_v43 = vadd.f32 %v5716_v11, %v5476_v57  ;;  %v5718_v57 = vunpack.c.l.bf16 %v19525_v50  ;;  %v5719_v11 = vunpack.c.h.bf16 %v19525_v50 }
 0x52a   :  { %5986 = vmatpush2.bf16.msra.mxu1 %v14921_v29  ;;  %v5478_v47 = vpop.f32.mrf.mxu0  ;;  %v5717_v29 = vunpack.c.h.bf16 %v19523_v53 }
 0x52b   :  { %5987 = vmatprep.subr.bf16.mxu1 %v14927_v33  ;;  %v8945_v39 = vmul.f32 -1.442695, %v5728_v43  ;;  %v19526_v43 = vld [vmem:[#allocation16_spill] sm:$0xff] }
 0x52c   :  { %v5480_v22 = vpop.f32.mrf.mxu0  ;;  %v5729_v33 = vadd.f32 %v5717_v29, %v5478_v47  ;;  %v5724_v29 = vunpack.c.l.bf16 %v19526_v43 }
 0x52d   :  { %10095 = vpow2.f32 %v8945_v39 }
 0x52e   :  { %5988 = vmatpush2.bf16.msra.mxu1 %v14933_v61  ;;  %v19524_v61 = vld [vmem:[#allocation15_spill] sm:$0xff] }
 0x52f   :  { %5989 = vmatprep.subr.bf16.mxu1 %v14939_v19  ;;  %v5722_v37 = vunpack.c.l.bf16 %v19524_v61  ;;  %v5482_v19 = vpop.f32.mrf.mxu0 }
 0x531   :  { %v5732_v46 = vadd.f32 %v5722_v37, %v5480_v22 }
 0x532   :  { %5990 = vmatpush2.bf16.msra.mxu1 %v14945_v4  ;;  %v5519_v4 = vpop.f32.mrf.mxu1 }
 0x533   :  { %5991 = vmatprep.subr.bf16.mxu1 %v14951_v63  ;;  %v5723_v63 = vunpack.c.h.bf16 %v19524_v61  ;;  %v8949_v58 = vmul.f32 -1.442695, %v5732_v46  ;;  %v5730_v47 = vadd.f32 %v5718_v57, %v5519_v4 }
 0x535   :  { %v5733_v24 = vadd.f32 %v5723_v63, %v5482_v19  ;;  %v8947_v39 = vmul.f32 -1.442695, %v5730_v47 }
 0x536   :  { %5992 = vmatpush2.bf16.msra.mxu1 %v14957_v41  ;;  %v8946_v41 = vmul.f32 -1.442695, %v5729_v33  ;;  %v5725_v33 = vunpack.c.h.bf16 %v19526_v43 }
 0x537   :  { %6049 = vmatprep.subr.bf16.mxu1 %v14963_v6  ;;  %v5521_v6 = vpop.f32.mrf.mxu1  ;;  %v8950_v10 = vmul.f32 -1.442695, %v5733_v24 }
 0x538   :  { %10097 = vpow2.f32 %v8946_v41  ;;  %v5731_v37 = vadd.f32 %v5719_v11, %v5521_v6 }
 0x539   :  { %10099 = vpow2.f32 %v8949_v58  ;;  %v5523_v53 = vpop.f32.mrf.mxu1 }
 0x53a   :  { %10101 = vpow2.f32 %v8950_v10  ;;  %v5734_v61 = vadd.f32 %v5724_v29, %v5523_v53  ;;  %v8948_v46 = vmul.f32 -1.442695, %v5731_v37  ;;  %v10096_v63 = vpop.eup %10095 }
 0x53b   :  { %v5525_v22 = vpop.f32.mrf.mxu1  ;;  %10103 = vpow2.f32 %v8947_v39  ;;  %v5760_v60 = vadd.f32 1.0, %v10096_v63 }
 0x53c   :  { %v5735_v19 = vadd.f32 %v5725_v33, %v5525_v22  ;;  %v8951_v24 = vmul.f32 -1.442695, %v5734_v61  ;;  %10105 = vpow2.f32 %v8948_v46  ;;  %v19527_v46 = vld [vmem:[#allocation43_spill] sm:$0xff] }
 0x53d   :  { %v5720_v63 = vunpack.c.l.bf16 %v19527_v46 }
 0x53e   :  { %v8952_v58 = vmul.f32 -1.442695, %v5735_v19  ;;  %10107 = vpow2.f32 %v8951_v24 }
 0x540   :  { %10109 = vpow2.f32 %v8952_v58  ;;  %v5721_v58 = vunpack.c.h.bf16 %v19527_v46 }
 0x541   :  { %10111 = vrcp.f32 %v5760_v60 }
 0x545   :  { %v10098_v41 = vpop.eup %10097 }
 0x546   :  { %v10100_v4 = vpop.eup %10099  ;;  %v5761_v50 = vadd.f32 1.0, %v10098_v41 }
 0x547   :  { %v10102_v10 = vpop.eup %10101  ;;  %v5764_v6 = vadd.f32 1.0, %v10100_v4 }
 0x548   :  { %10113 = vrcp.f32 %v5761_v50  ;;  %v5765_v57 = vadd.f32 1.0, %v10102_v10  ;;  %v10104_v53 = vpop.eup %10103 }
 0x549   :  { %10115 = vrcp.f32 %v5764_v6  ;;  %v10106_v47 = vpop.eup %10105  ;;  %v5762_v43 = vadd.f32 1.0, %v10104_v53 }
 0x54a   :  { %10117 = vrcp.f32 %v5765_v57  ;;  %v5763_v22 = vadd.f32 1.0, %v10106_v47  ;;  %v19528_v47 = vld [vmem:[#allocation45_spill] sm:$0xff] }
 0x54b   :  { %v10108_v11 = vpop.eup %10107  ;;  %10119 = vrcp.f32 %v5762_v43 }
 0x54c   :  { %v5766_v39 = vadd.f32 1.0, %v10108_v11  ;;  %10121 = vrcp.f32 %v5763_v22  ;;  %v5726_v11 = vunpack.c.l.bf16 %v19528_v47 }
 0x54d   :  { %v10110_v37 = vpop.eup %10109 }
 0x54e   :  { %v10112_v33 = vpop.eup %10111  ;;  %v5767_v4 = vadd.f32 1.0, %v10110_v37  ;;  %10123 = vrcp.f32 %v5766_v39  ;;  %v5727_v37 = vunpack.c.h.bf16 %v19528_v47 }
 0x555   :  { %v10114_v41 = vpop.eup %10113 }
 0x556   :  { %v10116_v53 = vpop.eup %10115 }
 0x568   :  { %v5562_v29 = vpop.f32.mrf.mxu0 }
 0x569   :  { %v5784_v61 = vadd.f32 %v5562_v29, %v13474_v48 }
 0x56a   :  { %v5564_v19 = vpop.f32.mrf.mxu0 }
 0x56b   :  { %v5788_v60 = vmul.f32 %v10112_v33, %v5784_v61  ;;  %v5785_v24 = vadd.f32 %v5564_v19, %v13479_v55  ;;  %v10118_v19 = vpop.eup %10117 }
 0x56c   :  { %v5566_v50 = vpop.f32.mrf.mxu0 }
 0x56d   :  { %v5792_v10 = vadd.f32 %v5788_v60, %v5720_v63  ;;  %v5789_v6 = vmul.f32 %v10114_v41, %v5785_v24  ;;  %v5786_v57 = vadd.f32 %v5566_v50, %v13474_v48  ;;  %v10120_v60 = vpop.eup %10119 }
 0x56e   :  { %v5568_v29 = vpop.f32.mrf.mxu0  ;;  %v10122_v24 = vpop.eup %10121  ;;  %v5800_v39 = vsub.f32 1.0, %v10120_v60 }
 0x56f   :  { %10125 = vtanh.f32 %v5792_v10  ;;  %v5793_v43 = vadd.f32 %v5789_v6, %v5721_v58  ;;  %v5790_v61 = vmul.f32 %v10116_v53, %v5786_v57  ;;  %v5787_v33 = vadd.f32 %v5568_v29, %v13479_v55  ;;  %v10124_v41 = vpop.eup %10123 }
 0x570   :  { %10127 = vrcp.f32 %v5767_v4  ;;  %v5801_v58 = vsub.f32 1.0, %v10122_v24  ;;  %v5808_v57 = vmul.f32 %v10120_v60, %v14984_v42  ;;  %v5809_v47 = vmul.f32 %v10122_v24, %v14986_v44 }
 0x571   :  { %10129 = vtanh.f32 %v5793_v43  ;;  %v5794_v22 = vadd.f32 %v5790_v61, %v5726_v11  ;;  %v5791_v46 = vmul.f32 %v10118_v19, %v5787_v33  ;;  %v5802_v29 = vsub.f32 1.0, %v10124_v41 }
 0x573   :  { %10131 = vtanh.f32 %v5794_v22  ;;  %v5795_v63 = vadd.f32 %v5791_v46, %v5727_v37  ;;  %v5810_v37 = vmul.f32 %v10124_v41, %v14990_v8 }
 0x575   :  { %10133 = vtanh.f32 %v5795_v63 }
 0x579   :  { %v5607_v24 = vpop.f32.mrf.mxu1 }
 0x57b   :  { %v5609_v8 = vpop.f32.mrf.mxu1 }
 0x57c   :  { %v10126_v50 = vpop.eup %10125 }
 0x57d   :  { %v10128_v10 = vpop.eup %10127  ;;  %v5804_v6 = vmul.f32 %v10126_v50, %v5800_v39  ;;  %v5611_v50 = vpop.f32.mrf.mxu1 }
 0x57e   :  { %v10130_v53 = vpop.eup %10129  ;;  %v5803_v61 = vsub.f32 1.0, %v10128_v10  ;;  %v5811_v63 = vmul.f32 %v10128_v10, %v14992_v2  ;;  %v19529_v2 = vld [vmem:[#allocation48_spill] sm:$0xff] }
 0x57f   :  { %v5805_v4 = vmul.f32 %v10130_v53, %v5801_v58  ;;  %v16095_v11 = vadd.f32 %v5808_v57, %v5804_v6  ;;  %v5816_v41 = vunpack.c.l.bf16 %v19529_v2  ;;  %v5817_v10 = vunpack.c.h.bf16 %v19529_v2  ;;  %v5613_v6 = vpop.f32.mrf.mxu1  ;;  %v19533_v57 = vld [vmem:[#allocation8_spill] sm:$0xff] }
 0x580   :  { %v10132_v43 = vpop.eup %10131  ;;  %v19545_v2 = vld [vmem:[#allocation96_spill] sm:$0xff] }
 0x581   :  { %v16097_v33 = vadd.f32 %v5809_v47, %v5805_v4  ;;  %v5806_v19 = vmul.f32 %v10132_v43, %v5802_v29  ;;  %v19535_v29 = vld [vmem:[#allocation37_spill] sm:$0xff]  ;;  %v19537_v43 = vld [vmem:[#allocation58_spill] sm:$0xff] }
 0x582   :  { %v10134_v22 = vpop.eup %10133 }
 0x583   :  { %v5807_v46 = vmul.f32 %v10134_v22, %v5803_v61  ;;  %v16101_v39 = vadd.f32 %v5810_v37, %v5806_v19  ;;  %v19538_v19 = vld [vmem:[#allocation89_spill] sm:$0xff]  ;;  %v19539_v22 = vld [vmem:[#allocation90_spill] sm:$0xff] }
 0x585   :  { %v16103_v42 = vadd.f32 %v5811_v63, %v5807_v46  ;;  %v16109_v60 = vpack.c.bf16 %v16101_v39, %v16095_v11  ;;  %v19540_v46 = vld [vmem:[#allocation91_spill] sm:$0xff]  ;;  %v19541_v63 = vld [vmem:[#allocation92_spill] sm:$0xff] }
 0x587   :  { %v5917_v44 = vpack.c.bf16 %v16103_v42, %v16097_v33 }
 0x589   :  { %5950 = vmatprep.mubr.bf16.mxu0 %v5917_v44  ;;  %5993 = vmatprep.mubr.bf16.mxu1 %v5917_v44 }
 0x58a   :  { %5951 = vmatmul.mubr.bf16.vlgmr.msra.gmra.mxu0 %v16109_v60  ;;  %5994 = vmatmul.mubr.bf16.vlgmr.msra.gmra.mxu1 %v16109_v60 }
 0x58b   :  { %6005 = vmatpush1.bf16.msra.mxu0 %v15005_v54  ;;  %6036 = vmatprep.mubr.bf16.mxu0 %v5917_v44  ;;  %v5828_v54 = vadd.f32 %v5816_v41, %v5607_v24  ;;  %v19542_v44 = vld [vmem:[#allocation93_spill] sm:$0xff]  ;;  %v19543_v24 = vld [vmem:[#allocation94_spill] sm:$0xff] }
 0x58c   :  { %6006 = vmatprep.subr.bf16.mxu0 %v15011_v31  ;;  %6050 = vmatpush1.bf16.msra.mxu1 %v15017_v38  ;;  %v5829_v31 = vadd.f32 %v5817_v10, %v5609_v8  ;;  %v19530_v38 = vld [vmem:[#allocation50_spill] sm:$0xff]  ;;  %v19544_v8 = vld [vmem:[#allocation95_spill] sm:$0xff]  ;;  %v19546_v41 = vld [vmem:[#allocation97_spill] sm:$0xff] }
 0x58d   :  { %6051 = vmatprep.subr.bf16.mxu1 %v15023_v20  ;;  %v5822_v58 = vunpack.c.l.bf16 %v19530_v38  ;;  %v19531_v20 = vld [vmem:[#allocation7_spill] sm:$0xff]  ;;  %v5823_v53 = vunpack.c.h.bf16 %v19530_v38  ;;  %v19549_v10 = vld [vmem:[#allocation100_spill] sm:$0xff]  ;;  %v19550_v38 = vld [vmem:[#allocation101_spill] sm:$0xff] }
 0x58e   :  { %v8954_v4 = vmul.f32 -1.442695, %v5829_v31 }
 0x58f   :  { %6007 = vmatpush1.bf16.msra.mxu0 %v15029_v30  ;;  %v19532_v30 = vld [vmem:[#allocation6_spill] sm:$0xff]  ;;  %v5833_v47 = vadd.f32 %v5823_v53, %v5613_v6 }
 0x590   :  { %6008 = vmatprep.subr.bf16.mxu0 %v15036_v52  ;;  %6052 = vmatpush1.bf16.msra.mxu1 %v15042_v62  ;;  %v8953_v52 = vmul.f32 -1.442695, %v5828_v54  ;;  %v5832_v62 = vadd.f32 %v5822_v58, %v5611_v50  ;;  %v19547_v50 = vld [vmem:[#allocation98_spill] sm:$0xff]  ;;  %v19548_v54 = vld [vmem:[#allocation99_spill] sm:$0xff]  ;;  %v19551_v58 = vld [vmem:[#allocation77_spill] sm:$0xff] }
 0x591   :  { %6053 = vmatprep.subr.bf16.mxu1 %v15048_v36  ;;  %v19534_v36 = vld [vmem:[#allocation35_spill] sm:$0xff]  ;;  %v8958_v37 = vmul.f32 -1.442695, %v5833_v47  ;;  %v19552_v6 = vld [vmem:[#allocation102_spill] sm:$0xff]  ;;  %v5819_v53 = vunpack.c.h.bf16 %v19551_v58 }
 0x592   :  { %10135 = vpow2.f32 %v8953_v52  ;;  %v8957_v61 = vmul.f32 -1.442695, %v5832_v62 }
 0x593   :  { %6009 = vmatpush1.bf16.msra.mxu0 %v15055_v51  ;;  %v19536_v51 = vld [vmem:[#allocation56_spill] sm:$0xff]  ;;  %10137 = vpow2.f32 %v8954_v4 }
 0x594   :  { %6010 = vmatprep.subr.bf16.mxu0 %v19531_v20  ;;  %6054 = vmatpush1.bf16.msra.mxu1 %v19532_v30  ;;  %10139 = vpow2.f32 %v8957_v61  ;;  %v5818_v20 = vunpack.c.l.bf16 %v19551_v58  ;;  %v19555_v61 = vld [vmem:[#allocation105_spill] sm:$0xff] }
 0x595   :  { %6055 = vmatprep.subr.bf16.mxu1 %v19533_v57  ;;  %10141 = vpow2.f32 %v8958_v37  ;;  %v19553_v57 = vld [vmem:[#allocation103_spill] sm:$0xff]  ;;  %v19560_v58 = vld [vmem:[#allocation85_spill] sm:$0xff] }
 0x597   :  { %6011 = vmatpush1.bf16.msra.mxu0 %v19534_v36  ;;  %v19554_v36 = vld [vmem:[#allocation104_spill] sm:$0xff] }
 0x598   :  { %6012 = vmatprep.subr.bf16.mxu0 %v19535_v29  ;;  %6056 = vmatpush1.bf16.msra.mxu1 %v19536_v51 }
 0x599   :  { %6057 = vmatprep.subr.bf16.mxu1 %v19537_v43 }
 0x59b   :  { %6013 = vmatpush1.bf16.msra.mxu0 %v19538_v19  ;;  %v19556_v19 = vld [vmem:[#allocation79_spill] sm:$0xff] }
 0x59c   :  { %6014 = vmatprep.subr.bf16.mxu0 %v19539_v22  ;;  %6058 = vmatpush1.bf16.msra.mxu1 %v19540_v46  ;;  %v5824_v37 = vunpack.c.l.bf16 %v19556_v19 }
 0x59d   :  { %6059 = vmatprep.subr.bf16.mxu1 %v19541_v63  ;;  %v19557_v63 = vld [vmem:[#allocation106_spill] sm:$0xff] }
 0x59f   :  { %6015 = vmatpush1.bf16.msra.mxu0 %v19542_v44  ;;  %v10136_v31 = vpop.eup %10135  ;;  %v19558_v44 = vld [vmem:[#allocation107_spill] sm:$0xff] }
 0x5a0   :  { %6016 = vmatprep.subr.bf16.mxu0 %v19543_v24  ;;  %6060 = vmatpush1.bf16.msra.mxu1 %v19544_v8  ;;  %v10138_v52 = vpop.eup %10137  ;;  %v5860_v4 = vadd.f32 1.0, %v10136_v31 }
 0x5a1   :  { %6061 = vmatprep.subr.bf16.mxu1 %v19545_v2  ;;  %v10140_v29 = vpop.eup %10139  ;;  %v5861_v22 = vadd.f32 1.0, %v10138_v52  ;;  %v19563_v52 = vld [vmem:[#allocation113_spill] sm:$0xff] }
 0x5a2   :  { %v10142_v24 = vpop.eup %10141 }
 0x5a3   :  { %6017 = vmatpush1.bf16.msra.mxu0 %v19546_v41  ;;  %v5825_v41 = vunpack.c.h.bf16 %v19556_v19 }
 0x5a4   :  { %6018 = vmatprep.subr.bf16.mxu0 %v19547_v50  ;;  %6062 = vmatpush1.bf16.msra.mxu1 %v19548_v54  ;;  %v19559_v50 = vld [vmem:[#allocation108_spill] sm:$0xff]  ;;  %v5864_v54 = vadd.f32 1.0, %v10140_v29  ;;  %v19569_v29 = vld [vmem:[#allocation118_spill] sm:$0xff] }
 0x5a5   :  { %6063 = vmatprep.subr.bf16.mxu1 %v19549_v10 }
 0x5a7   :  { %6019 = vmatpush1.bf16.msra.mxu0 %v19550_v38 }
 0x5a8   :  { %v5650_v30 = vpop.f32.mrf.mxu0  ;;  %6020 = vmatprep.subr.bf16.mxu0 %v19552_v6  ;;  %6064 = vmatpush1.bf16.msra.mxu1 %v19553_v57  ;;  %v19562_v6 = vld [vmem:[#allocation111_spill] sm:$0xff] }
 0x5a9   :  { %v5830_v62 = vadd.f32 %v5818_v20, %v5650_v30  ;;  %6065 = vmatprep.subr.bf16.mxu1 %v19554_v36  ;;  %v5865_v20 = vadd.f32 1.0, %v10142_v24  ;;  %v19561_v30 = vld [vmem:[#allocation110_spill] sm:$0xff]  ;;  %v19566_v36 = vld [vmem:[#allocation115_spill] sm:$0xff] }
 0x5aa   :  { %v5652_v47 = vpop.f32.mrf.mxu0 }
 0x5ab   :  { %v8955_v51 = vmul.f32 -1.442695, %v5830_v62  ;;  %v5831_v43 = vadd.f32 %v5819_v53, %v5652_v47  ;;  %6021 = vmatpush2.bf16.msra.mxu0 %v19555_v61  ;;  %v19564_v62 = vld [vmem:[#allocation114_spill] sm:$0xff]  ;;  %v19565_v53 = vld [vmem:[#allocation87_spill] sm:$0xff]  ;;  %v19568_v47 = vld [vmem:[#allocation117_spill] sm:$0xff] }
 0x5ac   :  { %v5654_v46 = vpop.f32.mrf.mxu0  ;;  %6022 = vmatprep.subr.bf16.mxu0 %v19557_v63  ;;  %6066 = vmatpush2.bf16.msra.mxu1 %v19558_v44  ;;  %v19571_v61 = vld [vmem:[#allocation120_spill] sm:$0xff]  ;;  %v19572_v44 = vld [vmem:[#allocation121_spill] sm:$0xff] }
 0x5ad   :  { %10143 = vpow2.f32 %v8955_v51  ;;  %v8956_v8 = vmul.f32 -1.442695, %v5831_v43  ;;  %v5834_v2 = vadd.f32 %v5824_v37, %v5654_v46  ;;  %6067 = vmatprep.subr.bf16.mxu1 %v19559_v50  ;;  %v19570_v51 = vld [vmem:[#allocation119_spill] sm:$0xff] }
 0x5ae   :  { %10145 = vrcp.f32 %v5860_v4  ;;  %v5656_v10 = vpop.f32.mrf.mxu0  ;;  %v19567_v4 = vld [vmem:[#allocation116_spill] sm:$0xff] }
 0x5af   :  { %10147 = vpow2.f32 %v8956_v8  ;;  %v8959_v31 = vmul.f32 -1.442695, %v5834_v2  ;;  %v5835_v38 = vadd.f32 %v5825_v41, %v5656_v10  ;;  %6023 = vmatpush2.bf16.msra.mxu0 %v19560_v58  ;;  %v19573_v8 = vld [vmem:[#allocation78_spill] sm:$0xff]  ;;  %v19575_v10 = vld [vmem:[#allocation123_spill] sm:$0xff] }
 0x5b0   :  { %10149 = vrcp.f32 %v5861_v22  ;;  %6024 = vmatprep.subr.bf16.mxu0 %v19561_v30  ;;  %6068 = vmatpush2.bf16.msra.mxu1 %v19562_v6  ;;  %v5820_v2 = vunpack.c.l.bf16 %v19573_v8  ;;  %v5821_v6 = vunpack.c.h.bf16 %v19573_v8  ;;  %v19580_v8 = vld [vmem:[#allocation112_spill] sm:$0xff] }
 0x5b1   :  { %10151 = vpow2.f32 %v8959_v31  ;;  %v8960_v57 = vmul.f32 -1.442695, %v5835_v38  ;;  %6069 = vmatprep.subr.bf16.mxu1 %v19563_v52 }
 0x5b2   :  { %10153 = vrcp.f32 %v5864_v54  ;;  %v19574_v54 = vld [vmem:[#allocation122_spill] sm:$0xff] }
 0x5b3   :  { %10155 = vpow2.f32 %v8960_v57  ;;  %6025 = vmatpush2.bf16.msra.mxu0 %v19564_v62 }
 0x5b4   :  { %10157 = vrcp.f32 %v5865_v20  ;;  %6026 = vmatprep.subr.bf16.mxu0 %v19565_v53  ;;  %6070 = vmatpush2.bf16.msra.mxu1 %v19566_v36  ;;  %v19576_v20 = vld [vmem:[#allocation109_spill] sm:$0xff]  ;;  %v19577_v36 = vld [vmem:[#allocation80_spill] sm:$0xff] }
 0x5b5   :  { %6071 = vmatprep.subr.bf16.mxu1 %v19567_v4  ;;  %v5826_v4 = vunpack.c.l.bf16 %v19577_v36 }
 0x5b7   :  { %6027 = vmatpush2.bf16.msra.mxu0 %v19568_v47 }
 0x5b8   :  { %6028 = vmatprep.subr.bf16.mxu0 %v19569_v29  ;;  %6072 = vmatpush2.bf16.msra.mxu1 %v19570_v51 }
 0x5b9   :  { %v5693_v43 = vpop.f32.mrf.mxu1  ;;  %6073 = vmatprep.subr.bf16.mxu1 %v19571_v61 }
 0x5ba   :  { %v10144_v19 = vpop.eup %10143  ;;  %v5884_v37 = vadd.f32 %v5693_v43, %v19264_v45 }
 0x5bb   :  { %v10146_v22 = vpop.eup %10145  ;;  %v5862_v46 = vadd.f32 1.0, %v10144_v19  ;;  %v5695_v63 = vpop.f32.mrf.mxu1  ;;  %6029 = vmatpush2.bf16.msra.mxu0 %v19572_v44  ;;  %v5827_v44 = vunpack.c.h.bf16 %v19577_v36 }
 0x5bc   :  { %v10148_v24 = vpop.eup %10147  ;;  %v5888_v41 = vmul.f32 %v10146_v22, %v5884_v37  ;;  %v5885_v50 = vadd.f32 %v5695_v63, %v19267_v32  ;;  %6030 = vmatprep.subr.bf16.mxu0 %v19574_v54  ;;  %6074 = vmatpush2.bf16.msra.mxu1 %v19575_v10  ;;  %v19578_v37 = vld [vmem:[#allocation124_spill] sm:$0xff]  ;;  %v19579_v63 = vld [vmem:[#allocation86_spill] sm:$0xff] }
 0x5bd   :  { %v10150_v31 = vpop.eup %10149  ;;  %10159 = vrcp.f32 %v5862_v46  ;;  %v5863_v38 = vadd.f32 1.0, %v10148_v24  ;;  %v5697_v58 = vpop.f32.mrf.mxu1  ;;  %6075 = vmatprep.subr.bf16.mxu1 %v19576_v20  ;;  %v19584_v54 = vld [vmem:[#allocation88_spill] sm:$0xff]  ;;  %v19588_v20 = vld [vmem:[#allocation131_spill] sm:$0xff] }
 0x5be   :  { %v10152_v30 = vpop.eup %10151  ;;  %v5892_v57 = vadd.f32 %v5888_v41, %v5820_v2  ;;  %v5889_v52 = vmul.f32 %v10150_v31, %v5885_v50  ;;  %v5886_v62 = vadd.f32 %v5697_v58, %v19264_v45  ;;  %v19581_v41 = vld [vmem:[#allocation125_spill] sm:$0xff]  ;;  %v19583_v50 = vld [vmem:[#allocation127_spill] sm:$0xff]  ;;  %v19585_v10 = vld [vmem:[#allocation128_spill] sm:$0xff] }
 0x5bf   :  { %v10154_v53 = vpop.eup %10153  ;;  %10161 = vrcp.f32 %v5863_v38  ;;  %v5866_v47 = vadd.f32 1.0, %v10152_v30  ;;  %v5699_v29 = vpop.f32.mrf.mxu1  ;;  %6031 = vmatpush2.bf16.msra.mxu0 %v15331_v9  ;;  %v19586_v31 = vld [vmem:[#allocation129_spill] sm:$0xff]  ;;  %v19587_v38 = vld [vmem:[#allocation130_spill] sm:$0xff] }
 0x5c0   :  { %v10156_v51 = vpop.eup %10155  ;;  %10163 = vtanh.f32 %v5892_v57  ;;  %v5893_v43 = vadd.f32 %v5889_v52, %v5821_v6  ;;  %v5890_v61 = vmul.f32 %v10154_v53, %v5886_v62  ;;  %v5887_v19 = vadd.f32 %v5699_v29, %v19267_v32  ;;  %6032 = vmatprep.subr.bf16.mxu0 %v15338_v40  ;;  %6076 = vmatpush2.bf16.msra.mxu1 %v19578_v37  ;;  %v19582_v40 = vld [vmem:[#allocation126_spill] sm:$0xff]  ;;  %v19589_v57 = vld [vmem:[#allocation132_spill] sm:$0xff]  ;;  %v19590_v29 = vld [vmem:[#allocation133_spill] sm:$0xff] }
 0x5c1   :  { %v10158_v22 = vpop.eup %10157  ;;  %10165 = vrcp.f32 %v5866_v47  ;;  %v5867_v46 = vadd.f32 1.0, %v10156_v51  ;;  %6077 = vmatprep.subr.bf16.mxu1 %v19579_v63 }
 0x5c2   :  { %10167 = vtanh.f32 %v5893_v43  ;;  %v5894_v24 = vadd.f32 %v5890_v61, %v5826_v4  ;;  %v5891_v9 = vmul.f32 %v10158_v22, %v5887_v19 }
 0x5c3   :  { %10169 = vrcp.f32 %v5867_v46  ;;  %6033 = vmatpush2.bf16.msra.mxu0 %v19580_v8 }
 0x5c4   :  { %10171 = vtanh.f32 %v5894_v24  ;;  %v5895_v2 = vadd.f32 %v5891_v9, %v5827_v44  ;;  %6034 = vmatprep.subr.bf16.mxu0 %v19581_v41  ;;  %6078 = vmatpush2.bf16.msra.mxu1 %v19582_v40  ;;  %v19605_v41 = vld [vmem:[#allocation148_spill] sm:$0xff]  ;;  %v19606_v40 = vld [vmem:[#allocation149_spill] sm:$0xff] }
 0x5c5   :  { %6079 = vmatprep.subr.bf16.mxu1 %v19583_v50  ;;  %v19607_v50 = vld [vmem:[#allocation150_spill] sm:$0xff] }
 0x5c6   :  { %10173 = vtanh.f32 %v5895_v2  ;;  %v19604_v2 = vld [vmem:[#allocation147_spill] sm:$0xff] }
 0x5c7   :  { %6035 = vmatpush2.bf16.msra.mxu0 %v19584_v54  ;;  %v19608_v54 = vld [vmem:[#allocation151_spill] sm:$0xff] }
 0x5c8   :  { %6092 = vmatprep.subr.bf16.mxu0 %v19585_v10  ;;  %6080 = vmatpush2.bf16.msra.mxu1 %v19586_v31  ;;  %v19609_v10 = vld [vmem:[#allocation152_spill] sm:$0xff]  ;;  %v19610_v31 = vld [vmem:[#allocation153_spill] sm:$0xff] }
 0x5c9   :  { %6135 = vmatprep.subr.bf16.mxu1 %v19587_v38  ;;  %v19611_v38 = vld [vmem:[#allocation154_spill] sm:$0xff] }
 0x5ca   :  { %v10160_v58 = vpop.eup %10159  ;;  %6037 = vmatmul.mubr.bf16.vlgmr.msra.gmra.mxu0 %v16109_v60 }
 0x5cb   :  { %6093 = vmatpush1.bf16.msra.mxu0 %v19588_v20  ;;  %v5900_v30 = vsub.f32 1.0, %v10160_v58  ;;  %v5908_v4 = vmul.f32 %v10160_v58, %v15429_v5  ;;  %v19612_v58 = vld [vmem:[#allocation155_spill] sm:$0xff]  ;;  %v19613_v20 = vld [vmem:[#allocation156_spill] sm:$0xff] }
 0x5cc   :  { %v10162_v6 = vpop.eup %10161  ;;  %6094 = vmatprep.subr.bf16.mxu0 %v19589_v57  ;;  %v19616_v57 = vld [vmem:[#allocation159_spill] sm:$0xff] }
 0x5cd   :  { %v10164_v52 = vpop.eup %10163  ;;  %v5901_v62 = vsub.f32 1.0, %v10162_v6  ;;  %v5909_v61 = vmul.f32 %v10162_v6, %v15431_v25  ;;  %v19615_v6 = vld [vmem:[#allocation158_spill] sm:$0xff] }
 0x5ce   :  { %v10166_v53 = vpop.eup %10165  ;;  %v5904_v36 = vmul.f32 %v10164_v52, %v5900_v30  ;;  %v19614_v30 = vld [vmem:[#allocation157_spill] sm:$0xff]  ;;  %v19617_v52 = vld [vmem:[#allocation160_spill] sm:$0xff] }
 0x5cf   :  { %v10168_v47 = vpop.eup %10167  ;;  %6095 = vmatpush1.bf16.msra.mxu0 %v19590_v29  ;;  %v5902_v51 = vsub.f32 1.0, %v10166_v53  ;;  %v5910_v44 = vmul.f32 %v10166_v53, %v15447_v49  ;;  %v19619_v53 = vld [vmem:[#allocation162_spill] sm:$0xff] }
 0x5d0   :  { %v10170_v43 = vpop.eup %10169  ;;  %6096 = vmatprep.subr.bf16.mxu0 %v15425_v59  ;;  %v5905_v60 = vmul.f32 %v10168_v47, %v5901_v62  ;;  %v16200_v19 = vadd.f32 %v5908_v4, %v5904_v36  ;;  %v19618_v62 = vld [vmem:[#allocation161_spill] sm:$0xff]  ;;  %v19620_v36 = vld [vmem:[#allocation163_spill] sm:$0xff]  ;;  %v19621_v4 = vld [vmem:[#allocation164_spill] sm:$0xff] }
 0x5d1   :  { %v10172_v37 = vpop.eup %10171  ;;  %v5903_v22 = vsub.f32 1.0, %v10170_v43  ;;  %v5911_v59 = vmul.f32 %v10170_v43, %v15449_v0  ;;  %v19593_v0 = vld [vmem:[#allocation136_spill] sm:$0xff]  ;;  %v19622_v47 = vld [vmem:[#allocation165_spill] sm:$0xff]  ;;  %v19623_v29 = vld [vmem:[#allocation166_spill] sm:$0xff] }
 0x5d2   :  { %v16202_v46 = vadd.f32 %v5909_v61, %v5905_v60  ;;  %v5906_v63 = vmul.f32 %v10172_v37, %v5902_v51  ;;  %v19624_v51 = vld [vmem:[#allocation167_spill] sm:$0xff]  ;;  %v19625_v43 = vld [vmem:[#allocation168_spill] sm:$0xff]  ;;  %v19626_v60 = vld [vmem:[#allocation169_spill] sm:$0xff] }
 0x5d3   :  { %v10174_v5 = vpop.eup %10173  ;;  %6097 = vmatpush1.bf16.msra.mxu0 %v15437_v56  ;;  %v19591_v56 = vld [vmem:[#allocation134_spill] sm:$0xff]  ;;  %v19628_v37 = vld [vmem:[#allocation171_spill] sm:$0xff] }
 0x5d4   :  { %6098 = vmatprep.subr.bf16.mxu0 %v15443_v34  ;;  %v5907_v24 = vmul.f32 %v10174_v5, %v5903_v22  ;;  %v16208_v9 = vadd.f32 %v5910_v44, %v5906_v63  ;;  %v19592_v34 = vld [vmem:[#allocation135_spill] sm:$0xff]  ;;  %v19627_v61 = vld [vmem:[#allocation170_spill] sm:$0xff]  ;;  %v19629_v22 = vld [vmem:[#allocation172_spill] sm:$0xff] }
 0x5d5   :  { %v19630_v63 = vld [vmem:[#allocation173_spill] sm:$0xff]  ;;  %v19631_v44 = vld [vmem:[#allocation174_spill] sm:$0xff]  ;;  %v19632_v5 = vld [vmem:[#allocation175_spill] sm:$0xff] }
 0x5d6   :  { %v16210_v25 = vadd.f32 %v5911_v59, %v5907_v24  ;;  %v16218_v49 = vpack.c.bf16 %v16208_v9, %v16200_v19  ;;  %v19633_v24 = vld [vmem:[#allocation176_spill] sm:$0xff]  ;;  %v19634_v59 = vld [vmem:[#allocation177_spill] sm:$0xff] }
 0x5d7   :  { %6099 = vmatpush1.bf16.msra.mxu0 %v15454_v16  ;;  %v19594_v16 = vld [vmem:[#allocation137_spill] sm:$0xff] }
 0x5d8   :  { %v6048_v8 = vpack.c.bf16 %v16210_v25, %v16202_v46  ;;  %6100 = vmatprep.subr.bf16.mxu0 %v15462_v23  ;;  %v19595_v23 = vld [vmem:[#allocation138_spill] sm:$0xff] }
 0x5da   :  { %6081 = vmatprep.mubr.bf16.mxu1 %v6048_v8  ;;  %6124 = vmatprep.mubr.bf16.mxu0 %v6048_v8 }
 0x5db   :  { %6082 = vmatmul.mubr.bf16.vlgmr.msra.gmra.mxu1 %v16218_v49  ;;  %6101 = vmatpush1.bf16.msra.mxu0 %v15473_v13  ;;  %v19596_v13 = vld [vmem:[#allocation139_spill] sm:$0xff] }
 0x5dc   :  { %6136 = vmatpush1.bf16.msra.mxu1 %v15479_v1  ;;  %6167 = vmatprep.mubr.bf16.mxu1 %v6048_v8  ;;  %v19597_v1 = vld [vmem:[#allocation140_spill] sm:$0xff]  ;;  %v19635_v8 = vld [vmem:[#allocation178_spill] sm:$0xff] }
 0x5dd   :  { %6102 = vmatprep.subr.bf16.mxu0 %v15485_v12  ;;  %6137 = vmatprep.subr.bf16.mxu1 %v15491_v15  ;;  %v19598_v12 = vld [vmem:[#allocation141_spill] sm:$0xff]  ;;  %v19599_v15 = vld [vmem:[#allocation142_spill] sm:$0xff] }
 0x5df   :  { %6103 = vmatpush1.bf16.msra.mxu0 %v15497_v28  ;;  %v19600_v28 = vld [vmem:[#allocation143_spill] sm:$0xff] }
 0x5e0   :  { %6138 = vmatpush1.bf16.msra.mxu1 %v15503_v26  ;;  %6104 = vmatprep.subr.bf16.mxu0 %v15509_v14  ;;  %v19601_v26 = vld [vmem:[#allocation144_spill] sm:$0xff]  ;;  %v19602_v14 = vld [vmem:[#allocation145_spill] sm:$0xff] }
 0x5e1   :  { %6139 = vmatprep.subr.bf16.mxu1 %v15515_v7  ;;  %v19603_v7 = vld [vmem:[#allocation146_spill] sm:$0xff] }
 0x5e3   :  { %6105 = vmatpush1.bf16.msra.mxu0 %v19591_v56  ;;  %v19636_v56 = vld [vmem:[#allocation179_spill] sm:$0xff] }
 0x5e4   :  { %6140 = vmatpush1.bf16.msra.mxu1 %v19592_v34  ;;  %6106 = vmatprep.subr.bf16.mxu0 %v19593_v0  ;;  %v19637_v34 = vld [vmem:[#allocation180_spill] sm:$0xff]  ;;  %v19638_v0 = vld [vmem:[#allocation181_spill] sm:$0xff] }
 0x5e5   :  { %6141 = vmatprep.subr.bf16.mxu1 %v19594_v16  ;;  %v19639_v16 = vld [vmem:[#allocation182_spill] sm:$0xff] }
 0x5e7   :  { %6107 = vmatpush1.bf16.msra.mxu0 %v19595_v23  ;;  %v19640_v23 = vld [vmem:[#allocation183_spill] sm:$0xff] }
 0x5e8   :  { %6142 = vmatpush1.bf16.msra.mxu1 %v19596_v13  ;;  %6108 = vmatprep.subr.bf16.mxu0 %v19597_v1  ;;  %v19641_v13 = vld [vmem:[#allocation184_spill] sm:$0xff]  ;;  %v19642_v1 = vld [vmem:[#allocation185_spill] sm:$0xff] }
 0x5e9   :  { %6143 = vmatprep.subr.bf16.mxu1 %v19598_v12  ;;  %v19643_v12 = vld [vmem:[#allocation186_spill] sm:$0xff] }
 0x5eb   :  { %6109 = vmatpush2.bf16.msra.mxu0 %v19599_v15  ;;  %v19644_v15 = vld [vmem:[#allocation187_spill] sm:$0xff] }
 0x5ec   :  { %6144 = vmatpush1.bf16.msra.mxu1 %v19600_v28  ;;  %6110 = vmatprep.subr.bf16.mxu0 %v19601_v26  ;;  %v19645_v28 = vld [vmem:[#allocation188_spill] sm:$0xff]  ;;  %v19646_v26 = vld [vmem:[#allocation189_spill] sm:$0xff] }
 0x5ed   :  { %6145 = vmatprep.subr.bf16.mxu1 %v19602_v14  ;;  %v19647_v14 = vld [vmem:[#allocation190_spill] sm:$0xff] }
 0x5ef   :  { %6111 = vmatpush2.bf16.msra.mxu0 %v19603_v7  ;;  %v19648_v7 = vld [vmem:[#allocation191_spill] sm:$0xff] }
 0x5f0   :  { %6146 = vmatpush1.bf16.msra.mxu1 %v19604_v2  ;;  %6112 = vmatprep.subr.bf16.mxu0 %v19605_v41  ;;  %v19649_v2 = vld [vmem:[#allocation192_spill] sm:$0xff]  ;;  %v19650_v41 = vld [vmem:[#allocation193_spill] sm:$0xff] }
 0x5f1   :  { %6147 = vmatprep.subr.bf16.mxu1 %v19606_v40  ;;  %v19651_v40 = vld [vmem:[#allocation194_spill] sm:$0xff] }
 0x5f3   :  { %6113 = vmatpush2.bf16.msra.mxu0 %v19607_v50  ;;  %v19653_v50 = vld [vmem:[#allocation196_spill] sm:$0xff] }
 0x5f4   :  { %6148 = vmatpush1.bf16.msra.mxu1 %v19608_v54  ;;  %6114 = vmatprep.subr.bf16.mxu0 %v19609_v10  ;;  %v19654_v54 = vld [vmem:[#allocation197_spill] sm:$0xff]  ;;  %v19655_v10 = vld [vmem:[#allocation198_spill] sm:$0xff] }
 0x5f5   :  { %6149 = vmatprep.subr.bf16.mxu1 %v19610_v31  ;;  %v19657_v31 = vld [vmem:[#allocation200_spill] sm:$0xff] }
 0x5f7   :  { %6115 = vmatpush2.bf16.msra.mxu0 %v19611_v38  ;;  %v19658_v38 = vld [vmem:[#allocation201_spill] sm:$0xff] }
 0x5f8   :  { %6150 = vmatpush1.bf16.msra.mxu1 %v19612_v58  ;;  %6116 = vmatprep.subr.bf16.mxu0 %v19613_v20  ;;  %v19659_v58 = vld [vmem:[#allocation202_spill] sm:$0xff]  ;;  %v19660_v20 = vld [vmem:[#allocation203_spill] sm:$0xff] }
 0x5f9   :  { %6151 = vmatprep.subr.bf16.mxu1 %v19614_v30  ;;  %v19661_v30 = vld [vmem:[#allocation204_spill] sm:$0xff] }
 0x5fb   :  { %6117 = vmatpush2.bf16.msra.mxu0 %v19615_v6  ;;  %v19662_v6 = vld [vmem:[#allocation205_spill] sm:$0xff] }
 0x5fc   :  { %6152 = vmatpush2.bf16.msra.mxu1 %v19616_v57  ;;  %6118 = vmatprep.subr.bf16.mxu0 %v19617_v52  ;;  %v19663_v57 = vld [vmem:[#allocation206_spill] sm:$0xff]  ;;  %v19664_v52 = vld [vmem:[#allocation207_spill] sm:$0xff] }
 0x5fd   :  { %6153 = vmatprep.subr.bf16.mxu1 %v19618_v62  ;;  %v19665_v62 = vld [vmem:[#allocation208_spill] sm:$0xff] }
 0x5ff   :  { %6119 = vmatpush2.bf16.msra.mxu0 %v19619_v53  ;;  %v16312_v53 = vld [vmem:[%s18481_s3 + $0x274] ss:$24 sps:$4 sm:$0xff]  }
 0x600   :  { %6154 = vmatpush2.bf16.msra.mxu1 %v19620_v36  ;;  %6120 = vmatprep.subr.bf16.mxu0 %v19621_v4  ;;  %v16319_v36 = vld [vmem:[%s18481_s3 + $0x270] ss:$24 sps:$4 sm:$0xff]   ;;  %v19667_v4 = vld [vmem:[#allocation210_spill] sm:$0xff] }
 0x601   :  { %6155 = vmatprep.subr.bf16.mxu1 %v19622_v47  ;;  %v19668_v47 = vld [vmem:[#allocation211_spill] sm:$0xff] }
 0x603   :  { %6121 = vmatpush2.bf16.msra.mxu0 %v19623_v29  ;;  %v16354_v29 = vld [vmem:[%s18481_s3 + $0x1e4] ss:$24 sps:$4 sm:$0xff]  }
 0x604   :  { %6156 = vmatpush2.bf16.msra.mxu1 %v19624_v51  ;;  %6122 = vmatprep.subr.bf16.mxu0 %v19625_v43  ;;  %v19669_v51 = vld [vmem:[#allocation212_spill] sm:$0xff]  ;;  %v16361_v43 = vld [vmem:[%s18481_s3 + $0x1e0] ss:$24 sps:$4 sm:$0xff]  }
 0x605   :  { %6157 = vmatprep.subr.bf16.mxu1 %v19626_v60  ;;  %v19670_v60 = vld [vmem:[#allocation213_spill] sm:$0xff] }
 0x607   :  { %6123 = vmatpush2.bf16.msra.mxu0 %v19627_v61  ;;  %v16368_v61 = vld [vmem:[%s18481_s3 + $0x1b4] ss:$24 sps:$4 sm:$0xff]  }
 0x608   :  { %6158 = vmatpush2.bf16.msra.mxu1 %v19628_v37  ;;  %6394 = vmatprep.subr.bf16.mxu0 %v19629_v22  ;;  %v19671_v37 = vld [vmem:[#allocation214_spill] sm:$0xff]  ;;  %v16375_v22 = vld [vmem:[%s18481_s3 + $0x1b0] ss:$24 sps:$4 sm:$0xff]  }
 0x609   :  { %6159 = vmatprep.subr.bf16.mxu1 %v19630_v63  ;;  %v19672_v63 = vld [vmem:[#allocation215_spill] sm:$0xff] }
 0x60a   :  { %6125 = vmatmul.mubr.bf16.vlgmr.msra.gmra.mxu0 %v16218_v49 }
 0x60b   :  { %6395 = vmatpush1.bf16.msra.mxu0 %v19631_v44  ;;  %v16382_v44 = vld [vmem:[%s18481_s3 + $0x184] ss:$24 sps:$4 sm:$0xff]  }
 0x60c   :  { %6160 = vmatpush2.bf16.msra.mxu1 %v19632_v5  ;;  %6396 = vmatprep.subr.bf16.mxu0 %v19633_v24  ;;  %v19673_v5 = vld [vmem:[#allocation216_spill] sm:$0xff]  ;;  %v16389_v24 = vld [vmem:[%s18481_s3 + $0x180] ss:$24 sps:$4 sm:$0xff]  }
 0x60d   :  { %6161 = vmatprep.subr.bf16.mxu1 %v19634_v59  ;;  %v16395_v59 = vld [vmem:[%s18481_s3 + $0x248] ss:$24 sps:$4 sm:$0xff]  }
 0x60f   :  { %6397 = vmatpush1.bf16.msra.mxu0 %v19635_v8  ;;  %v16401_v8 = vld [vmem:[%s18481_s3 + $0x164] ss:$24 sps:$4 sm:$0xff]  }
 0x610   :  { %6162 = vmatpush2.bf16.msra.mxu1 %v19636_v56  ;;  %6398 = vmatprep.subr.bf16.mxu0 %v19637_v34  ;;  %v16407_v56 = vld [vmem:[%s18481_s3 + $0x21c] ss:$24 sps:$4 sm:$0xff]   ;;  %v16413_v34 = vld [vmem:[%s18481_s3 + $0x218] ss:$24 sps:$4 sm:$0xff]  }
 0x611   :  { %6163 = vmatprep.subr.bf16.mxu1 %v19638_v0  ;;  %v16419_v0 = vld [vmem:[%s18481_s3 + $0x1ec] ss:$24 sps:$4 sm:$0xff]  }
 0x613   :  { %6399 = vmatpush1.bf16.msra.mxu0 %v19639_v16  ;;  %v16425_v16 = vld [vmem:[%s18481_s3 + $0x1e8] ss:$24 sps:$4 sm:$0xff]  }
 0x614   :  { %6164 = vmatpush2.bf16.msra.mxu1 %v19640_v23  ;;  %6400 = vmatprep.subr.bf16.mxu0 %v19641_v13  ;;  %v16431_v23 = vld [vmem:[%s18481_s3 + $0x1bc] ss:$24 sps:$4 sm:$0xff]   ;;  %v16437_v13 = vld [vmem:[%s18481_s3 + $0x1b8] ss:$24 sps:$4 sm:$0xff]  }
 0x615   :  { %6165 = vmatprep.subr.bf16.mxu1 %v19642_v1  ;;  %v16443_v1 = vld [vmem:[%s18481_s3 + $0x18c] ss:$24 sps:$4 sm:$0xff]  }
 0x617   :  { %6401 = vmatpush1.bf16.msra.mxu0 %v15834_v18  ;;  %v19652_v18 = vld [vmem:[#allocation195_spill] sm:$0xff] }
 0x618   :  { %6166 = vmatpush2.bf16.msra.mxu1 %v19643_v12  ;;  %6402 = vmatprep.subr.bf16.mxu0 %v19644_v15  ;;  %v16449_v12 = vld [vmem:[%s18481_s3 + $0x188] ss:$24 sps:$4 sm:$0xff]   ;;  %v16455_v15 = vld [vmem:[%s18481_s3 + $0x454] ss:$24 sps:$4 sm:$0xff]  }
 0x619   :  { %6437 = vmatprep.subr.bf16.mxu1 %v19645_v28 }
 0x61b   :  { %6168 = vmatmul.mubr.bf16.vlgmr.msra.gmra.mxu1 %v16218_v49  ;;  %6403 = vmatpush1.bf16.msra.mxu0 %v19646_v26  ;;  %v19656_v49 = vld [vmem:[#allocation199_spill] sm:$0xff] }
 0x61c   :  { %6438 = vmatpush1.bf16.msra.mxu1 %v19647_v14  ;;  %6404 = vmatprep.subr.bf16.mxu0 %v19648_v7  ;;  %v19674_v14 = vld [vmem:[#allocation17_spill] sm:$0xff] }
 0x61d   :  { %6439 = vmatprep.subr.bf16.mxu1 %v19649_v2  ;;  %v6192_v7 = vunpack.c.l.bf16 %v19674_v14 }
 0x61f   :  { %6405 = vmatpush1.bf16.msra.mxu0 %v19650_v41 }
 0x620   :  { %6440 = vmatpush1.bf16.msra.mxu1 %v19651_v40  ;;  %6406 = vmatprep.subr.bf16.mxu0 %v19652_v18  ;;  %v6193_v40 = vunpack.c.h.bf16 %v19674_v14 }
 0x621   :  { %6441 = vmatprep.subr.bf16.mxu1 %v19653_v50  ;;  %v19675_v50 = vld [vmem:[#allocation19_spill] sm:$0xff] }
 0x623   :  { %6407 = vmatpush1.bf16.msra.mxu0 %v19654_v54  ;;  %v6198_v54 = vunpack.c.l.bf16 %v19675_v50 }
 0x624   :  { %6442 = vmatpush1.bf16.msra.mxu1 %v19655_v10  ;;  %6408 = vmatprep.subr.bf16.mxu0 %v19656_v49 }
 0x625   :  { %6443 = vmatprep.subr.bf16.mxu1 %v19657_v31 }
 0x627   :  { %6409 = vmatpush1.bf16.msra.mxu0 %v19658_v38 }
 0x628   :  { %6444 = vmatpush1.bf16.msra.mxu1 %v19659_v58  ;;  %6410 = vmatprep.subr.bf16.mxu0 %v19660_v20  ;;  %v6199_v58 = vunpack.c.h.bf16 %v19675_v50 }
 0x629   :  { %6445 = vmatprep.subr.bf16.mxu1 %v19661_v30 }
 0x62b   :  { %6411 = vmatpush2.bf16.msra.mxu0 %v19662_v6 }
 0x62c   :  { %6446 = vmatpush1.bf16.msra.mxu1 %v19663_v57  ;;  %6412 = vmatprep.subr.bf16.mxu0 %v15967_v3  ;;  %v16326_v3 = vld [vmem:[%s18481_s3 + $0x244] ss:$24 sps:$4 sm:$0xff]  }
 0x62d   :  { %6447 = vmatprep.subr.bf16.mxu1 %v19664_v52 }
 0x62f   :  { %6413 = vmatpush2.bf16.msra.mxu0 %v19665_v62  ;;  %v19676_v62 = vld [vmem:[#allocation18_spill] sm:$0xff] }
 0x630   :  { %6448 = vmatpush1.bf16.msra.mxu1 %v15985_v17  ;;  %6414 = vmatprep.subr.bf16.mxu0 %v16312_v53  ;;  %v16333_v17 = vld [vmem:[%s18481_s3 + $0x240] ss:$24 sps:$4 sm:$0xff]  }
 0x631   :  { %6449 = vmatprep.subr.bf16.mxu1 %v15992_v27  ;;  %v19666_v27 = vld [vmem:[#allocation209_spill] sm:$0xff] }
 0x633   :  { %6415 = vmatpush2.bf16.msra.mxu0 %v16319_v36 }
 0x634   :  { %6450 = vmatpush1.bf16.msra.mxu1 %v15999_v21  ;;  %6416 = vmatprep.subr.bf16.mxu0 %v16326_v3  ;;  %v16340_v21 = vld [vmem:[%s18481_s3 + $0x214] ss:$24 sps:$4 sm:$0xff]  }
 0x635   :  { %6451 = vmatprep.subr.bf16.mxu1 %v16006_v35  ;;  %v16347_v35 = vld [vmem:[%s18481_s3 + $0x210] ss:$24 sps:$4 sm:$0xff]  }
 0x637   :  { %6417 = vmatpush2.bf16.msra.mxu0 %v16333_v17 }
 0x638   :  { %6452 = vmatpush1.bf16.msra.mxu1 %v19666_v27  ;;  %6418 = vmatprep.subr.bf16.mxu0 %v16340_v21  ;;  %v6194_v27 = vunpack.c.l.bf16 %v19676_v62 }
 0x639   :  { %6453 = vmatprep.subr.bf16.mxu1 %v19667_v4 }
 0x63b   :  { %6419 = vmatpush2.bf16.msra.mxu0 %v16347_v35 }
 0x63c   :  { %6454 = vmatpush2.bf16.msra.mxu1 %v19668_v47  ;;  %6420 = vmatprep.subr.bf16.mxu0 %v16354_v29 }
 0x63d   :  { %6455 = vmatprep.subr.bf16.mxu1 %v19669_v51  ;;  %v6195_v51 = vunpack.c.h.bf16 %v19676_v62 }
 0x63f   :  { %6421 = vmatpush2.bf16.msra.mxu0 %v16361_v43 }
 0x640   :  { %6456 = vmatpush2.bf16.msra.mxu1 %v19670_v60  ;;  %6422 = vmatprep.subr.bf16.mxu0 %v16368_v61  ;;  %v19677_v60 = vld [vmem:[#allocation20_spill] sm:$0xff] }
 0x641   :  { %6457 = vmatprep.subr.bf16.mxu1 %v19671_v37  ;;  %v6200_v37 = vunpack.c.l.bf16 %v19677_v60 }
 0x643   :  { %6423 = vmatpush2.bf16.msra.mxu0 %v16375_v22 }
 0x644   :  { %6458 = vmatpush2.bf16.msra.mxu1 %v19672_v63  ;;  %6424 = vmatprep.subr.bf16.mxu0 %v16382_v44 }
 0x645   :  { %6459 = vmatprep.subr.bf16.mxu1 %v19673_v5 }
 0x647   :  { %6425 = vmatpush2.bf16.msra.mxu0 %v16389_v24 }
 0x648   :  { %6460 = vmatpush2.bf16.msra.mxu1 %v16395_v59  ;;  %6480 = vmatprep.subr.bf16.mxu0 %v16401_v8 }
 0x649   :  { %6461 = vmatprep.subr.bf16.mxu1 %v16407_v56 }
 0x64a   :  { %v5952_v28 = vpop.f32.mrf.mxu0  ;;  %v5995_v31 = vpop.f32.mrf.mxu1 }
 0x64b   :  { %v6204_v41 = vadd.f32 %v6192_v7, %v5952_v28  ;;  %v6206_v47 = vadd.f32 %v6194_v27, %v5995_v31 }
 0x64c   :  { %6462 = vmatpush2.bf16.msra.mxu1 %v16413_v34  ;;  %v5954_v26 = vpop.f32.mrf.mxu0  ;;  %v5997_v6 = vpop.f32.mrf.mxu1 }
 0x64d   :  { %6463 = vmatprep.subr.bf16.mxu1 %v16419_v0  ;;  %v6205_v18 = vadd.f32 %v6193_v40, %v5954_v26  ;;  %v8961_v49 = vmul.f32 -1.442695, %v6204_v41  ;;  %v6207_v63 = vadd.f32 %v6195_v51, %v5997_v6  ;;  %v6201_v26 = vunpack.c.h.bf16 %v19677_v60 }
 0x64e   :  { %v5956_v2 = vpop.f32.mrf.mxu0  ;;  %v5999_v4 = vpop.f32.mrf.mxu1  ;;  %v8963_v14 = vmul.f32 -1.442695, %v6206_v47 }
 0x64f   :  { %v6208_v38 = vadd.f32 %v6198_v54, %v5956_v2  ;;  %v8962_v20 = vmul.f32 -1.442695, %v6205_v18  ;;  %10175 = vpow2.f32 %v8961_v49  ;;  %v6210_v28 = vadd.f32 %v6200_v37, %v5999_v4  ;;  %v19678_v37 = vld [vmem:[#allocation47_spill] sm:$0xff] }
 0x650   :  { %6464 = vmatpush2.bf16.msra.mxu1 %v16425_v16  ;;  %v5958_v10 = vpop.f32.mrf.mxu0  ;;  %v6001_v5 = vpop.f32.mrf.mxu1  ;;  %v8964_v2 = vmul.f32 -1.442695, %v6207_v63  ;;  %v6196_v63 = vunpack.c.l.bf16 %v19678_v37 }
 0x651   :  { %6465 = vmatprep.subr.bf16.mxu1 %v16431_v23  ;;  %v6209_v30 = vadd.f32 %v6199_v58, %v5958_v10  ;;  %v8965_v57 = vmul.f32 -1.442695, %v6208_v38  ;;  %10177 = vpow2.f32 %v8962_v20  ;;  %v6211_v7 = vadd.f32 %v6201_v26, %v6001_v5 }
 0x652   :  { %v8967_v40 = vmul.f32 -1.442695, %v6210_v28 }
 0x653   :  { %v8966_v52 = vmul.f32 -1.442695, %v6209_v30  ;;  %10179 = vpow2.f32 %v8965_v57  ;;  %v8968_v50 = vmul.f32 -1.442695, %v6211_v7 }
 0x654   :  { %6466 = vmatpush2.bf16.msra.mxu1 %v16437_v13 }
 0x655   :  { %6467 = vmatprep.subr.bf16.mxu1 %v16443_v1  ;;  %10181 = vpow2.f32 %v8966_v52 }
 0x656   :  { %10183 = vpow2.f32 %v8963_v14  ;;  %v6197_v14 = vunpack.c.h.bf16 %v19678_v37 }
 0x657   :  { %10185 = vpow2.f32 %v8964_v2 }
 0x658   :  { %6468 = vmatpush2.bf16.msra.mxu1 %v16449_v12  ;;  %10187 = vpow2.f32 %v8967_v40 }
 0x659   :  { %6525 = vmatprep.subr.bf16.mxu1 %v16455_v15  ;;  %10189 = vpow2.f32 %v8968_v50 }
 0x65c   :  { %v10176_v41 = vpop.eup %10175 }
 0x65d   :  { %v6236_v54 = vadd.f32 1.0, %v10176_v41 }
 0x65e   :  { %v10178_v18 = vpop.eup %10177 }
 0x65f   :  { %v6237_v49 = vadd.f32 1.0, %v10178_v18  ;;  %10191 = vrcp.f32 %v6236_v54  ;;  %v19679_v54 = vld [vmem:[#allocation49_spill] sm:$0xff] }
 0x660   :  { %v10180_v10 = vpop.eup %10179 }
 0x661   :  { %v6240_v38 = vadd.f32 1.0, %v10180_v10  ;;  %10193 = vrcp.f32 %v6237_v49  ;;  %v6202_v10 = vunpack.c.l.bf16 %v19679_v54 }
 0x662   :  { %v10182_v31 = vpop.eup %10181 }
 0x663   :  { %v6241_v58 = vadd.f32 1.0, %v10182_v31  ;;  %10195 = vrcp.f32 %v6240_v38  ;;  %v10184_v20 = vpop.eup %10183 }
 0x664   :  { %v10186_v30 = vpop.eup %10185  ;;  %v6238_v57 = vadd.f32 1.0, %v10184_v20 }
 0x665   :  { %10197 = vrcp.f32 %v6241_v58  ;;  %v10188_v6 = vpop.eup %10187  ;;  %v6239_v27 = vadd.f32 1.0, %v10186_v30  ;;  %v6203_v30 = vunpack.c.h.bf16 %v19679_v54 }
 0x666   :  { %v10190_v62 = vpop.eup %10189  ;;  %v6242_v51 = vadd.f32 1.0, %v10188_v6  ;;  %10199 = vrcp.f32 %v6238_v57 }
 0x667   :  { %v6243_v7 = vadd.f32 1.0, %v10190_v62  ;;  %10201 = vrcp.f32 %v6239_v27 }
 0x668   :  { %10203 = vrcp.f32 %v6242_v51 }
 0x66c   :  { %v10192_v47 = vpop.eup %10191 }
 0x66e   :  { %v10194_v26 = vpop.eup %10193 }
 0x670   :  { %v10196_v50 = vpop.eup %10195 }
 0x672   :  { %v10198_v20 = vpop.eup %10197 }
 0x673   :  { %v10200_v62 = vpop.eup %10199 }
 0x674   :  { %v10202_v27 = vpop.eup %10201 }
 0x675   :  { %v6277_v37 = vsub.f32 1.0, %v10202_v27 }
 0x68a   :  { %v6038_v52 = vpop.f32.mrf.mxu0 }
 0x68b   :  { %v6260_v4 = vadd.f32 %v6038_v52, %v13474_v48 }
 0x68c   :  { %v6040_v60 = vpop.f32.mrf.mxu0 }
 0x68d   :  { %v6264_v5 = vmul.f32 %v10192_v47, %v6260_v4  ;;  %v6261_v28 = vadd.f32 %v6040_v60, %v13479_v55  ;;  %v10204_v4 = vpop.eup %10203  ;;  %v6276_v47 = vsub.f32 1.0, %v10200_v62 }
 0x68e   :  { %v6042_v2 = vpop.f32.mrf.mxu0  ;;  %v6286_v54 = vmul.f32 %v10204_v4, %v16101_v39  ;;  %v16497_v39 = vld [vmem:[%s18481_s3 + $0x160] ss:$24 sps:$4 sm:$0xff]  }
 0x68f   :  { %v6268_v41 = vadd.f32 %v6264_v5, %v6196_v63  ;;  %v6265_v40 = vmul.f32 %v10194_v26, %v6261_v28  ;;  %v6262_v18 = vadd.f32 %v6042_v2, %v13474_v48  ;;  %v6284_v5 = vmul.f32 %v10200_v62, %v16095_v11  ;;  %v19680_v62 = vld [vmem:[#allocation44_spill] sm:$0xff] }
 0x690   :  { %v6044_v49 = vpop.f32.mrf.mxu0 }
 0x691   :  { %10205 = vtanh.f32 %v6268_v41  ;;  %v6269_v31 = vadd.f32 %v6265_v40, %v6197_v14  ;;  %v6266_v38 = vmul.f32 %v10196_v50, %v6262_v18  ;;  %v6263_v58 = vadd.f32 %v6044_v49, %v13479_v55 }
 0x692   :  { %10207 = vrcp.f32 %v6243_v7  ;;  %v6285_v14 = vmul.f32 %v10202_v27, %v16097_v33  ;;  %v6278_v7 = vsub.f32 1.0, %v10204_v4  ;;  %v6292_v27 = vunpack.c.l.bf16 %v19680_v62  ;;  %v16528_v4 = vld [vmem:[%s18481_s3 + $0x104] ss:$24 sps:$4 sm:$0xff]  }
 0x693   :  { %10209 = vtanh.f32 %v6269_v31  ;;  %v6270_v6 = vadd.f32 %v6266_v38, %v6202_v10  ;;  %v6267_v57 = vmul.f32 %v10198_v20, %v6263_v58 }
 0x695   :  { %10211 = vtanh.f32 %v6270_v6  ;;  %v6271_v52 = vadd.f32 %v6267_v57, %v6203_v30  ;;  %v16509_v30 = vld [vmem:[%s18481_s3 + $0x450] ss:$24 sps:$4 sm:$0xff]   ;;  %v16515_v57 = vld [vmem:[%s18481_s3 + $0x424] ss:$24 sps:$4 sm:$0xff]  }
 0x697   :  { %10213 = vtanh.f32 %v6271_v52  ;;  %v16521_v52 = vld [vmem:[%s18481_s3 + $0x130] ss:$24 sps:$4 sm:$0xff]  }
 0x69b   :  { %v6083_v20 = vpop.f32.mrf.mxu1 }
 0x69d   :  { %v6085_v6 = vpop.f32.mrf.mxu1 }
 0x69e   :  { %v10206_v51 = vpop.eup %10205 }
 0x69f   :  { %v10208_v60 = vpop.eup %10207  ;;  %v6280_v63 = vmul.f32 %v10206_v51, %v6276_v47  ;;  %v16534_v47 = vld [vmem:[%s18481_s3 + $0x420] ss:$24 sps:$4 sm:$0xff]   ;;  %v6087_v51 = vpop.f32.mrf.mxu1 }
 0x6a0   :  { %v10210_v28 = vpop.eup %10209  ;;  %v6279_v40 = vsub.f32 1.0, %v10208_v60  ;;  %v6287_v31 = vmul.f32 %v10208_v60, %v16103_v42  ;;  %v16503_v42 = vld [vmem:[%s18481_s3 + $0x134] ss:$24 sps:$4 sm:$0xff]  }
 0x6a1   :  { %v6281_v26 = vmul.f32 %v10210_v28, %v6277_v37  ;;  %v16476_v2 = vadd.f32 %v6284_v5, %v6280_v63  ;;  %v16540_v60 = vld [vmem:[%s18481_s3 + $0x3f4] ss:$24 sps:$4 sm:$0xff]   ;;  %v6304_v37 = vadd.f32 %v6292_v27, %v6083_v20  ;;  %v6293_v63 = vunpack.c.h.bf16 %v19680_v62  ;;  %v16547_v5 = vld [vmem:[%s18481_s3 + $0x100] ss:$24 sps:$4 sm:$0xff]  }
 0x6a2   :  { %v10212_v41 = vpop.eup %10211  ;;  %v16585_v62 = vld [vmem:[%s18481_s3 + $0x3c0] ss:$24 sps:$4 sm:$0xff]   ;;  %v16591_v27 = vld [vmem:[%s18481_s3 + $0x394] ss:$24 sps:$4 sm:$0xff]  }
 0x6a3   :  { %v16478_v18 = vadd.f32 %v6285_v14, %v6281_v26  ;;  %v6282_v50 = vmul.f32 %v10212_v41, %v6278_v7  ;;  %v6305_v28 = vadd.f32 %v6293_v63, %v6085_v6  ;;  %v19681_v26 = vld [vmem:[#allocation46_spill] sm:$0xff]  ;;  %v16554_v7 = vld [vmem:[%s18481_s3 + $0xd4] ss:$24 sps:$4 sm:$0xff]   ;;  %v16560_v41 = vld [vmem:[%s18481_s3 + $0x3f0] ss:$24 sps:$4 sm:$0xff]   ;;  %19687 = vst [vmem:[#allocation222_spill] sm:$0xff] %v16585_v62 }
 0x6a4   :  { %v10214_v10 = vpop.eup %10213  ;;  %v6298_v14 = vunpack.c.l.bf16 %v19681_v26  ;;  %19682 = vst [vmem:[#allocation217_spill] sm:$0xff] %v16554_v7  ;;  %19683 = vst [vmem:[#allocation218_spill] sm:$0xff] %v16560_v41  ;;  %v16579_v6 = vld [vmem:[%s18481_s3 + $0xa4] ss:$24 sps:$4 sm:$0xff]  }
 0x6a5   :  { %v6283_v49 = vmul.f32 %v10214_v10, %v6279_v40  ;;  %v16482_v38 = vadd.f32 %v6286_v54, %v6282_v50  ;;  %v6089_v40 = vpop.f32.mrf.mxu1  ;;  %v16566_v50 = vld [vmem:[%s18481_s3 + $0x3c4] ss:$24 sps:$4 sm:$0xff]   ;;  %v8969_v54 = vmul.f32 -1.442695, %v6304_v37  ;;  %19686 = vst [vmem:[#allocation221_spill] sm:$0xff] %v16579_v6  ;;  %19688 = vst [vmem:[#allocation223_spill] sm:$0xff] %v16591_v27 }
 0x6a6   :  { %19684 = vst [vmem:[#allocation219_spill] sm:$0xff] %v16566_v50  ;;  %v6308_v10 = vadd.f32 %v6298_v14, %v6087_v51  ;;  %v16597_v37 = vld [vmem:[%s18481_s3 + $0xa0] ss:$24 sps:$4 sm:$0xff]   ;;  %v16615_v14 = vld [vmem:[%s18481_s3 + $0x364] ss:$24 sps:$4 sm:$0xff]  }
 0x6a7   :  { %v16484_v11 = vadd.f32 %v6287_v31, %v6283_v49  ;;  %v16490_v58 = vpack.c.bf16 %v16482_v38, %v16476_v2  ;;  %v6299_v49 = vunpack.c.h.bf16 %v19681_v26  ;;  %v16573_v31 = vld [vmem:[%s18481_s3 + $0xd0] ss:$24 sps:$4 sm:$0xff]   ;;  %10215 = vpow2.f32 %v8969_v54  ;;  %19689 = vst [vmem:[#allocation224_spill] sm:$0xff] %v16597_v37  ;;  %19692 = vst [vmem:[#allocation227_spill] sm:$0xff] %v16615_v14  ;;  %v16627_v54 = vld [vmem:[%s18481_s3 + $0x44] ss:$24 sps:$4 sm:$0xff]  }
 0x6a8   :  { %19685 = vst [vmem:[#allocation220_spill] sm:$0xff] %v16573_v31  ;;  %v8973_v51 = vmul.f32 -1.442695, %v6308_v10  ;;  %v16609_v26 = vld [vmem:[%s18481_s3 + $0x390] ss:$24 sps:$4 sm:$0xff]   ;;  %19694 = vst [vmem:[#allocation11_spill] sm:$0xff] %v16627_v54 }
 0x6a9   :  { %v6393_v33 = vpack.c.bf16 %v16484_v11, %v16478_v18  ;;  %v6309_v20 = vadd.f32 %v6299_v49, %v6089_v40  ;;  %19691 = vst [vmem:[#allocation226_spill] sm:$0xff] %v16609_v26  ;;  %v16621_v40 = vld [vmem:[%s18481_s3 + $0x70] ss:$24 sps:$4 sm:$0xff]   ;;  %v16633_v10 = vld [vmem:[%s18481_s3 + $0x360] ss:$24 sps:$4 sm:$0xff]  }
 0x6aa   :  { %19693 = vst [vmem:[#allocation9_spill] sm:$0xff] %v16621_v40  ;;  %19695 = vst [vmem:[#allocation10_spill] sm:$0xff] %v16633_v10  ;;  %v16639_v49 = vld [vmem:[%s18481_s3 + $0x334] ss:$24 sps:$4 sm:$0xff]  }
 0x6ab   :  { %6426 = vmatprep.mubr.bf16.mxu0 %v6393_v33  ;;  %6469 = vmatprep.mubr.bf16.mxu1 %v6393_v33  ;;  %v8974_v63 = vmul.f32 -1.442695, %v6309_v20  ;;  %19696 = vst [vmem:[#allocation12_spill] sm:$0xff] %v16639_v49  ;;  %v16651_v20 = vld [vmem:[%s18481_s3 + $0x14] ss:$24 sps:$4 sm:$0xff]  }
 0x6ac   :  { %6427 = vmatmul.mubr.bf16.vlgmr.msra.gmra.mxu0 %v16490_v58  ;;  %6470 = vmatmul.mubr.bf16.vlgmr.msra.gmra.mxu1 %v16490_v58  ;;  %19698 = vst [vmem:[#allocation41_spill] sm:$0xff] %v16651_v20 }
 0x6ad   :  { %6481 = vmatpush1.bf16.msra.mxu0 %v16497_v39  ;;  %6512 = vmatprep.mubr.bf16.mxu0 %v6393_v33  ;;  %v8970_v33 = vmul.f32 -1.442695, %v6305_v28  ;;  %v16603_v28 = vld [vmem:[%s18481_s3 + $0x74] ss:$24 sps:$4 sm:$0xff]  }
 0x6ae   :  { %6482 = vmatprep.subr.bf16.mxu0 %v16503_v42  ;;  %6526 = vmatpush1.bf16.msra.mxu1 %v16509_v30  ;;  %19690 = vst [vmem:[#allocation225_spill] sm:$0xff] %v16603_v28 }
 0x6af   :  { %6527 = vmatprep.subr.bf16.mxu1 %v16515_v57  ;;  %10217 = vpow2.f32 %v8970_v33  ;;  %v16645_v33 = vld [vmem:[%s18481_s3 + $0x40] ss:$24 sps:$4 sm:$0xff]  }
 0x6b0   :  { %10219 = vpow2.f32 %v8973_v51  ;;  %19697 = vst [vmem:[#allocation39_spill] sm:$0xff] %v16645_v33  ;;  %v16657_v51 = vld [vmem:[%s18481_s3 + $0x330] ss:$24 sps:$4 sm:$0xff]  }
 0x6b1   :  { %6483 = vmatpush1.bf16.msra.mxu0 %v16521_v52  ;;  %10221 = vpow2.f32 %v8974_v63  ;;  %19699 = vst [vmem:[#allocation52_spill] sm:$0xff] %v16657_v51  ;;  %v16663_v63 = vld [vmem:[%s18481_s3 + $0x304] ss:$24 sps:$4 sm:$0xff]  }
 0x6b2   :  { %6484 = vmatprep.subr.bf16.mxu0 %v16528_v4  ;;  %6528 = vmatpush1.bf16.msra.mxu1 %v16534_v47  ;;  %19700 = vst [vmem:[#allocation54_spill] sm:$0xff] %v16663_v63 }
 0x6b3   :  { %6529 = vmatprep.subr.bf16.mxu1 %v16540_v60 }
 0x6b5   :  { %6485 = vmatpush1.bf16.msra.mxu0 %v16547_v5 }
 0x6b6   :  { %6486 = vmatprep.subr.bf16.mxu0 %v16554_v7  ;;  %6530 = vmatpush1.bf16.msra.mxu1 %v16560_v41  ;;  %v16823_v7 = vld [vmem:[%s18481_s3 + $0x1f0] ss:$24 sps:$4 sm:$0xff]  }
 0x6b7   :  { %6531 = vmatprep.subr.bf16.mxu1 %v16566_v50 }
 0x6b9   :  { %6487 = vmatpush1.bf16.msra.mxu0 %v16573_v31 }
 0x6ba   :  { %6488 = vmatprep.subr.bf16.mxu0 %v16579_v6  ;;  %6532 = vmatpush1.bf16.msra.mxu1 %v16585_v62 }
 0x6bb   :  { %6533 = vmatprep.subr.bf16.mxu1 %v16591_v27 }
 0x6bd   :  { %6489 = vmatpush1.bf16.msra.mxu0 %v16597_v37 }
 0x6be   :  { %6490 = vmatprep.subr.bf16.mxu0 %v16603_v28  ;;  %6534 = vmatpush1.bf16.msra.mxu1 %v16609_v26  ;;  %v16689_v26 = vld [vmem:[%s18481_s3 + $0x5d4] ss:$24 sps:$4 sm:$0xff]  }
 0x6bf   :  { %6535 = vmatprep.subr.bf16.mxu1 %v16615_v14  ;;  %19705 = vst [vmem:[#allocation84_spill] sm:$0xff] %v16689_v26 }
 0x6c1   :  { %6491 = vmatpush1.bf16.msra.mxu0 %v16621_v40 }
 0x6c2   :  { %6492 = vmatprep.subr.bf16.mxu0 %v16627_v54  ;;  %6536 = vmatpush1.bf16.msra.mxu1 %v16633_v10 }
 0x6c3   :  { %6537 = vmatprep.subr.bf16.mxu1 %v16639_v49  ;;  %v16669_v49 = vld [vmem:[%s18481_s3 + $0x10] ss:$24 sps:$4 sm:$0xff]  }
 0x6c4   :  { %19701 = vst [vmem:[#allocation81_spill] sm:$0xff] %v16669_v49 }
 0x6c5   :  { %6493 = vmatpush1.bf16.msra.mxu0 %v16645_v33  ;;  %v10216_v33 = vpop.eup %10215 }
 0x6c6   :  { %6494 = vmatprep.subr.bf16.mxu0 %v16651_v20  ;;  %6538 = vmatpush1.bf16.msra.mxu1 %v16657_v51  ;;  %v19702_v20 = vld [vmem:[#allocation73_spill] sm:$0xff]  ;;  %v10218_v40 = vpop.eup %10217  ;;  %v6336_v28 = vadd.f32 1.0, %v10216_v33 }
 0x6c7   :  { %6539 = vmatprep.subr.bf16.mxu1 %v16663_v63  ;;  %v6294_v10 = vunpack.c.l.bf16 %v19702_v20  ;;  %v16676_v51 = vld [vmem:[%s18481_s3 + $0x2e4] ss:$24 sps:$4 sm:$0xff]   ;;  %v16682_v63 = vld [vmem:[%s18481_s3 + $0x300] ss:$24 sps:$4 sm:$0xff]   ;;  %v10220_v37 = vpop.eup %10219 }
 0x6c8   :  { %19703 = vst [vmem:[#allocation83_spill] sm:$0xff] %v16676_v51  ;;  %19704 = vst [vmem:[#allocation82_spill] sm:$0xff] %v16682_v63 }
 0x6c9   :  { %6495 = vmatpush1.bf16.msra.mxu0 %v16669_v49  ;;  %v6295_v49 = vunpack.c.h.bf16 %v19702_v20  ;;  %v6337_v20 = vadd.f32 1.0, %v10218_v40 }
 0x6ca   :  { %v6126_v54 = vpop.f32.mrf.mxu0  ;;  %6496 = vmatprep.subr.bf16.mxu0 %v16676_v51  ;;  %6540 = vmatpush1.bf16.msra.mxu1 %v16682_v63  ;;  %v16695_v63 = vld [vmem:[%s18481_s3 + $0x2e0] ss:$24 sps:$4 sm:$0xff]  }
 0x6cb   :  { %v6306_v14 = vadd.f32 %v6294_v10, %v6126_v54  ;;  %6541 = vmatprep.subr.bf16.mxu1 %v16689_v26  ;;  %19706 = vst [vmem:[#allocation13_spill] sm:$0xff] %v16695_v63  ;;  %v19707_v54 = vld [vmem:[#allocation75_spill] sm:$0xff] }
 0x6cc   :  { %v6128_v51 = vpop.f32.mrf.mxu0  ;;  %v6300_v10 = vunpack.c.l.bf16 %v19707_v54  ;;  %v16702_v26 = vld [vmem:[%s18481_s3 + $0x2b4] ss:$24 sps:$4 sm:$0xff]   ;;  %v6301_v40 = vunpack.c.h.bf16 %v19707_v54  ;;  %v16745_v54 = vld [vmem:[%s18481_s3 + $0x280] ss:$24 sps:$4 sm:$0xff]  }
 0x6cd   :  { %v8971_v27 = vmul.f32 -1.442695, %v6306_v14  ;;  %v6307_v62 = vadd.f32 %v6295_v49, %v6128_v51  ;;  %6497 = vmatpush2.bf16.msra.mxu0 %v16695_v63  ;;  %19708 = vst [vmem:[#allocation15_spill] sm:$0xff] %v16702_v26  ;;  %v16708_v14 = vld [vmem:[%s18481_s3 + $0x5d0] ss:$24 sps:$4 sm:$0xff]   ;;  %v10222_v49 = vpop.eup %10221  ;;  %19715 = vst [vmem:[#allocation7_spill] sm:$0xff] %v16745_v54 }
 0x6ce   :  { %v6130_v6 = vpop.f32.mrf.mxu0  ;;  %6498 = vmatprep.subr.bf16.mxu0 %v16702_v26  ;;  %19709 = vst [vmem:[#allocation14_spill] sm:$0xff] %v16708_v14  ;;  %6542 = vmatpush2.bf16.msra.mxu1 %v16708_v14  ;;  %v16715_v63 = vld [vmem:[%s18481_s3 + $0x5a4] ss:$24 sps:$4 sm:$0xff]   ;;  %v6340_v26 = vadd.f32 1.0, %v10220_v37 }
 0x6cf   :  { %10223 = vpow2.f32 %v8971_v27  ;;  %v8972_v33 = vmul.f32 -1.442695, %v6307_v62  ;;  %v6310_v51 = vadd.f32 %v6300_v10, %v6130_v6  ;;  %19710 = vst [vmem:[#allocation16_spill] sm:$0xff] %v16715_v63  ;;  %6543 = vmatprep.subr.bf16.mxu1 %v16715_v63  ;;  %v16721_v62 = vld [vmem:[%s18481_s3 + $0x2b0] ss:$24 sps:$4 sm:$0xff]   ;;  %v6341_v6 = vadd.f32 1.0, %v10222_v49 }
 0x6d0   :  { %10225 = vrcp.f32 %v6336_v28  ;;  %v6132_v31 = vpop.f32.mrf.mxu0  ;;  %19711 = vst [vmem:[#allocation43_spill] sm:$0xff] %v16721_v62  ;;  %v16727_v27 = vld [vmem:[%s18481_s3 + $0x284] ss:$24 sps:$4 sm:$0xff]   ;;  %v16739_v28 = vld [vmem:[%s18481_s3 + $0x574] ss:$24 sps:$4 sm:$0xff]  }
 0x6d1   :  { %10227 = vpow2.f32 %v8972_v33  ;;  %v8975_v50 = vmul.f32 -1.442695, %v6310_v51  ;;  %v6311_v41 = vadd.f32 %v6301_v40, %v6132_v31  ;;  %6499 = vmatpush2.bf16.msra.mxu0 %v16721_v62  ;;  %19712 = vst [vmem:[#allocation45_spill] sm:$0xff] %v16727_v27  ;;  %v16733_v31 = vld [vmem:[%s18481_s3 + $0x5a0] ss:$24 sps:$4 sm:$0xff]   ;;  %19714 = vst [vmem:[#allocation50_spill] sm:$0xff] %v16739_v28 }
 0x6d2   :  { %10229 = vrcp.f32 %v6337_v20  ;;  %6500 = vmatprep.subr.bf16.mxu0 %v16727_v27  ;;  %19713 = vst [vmem:[#allocation48_spill] sm:$0xff] %v16733_v31  ;;  %6544 = vmatpush2.bf16.msra.mxu1 %v16733_v31  ;;  %v16769_v10 = vld [vmem:[%s18481_s3 + $0x250] ss:$24 sps:$4 sm:$0xff]   ;;  %v16775_v20 = vld [vmem:[%s18481_s3 + $0x224] ss:$24 sps:$4 sm:$0xff]  }
 0x6d3   :  { %10231 = vpow2.f32 %v8975_v50  ;;  %v8976_v37 = vmul.f32 -1.442695, %v6311_v41  ;;  %6545 = vmatprep.subr.bf16.mxu1 %v16739_v28  ;;  %v16751_v41 = vld [vmem:[%s18481_s3 + $0x254] ss:$24 sps:$4 sm:$0xff]   ;;  %v16757_v50 = vld [vmem:[%s18481_s3 + $0x570] ss:$24 sps:$4 sm:$0xff]  }
 0x6d4   :  { %10233 = vrcp.f32 %v6340_v26  ;;  %19716 = vst [vmem:[#allocation6_spill] sm:$0xff] %v16751_v41  ;;  %19717 = vst [vmem:[#allocation8_spill] sm:$0xff] %v16757_v50  ;;  %v16763_v26 = vld [vmem:[%s18481_s3 + $0x544] ss:$24 sps:$4 sm:$0xff]   ;;  %v16781_v49 = vld [vmem:[%s18481_s3 + $0x540] ss:$24 sps:$4 sm:$0xff]  }
 0x6d5   :  { %10235 = vpow2.f32 %v8976_v37  ;;  %6501 = vmatpush2.bf16.msra.mxu0 %v16745_v54  ;;  %19718 = vst [vmem:[#allocation35_spill] sm:$0xff] %v16763_v26  ;;  %19719 = vst [vmem:[#allocation37_spill] sm:$0xff] %v16769_v10  ;;  %v16787_v51 = vld [vmem:[%s18481_s3 + $0x514] ss:$24 sps:$4 sm:$0xff]  }
 0x6d6   :  { %10237 = vrcp.f32 %v6341_v6  ;;  %6502 = vmatprep.subr.bf16.mxu0 %v16751_v41  ;;  %6546 = vmatpush2.bf16.msra.mxu1 %v16757_v50  ;;  %19720 = vst [vmem:[#allocation56_spill] sm:$0xff] %v16775_v20  ;;  %19721 = vst [vmem:[#allocation58_spill] sm:$0xff] %v16781_v49  ;;  %v19724_v50 = vld [vmem:[#allocation74_spill] sm:$0xff] }
 0x6d7   :  { %6547 = vmatprep.subr.bf16.mxu1 %v16763_v26  ;;  %19722 = vst [vmem:[#allocation89_spill] sm:$0xff] %v16787_v51  ;;  %v16794_v26 = vld [vmem:[%s18481_s3 + $0x220] ss:$24 sps:$4 sm:$0xff]   ;;  %v6296_v41 = vunpack.c.l.bf16 %v19724_v50 }
 0x6d8   :  { %19723 = vst [vmem:[#allocation90_spill] sm:$0xff] %v16794_v26 }
 0x6d9   :  { %6503 = vmatpush2.bf16.msra.mxu0 %v16769_v10 }
 0x6da   :  { %6504 = vmatprep.subr.bf16.mxu0 %v16775_v20  ;;  %6548 = vmatpush2.bf16.msra.mxu1 %v16781_v49 }
 0x6db   :  { %v6169_v33 = vpop.f32.mrf.mxu1  ;;  %6549 = vmatprep.subr.bf16.mxu1 %v16787_v51 }
 0x6dc   :  { %v10224_v40 = vpop.eup %10223  ;;  %v6360_v6 = vadd.f32 %v6169_v33, %v19264_v45  ;;  %v16802_v33 = vld [vmem:[%s18481_s3 + $0x1f4] ss:$24 sps:$4 sm:$0xff]  }
 0x6dd   :  { %v10226_v37 = vpop.eup %10225  ;;  %v6338_v20 = vadd.f32 1.0, %v10224_v40  ;;  %v6171_v10 = vpop.f32.mrf.mxu1  ;;  %6505 = vmatpush2.bf16.msra.mxu0 %v16794_v26  ;;  %19725 = vst [vmem:[#allocation91_spill] sm:$0xff] %v16802_v33  ;;  %v16808_v40 = vld [vmem:[%s18481_s3 + $0x510] ss:$24 sps:$4 sm:$0xff]  }
 0x6de   :  { %v10228_v49 = vpop.eup %10227  ;;  %v6364_v54 = vmul.f32 %v10226_v37, %v6360_v6  ;;  %v6361_v28 = vadd.f32 %v6171_v10, %v19267_v32  ;;  %6506 = vmatprep.subr.bf16.mxu0 %v16802_v33  ;;  %19726 = vst [vmem:[#allocation92_spill] sm:$0xff] %v16808_v40  ;;  %6550 = vmatpush2.bf16.msra.mxu1 %v16808_v40  ;;  %v16814_v10 = vld [vmem:[%s18481_s3 + $0x4e4] ss:$24 sps:$4 sm:$0xff]   ;;  %v6297_v33 = vunpack.c.h.bf16 %v19724_v50  ;;  %v19728_v40 = vld [vmem:[#allocation76_spill] sm:$0xff] }
 0x6df   :  { %v10230_v26 = vpop.eup %10229  ;;  %10239 = vrcp.f32 %v6338_v20  ;;  %v6339_v51 = vadd.f32 1.0, %v10228_v49  ;;  %v6173_v6 = vpop.f32.mrf.mxu1  ;;  %19727 = vst [vmem:[#allocation93_spill] sm:$0xff] %v16814_v10  ;;  %6551 = vmatprep.subr.bf16.mxu1 %v16814_v10  ;;  %v6302_v14 = vunpack.c.l.bf16 %v19728_v40 }
 0x6e0   :  { %v10232_v37 = vpop.eup %10231  ;;  %v6368_v31 = vadd.f32 %v6364_v54, %v6296_v41  ;;  %v6365_v27 = vmul.f32 %v10230_v26, %v6361_v28  ;;  %v6362_v62 = vadd.f32 %v6173_v6, %v19264_v45  ;;  %v16830_v41 = vld [vmem:[%s18481_s3 + $0x1c4] ss:$24 sps:$4 sm:$0xff]   ;;  %v16836_v26 = vld [vmem:[%s18481_s3 + $0x4e0] ss:$24 sps:$4 sm:$0xff]  }
 0x6e1   :  { %v10234_v63 = vpop.eup %10233  ;;  %10241 = vrcp.f32 %v6339_v51  ;;  %v6342_v20 = vadd.f32 1.0, %v10232_v37  ;;  %v6175_v49 = vpop.f32.mrf.mxu1  ;;  %6507 = vmatpush2.bf16.msra.mxu0 %v16823_v7  ;;  %19729 = vst [vmem:[#allocation94_spill] sm:$0xff] %v16836_v26  ;;  %v16849_v6 = vld [vmem:[%s18481_s3 + $0x1c0] ss:$24 sps:$4 sm:$0xff]   ;;  %v16855_v37 = vld [vmem:[%s18481_s3 + $0x194] ss:$24 sps:$4 sm:$0xff]  }
 0x6e2   :  { %v10236_v10 = vpop.eup %10235  ;;  %10243 = vtanh.f32 %v6368_v31  ;;  %v6369_v50 = vadd.f32 %v6365_v27, %v6297_v33  ;;  %v6366_v54 = vmul.f32 %v10234_v63, %v6362_v62  ;;  %v6363_v28 = vadd.f32 %v6175_v49, %v19267_v32  ;;  %6508 = vmatprep.subr.bf16.mxu0 %v16830_v41  ;;  %6552 = vmatpush2.bf16.msra.mxu1 %v16836_v26  ;;  %v16842_v63 = vld [vmem:[%s18481_s3 + $0x4b4] ss:$24 sps:$4 sm:$0xff]   ;;  %v16929_v26 = vld [vmem:[%s18481_s3 + $0x3f8] ss:$24 sps:$4 sm:$0xff]  }
 0x6e3   :  { %v10238_v51 = vpop.eup %10237  ;;  %10245 = vrcp.f32 %v6342_v20  ;;  %v6343_v27 = vadd.f32 1.0, %v10236_v10  ;;  %19730 = vst [vmem:[#allocation95_spill] sm:$0xff] %v16842_v63  ;;  %6553 = vmatprep.subr.bf16.mxu1 %v16842_v63  ;;  %v6303_v62 = vunpack.c.h.bf16 %v19728_v40  ;;  %19731 = vst [vmem:[#allocation96_spill] sm:$0xff] %v16849_v6  ;;  %v16867_v40 = vld [vmem:[%s18481_s3 + $0x484] ss:$24 sps:$4 sm:$0xff]  }
 0x6e4   :  { %10247 = vtanh.f32 %v6369_v50  ;;  %v6370_v31 = vadd.f32 %v6366_v54, %v6302_v14  ;;  %v6367_v33 = vmul.f32 %v10238_v51, %v6363_v28  ;;  %19732 = vst [vmem:[#allocation97_spill] sm:$0xff] %v16855_v37  ;;  %v16861_v14 = vld [vmem:[%s18481_s3 + $0x4b0] ss:$24 sps:$4 sm:$0xff]   ;;  %19734 = vst [vmem:[#allocation99_spill] sm:$0xff] %v16867_v40  ;;  %v16879_v49 = vld [vmem:[%s18481_s3 + $0x45c] ss:$24 sps:$4 sm:$0xff]  }
 0x6e5   :  { %10249 = vrcp.f32 %v6343_v27  ;;  %6509 = vmatpush2.bf16.msra.mxu0 %v16849_v6  ;;  %19733 = vst [vmem:[#allocation98_spill] sm:$0xff] %v16861_v14  ;;  %v16873_v20 = vld [vmem:[%s18481_s3 + $0x190] ss:$24 sps:$4 sm:$0xff]   ;;  %19736 = vst [vmem:[#allocation101_spill] sm:$0xff] %v16879_v49  ;;  %v16885_v50 = vld [vmem:[%s18481_s3 + $0x480] ss:$24 sps:$4 sm:$0xff]  }
 0x6e6   :  { %10251 = vtanh.f32 %v6370_v31  ;;  %v6371_v10 = vadd.f32 %v6367_v33, %v6303_v62  ;;  %6510 = vmatprep.subr.bf16.mxu0 %v16855_v37  ;;  %6554 = vmatpush2.bf16.msra.mxu1 %v16861_v14  ;;  %19735 = vst [vmem:[#allocation100_spill] sm:$0xff] %v16873_v20  ;;  %19737 = vst [vmem:[#allocation77_spill] sm:$0xff] %v16885_v50  ;;  %v16891_v54 = vld [vmem:[%s18481_s3 + $0x464] ss:$24 sps:$4 sm:$0xff]   ;;  %v16898_v51 = vld [vmem:[%s18481_s3 + $0x458] ss:$24 sps:$4 sm:$0xff]  }
 0x6e7   :  { %6555 = vmatprep.subr.bf16.mxu1 %v16867_v40  ;;  %19738 = vst [vmem:[#allocation102_spill] sm:$0xff] %v16891_v54  ;;  %19739 = vst [vmem:[#allocation103_spill] sm:$0xff] %v16898_v51  ;;  %v16904_v31 = vld [vmem:[%s18481_s3 + $0x42c] ss:$24 sps:$4 sm:$0xff]  }
 0x6e8   :  { %10253 = vtanh.f32 %v6371_v10  ;;  %19740 = vst [vmem:[#allocation104_spill] sm:$0xff] %v16904_v31 }
 0x6e9   :  { %6511 = vmatpush2.bf16.msra.mxu0 %v16873_v20 }
 0x6ea   :  { %6568 = vmatprep.subr.bf16.mxu0 %v16879_v49  ;;  %6556 = vmatpush2.bf16.msra.mxu1 %v16885_v50 }
 0x6eb   :  { %6611 = vmatprep.subr.bf16.mxu1 %v16891_v54 }
 0x6ec   :  { %v10240_v28 = vpop.eup %10239  ;;  %6513 = vmatmul.mubr.bf16.vlgmr.msra.gmra.mxu0 %v16490_v58 }
 0x6ed   :  { %6569 = vmatpush1.bf16.msra.mxu0 %v16898_v51  ;;  %v6376_v27 = vsub.f32 1.0, %v10240_v28  ;;  %v6384_v50 = vmul.f32 %v10240_v28, %v16200_v19  ;;  %v16911_v51 = vld [vmem:[%s18481_s3 + $0x428] ss:$24 sps:$4 sm:$0xff]  }
 0x6ee   :  { %v10242_v62 = vpop.eup %10241  ;;  %6570 = vmatprep.subr.bf16.mxu0 %v16904_v31  ;;  %19741 = vst [vmem:[#allocation105_spill] sm:$0xff] %v16911_v51  ;;  %v16917_v31 = vld [vmem:[%s18481_s3 + $0x3fc] ss:$24 sps:$4 sm:$0xff]  }
 0x6ef   :  { %v10244_v33 = vpop.eup %10243  ;;  %v6377_v10 = vsub.f32 1.0, %v10242_v62  ;;  %v6385_v19 = vmul.f32 %v10242_v62, %v16202_v46  ;;  %v16935_v46 = vld [vmem:[%s18481_s3 + $0x3cc] ss:$24 sps:$4 sm:$0xff]  }
 0x6f0   :  { %v10246_v54 = vpop.eup %10245  ;;  %v6380_v58 = vmul.f32 %v10244_v33, %v6376_v27 }
 0x6f1   :  { %v10248_v49 = vpop.eup %10247  ;;  %6571 = vmatpush1.bf16.msra.mxu0 %v16911_v51  ;;  %v6378_v20 = vsub.f32 1.0, %v10246_v54  ;;  %v6386_v51 = vmul.f32 %v10246_v54, %v16208_v9  ;;  %v16946_v54 = vld [vmem:[%s18481_s3 + $0x3c8] ss:$24 sps:$4 sm:$0xff]  }
 0x6f2   :  { %v10250_v40 = vpop.eup %10249  ;;  %6572 = vmatprep.subr.bf16.mxu0 %v16917_v31  ;;  %v6381_v27 = vmul.f32 %v10248_v49, %v6377_v10  ;;  %v16921_v28 = vadd.f32 %v6384_v50, %v6380_v58  ;;  %v16989_v10 = vld [vmem:[%s18481_s3 + $0x368] ss:$24 sps:$4 sm:$0xff]  }
 0x6f3   :  { %v10252_v33 = vpop.eup %10251  ;;  %v6379_v14 = vsub.f32 1.0, %v10250_v40  ;;  %v16995_v58 = vld [vmem:[%s18481_s3 + $0x430] ss:$24 sps:$4 sm:$0xff]  }
 0x6f4   :  { %v16923_v37 = vadd.f32 %v6385_v19, %v6381_v27  ;;  %v6382_v6 = vmul.f32 %v10252_v33, %v6378_v20  ;;  %v6387_v20 = vmul.f32 %v10250_v40, %v16210_v25  ;;  %v16977_v40 = vld [vmem:[%s18481_s3 + $0x36c] ss:$24 sps:$4 sm:$0xff]   ;;  %v17001_v27 = vld [vmem:[%s18481_s3 + $0x33c] ss:$24 sps:$4 sm:$0xff]   ;;  %v17013_v33 = vld [vmem:[%s18481_s3 + $0x338] ss:$24 sps:$4 sm:$0xff]  }
 0x6f5   :  { %v10254_v63 = vpop.eup %10253  ;;  %6573 = vmatpush1.bf16.msra.mxu0 %v16929_v26  ;;  %v17007_v19 = vld [vmem:[%s18481_s3 + $0x404] ss:$24 sps:$4 sm:$0xff]   ;;  %19742 = vst [vmem:[#allocation79_spill] sm:$0xff] %v17013_v33 }
 0x6f6   :  { %6574 = vmatprep.subr.bf16.mxu0 %v16935_v46  ;;  %v6383_v49 = vmul.f32 %v10254_v63, %v6379_v14  ;;  %v16939_v50 = vadd.f32 %v6386_v51, %v6382_v6  ;;  %v16954_v63 = vld [vmem:[%s18481_s3 + $0x39c] ss:$24 sps:$4 sm:$0xff]   ;;  %v16965_v6 = vld [vmem:[%s18481_s3 + $0x398] ss:$24 sps:$4 sm:$0xff]  }
 0x6f7   :  { %v16971_v14 = vld [vmem:[%s18481_s3 + $0x460] ss:$24 sps:$4 sm:$0xff]   ;;  %v16983_v51 = vld [vmem:[%s18481_s3 + $0x434] ss:$24 sps:$4 sm:$0xff]  }
 0x6f8   :  { %v16941_v9 = vadd.f32 %v6387_v20, %v6383_v49  ;;  %v16959_v25 = vpack.c.bf16 %v16939_v50, %v16921_v28  ;;  %v17019_v49 = vld [vmem:[%s18481_s3 + $0x400] ss:$24 sps:$4 sm:$0xff]   ;;  %v17025_v20 = vld [vmem:[%s18481_s3 + $0x30c] ss:$24 sps:$4 sm:$0xff]  }
 0x6f9   :  { %6575 = vmatpush1.bf16.msra.mxu0 %v16946_v54  ;;  %19743 = vst [vmem:[#allocation106_spill] sm:$0xff] %v17019_v49  ;;  %19744 = vst [vmem:[#allocation107_spill] sm:$0xff] %v17025_v20 }
 0x6fa   :  { %v6524_v62 = vpack.c.bf16 %v16941_v9, %v16923_v37  ;;  %6576 = vmatprep.subr.bf16.mxu0 %v16954_v63 }
 0x6fc   :  { %6557 = vmatprep.mubr.bf16.mxu1 %v6524_v62  ;;  %6600 = vmatprep.mubr.bf16.mxu0 %v6524_v62 }
 0x6fd   :  { %6558 = vmatmul.mubr.bf16.vlgmr.msra.gmra.mxu1 %v16959_v25  ;;  %6577 = vmatpush1.bf16.msra.mxu0 %v16965_v6 }
 0x6fe   :  { %6612 = vmatpush1.bf16.msra.mxu1 %v16971_v14  ;;  %6643 = vmatprep.mubr.bf16.mxu1 %v6524_v62  ;;  %v17031_v62 = vld [vmem:[%s18481_s3 + $0x3d4] ss:$24 sps:$4 sm:$0xff]  }
 0x6ff   :  { %6578 = vmatprep.subr.bf16.mxu0 %v16977_v40  ;;  %6613 = vmatprep.subr.bf16.mxu1 %v16983_v51  ;;  %19745 = vst [vmem:[#allocation108_spill] sm:$0xff] %v17031_v62 }
 0x701   :  { %6579 = vmatpush1.bf16.msra.mxu0 %v16989_v10 }
 0x702   :  { %6614 = vmatpush1.bf16.msra.mxu1 %v16995_v58  ;;  %6580 = vmatprep.subr.bf16.mxu0 %v17001_v27 }
 0x703   :  { %6615 = vmatprep.subr.bf16.mxu1 %v17007_v19 }
 0x705   :  { %6581 = vmatpush1.bf16.msra.mxu0 %v17013_v33  ;;  %v17037_v33 = vld [vmem:[%s18481_s3 + $0x308] ss:$24 sps:$4 sm:$0xff]  }
 0x706   :  { %6616 = vmatpush1.bf16.msra.mxu1 %v17019_v49  ;;  %6582 = vmatprep.subr.bf16.mxu0 %v17025_v20  ;;  %19746 = vst [vmem:[#allocation85_spill] sm:$0xff] %v17037_v33  ;;  %v17043_v49 = vld [vmem:[%s18481_s3 + $0x3d0] ss:$24 sps:$4 sm:$0xff]   ;;  %v17049_v20 = vld [vmem:[%s18481_s3 + $0x5dc] ss:$24 sps:$4 sm:$0xff]  }
 0x707   :  { %6617 = vmatprep.subr.bf16.mxu1 %v17031_v62  ;;  %19747 = vst [vmem:[#allocation110_spill] sm:$0xff] %v17043_v49  ;;  %19748 = vst [vmem:[#allocation111_spill] sm:$0xff] %v17049_v20  ;;  %v17055_v62 = vld [vmem:[%s18481_s3 + $0x3a4] ss:$24 sps:$4 sm:$0xff]  }
 0x708   :  { %19749 = vst [vmem:[#allocation113_spill] sm:$0xff] %v17055_v62 }
 0x709   :  { %6583 = vmatpush1.bf16.msra.mxu0 %v17037_v33  ;;  %v17061_v33 = vld [vmem:[%s18481_s3 + $0x5d8] ss:$24 sps:$4 sm:$0xff]  }
 0x70a   :  { %6618 = vmatpush1.bf16.msra.mxu1 %v17043_v49  ;;  %6584 = vmatprep.subr.bf16.mxu0 %v17049_v20  ;;  %19750 = vst [vmem:[#allocation114_spill] sm:$0xff] %v17061_v33  ;;  %v17067_v49 = vld [vmem:[%s18481_s3 + $0x3a0] ss:$24 sps:$4 sm:$0xff]   ;;  %v17073_v20 = vld [vmem:[%s18481_s3 + $0x5ac] ss:$24 sps:$4 sm:$0xff]  }
 0x70b   :  { %6619 = vmatprep.subr.bf16.mxu1 %v17055_v62  ;;  %19751 = vst [vmem:[#allocation87_spill] sm:$0xff] %v17067_v49  ;;  %19752 = vst [vmem:[#allocation115_spill] sm:$0xff] %v17073_v20  ;;  %v17079_v62 = vld [vmem:[%s18481_s3 + $0x374] ss:$24 sps:$4 sm:$0xff]  }
 0x70c   :  { %19753 = vst [vmem:[#allocation116_spill] sm:$0xff] %v17079_v62 }
 0x70d   :  { %6585 = vmatpush2.bf16.msra.mxu0 %v17061_v33  ;;  %v17085_v33 = vld [vmem:[%s18481_s3 + $0x5a8] ss:$24 sps:$4 sm:$0xff]  }
 0x70e   :  { %6620 = vmatpush1.bf16.msra.mxu1 %v17067_v49  ;;  %6586 = vmatprep.subr.bf16.mxu0 %v17073_v20  ;;  %19754 = vst [vmem:[#allocation117_spill] sm:$0xff] %v17085_v33  ;;  %v17091_v49 = vld [vmem:[%s18481_s3 + $0x370] ss:$24 sps:$4 sm:$0xff]   ;;  %v17097_v20 = vld [vmem:[%s18481_s3 + $0x57c] ss:$24 sps:$4 sm:$0xff]  }
 0x70f   :  { %6621 = vmatprep.subr.bf16.mxu1 %v17079_v62  ;;  %19755 = vst [vmem:[#allocation118_spill] sm:$0xff] %v17091_v49  ;;  %19756 = vst [vmem:[#allocation119_spill] sm:$0xff] %v17097_v20  ;;  %v17103_v62 = vld [vmem:[%s18481_s3 + $0x344] ss:$24 sps:$4 sm:$0xff]  }
 0x710   :  { %19757 = vst [vmem:[#allocation120_spill] sm:$0xff] %v17103_v62 }
 0x711   :  { %6587 = vmatpush2.bf16.msra.mxu0 %v17085_v33  ;;  %v17109_v33 = vld [vmem:[%s18481_s3 + $0x578] ss:$24 sps:$4 sm:$0xff]  }
 0x712   :  { %6622 = vmatpush1.bf16.msra.mxu1 %v17091_v49  ;;  %6588 = vmatprep.subr.bf16.mxu0 %v17097_v20  ;;  %19758 = vst [vmem:[#allocation121_spill] sm:$0xff] %v17109_v33  ;;  %v17115_v49 = vld [vmem:[%s18481_s3 + $0x340] ss:$24 sps:$4 sm:$0xff]   ;;  %v17121_v20 = vld [vmem:[%s18481_s3 + $0x54c] ss:$24 sps:$4 sm:$0xff]  }
 0x713   :  { %6623 = vmatprep.subr.bf16.mxu1 %v17103_v62  ;;  %19759 = vst [vmem:[#allocation78_spill] sm:$0xff] %v17115_v49  ;;  %19760 = vst [vmem:[#allocation122_spill] sm:$0xff] %v17121_v20  ;;  %v17127_v62 = vld [vmem:[%s18481_s3 + $0x314] ss:$24 sps:$4 sm:$0xff]  }
 0x714   :  { %19761 = vst [vmem:[#allocation123_spill] sm:$0xff] %v17127_v62 }
 0x715   :  { %6589 = vmatpush2.bf16.msra.mxu0 %v17109_v33  ;;  %v17133_v33 = vld [vmem:[%s18481_s3 + $0x548] ss:$24 sps:$4 sm:$0xff]  }
 0x716   :  { %6624 = vmatpush1.bf16.msra.mxu1 %v17115_v49  ;;  %6590 = vmatprep.subr.bf16.mxu0 %v17121_v20  ;;  %19762 = vst [vmem:[#allocation109_spill] sm:$0xff] %v17133_v33  ;;  %v17139_v49 = vld [vmem:[%s18481_s3 + $0x310] ss:$24 sps:$4 sm:$0xff]   ;;  %v17145_v20 = vld [vmem:[%s18481_s3 + $0x51c] ss:$24 sps:$4 sm:$0xff]  }
 0x717   :  { %6625 = vmatprep.subr.bf16.mxu1 %v17127_v62  ;;  %19763 = vst [vmem:[#allocation80_spill] sm:$0xff] %v17139_v49  ;;  %19764 = vst [vmem:[#allocation124_spill] sm:$0xff] %v17145_v20  ;;  %v17151_v62 = vld [vmem:[%s18481_s3 + $0x5e4] ss:$24 sps:$4 sm:$0xff]  }
 0x718   :  { %19765 = vst [vmem:[#allocation86_spill] sm:$0xff] %v17151_v62 }
 0x719   :  { %6591 = vmatpush2.bf16.msra.mxu0 %v17133_v33  ;;  %v17157_v33 = vld [vmem:[%s18481_s3 + $0x518] ss:$24 sps:$4 sm:$0xff]  }
 0x71a   :  { %6626 = vmatpush1.bf16.msra.mxu1 %v17139_v49  ;;  %6592 = vmatprep.subr.bf16.mxu0 %v17145_v20  ;;  %19766 = vst [vmem:[#allocation112_spill] sm:$0xff] %v17157_v33  ;;  %v17163_v49 = vld [vmem:[%s18481_s3 + $0x5e0] ss:$24 sps:$4 sm:$0xff]   ;;  %v17169_v20 = vld [vmem:[%s18481_s3 + $0x4ec] ss:$24 sps:$4 sm:$0xff]  }
 0x71b   :  { %6627 = vmatprep.subr.bf16.mxu1 %v17151_v62  ;;  %19767 = vst [vmem:[#allocation125_spill] sm:$0xff] %v17163_v49  ;;  %19768 = vst [vmem:[#allocation126_spill] sm:$0xff] %v17169_v20  ;;  %v17175_v62 = vld [vmem:[%s18481_s3 + $0x5b4] ss:$24 sps:$4 sm:$0xff]  }
 0x71c   :  { %19769 = vst [vmem:[#allocation127_spill] sm:$0xff] %v17175_v62 }
 0x71d   :  { %6593 = vmatpush2.bf16.msra.mxu0 %v17157_v33  ;;  %v17181_v33 = vld [vmem:[%s18481_s3 + $0x4e8] ss:$24 sps:$4 sm:$0xff]  }
 0x71e   :  { %6628 = vmatpush2.bf16.msra.mxu1 %v17163_v49  ;;  %6594 = vmatprep.subr.bf16.mxu0 %v17169_v20  ;;  %19770 = vst [vmem:[#allocation88_spill] sm:$0xff] %v17181_v33  ;;  %v17187_v49 = vld [vmem:[%s18481_s3 + $0x5b0] ss:$24 sps:$4 sm:$0xff]   ;;  %v17193_v20 = vld [vmem:[%s18481_s3 + $0x4bc] ss:$24 sps:$4 sm:$0xff]  }
 0x71f   :  { %6629 = vmatprep.subr.bf16.mxu1 %v17175_v62  ;;  %19771 = vst [vmem:[#allocation128_spill] sm:$0xff] %v17187_v49  ;;  %19772 = vst [vmem:[#allocation129_spill] sm:$0xff] %v17193_v20  ;;  %v17199_v62 = vld [vmem:[%s18481_s3 + $0x584] ss:$24 sps:$4 sm:$0xff]  }
 0x720   :  { %19773 = vst [vmem:[#allocation130_spill] sm:$0xff] %v17199_v62 }
 0x721   :  { %6595 = vmatpush2.bf16.msra.mxu0 %v17181_v33  ;;  %v17205_v33 = vld [vmem:[%s18481_s3 + $0x4b8] ss:$24 sps:$4 sm:$0xff]  }
 0x722   :  { %6630 = vmatpush2.bf16.msra.mxu1 %v17187_v49  ;;  %6596 = vmatprep.subr.bf16.mxu0 %v17193_v20  ;;  %19774 = vst [vmem:[#allocation131_spill] sm:$0xff] %v17205_v33  ;;  %v17211_v49 = vld [vmem:[%s18481_s3 + $0x580] ss:$24 sps:$4 sm:$0xff]   ;;  %v17217_v20 = vld [vmem:[%s18481_s3 + $0x48c] ss:$24 sps:$4 sm:$0xff]  }
 0x723   :  { %6631 = vmatprep.subr.bf16.mxu1 %v17199_v62  ;;  %19775 = vst [vmem:[#allocation132_spill] sm:$0xff] %v17211_v49  ;;  %19776 = vst [vmem:[#allocation133_spill] sm:$0xff] %v17217_v20  ;;  %v17223_v62 = vld [vmem:[%s18481_s3 + $0x554] ss:$24 sps:$4 sm:$0xff]  }
 0x724   :  { %19777 = vst [vmem:[#allocation134_spill] sm:$0xff] %v17223_v62 }
 0x725   :  { %6597 = vmatpush2.bf16.msra.mxu0 %v17205_v33  ;;  %v17229_v33 = vld [vmem:[%s18481_s3 + $0x488] ss:$24 sps:$4 sm:$0xff]  }
 0x726   :  { %6632 = vmatpush2.bf16.msra.mxu1 %v17211_v49  ;;  %6598 = vmatprep.subr.bf16.mxu0 %v17217_v20  ;;  %19778 = vst [vmem:[#allocation135_spill] sm:$0xff] %v17229_v33  ;;  %v17235_v49 = vld [vmem:[%s18481_s3 + $0x550] ss:$24 sps:$4 sm:$0xff]   ;;  %v17241_v20 = vld [vmem:[%s18481_s3 + $0x154] ss:$24 sps:$4 sm:$0xff]  }
 0x727   :  { %6633 = vmatprep.subr.bf16.mxu1 %v17223_v62  ;;  %19779 = vst [vmem:[#allocation136_spill] sm:$0xff] %v17235_v49  ;;  %19780 = vst [vmem:[#allocation137_spill] sm:$0xff] %v17241_v20  ;;  %v17247_v62 = vld [vmem:[%s18481_s3 + $0x524] ss:$24 sps:$4 sm:$0xff]  }
 0x728   :  { %19781 = vst [vmem:[#allocation138_spill] sm:$0xff] %v17247_v62 }
 0x729   :  { %6599 = vmatpush2.bf16.msra.mxu0 %v17229_v33  ;;  %v17272_v33 = vld [vmem:[%s18481_s3 + $0x4f4] ss:$24 sps:$4 sm:$0xff]  }
 0x72a   :  { %6634 = vmatpush2.bf16.msra.mxu1 %v17235_v49  ;;  %6870 = vmatprep.subr.bf16.mxu0 %v17241_v20  ;;  %v17254_v49 = vld [vmem:[%s18481_s3 + $0x150] ss:$24 sps:$4 sm:$0xff]   ;;  %v17260_v20 = vld [vmem:[%s18481_s3 + $0x520] ss:$24 sps:$4 sm:$0xff]   ;;  %19785 = vst [vmem:[#allocation142_spill] sm:$0xff] %v17272_v33 }
 0x72b   :  { %6635 = vmatprep.subr.bf16.mxu1 %v17247_v62  ;;  %19782 = vst [vmem:[#allocation139_spill] sm:$0xff] %v17254_v49  ;;  %19783 = vst [vmem:[#allocation140_spill] sm:$0xff] %v17260_v20  ;;  %v17266_v62 = vld [vmem:[%s18481_s3 + $0x124] ss:$24 sps:$4 sm:$0xff]  }
 0x72c   :  { %6601 = vmatmul.mubr.bf16.vlgmr.msra.gmra.mxu0 %v16959_v25  ;;  %19784 = vst [vmem:[#allocation141_spill] sm:$0xff] %v17266_v62 }
 0x72d   :  { %6871 = vmatpush1.bf16.msra.mxu0 %v17254_v49  ;;  %v17278_v49 = vld [vmem:[%s18481_s3 + $0x120] ss:$24 sps:$4 sm:$0xff]  }
 0x72e   :  { %6636 = vmatpush2.bf16.msra.mxu1 %v17260_v20  ;;  %6872 = vmatprep.subr.bf16.mxu0 %v17266_v62  ;;  %19786 = vst [vmem:[#allocation143_spill] sm:$0xff] %v17278_v49  ;;  %v17284_v20 = vld [vmem:[%s18481_s3 + $0x4f0] ss:$24 sps:$4 sm:$0xff]   ;;  %v17290_v62 = vld [vmem:[%s18481_s3 + $0xf4] ss:$24 sps:$4 sm:$0xff]  }
 0x72f   :  { %6637 = vmatprep.subr.bf16.mxu1 %v17272_v33  ;;  %19787 = vst [vmem:[#allocation144_spill] sm:$0xff] %v17284_v20  ;;  %19788 = vst [vmem:[#allocation145_spill] sm:$0xff] %v17290_v62  ;;  %v17296_v33 = vld [vmem:[%s18481_s3 + $0x4c4] ss:$24 sps:$4 sm:$0xff]  }
 0x730   :  { %19789 = vst [vmem:[#allocation146_spill] sm:$0xff] %v17296_v33 }
 0x731   :  { %6873 = vmatpush1.bf16.msra.mxu0 %v17278_v49  ;;  %v17302_v49 = vld [vmem:[%s18481_s3 + $0xf0] ss:$24 sps:$4 sm:$0xff]  }
 0x732   :  { %6638 = vmatpush2.bf16.msra.mxu1 %v17284_v20  ;;  %6874 = vmatprep.subr.bf16.mxu0 %v17290_v62  ;;  %19790 = vst [vmem:[#allocation147_spill] sm:$0xff] %v17302_v49  ;;  %v17308_v20 = vld [vmem:[%s18481_s3 + $0x4c0] ss:$24 sps:$4 sm:$0xff]   ;;  %v17314_v62 = vld [vmem:[%s18481_s3 + $0xc4] ss:$24 sps:$4 sm:$0xff]  }
 0x733   :  { %6639 = vmatprep.subr.bf16.mxu1 %v17296_v33  ;;  %19791 = vst [vmem:[#allocation148_spill] sm:$0xff] %v17308_v20  ;;  %19792 = vst [vmem:[#allocation149_spill] sm:$0xff] %v17314_v62  ;;  %v17320_v33 = vld [vmem:[%s18481_s3 + $0x494] ss:$24 sps:$4 sm:$0xff]  }
 0x734   :  { %19793 = vst [vmem:[#allocation150_spill] sm:$0xff] %v17320_v33 }
 0x735   :  { %6875 = vmatpush1.bf16.msra.mxu0 %v17302_v49  ;;  %v17326_v49 = vld [vmem:[%s18481_s3 + $0xc0] ss:$24 sps:$4 sm:$0xff]  }
 0x736   :  { %6640 = vmatpush2.bf16.msra.mxu1 %v17308_v20  ;;  %6876 = vmatprep.subr.bf16.mxu0 %v17314_v62  ;;  %v17332_v20 = vld [vmem:[%s18481_s3 + $0x490] ss:$24 sps:$4 sm:$0xff]   ;;  %v17338_v62 = vld [vmem:[%s18481_s3 + $0x94] ss:$24 sps:$4 sm:$0xff]  }
 0x737   :  { %6641 = vmatprep.subr.bf16.mxu1 %v17320_v33  ;;  %19794 = vst [vmem:[#allocation151_spill] sm:$0xff] %v17332_v20  ;;  %19795 = vst [vmem:[#allocation152_spill] sm:$0xff] %v17338_v62  ;;  %v17344_v33 = vld [vmem:[%s18481_s3 + $0x15c] ss:$24 sps:$4 sm:$0xff]  }
 0x738   :  { %19796 = vst [vmem:[#allocation153_spill] sm:$0xff] %v17344_v33 }
 0x739   :  { %6877 = vmatpush1.bf16.msra.mxu0 %v17326_v49 }
 0x73a   :  { %6642 = vmatpush2.bf16.msra.mxu1 %v17332_v20  ;;  %6878 = vmatprep.subr.bf16.mxu0 %v17338_v62  ;;  %v17351_v20 = vld [vmem:[%s18481_s3 + $0x90] ss:$24 sps:$4 sm:$0xff]  }
 0x73b   :  { %6913 = vmatprep.subr.bf16.mxu1 %v17344_v33  ;;  %19797 = vst [vmem:[#allocation154_spill] sm:$0xff] %v17351_v20  ;;  %v17357_v62 = vld [vmem:[%s18481_s3 + $0x158] ss:$24 sps:$4 sm:$0xff]   ;;  %v17363_v33 = vld [vmem:[%s18481_s3 + $0x64] ss:$24 sps:$4 sm:$0xff]  }
 0x73c   :  { %19798 = vst [vmem:[#allocation155_spill] sm:$0xff] %v17357_v62  ;;  %19799 = vst [vmem:[#allocation156_spill] sm:$0xff] %v17363_v33 }
 0x73d   :  { %6644 = vmatmul.mubr.bf16.vlgmr.msra.gmra.mxu1 %v16959_v25  ;;  %6879 = vmatpush1.bf16.msra.mxu0 %v17351_v20  ;;  %v17369_v25 = vld [vmem:[%s18481_s3 + $0x12c] ss:$24 sps:$4 sm:$0xff]   ;;  %v17375_v20 = vld [vmem:[%s18481_s3 + $0x60] ss:$24 sps:$4 sm:$0xff]  }
 0x73e   :  { %6914 = vmatpush1.bf16.msra.mxu1 %v17357_v62  ;;  %6880 = vmatprep.subr.bf16.mxu0 %v17363_v33  ;;  %19800 = vst [vmem:[#allocation157_spill] sm:$0xff] %v17369_v25  ;;  %19801 = vst [vmem:[#allocation158_spill] sm:$0xff] %v17375_v20  ;;  %v17381_v62 = vld [vmem:[%s18481_s3 + $0x128] ss:$24 sps:$4 sm:$0xff]   ;;  %v17387_v33 = vld [vmem:[%s18481_s3 + $0x34] ss:$24 sps:$4 sm:$0xff]  }
 0x73f   :  { %6915 = vmatprep.subr.bf16.mxu1 %v17369_v25  ;;  %19802 = vst [vmem:[#allocation159_spill] sm:$0xff] %v17381_v62  ;;  %19803 = vst [vmem:[#allocation160_spill] sm:$0xff] %v17387_v33  ;;  %v17393_v25 = vld [vmem:[%s18481_s3 + $0xfc] ss:$24 sps:$4 sm:$0xff]  }
 0x740   :  { %19804 = vst [vmem:[#allocation161_spill] sm:$0xff] %v17393_v25 }
 0x741   :  { %6881 = vmatpush1.bf16.msra.mxu0 %v17375_v20  ;;  %v17399_v20 = vld [vmem:[%s18481_s3 + $0x30] ss:$24 sps:$4 sm:$0xff]  }
 0x742   :  { %6916 = vmatpush1.bf16.msra.mxu1 %v17381_v62  ;;  %6882 = vmatprep.subr.bf16.mxu0 %v17387_v33  ;;  %19805 = vst [vmem:[#allocation162_spill] sm:$0xff] %v17399_v20  ;;  %v17405_v62 = vld [vmem:[%s18481_s3 + $0xf8] ss:$24 sps:$4 sm:$0xff]   ;;  %v17411_v33 = vld [vmem:[%s18481_s3 + $0x4] ss:$24 sps:$4 sm:$0xff]  }
 0x743   :  { %6917 = vmatprep.subr.bf16.mxu1 %v17393_v25  ;;  %19806 = vst [vmem:[#allocation163_spill] sm:$0xff] %v17405_v62  ;;  %19807 = vst [vmem:[#allocation164_spill] sm:$0xff] %v17411_v33  ;;  %v17417_v25 = vld [vmem:[%s18481_s3 + $0xcc] ss:$24 sps:$4 sm:$0xff]  }
 0x744   :  { %19808 = vst [vmem:[#allocation165_spill] sm:$0xff] %v17417_v25 }
 0x745   :  { %6883 = vmatpush1.bf16.msra.mxu0 %v17399_v20  ;;  %v17423_v20 = vld [vmem:[%s18481_s3] ss:$24 sps:$4 sm:$0xff]  }
 0x746   :  { %6918 = vmatpush1.bf16.msra.mxu1 %v17405_v62  ;;  %6884 = vmatprep.subr.bf16.mxu0 %v17411_v33  ;;  %19809 = vst [vmem:[#allocation166_spill] sm:$0xff] %v17423_v20  ;;  %v17429_v62 = vld [vmem:[%s18481_s3 + $0xc8] ss:$24 sps:$4 sm:$0xff]   ;;  %v17435_v33 = vld [vmem:[%s18481_s3 + $0x2d4] ss:$24 sps:$4 sm:$0xff]  }
 0x747   :  { %6919 = vmatprep.subr.bf16.mxu1 %v17417_v25  ;;  %19810 = vst [vmem:[#allocation167_spill] sm:$0xff] %v17429_v62  ;;  %19811 = vst [vmem:[#allocation168_spill] sm:$0xff] %v17435_v33  ;;  %v17441_v25 = vld [vmem:[%s18481_s3 + $0x9c] ss:$24 sps:$4 sm:$0xff]  }
 0x748   :  { %19812 = vst [vmem:[#allocation169_spill] sm:$0xff] %v17441_v25 }
 0x749   :  { %6885 = vmatpush1.bf16.msra.mxu0 %v17423_v20  ;;  %v17447_v20 = vld [vmem:[%s18481_s3 + $0x2d0] ss:$24 sps:$4 sm:$0xff]  }
 0x74a   :  { %6920 = vmatpush1.bf16.msra.mxu1 %v17429_v62  ;;  %6886 = vmatprep.subr.bf16.mxu0 %v17435_v33  ;;  %19813 = vst [vmem:[#allocation170_spill] sm:$0xff] %v17447_v20  ;;  %v17453_v62 = vld [vmem:[%s18481_s3 + $0x98] ss:$24 sps:$4 sm:$0xff]   ;;  %v17459_v33 = vld [vmem:[%s18481_s3 + $0x2a4] ss:$24 sps:$4 sm:$0xff]  }
 0x74b   :  { %6921 = vmatprep.subr.bf16.mxu1 %v17441_v25  ;;  %19814 = vst [vmem:[#allocation171_spill] sm:$0xff] %v17453_v62  ;;  %v17465_v25 = vld [vmem:[%s18481_s3 + $0x6c] ss:$24 sps:$4 sm:$0xff]  }
 0x74c   :  { %19815 = vst [vmem:[#allocation172_spill] sm:$0xff] %v17465_v25 }
 0x74d   :  { %6887 = vmatpush2.bf16.msra.mxu0 %v17447_v20  ;;  %v17471_v20 = vld [vmem:[%s18481_s3 + $0x2a0] ss:$24 sps:$4 sm:$0xff]  }
 0x74e   :  { %6922 = vmatpush1.bf16.msra.mxu1 %v17453_v62  ;;  %6888 = vmatprep.subr.bf16.mxu0 %v17459_v33  ;;  %19816 = vst [vmem:[#allocation173_spill] sm:$0xff] %v17471_v20  ;;  %v17477_v62 = vld [vmem:[%s18481_s3 + $0x68] ss:$24 sps:$4 sm:$0xff]  }
 0x74f   :  { %6923 = vmatprep.subr.bf16.mxu1 %v17465_v25  ;;  %v17484_v25 = vld [vmem:[%s18481_s3 + $0x3c] ss:$24 sps:$4 sm:$0xff]  }
 0x751   :  { %6889 = vmatpush2.bf16.msra.mxu0 %v17471_v20  ;;  %v17491_v20 = vld [vmem:[%s18481_s3 + $0x38] ss:$24 sps:$4 sm:$0xff]  }
 0x752   :  { %6924 = vmatpush1.bf16.msra.mxu1 %v17477_v62  ;;  %6890 = vmatprep.subr.bf16.mxu0 %v16312_v53  ;;  %v17498_v53 = vld [vmem:[%s18481_s3 + $0xc] ss:$24 sps:$4 sm:$0xff]  }
 0x753   :  { %6925 = vmatprep.subr.bf16.mxu1 %v17484_v25 }
 0x755   :  { %6891 = vmatpush2.bf16.msra.mxu0 %v16319_v36  ;;  %v17505_v36 = vld [vmem:[%s18481_s3 + $0x8] ss:$24 sps:$4 sm:$0xff]  }
 0x756   :  { %6926 = vmatpush1.bf16.msra.mxu1 %v17491_v20  ;;  %6892 = vmatprep.subr.bf16.mxu0 %v16326_v3  ;;  %19817 = vst [vmem:[#allocation174_spill] sm:$0xff] %v17505_v36  ;;  %v17512_v3 = vld [vmem:[%s18481_s3 + $0x2dc] ss:$24 sps:$4 sm:$0xff]  }
 0x757   :  { %6927 = vmatprep.subr.bf16.mxu1 %v17498_v53  ;;  %19818 = vst [vmem:[#allocation175_spill] sm:$0xff] %v17512_v3 }
 0x759   :  { %6893 = vmatpush2.bf16.msra.mxu0 %v16333_v17  ;;  %v17519_v17 = vld [vmem:[%s18481_s3 + $0x2d8] ss:$24 sps:$4 sm:$0xff]  }
 0x75a   :  { %6928 = vmatpush1.bf16.msra.mxu1 %v17505_v36  ;;  %6894 = vmatprep.subr.bf16.mxu0 %v16340_v21  ;;  %19819 = vst [vmem:[#allocation176_spill] sm:$0xff] %v17519_v17  ;;  %v17526_v21 = vld [vmem:[%s18481_s3 + $0x2ac] ss:$24 sps:$4 sm:$0xff]  }
 0x75b   :  { %6929 = vmatprep.subr.bf16.mxu1 %v17512_v3  ;;  %19820 = vst [vmem:[#allocation177_spill] sm:$0xff] %v17526_v21  ;;  %v19827_v3 = vld [vmem:[#allocation22_spill] sm:$0xff] }
 0x75d   :  { %6895 = vmatpush2.bf16.msra.mxu0 %v16347_v35  ;;  %v17533_v35 = vld [vmem:[%s18481_s3 + $0x2a8] ss:$24 sps:$4 sm:$0xff]  }
 0x75e   :  { %6930 = vmatpush2.bf16.msra.mxu1 %v17519_v17  ;;  %6896 = vmatprep.subr.bf16.mxu0 %v16354_v29  ;;  %19821 = vst [vmem:[#allocation178_spill] sm:$0xff] %v17533_v35  ;;  %v17540_v29 = vld [vmem:[%s18481_s3 + $0x27c] ss:$24 sps:$4 sm:$0xff]  }
 0x75f   :  { %6931 = vmatprep.subr.bf16.mxu1 %v17526_v21  ;;  %19822 = vst [vmem:[#allocation179_spill] sm:$0xff] %v17540_v29 }
 0x761   :  { %6897 = vmatpush2.bf16.msra.mxu0 %v16361_v43  ;;  %v17547_v43 = vld [vmem:[%s18481_s3 + $0x278] ss:$24 sps:$4 sm:$0xff]  }
 0x762   :  { %6932 = vmatpush2.bf16.msra.mxu1 %v17533_v35  ;;  %6898 = vmatprep.subr.bf16.mxu0 %v16368_v61  ;;  %19823 = vst [vmem:[#allocation180_spill] sm:$0xff] %v17547_v43  ;;  %v17554_v61 = vld [vmem:[%s18481_s3 + $0x24c] ss:$24 sps:$4 sm:$0xff]  }
 0x763   :  { %6933 = vmatprep.subr.bf16.mxu1 %v17540_v29  ;;  %19824 = vst [vmem:[#allocation181_spill] sm:$0xff] %v17554_v61 }
 0x765   :  { %6899 = vmatpush2.bf16.msra.mxu0 %v16375_v22 }
 0x766   :  { %6934 = vmatpush2.bf16.msra.mxu1 %v17547_v43  ;;  %6900 = vmatprep.subr.bf16.mxu0 %v16382_v44 }
 0x767   :  { %6935 = vmatprep.subr.bf16.mxu1 %v17554_v61 }
 0x769   :  { %6901 = vmatpush2.bf16.msra.mxu0 %v16389_v24  ;;  %v19825_v24 = vld [vmem:[#allocation21_spill] sm:$0xff] }
 0x76a   :  { %6936 = vmatpush2.bf16.msra.mxu1 %v16395_v59  ;;  %6956 = vmatprep.subr.bf16.mxu0 %v16401_v8  ;;  %v6668_v59 = vunpack.c.l.bf16 %v19825_v24 }
 0x76b   :  { %6937 = vmatprep.subr.bf16.mxu1 %v16407_v56 }
 0x76c   :  { %v6428_v22 = vpop.f32.mrf.mxu0 }
 0x76d   :  { %v6680_v56 = vadd.f32 %v6668_v59, %v6428_v22  ;;  %v6670_v22 = vunpack.c.l.bf16 %v19827_v3  ;;  %v6671_v59 = vunpack.c.h.bf16 %v19827_v3 }
 0x76e   :  { %6938 = vmatpush2.bf16.msra.mxu1 %v16413_v34  ;;  %v6430_v44 = vpop.f32.mrf.mxu0  ;;  %v6669_v34 = vunpack.c.h.bf16 %v19825_v24 }
 0x76f   :  { %6939 = vmatprep.subr.bf16.mxu1 %v16419_v0  ;;  %v8977_v43 = vmul.f32 -1.442695, %v6680_v56  ;;  %v19828_v56 = vld [vmem:[#allocation24_spill] sm:$0xff] }
 0x770   :  { %v6432_v8 = vpop.f32.mrf.mxu0  ;;  %v6681_v0 = vadd.f32 %v6669_v34, %v6430_v44  ;;  %v6676_v34 = vunpack.c.l.bf16 %v19828_v56 }
 0x771   :  { %10255 = vpow2.f32 %v8977_v43 }
 0x772   :  { %6940 = vmatpush2.bf16.msra.mxu1 %v16425_v16  ;;  %v19826_v16 = vld [vmem:[#allocation23_spill] sm:$0xff] }
 0x773   :  { %6941 = vmatprep.subr.bf16.mxu1 %v16431_v23  ;;  %v6674_v61 = vunpack.c.l.bf16 %v19826_v16  ;;  %v6434_v23 = vpop.f32.mrf.mxu0 }
 0x775   :  { %v6684_v29 = vadd.f32 %v6674_v61, %v6432_v8 }
 0x776   :  { %6942 = vmatpush2.bf16.msra.mxu1 %v16437_v13  ;;  %v6471_v13 = vpop.f32.mrf.mxu1 }
 0x777   :  { %6943 = vmatprep.subr.bf16.mxu1 %v16443_v1  ;;  %v6675_v1 = vunpack.c.h.bf16 %v19826_v16  ;;  %v8981_v21 = vmul.f32 -1.442695, %v6684_v29  ;;  %v6682_v44 = vadd.f32 %v6670_v22, %v6471_v13 }
 0x779   :  { %v6685_v35 = vadd.f32 %v6675_v1, %v6434_v23  ;;  %v8979_v43 = vmul.f32 -1.442695, %v6682_v44 }
 0x77a   :  { %6944 = vmatpush2.bf16.msra.mxu1 %v16449_v12  ;;  %v8978_v12 = vmul.f32 -1.442695, %v6681_v0  ;;  %v6677_v0 = vunpack.c.h.bf16 %v19828_v56 }
 0x77b   :  { %7001 = vmatprep.subr.bf16.mxu1 %v16455_v15  ;;  %v6473_v15 = vpop.f32.mrf.mxu1  ;;  %v8982_v17 = vmul.f32 -1.442695, %v6685_v35 }
 0x77c   :  { %10257 = vpow2.f32 %v8978_v12  ;;  %v6683_v61 = vadd.f32 %v6671_v59, %v6473_v15 }
 0x77d   :  { %10259 = vpow2.f32 %v8981_v21  ;;  %v6475_v24 = vpop.f32.mrf.mxu1 }
 0x77e   :  { %10261 = vpow2.f32 %v8982_v17  ;;  %v6686_v16 = vadd.f32 %v6676_v34, %v6475_v24  ;;  %v8980_v29 = vmul.f32 -1.442695, %v6683_v61  ;;  %v10256_v1 = vpop.eup %10255 }
 0x77f   :  { %v6477_v8 = vpop.f32.mrf.mxu1  ;;  %10263 = vpow2.f32 %v8979_v43  ;;  %v6712_v36 = vadd.f32 1.0, %v10256_v1 }
 0x780   :  { %v6687_v23 = vadd.f32 %v6677_v0, %v6477_v8  ;;  %v8983_v35 = vmul.f32 -1.442695, %v6686_v16  ;;  %10265 = vpow2.f32 %v8980_v29  ;;  %v19829_v29 = vld [vmem:[#allocation51_spill] sm:$0xff] }
 0x781   :  { %v6672_v1 = vunpack.c.l.bf16 %v19829_v29 }
 0x782   :  { %v8984_v21 = vmul.f32 -1.442695, %v6687_v23  ;;  %10267 = vpow2.f32 %v8983_v35 }
 0x784   :  { %10269 = vpow2.f32 %v8984_v21  ;;  %v6673_v21 = vunpack.c.h.bf16 %v19829_v29 }
 0x785   :  { %10271 = vrcp.f32 %v6712_v36 }
 0x789   :  { %v10258_v12 = vpop.eup %10257 }
 0x78a   :  { %v10260_v13 = vpop.eup %10259  ;;  %v6713_v3 = vadd.f32 1.0, %v10258_v12 }
 0x78b   :  { %v10262_v17 = vpop.eup %10261  ;;  %v6716_v15 = vadd.f32 1.0, %v10260_v13 }
 0x78c   :  { %10273 = vrcp.f32 %v6713_v3  ;;  %v6717_v22 = vadd.f32 1.0, %v10262_v17  ;;  %v10264_v24 = vpop.eup %10263 }
 0x78d   :  { %10275 = vrcp.f32 %v6716_v15  ;;  %v10266_v44 = vpop.eup %10265  ;;  %v6714_v56 = vadd.f32 1.0, %v10264_v24 }
 0x78e   :  { %10277 = vrcp.f32 %v6717_v22  ;;  %v6715_v8 = vadd.f32 1.0, %v10266_v44  ;;  %v19830_v44 = vld [vmem:[#allocation53_spill] sm:$0xff] }
 0x78f   :  { %v10268_v59 = vpop.eup %10267  ;;  %10279 = vrcp.f32 %v6714_v56 }
 0x790   :  { %v6718_v43 = vadd.f32 1.0, %v10268_v59  ;;  %10281 = vrcp.f32 %v6715_v8  ;;  %v6678_v59 = vunpack.c.l.bf16 %v19830_v44 }
 0x791   :  { %v10270_v61 = vpop.eup %10269 }
 0x792   :  { %v10272_v0 = vpop.eup %10271  ;;  %v6719_v13 = vadd.f32 1.0, %v10270_v61  ;;  %10283 = vrcp.f32 %v6718_v43  ;;  %v6679_v61 = vunpack.c.h.bf16 %v19830_v44 }
 0x799   :  { %v10274_v12 = vpop.eup %10273 }
 0x79a   :  { %v10276_v24 = vpop.eup %10275 }
 0x7ac   :  { %v6514_v34 = vpop.f32.mrf.mxu0 }
 0x7ad   :  { %v6736_v16 = vadd.f32 %v6514_v34, %v13474_v48 }
 0x7ae   :  { %v6516_v23 = vpop.f32.mrf.mxu0 }
 0x7af   :  { %v6740_v36 = vmul.f32 %v10272_v0, %v6736_v16  ;;  %v6737_v35 = vadd.f32 %v6516_v23, %v13479_v55  ;;  %v10278_v23 = vpop.eup %10277 }
 0x7b0   :  { %v6518_v3 = vpop.f32.mrf.mxu0 }
 0x7b1   :  { %v6744_v17 = vadd.f32 %v6740_v36, %v6672_v1  ;;  %v6741_v15 = vmul.f32 %v10274_v12, %v6737_v35  ;;  %v6738_v22 = vadd.f32 %v6518_v3, %v13474_v48  ;;  %v10280_v36 = vpop.eup %10279 }
 0x7b2   :  { %v6520_v34 = vpop.f32.mrf.mxu0  ;;  %v10282_v35 = vpop.eup %10281  ;;  %v6752_v43 = vsub.f32 1.0, %v10280_v36 }
 0x7b3   :  { %10285 = vtanh.f32 %v6744_v17  ;;  %v6745_v56 = vadd.f32 %v6741_v15, %v6673_v21  ;;  %v6742_v16 = vmul.f32 %v10276_v24, %v6738_v22  ;;  %v6739_v0 = vadd.f32 %v6520_v34, %v13479_v55  ;;  %v10284_v12 = vpop.eup %10283 }
 0x7b4   :  { %10287 = vrcp.f32 %v6719_v13  ;;  %v6753_v21 = vsub.f32 1.0, %v10282_v35  ;;  %v6760_v22 = vmul.f32 %v10280_v36, %v16476_v2  ;;  %v6761_v44 = vmul.f32 %v10282_v35, %v16478_v18 }
 0x7b5   :  { %10289 = vtanh.f32 %v6745_v56  ;;  %v6746_v8 = vadd.f32 %v6742_v16, %v6678_v59  ;;  %v6743_v29 = vmul.f32 %v10278_v23, %v6739_v0  ;;  %v6754_v34 = vsub.f32 1.0, %v10284_v12 }
 0x7b7   :  { %10291 = vtanh.f32 %v6746_v8  ;;  %v6747_v1 = vadd.f32 %v6743_v29, %v6679_v61  ;;  %v6762_v61 = vmul.f32 %v10284_v12, %v16482_v38 }
 0x7b9   :  { %10293 = vtanh.f32 %v6747_v1 }
 0x7bd   :  { %v6559_v35 = vpop.f32.mrf.mxu1 }
 0x7bf   :  { %v6561_v38 = vpop.f32.mrf.mxu1 }
 0x7c0   :  { %v10286_v3 = vpop.eup %10285 }
 0x7c1   :  { %v10288_v17 = vpop.eup %10287  ;;  %v6756_v15 = vmul.f32 %v10286_v3, %v6752_v43  ;;  %v6563_v3 = vpop.f32.mrf.mxu1 }
 0x7c2   :  { %v10290_v24 = vpop.eup %10289  ;;  %v6755_v16 = vsub.f32 1.0, %v10288_v17  ;;  %v6763_v1 = vmul.f32 %v10288_v17, %v16484_v11  ;;  %v19831_v11 = vld [vmem:[#allocation40_spill] sm:$0xff] }
 0x7c3   :  { %v6757_v13 = vmul.f32 %v10290_v24, %v6753_v21  ;;  %v17587_v59 = vadd.f32 %v6760_v22, %v6756_v15  ;;  %v6768_v12 = vunpack.c.l.bf16 %v19831_v11  ;;  %v6769_v17 = vunpack.c.h.bf16 %v19831_v11  ;;  %v6565_v15 = vpop.f32.mrf.mxu1  ;;  %v19835_v22 = vld [vmem:[#allocation219_spill] sm:$0xff]  ;;  %v19847_v11 = vld [vmem:[#allocation12_spill] sm:$0xff] }
 0x7c4   :  { %v10292_v56 = vpop.eup %10291 }
 0x7c5   :  { %v17589_v0 = vadd.f32 %v6761_v44, %v6757_v13  ;;  %v6758_v23 = vmul.f32 %v10292_v56, %v6754_v34  ;;  %v19837_v34 = vld [vmem:[#allocation221_spill] sm:$0xff]  ;;  %v19839_v56 = vld [vmem:[#allocation223_spill] sm:$0xff] }
 0x7c6   :  { %v10294_v8 = vpop.eup %10293 }
 0x7c7   :  { %v6759_v29 = vmul.f32 %v10294_v8, %v6755_v16  ;;  %v17593_v43 = vadd.f32 %v6762_v61, %v6758_v23  ;;  %v19840_v23 = vld [vmem:[#allocation224_spill] sm:$0xff]  ;;  %v19841_v8 = vld [vmem:[#allocation225_spill] sm:$0xff] }
 0x7c9   :  { %v17595_v2 = vadd.f32 %v6763_v1, %v6759_v29  ;;  %v17601_v36 = vpack.c.bf16 %v17593_v43, %v17587_v59  ;;  %v19842_v29 = vld [vmem:[#allocation226_spill] sm:$0xff]  ;;  %v19843_v1 = vld [vmem:[#allocation227_spill] sm:$0xff] }
 0x7cb   :  { %v6869_v18 = vpack.c.bf16 %v17595_v2, %v17589_v0 }
 0x7cd   :  { %6902 = vmatprep.mubr.bf16.mxu0 %v6869_v18  ;;  %6945 = vmatprep.mubr.bf16.mxu1 %v6869_v18 }
 0x7ce   :  { %6903 = vmatmul.mubr.bf16.vlgmr.msra.gmra.mxu0 %v17601_v36  ;;  %6946 = vmatmul.mubr.bf16.vlgmr.msra.gmra.mxu1 %v17601_v36 }
 0x7cf   :  { %6957 = vmatpush1.bf16.msra.mxu0 %v16497_v39  ;;  %6988 = vmatprep.mubr.bf16.mxu0 %v6869_v18  ;;  %v6780_v39 = vadd.f32 %v6768_v12, %v6559_v35  ;;  %v19844_v18 = vld [vmem:[#allocation9_spill] sm:$0xff]  ;;  %v19845_v35 = vld [vmem:[#allocation11_spill] sm:$0xff] }
 0x7d0   :  { %6958 = vmatprep.subr.bf16.mxu0 %v16503_v42  ;;  %7002 = vmatpush1.bf16.msra.mxu1 %v16509_v30  ;;  %v6781_v42 = vadd.f32 %v6769_v17, %v6561_v38  ;;  %v19832_v30 = vld [vmem:[#allocation42_spill] sm:$0xff]  ;;  %v19848_v12 = vld [vmem:[#allocation39_spill] sm:$0xff] }
 0x7d1   :  { %7003 = vmatprep.subr.bf16.mxu1 %v16515_v57  ;;  %v6774_v21 = vunpack.c.l.bf16 %v19832_v30  ;;  %v19833_v57 = vld [vmem:[#allocation217_spill] sm:$0xff]  ;;  %v6775_v24 = vunpack.c.h.bf16 %v19832_v30  ;;  %v19846_v38 = vld [vmem:[#allocation10_spill] sm:$0xff] }
 0x7d2   :  { %v8986_v13 = vmul.f32 -1.442695, %v6781_v42  ;;  %v19851_v17 = vld [vmem:[#allocation54_spill] sm:$0xff]  ;;  %v19852_v30 = vld [vmem:[#allocation81_spill] sm:$0xff] }
 0x7d3   :  { %6959 = vmatpush1.bf16.msra.mxu0 %v16521_v52  ;;  %v19834_v52 = vld [vmem:[#allocation218_spill] sm:$0xff]  ;;  %v6785_v44 = vadd.f32 %v6775_v24, %v6565_v15  ;;  %v19854_v15 = vld [vmem:[#allocation83_spill] sm:$0xff] }
 0x7d4   :  { %6960 = vmatprep.subr.bf16.mxu0 %v16528_v4  ;;  %7004 = vmatpush1.bf16.msra.mxu1 %v16534_v47  ;;  %v8985_v4 = vmul.f32 -1.442695, %v6780_v39  ;;  %v6784_v47 = vadd.f32 %v6774_v21, %v6563_v3  ;;  %v19849_v3 = vld [vmem:[#allocation41_spill] sm:$0xff]  ;;  %v19850_v39 = vld [vmem:[#allocation52_spill] sm:$0xff] }
 0x7d5   :  { %7005 = vmatprep.subr.bf16.mxu1 %v16540_v60  ;;  %v19836_v60 = vld [vmem:[#allocation220_spill] sm:$0xff]  ;;  %v8990_v61 = vmul.f32 -1.442695, %v6785_v44  ;;  %v19853_v21 = vld [vmem:[#allocation69_spill] sm:$0xff] }
 0x7d6   :  { %10295 = vpow2.f32 %v8985_v4  ;;  %v8989_v16 = vmul.f32 -1.442695, %v6784_v47  ;;  %v6771_v24 = vunpack.c.h.bf16 %v19853_v21 }
 0x7d7   :  { %6961 = vmatpush1.bf16.msra.mxu0 %v16547_v5  ;;  %v19838_v5 = vld [vmem:[#allocation222_spill] sm:$0xff]  ;;  %10297 = vpow2.f32 %v8986_v13 }
 0x7d8   :  { %6962 = vmatprep.subr.bf16.mxu0 %v19833_v57  ;;  %7006 = vmatpush1.bf16.msra.mxu1 %v19834_v52  ;;  %10299 = vpow2.f32 %v8989_v16  ;;  %v6770_v57 = vunpack.c.l.bf16 %v19853_v21  ;;  %v19857_v16 = vld [vmem:[#allocation13_spill] sm:$0xff]  ;;  %v19862_v21 = vld [vmem:[#allocation43_spill] sm:$0xff] }
 0x7d9   :  { %7007 = vmatprep.subr.bf16.mxu1 %v19835_v22  ;;  %10301 = vpow2.f32 %v8990_v61  ;;  %v19855_v22 = vld [vmem:[#allocation82_spill] sm:$0xff] }
 0x7db   :  { %6963 = vmatpush1.bf16.msra.mxu0 %v19836_v60  ;;  %v19856_v60 = vld [vmem:[#allocation84_spill] sm:$0xff] }
 0x7dc   :  { %6964 = vmatprep.subr.bf16.mxu0 %v19837_v34  ;;  %7008 = vmatpush1.bf16.msra.mxu1 %v19838_v5 }
 0x7dd   :  { %7009 = vmatprep.subr.bf16.mxu1 %v19839_v56 }
 0x7df   :  { %6965 = vmatpush1.bf16.msra.mxu0 %v19840_v23  ;;  %v19858_v23 = vld [vmem:[#allocation71_spill] sm:$0xff] }
 0x7e0   :  { %6966 = vmatprep.subr.bf16.mxu0 %v19841_v8  ;;  %7010 = vmatpush1.bf16.msra.mxu1 %v19842_v29  ;;  %v6776_v61 = vunpack.c.l.bf16 %v19858_v23 }
 0x7e1   :  { %7011 = vmatprep.subr.bf16.mxu1 %v19843_v1  ;;  %v19859_v1 = vld [vmem:[#allocation15_spill] sm:$0xff] }
 0x7e3   :  { %6967 = vmatpush1.bf16.msra.mxu0 %v19844_v18  ;;  %v10296_v42 = vpop.eup %10295  ;;  %v19860_v18 = vld [vmem:[#allocation14_spill] sm:$0xff] }
 0x7e4   :  { %6968 = vmatprep.subr.bf16.mxu0 %v19845_v35  ;;  %7012 = vmatpush1.bf16.msra.mxu1 %v19846_v38  ;;  %v10298_v4 = vpop.eup %10297  ;;  %v6812_v13 = vadd.f32 1.0, %v10296_v42 }
 0x7e5   :  { %7013 = vmatprep.subr.bf16.mxu1 %v19847_v11  ;;  %v10300_v34 = vpop.eup %10299  ;;  %v6813_v8 = vadd.f32 1.0, %v10298_v4  ;;  %v19865_v4 = vld [vmem:[#allocation50_spill] sm:$0xff] }
 0x7e6   :  { %v10302_v35 = vpop.eup %10301 }
 0x7e7   :  { %6969 = vmatpush1.bf16.msra.mxu0 %v19848_v12  ;;  %v6777_v12 = vunpack.c.h.bf16 %v19858_v23 }
 0x7e8   :  { %6970 = vmatprep.subr.bf16.mxu0 %v19849_v3  ;;  %7014 = vmatpush1.bf16.msra.mxu1 %v19850_v39  ;;  %v19861_v3 = vld [vmem:[#allocation16_spill] sm:$0xff]  ;;  %v6816_v39 = vadd.f32 1.0, %v10300_v34 }
 0x7e9   :  { %7015 = vmatprep.subr.bf16.mxu1 %v19851_v17  ;;  %v19871_v34 = vld [vmem:[#allocation56_spill] sm:$0xff] }
 0x7eb   :  { %6971 = vmatpush1.bf16.msra.mxu0 %v19852_v30 }
 0x7ec   :  { %v6602_v52 = vpop.f32.mrf.mxu0  ;;  %6972 = vmatprep.subr.bf16.mxu0 %v19854_v15  ;;  %7016 = vmatpush1.bf16.msra.mxu1 %v19855_v22  ;;  %v19864_v15 = vld [vmem:[#allocation48_spill] sm:$0xff] }
 0x7ed   :  { %v6782_v47 = vadd.f32 %v6770_v57, %v6602_v52  ;;  %7017 = vmatprep.subr.bf16.mxu1 %v19856_v60  ;;  %v6817_v57 = vadd.f32 1.0, %v10302_v35  ;;  %v19863_v52 = vld [vmem:[#allocation45_spill] sm:$0xff]  ;;  %v19868_v60 = vld [vmem:[#allocation8_spill] sm:$0xff] }
 0x7ee   :  { %v6604_v44 = vpop.f32.mrf.mxu0 }
 0x7ef   :  { %v8987_v5 = vmul.f32 -1.442695, %v6782_v47  ;;  %v6783_v56 = vadd.f32 %v6771_v24, %v6604_v44  ;;  %6973 = vmatpush2.bf16.msra.mxu0 %v19857_v16  ;;  %v19866_v47 = vld [vmem:[#allocation7_spill] sm:$0xff]  ;;  %v19867_v24 = vld [vmem:[#allocation6_spill] sm:$0xff]  ;;  %v19870_v44 = vld [vmem:[#allocation37_spill] sm:$0xff] }
 0x7f0   :  { %v6606_v29 = vpop.f32.mrf.mxu0  ;;  %6974 = vmatprep.subr.bf16.mxu0 %v19859_v1  ;;  %7018 = vmatpush2.bf16.msra.mxu1 %v19860_v18  ;;  %v19873_v16 = vld [vmem:[#allocation89_spill] sm:$0xff]  ;;  %v19874_v18 = vld [vmem:[#allocation90_spill] sm:$0xff] }
 0x7f1   :  { %10303 = vpow2.f32 %v8987_v5  ;;  %v8988_v38 = vmul.f32 -1.442695, %v6783_v56  ;;  %v6786_v11 = vadd.f32 %v6776_v61, %v6606_v29  ;;  %7019 = vmatprep.subr.bf16.mxu1 %v19861_v3  ;;  %v19872_v5 = vld [vmem:[#allocation58_spill] sm:$0xff] }
 0x7f2   :  { %10305 = vrcp.f32 %v6812_v13  ;;  %v6608_v17 = vpop.f32.mrf.mxu0  ;;  %v19869_v13 = vld [vmem:[#allocation35_spill] sm:$0xff] }
 0x7f3   :  { %10307 = vpow2.f32 %v8988_v38  ;;  %v8991_v42 = vmul.f32 -1.442695, %v6786_v11  ;;  %v6787_v30 = vadd.f32 %v6777_v12, %v6608_v17  ;;  %6975 = vmatpush2.bf16.msra.mxu0 %v19862_v21  ;;  %v19875_v38 = vld [vmem:[#allocation70_spill] sm:$0xff]  ;;  %v19877_v17 = vld [vmem:[#allocation92_spill] sm:$0xff] }
 0x7f4   :  { %10309 = vrcp.f32 %v6813_v8  ;;  %6976 = vmatprep.subr.bf16.mxu0 %v19863_v52  ;;  %7020 = vmatpush2.bf16.msra.mxu1 %v19864_v15  ;;  %v6772_v11 = vunpack.c.l.bf16 %v19875_v38  ;;  %v6773_v15 = vunpack.c.h.bf16 %v19875_v38  ;;  %v19882_v38 = vld [vmem:[#allocation96_spill] sm:$0xff] }
 0x7f5   :  { %10311 = vpow2.f32 %v8991_v42  ;;  %v8992_v22 = vmul.f32 -1.442695, %v6787_v30  ;;  %7021 = vmatprep.subr.bf16.mxu1 %v19865_v4 }
 0x7f6   :  { %10313 = vrcp.f32 %v6816_v39  ;;  %v19876_v39 = vld [vmem:[#allocation91_spill] sm:$0xff] }
 0x7f7   :  { %10315 = vpow2.f32 %v8992_v22  ;;  %6977 = vmatpush2.bf16.msra.mxu0 %v19866_v47 }
 0x7f8   :  { %10317 = vrcp.f32 %v6817_v57  ;;  %6978 = vmatprep.subr.bf16.mxu0 %v19867_v24  ;;  %7022 = vmatpush2.bf16.msra.mxu1 %v19868_v60  ;;  %v19878_v57 = vld [vmem:[#allocation93_spill] sm:$0xff]  ;;  %v19879_v60 = vld [vmem:[#allocation72_spill] sm:$0xff] }
 0x7f9   :  { %7023 = vmatprep.subr.bf16.mxu1 %v19869_v13  ;;  %v6778_v13 = vunpack.c.l.bf16 %v19879_v60 }
 0x7fb   :  { %6979 = vmatpush2.bf16.msra.mxu0 %v19870_v44 }
 0x7fc   :  { %6980 = vmatprep.subr.bf16.mxu0 %v19871_v34  ;;  %7024 = vmatpush2.bf16.msra.mxu1 %v19872_v5 }
 0x7fd   :  { %v6645_v56 = vpop.f32.mrf.mxu1  ;;  %7025 = vmatprep.subr.bf16.mxu1 %v19873_v16 }
 0x7fe   :  { %v10304_v23 = vpop.eup %10303  ;;  %v6836_v61 = vadd.f32 %v6645_v56, %v19264_v45 }
 0x7ff   :  { %v10306_v8 = vpop.eup %10305  ;;  %v6814_v29 = vadd.f32 1.0, %v10304_v23  ;;  %v6647_v1 = vpop.f32.mrf.mxu1  ;;  %6981 = vmatpush2.bf16.msra.mxu0 %v19874_v18  ;;  %v6779_v18 = vunpack.c.h.bf16 %v19879_v60 }
 0x800   :  { %v10308_v35 = vpop.eup %10307  ;;  %v6840_v12 = vmul.f32 %v10306_v8, %v6836_v61  ;;  %v6837_v3 = vadd.f32 %v6647_v1, %v19267_v32  ;;  %6982 = vmatprep.subr.bf16.mxu0 %v19876_v39  ;;  %7026 = vmatpush2.bf16.msra.mxu1 %v19877_v17  ;;  %v19880_v61 = vld [vmem:[#allocation94_spill] sm:$0xff]  ;;  %v19881_v1 = vld [vmem:[#allocation95_spill] sm:$0xff]  ;;  %v19886_v39 = vld [vmem:[#allocation100_spill] sm:$0xff] }
 0x801   :  { %v10310_v42 = vpop.eup %10309  ;;  %10319 = vrcp.f32 %v6814_v29  ;;  %v6815_v30 = vadd.f32 1.0, %v10308_v35  ;;  %v6649_v21 = vpop.f32.mrf.mxu1  ;;  %7027 = vmatprep.subr.bf16.mxu1 %v19878_v57  ;;  %v19887_v17 = vld [vmem:[#allocation101_spill] sm:$0xff]  ;;  %v19890_v57 = vld [vmem:[#allocation103_spill] sm:$0xff] }
 0x802   :  { %v10312_v52 = vpop.eup %10311  ;;  %v6844_v22 = vadd.f32 %v6840_v12, %v6772_v11  ;;  %v6841_v4 = vmul.f32 %v10310_v42, %v6837_v3  ;;  %v6838_v47 = vadd.f32 %v6649_v21, %v19264_v45  ;;  %v19883_v12 = vld [vmem:[#allocation97_spill] sm:$0xff]  ;;  %v19885_v3 = vld [vmem:[#allocation99_spill] sm:$0xff] }
 0x803   :  { %v10314_v24 = vpop.eup %10313  ;;  %10321 = vrcp.f32 %v6815_v30  ;;  %v6818_v44 = vadd.f32 1.0, %v10312_v52  ;;  %v6651_v34 = vpop.f32.mrf.mxu1  ;;  %6983 = vmatpush2.bf16.msra.mxu0 %v16823_v7  ;;  %v19888_v42 = vld [vmem:[#allocation77_spill] sm:$0xff]  ;;  %v19889_v30 = vld [vmem:[#allocation102_spill] sm:$0xff] }
 0x804   :  { %v10316_v5 = vpop.eup %10315  ;;  %10323 = vtanh.f32 %v6844_v22  ;;  %v6845_v56 = vadd.f32 %v6841_v4, %v6773_v15  ;;  %v6842_v16 = vmul.f32 %v10314_v24, %v6838_v47  ;;  %v6839_v23 = vadd.f32 %v6651_v34, %v19267_v32  ;;  %6984 = vmatprep.subr.bf16.mxu0 %v16830_v41  ;;  %7028 = vmatpush2.bf16.msra.mxu1 %v19880_v61  ;;  %v19884_v41 = vld [vmem:[#allocation98_spill] sm:$0xff]  ;;  %v19891_v22 = vld [vmem:[#allocation104_spill] sm:$0xff]  ;;  %v19892_v34 = vld [vmem:[#allocation105_spill] sm:$0xff] }
 0x805   :  { %v10318_v8 = vpop.eup %10317  ;;  %10325 = vrcp.f32 %v6818_v44  ;;  %v6819_v29 = vadd.f32 1.0, %v10316_v5  ;;  %7029 = vmatprep.subr.bf16.mxu1 %v19881_v1 }
 0x806   :  { %10327 = vtanh.f32 %v6845_v56  ;;  %v6846_v35 = vadd.f32 %v6842_v16, %v6778_v13  ;;  %v6843_v7 = vmul.f32 %v10318_v8, %v6839_v23 }
 0x807   :  { %10329 = vrcp.f32 %v6819_v29  ;;  %6985 = vmatpush2.bf16.msra.mxu0 %v19882_v38 }
 0x808   :  { %10331 = vtanh.f32 %v6846_v35  ;;  %v6847_v11 = vadd.f32 %v6843_v7, %v6779_v18  ;;  %6986 = vmatprep.subr.bf16.mxu0 %v19883_v12  ;;  %7030 = vmatpush2.bf16.msra.mxu1 %v19884_v41  ;;  %v19907_v12 = vld [vmem:[#allocation119_spill] sm:$0xff]  ;;  %v19908_v41 = vld [vmem:[#allocation120_spill] sm:$0xff] }
 0x809   :  { %7031 = vmatprep.subr.bf16.mxu1 %v19885_v3  ;;  %v19909_v3 = vld [vmem:[#allocation121_spill] sm:$0xff] }
 0x80a   :  { %10333 = vtanh.f32 %v6847_v11  ;;  %v19906_v11 = vld [vmem:[#allocation118_spill] sm:$0xff] }
 0x80b   :  { %6987 = vmatpush2.bf16.msra.mxu0 %v19886_v39  ;;  %v19910_v39 = vld [vmem:[#allocation78_spill] sm:$0xff] }
 0x80c   :  { %7044 = vmatprep.subr.bf16.mxu0 %v19887_v17  ;;  %7032 = vmatpush2.bf16.msra.mxu1 %v19888_v42  ;;  %v19911_v17 = vld [vmem:[#allocation122_spill] sm:$0xff]  ;;  %v19912_v42 = vld [vmem:[#allocation123_spill] sm:$0xff] }
 0x80d   :  { %7087 = vmatprep.subr.bf16.mxu1 %v19889_v30  ;;  %v19913_v30 = vld [vmem:[#allocation109_spill] sm:$0xff] }
 0x80e   :  { %v10320_v21 = vpop.eup %10319  ;;  %6989 = vmatmul.mubr.bf16.vlgmr.msra.gmra.mxu0 %v17601_v36 }
 0x80f   :  { %7045 = vmatpush1.bf16.msra.mxu0 %v19890_v57  ;;  %v6852_v52 = vsub.f32 1.0, %v10320_v21  ;;  %v6860_v13 = vmul.f32 %v10320_v21, %v16921_v28  ;;  %v19914_v21 = vld [vmem:[#allocation80_spill] sm:$0xff] }
 0x810   :  { %v10322_v15 = vpop.eup %10321  ;;  %7046 = vmatprep.subr.bf16.mxu0 %v19891_v22  ;;  %v19915_v57 = vld [vmem:[#allocation124_spill] sm:$0xff]  ;;  %v19918_v22 = vld [vmem:[#allocation125_spill] sm:$0xff] }
 0x811   :  { %v10324_v4 = vpop.eup %10323  ;;  %v6853_v47 = vsub.f32 1.0, %v10322_v15  ;;  %v6861_v16 = vmul.f32 %v10322_v15, %v16923_v37  ;;  %v19917_v15 = vld [vmem:[#allocation112_spill] sm:$0xff] }
 0x812   :  { %v10326_v24 = vpop.eup %10325  ;;  %v6856_v60 = vmul.f32 %v10324_v4, %v6852_v52  ;;  %v19916_v52 = vld [vmem:[#allocation86_spill] sm:$0xff] }
 0x813   :  { %v10328_v44 = vpop.eup %10327  ;;  %7047 = vmatpush1.bf16.msra.mxu0 %v19892_v34  ;;  %v6854_v5 = vsub.f32 1.0, %v10326_v24  ;;  %v6862_v18 = vmul.f32 %v10326_v24, %v16939_v50  ;;  %v19919_v4 = vld [vmem:[#allocation126_spill] sm:$0xff]  ;;  %v19921_v24 = vld [vmem:[#allocation88_spill] sm:$0xff]  ;;  %v19925_v34 = vld [vmem:[#allocation131_spill] sm:$0xff] }
 0x814   :  { %v10330_v56 = vpop.eup %10329  ;;  %7048 = vmatprep.subr.bf16.mxu0 %v16917_v31  ;;  %v6857_v36 = vmul.f32 %v10328_v44, %v6853_v47  ;;  %v17692_v23 = vadd.f32 %v6860_v13, %v6856_v60  ;;  %v19920_v47 = vld [vmem:[#allocation127_spill] sm:$0xff]  ;;  %v19922_v60 = vld [vmem:[#allocation128_spill] sm:$0xff]  ;;  %v19923_v13 = vld [vmem:[#allocation129_spill] sm:$0xff] }
 0x815   :  { %v10332_v61 = vpop.eup %10331  ;;  %v6855_v8 = vsub.f32 1.0, %v10330_v56  ;;  %v6863_v31 = vmul.f32 %v10330_v56, %v16941_v9  ;;  %v19895_v9 = vld [vmem:[#allocation107_spill] sm:$0xff]  ;;  %v19924_v44 = vld [vmem:[#allocation130_spill] sm:$0xff]  ;;  %v19927_v56 = vld [vmem:[#allocation133_spill] sm:$0xff] }
 0x816   :  { %v17694_v29 = vadd.f32 %v6861_v16, %v6857_v36  ;;  %v6858_v1 = vmul.f32 %v10332_v61, %v6854_v5  ;;  %v19926_v5 = vld [vmem:[#allocation132_spill] sm:$0xff]  ;;  %v19928_v36 = vld [vmem:[#allocation134_spill] sm:$0xff]  ;;  %v19929_v16 = vld [vmem:[#allocation135_spill] sm:$0xff] }
 0x817   :  { %v10334_v28 = vpop.eup %10333  ;;  %7049 = vmatpush1.bf16.msra.mxu0 %v16929_v26  ;;  %v19893_v26 = vld [vmem:[#allocation79_spill] sm:$0xff]  ;;  %v19930_v61 = vld [vmem:[#allocation136_spill] sm:$0xff] }
 0x818   :  { %7050 = vmatprep.subr.bf16.mxu0 %v16935_v46  ;;  %v6859_v35 = vmul.f32 %v10334_v28, %v6855_v8  ;;  %v17700_v7 = vadd.f32 %v6862_v18, %v6858_v1  ;;  %v19894_v46 = vld [vmem:[#allocation106_spill] sm:$0xff]  ;;  %v19931_v8 = vld [vmem:[#allocation137_spill] sm:$0xff]  ;;  %v19933_v18 = vld [vmem:[#allocation139_spill] sm:$0xff] }
 0x819   :  { %v19932_v1 = vld [vmem:[#allocation138_spill] sm:$0xff]  ;;  %v19934_v28 = vld [vmem:[#allocation140_spill] sm:$0xff] }
 0x81a   :  { %v17702_v37 = vadd.f32 %v6863_v31, %v6859_v35  ;;  %v17710_v50 = vpack.c.bf16 %v17700_v7, %v17692_v23  ;;  %v19935_v35 = vld [vmem:[#allocation141_spill] sm:$0xff]  ;;  %v19936_v31 = vld [vmem:[#allocation142_spill] sm:$0xff] }
 0x81b   :  { %7051 = vmatpush1.bf16.msra.mxu0 %v16946_v54  ;;  %v19896_v54 = vld [vmem:[#allocation108_spill] sm:$0xff] }
 0x81c   :  { %v7000_v38 = vpack.c.bf16 %v17702_v37, %v17694_v29  ;;  %7052 = vmatprep.subr.bf16.mxu0 %v16954_v63  ;;  %v19897_v63 = vld [vmem:[#allocation85_spill] sm:$0xff] }
 0x81e   :  { %7033 = vmatprep.mubr.bf16.mxu1 %v7000_v38  ;;  %7076 = vmatprep.mubr.bf16.mxu0 %v7000_v38 }
 0x81f   :  { %7034 = vmatmul.mubr.bf16.vlgmr.msra.gmra.mxu1 %v17710_v50  ;;  %7053 = vmatpush1.bf16.msra.mxu0 %v16965_v6  ;;  %v19898_v6 = vld [vmem:[#allocation110_spill] sm:$0xff] }
 0x820   :  { %7088 = vmatpush1.bf16.msra.mxu1 %v16971_v14  ;;  %7119 = vmatprep.mubr.bf16.mxu1 %v7000_v38  ;;  %v19899_v14 = vld [vmem:[#allocation111_spill] sm:$0xff] }
 0x821   :  { %7054 = vmatprep.subr.bf16.mxu0 %v16977_v40  ;;  %7089 = vmatprep.subr.bf16.mxu1 %v16983_v51  ;;  %v19900_v40 = vld [vmem:[#allocation113_spill] sm:$0xff]  ;;  %v19901_v51 = vld [vmem:[#allocation114_spill] sm:$0xff]  ;;  %v19937_v38 = vld [vmem:[#allocation143_spill] sm:$0xff] }
 0x823   :  { %7055 = vmatpush1.bf16.msra.mxu0 %v16989_v10  ;;  %v19902_v10 = vld [vmem:[#allocation87_spill] sm:$0xff] }
 0x824   :  { %7090 = vmatpush1.bf16.msra.mxu1 %v16995_v58  ;;  %7056 = vmatprep.subr.bf16.mxu0 %v17001_v27  ;;  %v19903_v58 = vld [vmem:[#allocation115_spill] sm:$0xff]  ;;  %v19904_v27 = vld [vmem:[#allocation116_spill] sm:$0xff] }
 0x825   :  { %7091 = vmatprep.subr.bf16.mxu1 %v17007_v19  ;;  %v19905_v19 = vld [vmem:[#allocation117_spill] sm:$0xff] }
 0x827   :  { %7057 = vmatpush1.bf16.msra.mxu0 %v19893_v26  ;;  %v19938_v26 = vld [vmem:[#allocation144_spill] sm:$0xff] }
 0x828   :  { %7092 = vmatpush1.bf16.msra.mxu1 %v19894_v46  ;;  %7058 = vmatprep.subr.bf16.mxu0 %v19895_v9  ;;  %v19939_v46 = vld [vmem:[#allocation145_spill] sm:$0xff]  ;;  %v19940_v9 = vld [vmem:[#allocation146_spill] sm:$0xff] }
 0x829   :  { %7093 = vmatprep.subr.bf16.mxu1 %v19896_v54  ;;  %v19941_v54 = vld [vmem:[#allocation147_spill] sm:$0xff] }
 0x82b   :  { %7059 = vmatpush1.bf16.msra.mxu0 %v19897_v63  ;;  %v19942_v63 = vld [vmem:[#allocation148_spill] sm:$0xff] }
 0x82c   :  { %7094 = vmatpush1.bf16.msra.mxu1 %v19898_v6  ;;  %7060 = vmatprep.subr.bf16.mxu0 %v19899_v14  ;;  %v19943_v6 = vld [vmem:[#allocation149_spill] sm:$0xff]  ;;  %v19944_v14 = vld [vmem:[#allocation150_spill] sm:$0xff] }
 0x82d   :  { %7095 = vmatprep.subr.bf16.mxu1 %v19900_v40  ;;  %v19945_v40 = vld [vmem:[#allocation151_spill] sm:$0xff] }
 0x82f   :  { %7061 = vmatpush2.bf16.msra.mxu0 %v19901_v51  ;;  %v19946_v51 = vld [vmem:[#allocation152_spill] sm:$0xff] }
 0x830   :  { %7096 = vmatpush1.bf16.msra.mxu1 %v19902_v10  ;;  %7062 = vmatprep.subr.bf16.mxu0 %v19903_v58  ;;  %v19947_v10 = vld [vmem:[#allocation153_spill] sm:$0xff]  ;;  %v19948_v58 = vld [vmem:[#allocation154_spill] sm:$0xff] }
 0x831   :  { %7097 = vmatprep.subr.bf16.mxu1 %v19904_v27  ;;  %v19949_v27 = vld [vmem:[#allocation155_spill] sm:$0xff] }
 0x833   :  { %7063 = vmatpush2.bf16.msra.mxu0 %v19905_v19  ;;  %v19950_v19 = vld [vmem:[#allocation156_spill] sm:$0xff] }
 0x834   :  { %7098 = vmatpush1.bf16.msra.mxu1 %v19906_v11  ;;  %7064 = vmatprep.subr.bf16.mxu0 %v19907_v12  ;;  %v19951_v11 = vld [vmem:[#allocation157_spill] sm:$0xff]  ;;  %v19952_v12 = vld [vmem:[#allocation158_spill] sm:$0xff] }
 0x835   :  { %7099 = vmatprep.subr.bf16.mxu1 %v19908_v41  ;;  %v19953_v41 = vld [vmem:[#allocation159_spill] sm:$0xff] }
 0x837   :  { %7065 = vmatpush2.bf16.msra.mxu0 %v19909_v3  ;;  %v19955_v3 = vld [vmem:[#allocation161_spill] sm:$0xff] }
 0x838   :  { %7100 = vmatpush1.bf16.msra.mxu1 %v19910_v39  ;;  %7066 = vmatprep.subr.bf16.mxu0 %v19911_v17  ;;  %v19956_v39 = vld [vmem:[#allocation162_spill] sm:$0xff]  ;;  %v19957_v17 = vld [vmem:[#allocation163_spill] sm:$0xff] }
 0x839   :  { %7101 = vmatprep.subr.bf16.mxu1 %v19912_v42  ;;  %v19959_v42 = vld [vmem:[#allocation165_spill] sm:$0xff] }
 0x83b   :  { %7067 = vmatpush2.bf16.msra.mxu0 %v19913_v30  ;;  %v19960_v30 = vld [vmem:[#allocation166_spill] sm:$0xff] }
 0x83c   :  { %7102 = vmatpush1.bf16.msra.mxu1 %v19914_v21  ;;  %7068 = vmatprep.subr.bf16.mxu0 %v19915_v57  ;;  %v19961_v21 = vld [vmem:[#allocation167_spill] sm:$0xff]  ;;  %v19962_v57 = vld [vmem:[#allocation168_spill] sm:$0xff] }
 0x83d   :  { %7103 = vmatprep.subr.bf16.mxu1 %v19916_v52  ;;  %v19963_v52 = vld [vmem:[#allocation169_spill] sm:$0xff] }
 0x83f   :  { %7069 = vmatpush2.bf16.msra.mxu0 %v19917_v15  ;;  %v19964_v15 = vld [vmem:[#allocation170_spill] sm:$0xff] }
 0x840   :  { %7104 = vmatpush2.bf16.msra.mxu1 %v19918_v22  ;;  %7070 = vmatprep.subr.bf16.mxu0 %v19919_v4  ;;  %v19965_v22 = vld [vmem:[#allocation171_spill] sm:$0xff]  ;;  %v19966_v4 = vld [vmem:[#allocation172_spill] sm:$0xff] }
 0x841   :  { %7105 = vmatprep.subr.bf16.mxu1 %v19920_v47  ;;  %v19967_v47 = vld [vmem:[#allocation173_spill] sm:$0xff] }
 0x843   :  { %7071 = vmatpush2.bf16.msra.mxu0 %v19921_v24  ;;  %v11114_v24 = vld [vmem:[%s18481_s3 + $0x274] ss:$24 sps:$4 sm:$0xff]  }
 0x844   :  { %7106 = vmatpush2.bf16.msra.mxu1 %v19922_v60  ;;  %7072 = vmatprep.subr.bf16.mxu0 %v19923_v13  ;;  %v11115_v60 = vld [vmem:[%s18481_s3 + $0x270] ss:$24 sps:$4 sm:$0xff]   ;;  %v11118_v13 = vld [vmem:[%s18481_s3 + $0x214] ss:$24 sps:$4 sm:$0xff]  }
 0x845   :  { %7107 = vmatprep.subr.bf16.mxu1 %v19924_v44  ;;  %v11119_v44 = vld [vmem:[%s18481_s3 + $0x210] ss:$24 sps:$4 sm:$0xff]  }
 0x847   :  { %7073 = vmatpush2.bf16.msra.mxu0 %v19925_v34  ;;  %v11120_v34 = vld [vmem:[%s18481_s3 + $0x1e4] ss:$24 sps:$4 sm:$0xff]  }
 0x848   :  { %7108 = vmatpush2.bf16.msra.mxu1 %v19926_v5  ;;  %7074 = vmatprep.subr.bf16.mxu0 %v19927_v56  ;;  %v19971_v5 = vld [vmem:[#allocation177_spill] sm:$0xff] }
 0x849   :  { %7109 = vmatprep.subr.bf16.mxu1 %v19928_v36  ;;  %v11121_v56 = vld [vmem:[%s18481_s3 + $0x1e0] ss:$24 sps:$4 sm:$0xff]  }
 0x84a   :  { %v19972_v36 = vld [vmem:[#allocation178_spill] sm:$0xff] }
 0x84b   :  { %7075 = vmatpush2.bf16.msra.mxu0 %v19929_v16  ;;  %v11122_v16 = vld [vmem:[%s18481_s3 + $0x1b4] ss:$24 sps:$4 sm:$0xff]  }
 0x84c   :  { %7110 = vmatpush2.bf16.msra.mxu1 %v19930_v61  ;;  %7346 = vmatprep.subr.bf16.mxu0 %v19931_v8  ;;  %v19973_v61 = vld [vmem:[#allocation179_spill] sm:$0xff] }
 0x84d   :  { %7111 = vmatprep.subr.bf16.mxu1 %v19932_v1  ;;  %v11123_v8 = vld [vmem:[%s18481_s3 + $0x1b0] ss:$24 sps:$4 sm:$0xff]  }
 0x84e   :  { %7077 = vmatmul.mubr.bf16.vlgmr.msra.gmra.mxu0 %v17710_v50  ;;  %v19974_v1 = vld [vmem:[#allocation180_spill] sm:$0xff] }
 0x84f   :  { %7347 = vmatpush1.bf16.msra.mxu0 %v19933_v18  ;;  %v11124_v18 = vld [vmem:[%s18481_s3 + $0x184] ss:$24 sps:$4 sm:$0xff]  }
 0x850   :  { %7112 = vmatpush2.bf16.msra.mxu1 %v19934_v28  ;;  %7348 = vmatprep.subr.bf16.mxu0 %v19935_v35  ;;  %v19975_v28 = vld [vmem:[#allocation181_spill] sm:$0xff] }
 0x851   :  { %7113 = vmatprep.subr.bf16.mxu1 %v19936_v31  ;;  %v11125_v35 = vld [vmem:[%s18481_s3 + $0x180] ss:$24 sps:$4 sm:$0xff]  }
 0x852   :  { %v11126_v31 = vld [vmem:[%s18481_s3 + $0x248] ss:$24 sps:$4 sm:$0xff]  }
 0x853   :  { %7349 = vmatpush1.bf16.msra.mxu0 %v19937_v38  ;;  %v11127_v38 = vld [vmem:[%s18481_s3 + $0x164] ss:$24 sps:$4 sm:$0xff]  }
 0x854   :  { %7114 = vmatpush2.bf16.msra.mxu1 %v19938_v26  ;;  %7350 = vmatprep.subr.bf16.mxu0 %v19939_v46  ;;  %v11128_v26 = vld [vmem:[%s18481_s3 + $0x21c] ss:$24 sps:$4 sm:$0xff]   ;;  %v11129_v46 = vld [vmem:[%s18481_s3 + $0x218] ss:$24 sps:$4 sm:$0xff]  }
 0x855   :  { %7115 = vmatprep.subr.bf16.mxu1 %v19940_v9  ;;  %v11130_v9 = vld [vmem:[%s18481_s3 + $0x1ec] ss:$24 sps:$4 sm:$0xff]  }
 0x857   :  { %7351 = vmatpush1.bf16.msra.mxu0 %v19941_v54  ;;  %v11131_v54 = vld [vmem:[%s18481_s3 + $0x1e8] ss:$24 sps:$4 sm:$0xff]  }
 0x858   :  { %7116 = vmatpush2.bf16.msra.mxu1 %v19942_v63  ;;  %7352 = vmatprep.subr.bf16.mxu0 %v19943_v6  ;;  %v11132_v63 = vld [vmem:[%s18481_s3 + $0x1bc] ss:$24 sps:$4 sm:$0xff]   ;;  %v11133_v6 = vld [vmem:[%s18481_s3 + $0x1b8] ss:$24 sps:$4 sm:$0xff]  }
 0x859   :  { %7117 = vmatprep.subr.bf16.mxu1 %v19944_v14  ;;  %v11134_v14 = vld [vmem:[%s18481_s3 + $0x18c] ss:$24 sps:$4 sm:$0xff]  }
 0x85b   :  { %7353 = vmatpush1.bf16.msra.mxu0 %v17326_v49  ;;  %v19954_v49 = vld [vmem:[#allocation160_spill] sm:$0xff] }
 0x85c   :  { %7118 = vmatpush2.bf16.msra.mxu1 %v19945_v40  ;;  %7354 = vmatprep.subr.bf16.mxu0 %v19946_v51  ;;  %v11135_v40 = vld [vmem:[%s18481_s3 + $0x188] ss:$24 sps:$4 sm:$0xff]   ;;  %v11136_v51 = vld [vmem:[%s18481_s3 + $0x454] ss:$24 sps:$4 sm:$0xff]  }
 0x85d   :  { %7389 = vmatprep.subr.bf16.mxu1 %v19947_v10 }
 0x85f   :  { %7120 = vmatmul.mubr.bf16.vlgmr.msra.gmra.mxu1 %v17710_v50  ;;  %7355 = vmatpush1.bf16.msra.mxu0 %v19948_v58  ;;  %v19958_v50 = vld [vmem:[#allocation164_spill] sm:$0xff] }
 0x860   :  { %7390 = vmatpush1.bf16.msra.mxu1 %v19949_v27  ;;  %7356 = vmatprep.subr.bf16.mxu0 %v19950_v19  ;;  %v19976_v27 = vld [vmem:[#allocation25_spill] sm:$0xff] }
 0x861   :  { %7391 = vmatprep.subr.bf16.mxu1 %v19951_v11  ;;  %v7144_v19 = vunpack.c.l.bf16 %v19976_v27 }
 0x863   :  { %7357 = vmatpush1.bf16.msra.mxu0 %v19952_v12 }
 0x864   :  { %7392 = vmatpush1.bf16.msra.mxu1 %v19953_v41  ;;  %7358 = vmatprep.subr.bf16.mxu0 %v19954_v49  ;;  %v7145_v41 = vunpack.c.h.bf16 %v19976_v27 }
 0x865   :  { %7393 = vmatprep.subr.bf16.mxu1 %v19955_v3  ;;  %v19977_v3 = vld [vmem:[#allocation27_spill] sm:$0xff] }
 0x867   :  { %7359 = vmatpush1.bf16.msra.mxu0 %v19956_v39  ;;  %v7150_v39 = vunpack.c.l.bf16 %v19977_v3 }
 0x868   :  { %7394 = vmatpush1.bf16.msra.mxu1 %v19957_v17  ;;  %7360 = vmatprep.subr.bf16.mxu0 %v19958_v50 }
 0x869   :  { %7395 = vmatprep.subr.bf16.mxu1 %v19959_v42 }
 0x86b   :  { %7361 = vmatpush1.bf16.msra.mxu0 %v19960_v30 }
 0x86c   :  { %7396 = vmatpush1.bf16.msra.mxu1 %v19961_v21  ;;  %7362 = vmatprep.subr.bf16.mxu0 %v19962_v57  ;;  %v7151_v21 = vunpack.c.h.bf16 %v19977_v3 }
 0x86d   :  { %7397 = vmatprep.subr.bf16.mxu1 %v19963_v52 }
 0x86f   :  { %7363 = vmatpush2.bf16.msra.mxu0 %v19964_v15 }
 0x870   :  { %7398 = vmatpush1.bf16.msra.mxu1 %v19965_v22  ;;  %7364 = vmatprep.subr.bf16.mxu0 %v17459_v33  ;;  %v11116_v33 = vld [vmem:[%s18481_s3 + $0x244] ss:$24 sps:$4 sm:$0xff]  }
 0x871   :  { %7399 = vmatprep.subr.bf16.mxu1 %v19966_v4 }
 0x873   :  { %7365 = vmatpush2.bf16.msra.mxu0 %v19967_v47  ;;  %v19978_v47 = vld [vmem:[#allocation26_spill] sm:$0xff] }
 0x874   :  { %7400 = vmatpush1.bf16.msra.mxu1 %v17477_v62  ;;  %7366 = vmatprep.subr.bf16.mxu0 %v11114_v24  ;;  %v11117_v62 = vld [vmem:[%s18481_s3 + $0x240] ss:$24 sps:$4 sm:$0xff]   ;;  %v7146_v24 = vunpack.c.l.bf16 %v19978_v47 }
 0x875   :  { %7401 = vmatprep.subr.bf16.mxu1 %v17484_v25  ;;  %v19968_v25 = vld [vmem:[#allocation174_spill] sm:$0xff] }
 0x877   :  { %7367 = vmatpush2.bf16.msra.mxu0 %v11115_v60 }
 0x878   :  { %7402 = vmatpush1.bf16.msra.mxu1 %v17491_v20  ;;  %7368 = vmatprep.subr.bf16.mxu0 %v11116_v33  ;;  %v19969_v20 = vld [vmem:[#allocation175_spill] sm:$0xff] }
 0x879   :  { %7403 = vmatprep.subr.bf16.mxu1 %v17498_v53  ;;  %v19970_v53 = vld [vmem:[#allocation176_spill] sm:$0xff] }
 0x87b   :  { %7369 = vmatpush2.bf16.msra.mxu0 %v11117_v62  ;;  %v7147_v62 = vunpack.c.h.bf16 %v19978_v47 }
 0x87c   :  { %7404 = vmatpush1.bf16.msra.mxu1 %v19968_v25  ;;  %7370 = vmatprep.subr.bf16.mxu0 %v11118_v13  ;;  %v19979_v25 = vld [vmem:[#allocation28_spill] sm:$0xff] }
 0x87d   :  { %7405 = vmatprep.subr.bf16.mxu1 %v19969_v20  ;;  %v7152_v13 = vunpack.c.l.bf16 %v19979_v25 }
 0x87f   :  { %7371 = vmatpush2.bf16.msra.mxu0 %v11119_v44 }
 0x880   :  { %7406 = vmatpush2.bf16.msra.mxu1 %v19970_v53  ;;  %7372 = vmatprep.subr.bf16.mxu0 %v11120_v34  ;;  %v7153_v34 = vunpack.c.h.bf16 %v19979_v25 }
 0x881   :  { %7407 = vmatprep.subr.bf16.mxu1 %v19971_v5 }
 0x883   :  { %7373 = vmatpush2.bf16.msra.mxu0 %v11121_v56 }
 0x884   :  { %7408 = vmatpush2.bf16.msra.mxu1 %v19972_v36  ;;  %7374 = vmatprep.subr.bf16.mxu0 %v11122_v16 }
 0x885   :  { %7409 = vmatprep.subr.bf16.mxu1 %v19973_v61 }
 0x887   :  { %7375 = vmatpush2.bf16.msra.mxu0 %v11123_v8 }
 0x888   :  { %7410 = vmatpush2.bf16.msra.mxu1 %v19974_v1  ;;  %7376 = vmatprep.subr.bf16.mxu0 %v11124_v18 }
 0x889   :  { %7411 = vmatprep.subr.bf16.mxu1 %v19975_v28 }
 0x88b   :  { %7377 = vmatpush2.bf16.msra.mxu0 %v11125_v35 }
 0x88c   :  { %7412 = vmatpush2.bf16.msra.mxu1 %v11126_v31  ;;  %7432 = vmatprep.subr.bf16.mxu0 %v11127_v38 }
 0x88d   :  { %7413 = vmatprep.subr.bf16.mxu1 %v11128_v26 }
 0x88e   :  { %v6904_v10 = vpop.f32.mrf.mxu0  ;;  %v6947_v42 = vpop.f32.mrf.mxu1 }
 0x88f   :  { %v7156_v12 = vadd.f32 %v7144_v19, %v6904_v10  ;;  %v7158_v33 = vadd.f32 %v7146_v24, %v6947_v42  ;;  %v19980_v19 = vld [vmem:[#allocation55_spill] sm:$0xff] }
 0x890   :  { %7414 = vmatpush2.bf16.msra.mxu1 %v11129_v46  ;;  %v6906_v58 = vpop.f32.mrf.mxu0  ;;  %v6949_v15 = vpop.f32.mrf.mxu1  ;;  %v7149_v3 = vunpack.c.h.bf16 %v19980_v19 }
 0x891   :  { %7415 = vmatprep.subr.bf16.mxu1 %v11130_v9  ;;  %v7157_v49 = vadd.f32 %v7145_v41, %v6906_v58  ;;  %v8993_v50 = vmul.f32 -1.442695, %v7156_v12  ;;  %v7159_v20 = vadd.f32 %v7147_v62, %v6949_v15  ;;  %v8995_v5 = vmul.f32 -1.442695, %v7158_v33 }
 0x892   :  { %v6908_v11 = vpop.f32.mrf.mxu0  ;;  %v6951_v60 = vpop.f32.mrf.mxu1 }
 0x893   :  { %v7160_v30 = vadd.f32 %v7150_v39, %v6908_v11  ;;  %v8994_v57 = vmul.f32 -1.442695, %v7157_v49  ;;  %10335 = vpow2.f32 %v8993_v50  ;;  %v7162_v53 = vadd.f32 %v7152_v13, %v6951_v60 }
 0x894   :  { %7416 = vmatpush2.bf16.msra.mxu1 %v11131_v54  ;;  %v6910_v17 = vpop.f32.mrf.mxu0  ;;  %v6953_v44 = vpop.f32.mrf.mxu1  ;;  %v8996_v36 = vmul.f32 -1.442695, %v7159_v20  ;;  %v7148_v11 = vunpack.c.l.bf16 %v19980_v19  ;;  %v19982_v19 = vld [vmem:[#allocation36_spill] sm:$0xff] }
 0x895   :  { %7417 = vmatprep.subr.bf16.mxu1 %v11132_v63  ;;  %v7161_v52 = vadd.f32 %v7151_v21, %v6910_v17  ;;  %v8997_v22 = vmul.f32 -1.442695, %v7160_v30  ;;  %10337 = vpow2.f32 %v8994_v57  ;;  %v7163_v56 = vadd.f32 %v7153_v34, %v6953_v44  ;;  %v19981_v57 = vld [vmem:[#allocation57_spill] sm:$0xff] }
 0x896   :  { %v8999_v61 = vmul.f32 -1.442695, %v7162_v53  ;;  %v7155_v60 = vunpack.c.h.bf16 %v19981_v57 }
 0x897   :  { %v8998_v4 = vmul.f32 -1.442695, %v7161_v52  ;;  %10339 = vpow2.f32 %v8997_v22  ;;  %v9000_v1 = vmul.f32 -1.442695, %v7163_v56  ;;  %v7154_v52 = vunpack.c.l.bf16 %v19981_v57  ;;  %v11146_v57 = vld [vmem:[%s18481_s3 + $0xd4] ss:$24 sps:$4 sm:$0xff]  }
 0x898   :  { %7418 = vmatpush2.bf16.msra.mxu1 %v11133_v6 }
 0x899   :  { %7419 = vmatprep.subr.bf16.mxu1 %v11134_v14  ;;  %10341 = vpow2.f32 %v8998_v4 }
 0x89a   :  { %10343 = vpow2.f32 %v8995_v5 }
 0x89b   :  { %10345 = vpow2.f32 %v8996_v36 }
 0x89c   :  { %7420 = vmatpush2.bf16.msra.mxu1 %v11135_v40  ;;  %10347 = vpow2.f32 %v8999_v61 }
 0x89d   :  { %7477 = vmatprep.subr.bf16.mxu1 %v11136_v51  ;;  %10349 = vpow2.f32 %v9000_v1 }
 0x8a0   :  { %v10336_v16 = vpop.eup %10335 }
 0x8a1   :  { %v7188_v18 = vadd.f32 1.0, %v10336_v16 }
 0x8a2   :  { %v10338_v8 = vpop.eup %10337 }
 0x8a3   :  { %v7189_v35 = vadd.f32 1.0, %v10338_v8  ;;  %10351 = vrcp.f32 %v7188_v18 }
 0x8a4   :  { %v10340_v28 = vpop.eup %10339 }
 0x8a5   :  { %v7192_v38 = vadd.f32 1.0, %v10340_v28  ;;  %10353 = vrcp.f32 %v7189_v35 }
 0x8a6   :  { %v10342_v31 = vpop.eup %10341 }
 0x8a7   :  { %v7193_v26 = vadd.f32 1.0, %v10342_v31  ;;  %10355 = vrcp.f32 %v7192_v38  ;;  %v10344_v46 = vpop.eup %10343 }
 0x8a8   :  { %v10346_v9 = vpop.eup %10345  ;;  %v7190_v63 = vadd.f32 1.0, %v10344_v46 }
 0x8a9   :  { %10357 = vrcp.f32 %v7193_v26  ;;  %v10348_v54 = vpop.eup %10347  ;;  %v7191_v40 = vadd.f32 1.0, %v10346_v9 }
 0x8aa   :  { %v10350_v14 = vpop.eup %10349  ;;  %v7194_v58 = vadd.f32 1.0, %v10348_v54  ;;  %10359 = vrcp.f32 %v7190_v63 }
 0x8ab   :  { %v7195_v39 = vadd.f32 1.0, %v10350_v14  ;;  %10361 = vrcp.f32 %v7191_v40 }
 0x8ac   :  { %10363 = vrcp.f32 %v7194_v58  ;;  %v11140_v58 = vld [vmem:[%s18481_s3 + $0x424] ss:$24 sps:$4 sm:$0xff]  }
 0x8b0   :  { %v10352_v10 = vpop.eup %10351 }
 0x8b2   :  { %v10354_v49 = vpop.eup %10353 }
 0x8b4   :  { %v10356_v21 = vpop.eup %10355 }
 0x8b6   :  { %v10358_v24 = vpop.eup %10357 }
 0x8b7   :  { %v10360_v13 = vpop.eup %10359 }
 0x8b8   :  { %v10362_v20 = vpop.eup %10361  ;;  %v7228_v53 = vsub.f32 1.0, %v10360_v13  ;;  %v7236_v16 = vmul.f32 %v10360_v13, %v17587_v59  ;;  %v11151_v13 = vld [vmem:[%s18481_s3 + $0x3c0] ss:$24 sps:$4 sm:$0xff]  }
 0x8b9   :  { %v10364_v44 = vpop.eup %10363  ;;  %v7229_v56 = vsub.f32 1.0, %v10362_v20  ;;  %v7237_v1 = vmul.f32 %v10362_v20, %v17589_v0  ;;  %v11152_v20 = vld [vmem:[%s18481_s3 + $0x394] ss:$24 sps:$4 sm:$0xff]  }
 0x8ba   :  { %v7230_v18 = vsub.f32 1.0, %v10364_v44  ;;  %v7238_v46 = vmul.f32 %v10364_v44, %v17593_v43  ;;  %v11137_v43 = vld [vmem:[%s18481_s3 + $0x160] ss:$24 sps:$4 sm:$0xff]  }
 0x8ce   :  { %v6990_v6 = vpop.f32.mrf.mxu0 }
 0x8cf   :  { %v7212_v51 = vadd.f32 %v6990_v6, %v13474_v48 }
 0x8d0   :  { %v6992_v27 = vpop.f32.mrf.mxu0 }
 0x8d1   :  { %v7216_v12 = vmul.f32 %v10352_v10, %v7212_v51  ;;  %v7213_v41 = vadd.f32 %v6992_v27, %v13479_v55  ;;  %v11139_v51 = vld [vmem:[%s18481_s3 + $0x450] ss:$24 sps:$4 sm:$0xff]  }
 0x8d2   :  { %v6994_v17 = vpop.f32.mrf.mxu0  ;;  %v11141_v27 = vld [vmem:[%s18481_s3 + $0x130] ss:$24 sps:$4 sm:$0xff]  }
 0x8d3   :  { %v7220_v50 = vadd.f32 %v7216_v12, %v7148_v11  ;;  %v7217_v42 = vmul.f32 %v10354_v49, %v7213_v41  ;;  %v7214_v30 = vadd.f32 %v6994_v17, %v13474_v48  ;;  %v7244_v11 = vunpack.c.l.bf16 %v19982_v19  ;;  %v11142_v12 = vld [vmem:[%s18481_s3 + $0x104] ss:$24 sps:$4 sm:$0xff]   ;;  %v11143_v41 = vld [vmem:[%s18481_s3 + $0x420] ss:$24 sps:$4 sm:$0xff]  }
 0x8d4   :  { %v6996_v15 = vpop.f32.mrf.mxu0  ;;  %v7245_v17 = vunpack.c.h.bf16 %v19982_v19 }
 0x8d5   :  { %10365 = vtanh.f32 %v7220_v50  ;;  %v7221_v22 = vadd.f32 %v7217_v42, %v7149_v3  ;;  %v7218_v4 = vmul.f32 %v10356_v21, %v7214_v30  ;;  %v7215_v47 = vadd.f32 %v6996_v15, %v13479_v55  ;;  %v11144_v3 = vld [vmem:[%s18481_s3 + $0x3f4] ss:$24 sps:$4 sm:$0xff]   ;;  %v11145_v50 = vld [vmem:[%s18481_s3 + $0x100] ss:$24 sps:$4 sm:$0xff]  }
 0x8d6   :  { %10367 = vrcp.f32 %v7195_v39  ;;  %v19983_v30 = vld [vmem:[#allocation38_spill] sm:$0xff] }
 0x8d7   :  { %10369 = vtanh.f32 %v7221_v22  ;;  %v7222_v33 = vadd.f32 %v7218_v4, %v7154_v52  ;;  %v7219_v62 = vmul.f32 %v10358_v24, %v7215_v47  ;;  %v7250_v21 = vunpack.c.l.bf16 %v19983_v30  ;;  %v11147_v52 = vld [vmem:[%s18481_s3 + $0x3f0] ss:$24 sps:$4 sm:$0xff]   ;;  %v11148_v22 = vld [vmem:[%s18481_s3 + $0x3c4] ss:$24 sps:$4 sm:$0xff]  }
 0x8d8   :  { %v7251_v24 = vunpack.c.h.bf16 %v19983_v30  ;;  %v11171_v30 = vld [vmem:[%s18481_s3 + $0x5d0] ss:$24 sps:$4 sm:$0xff]  }
 0x8d9   :  { %10371 = vtanh.f32 %v7222_v33  ;;  %v7223_v25 = vadd.f32 %v7219_v62, %v7155_v60  ;;  %v11149_v60 = vld [vmem:[%s18481_s3 + $0xd0] ss:$24 sps:$4 sm:$0xff]  }
 0x8db   :  { %10373 = vtanh.f32 %v7223_v25  ;;  %v11150_v25 = vld [vmem:[%s18481_s3 + $0xa4] ss:$24 sps:$4 sm:$0xff]  }
 0x8df   :  { %v7035_v40 = vpop.f32.mrf.mxu1 }
 0x8e0   :  { %v7256_v39 = vadd.f32 %v7244_v11, %v7035_v40  ;;  %v11166_v40 = vld [vmem:[%s18481_s3 + $0x2e4] ss:$24 sps:$4 sm:$0xff]  }
 0x8e1   :  { %v7037_v10 = vpop.f32.mrf.mxu1 }
 0x8e2   :  { %v10366_v34 = vpop.eup %10365  ;;  %v7257_v42 = vadd.f32 %v7245_v17, %v7037_v10  ;;  %v9001_v4 = vmul.f32 -1.442695, %v7256_v39 }
 0x8e3   :  { %v10368_v5 = vpop.eup %10367  ;;  %v7232_v36 = vmul.f32 %v10366_v34, %v7228_v53  ;;  %v7039_v49 = vpop.f32.mrf.mxu1  ;;  %v11153_v53 = vld [vmem:[%s18481_s3 + $0xa0] ss:$24 sps:$4 sm:$0xff]  }
 0x8e4   :  { %v10370_v61 = vpop.eup %10369  ;;  %v7231_v31 = vsub.f32 1.0, %v10368_v5  ;;  %v7239_v63 = vmul.f32 %v10368_v5, %v17595_v2  ;;  %v11138_v2 = vld [vmem:[%s18481_s3 + $0x134] ss:$24 sps:$4 sm:$0xff]   ;;  %v7260_v47 = vadd.f32 %v7250_v21, %v7039_v49  ;;  %v9002_v33 = vmul.f32 -1.442695, %v7257_v42 }
 0x8e5   :  { %v7233_v8 = vmul.f32 %v10370_v61, %v7229_v56  ;;  %v17899_v28 = vadd.f32 %v7236_v16, %v7232_v36  ;;  %v7041_v15 = vpop.f32.mrf.mxu1  ;;  %10375 = vpow2.f32 %v9001_v4  ;;  %v11154_v5 = vld [vmem:[%s18481_s3 + $0x74] ss:$24 sps:$4 sm:$0xff]   ;;  %v11155_v56 = vld [vmem:[%s18481_s3 + $0x390] ss:$24 sps:$4 sm:$0xff]   ;;  %v11156_v36 = vld [vmem:[%s18481_s3 + $0x364] ss:$24 sps:$4 sm:$0xff]  }
 0x8e6   :  { %v10372_v35 = vpop.eup %10371  ;;  %v7261_v62 = vadd.f32 %v7251_v24, %v7041_v15  ;;  %v9005_v44 = vmul.f32 -1.442695, %v7260_v47  ;;  %10377 = vpow2.f32 %v9002_v33  ;;  %v11157_v16 = vld [vmem:[%s18481_s3 + $0x70] ss:$24 sps:$4 sm:$0xff]   ;;  %v11158_v61 = vld [vmem:[%s18481_s3 + $0x44] ss:$24 sps:$4 sm:$0xff]  }
 0x8e7   :  { %v17901_v38 = vadd.f32 %v7237_v1, %v7233_v8  ;;  %v7234_v26 = vmul.f32 %v10372_v35, %v7230_v18  ;;  %v11159_v8 = vld [vmem:[%s18481_s3 + $0x360] ss:$24 sps:$4 sm:$0xff]   ;;  %v11160_v1 = vld [vmem:[%s18481_s3 + $0x334] ss:$24 sps:$4 sm:$0xff]   ;;  %v11173_v33 = vld [vmem:[%s18481_s3 + $0x2b0] ss:$24 sps:$4 sm:$0xff]  }
 0x8e8   :  { %v10374_v9 = vpop.eup %10373  ;;  %v9006_v34 = vmul.f32 -1.442695, %v7261_v62  ;;  %10379 = vpow2.f32 %v9005_v44  ;;  %v11161_v18 = vld [vmem:[%s18481_s3 + $0x40] ss:$24 sps:$4 sm:$0xff]   ;;  %v11162_v35 = vld [vmem:[%s18481_s3 + $0x14] ss:$24 sps:$4 sm:$0xff]  }
 0x8e9   :  { %v7235_v54 = vmul.f32 %v10374_v9, %v7231_v31  ;;  %v17905_v6 = vadd.f32 %v7238_v46, %v7234_v26  ;;  %v11163_v31 = vld [vmem:[%s18481_s3 + $0x330] ss:$24 sps:$4 sm:$0xff]   ;;  %v11164_v26 = vld [vmem:[%s18481_s3 + $0x304] ss:$24 sps:$4 sm:$0xff]   ;;  %v11169_v49 = vld [vmem:[%s18481_s3 + $0x2e0] ss:$24 sps:$4 sm:$0xff]  }
 0x8ea   :  { %10381 = vpow2.f32 %v9006_v34  ;;  %v11165_v9 = vld [vmem:[%s18481_s3 + $0x10] ss:$24 sps:$4 sm:$0xff]   ;;  %v11170_v42 = vld [vmem:[%s18481_s3 + $0x2b4] ss:$24 sps:$4 sm:$0xff]  }
 0x8eb   :  { %v17907_v59 = vadd.f32 %v7239_v63, %v7235_v54  ;;  %v17913_v14 = vpack.c.bf16 %v17905_v6, %v17899_v28  ;;  %v19984_v54 = vld [vmem:[#allocation65_spill] sm:$0xff]  ;;  %v11176_v44 = vld [vmem:[%s18481_s3 + $0x574] ss:$24 sps:$4 sm:$0xff]  }
 0x8ec   :  { %v7246_v63 = vunpack.c.l.bf16 %v19984_v54  ;;  %v7247_v10 = vunpack.c.h.bf16 %v19984_v54  ;;  %v11178_v34 = vld [vmem:[%s18481_s3 + $0x254] ss:$24 sps:$4 sm:$0xff]  }
 0x8ed   :  { %v7345_v0 = vpack.c.bf16 %v17907_v59, %v17901_v38 }
 0x8ef   :  { %7378 = vmatprep.mubr.bf16.mxu0 %v7345_v0  ;;  %7421 = vmatprep.mubr.bf16.mxu1 %v7345_v0 }
 0x8f0   :  { %7379 = vmatmul.mubr.bf16.vlgmr.msra.gmra.mxu0 %v17913_v14  ;;  %7422 = vmatmul.mubr.bf16.vlgmr.msra.gmra.mxu1 %v17913_v14 }
 0x8f1   :  { %7433 = vmatpush1.bf16.msra.mxu0 %v11137_v43  ;;  %7464 = vmatprep.mubr.bf16.mxu0 %v7345_v0  ;;  %v11167_v43 = vld [vmem:[%s18481_s3 + $0x300] ss:$24 sps:$4 sm:$0xff]  }
 0x8f2   :  { %7434 = vmatprep.subr.bf16.mxu0 %v11138_v2  ;;  %7478 = vmatpush1.bf16.msra.mxu1 %v11139_v51  ;;  %v10376_v46 = vpop.eup %10375 }
 0x8f3   :  { %7479 = vmatprep.subr.bf16.mxu1 %v11140_v58  ;;  %v10378_v2 = vpop.eup %10377  ;;  %v11168_v58 = vld [vmem:[%s18481_s3 + $0x5d4] ss:$24 sps:$4 sm:$0xff]  }
 0x8f4   :  { %v7289_v17 = vadd.f32 1.0, %v10378_v2  ;;  %v11186_v2 = vld [vmem:[%s18481_s3 + $0x1f4] ss:$24 sps:$4 sm:$0xff]  }
 0x8f5   :  { %7435 = vmatpush1.bf16.msra.mxu0 %v11141_v27  ;;  %v7288_v27 = vadd.f32 1.0, %v10376_v46  ;;  %v10380_v11 = vpop.eup %10379 }
 0x8f6   :  { %7436 = vmatprep.subr.bf16.mxu0 %v11142_v12  ;;  %7480 = vmatpush1.bf16.msra.mxu1 %v11143_v41  ;;  %v7292_v4 = vadd.f32 1.0, %v10380_v11 }
 0x8f7   :  { %7481 = vmatprep.subr.bf16.mxu1 %v11144_v3  ;;  %v19985_v3 = vld [vmem:[#allocation67_spill] sm:$0xff]  ;;  %v10382_v21 = vpop.eup %10381 }
 0x8f8   :  { %v7252_v39 = vunpack.c.l.bf16 %v19985_v3  ;;  %v7253_v15 = vunpack.c.h.bf16 %v19985_v3  ;;  %v7293_v62 = vadd.f32 1.0, %v10382_v21  ;;  %v11189_v21 = vld [vmem:[%s18481_s3 + $0x1f0] ss:$24 sps:$4 sm:$0xff]  }
 0x8f9   :  { %7437 = vmatpush1.bf16.msra.mxu0 %v11145_v50 }
 0x8fa   :  { %7438 = vmatprep.subr.bf16.mxu0 %v11146_v57  ;;  %7482 = vmatpush1.bf16.msra.mxu1 %v11147_v52 }
 0x8fb   :  { %7483 = vmatprep.subr.bf16.mxu1 %v11148_v22  ;;  %v11172_v22 = vld [vmem:[%s18481_s3 + $0x5a4] ss:$24 sps:$4 sm:$0xff]  }
 0x8fd   :  { %7439 = vmatpush1.bf16.msra.mxu0 %v11149_v60 }
 0x8fe   :  { %7440 = vmatprep.subr.bf16.mxu0 %v11150_v25  ;;  %7484 = vmatpush1.bf16.msra.mxu1 %v11151_v13  ;;  %v11174_v25 = vld [vmem:[%s18481_s3 + $0x284] ss:$24 sps:$4 sm:$0xff]   ;;  %v11175_v13 = vld [vmem:[%s18481_s3 + $0x5a0] ss:$24 sps:$4 sm:$0xff]  }
 0x8ff   :  { %7485 = vmatprep.subr.bf16.mxu1 %v11152_v20 }
 0x901   :  { %7441 = vmatpush1.bf16.msra.mxu0 %v11153_v53  ;;  %v11177_v53 = vld [vmem:[%s18481_s3 + $0x280] ss:$24 sps:$4 sm:$0xff]  }
 0x902   :  { %7442 = vmatprep.subr.bf16.mxu0 %v11154_v5  ;;  %7486 = vmatpush1.bf16.msra.mxu1 %v11155_v56  ;;  %v11179_v5 = vld [vmem:[%s18481_s3 + $0x570] ss:$24 sps:$4 sm:$0xff]   ;;  %v11180_v56 = vld [vmem:[%s18481_s3 + $0x544] ss:$24 sps:$4 sm:$0xff]  }
 0x903   :  { %7487 = vmatprep.subr.bf16.mxu1 %v11156_v36  ;;  %v11181_v36 = vld [vmem:[%s18481_s3 + $0x250] ss:$24 sps:$4 sm:$0xff]  }
 0x905   :  { %7443 = vmatpush1.bf16.msra.mxu0 %v11157_v16  ;;  %v11182_v16 = vld [vmem:[%s18481_s3 + $0x224] ss:$24 sps:$4 sm:$0xff]  }
 0x906   :  { %7444 = vmatprep.subr.bf16.mxu0 %v11158_v61  ;;  %7488 = vmatpush1.bf16.msra.mxu1 %v11159_v8  ;;  %v11183_v61 = vld [vmem:[%s18481_s3 + $0x540] ss:$24 sps:$4 sm:$0xff]  }
 0x907   :  { %7489 = vmatprep.subr.bf16.mxu1 %v11160_v1  ;;  %v11184_v1 = vld [vmem:[%s18481_s3 + $0x514] ss:$24 sps:$4 sm:$0xff]  }
 0x909   :  { %7445 = vmatpush1.bf16.msra.mxu0 %v11161_v18 }
 0x90a   :  { %7446 = vmatprep.subr.bf16.mxu0 %v11162_v35  ;;  %7490 = vmatpush1.bf16.msra.mxu1 %v11163_v31 }
 0x90b   :  { %7491 = vmatprep.subr.bf16.mxu1 %v11164_v26 }
 0x90d   :  { %7447 = vmatpush1.bf16.msra.mxu0 %v11165_v9  ;;  %v11185_v9 = vld [vmem:[%s18481_s3 + $0x220] ss:$24 sps:$4 sm:$0xff]  }
 0x90e   :  { %v7078_v0 = vpop.f32.mrf.mxu0  ;;  %7448 = vmatprep.subr.bf16.mxu0 %v11166_v40  ;;  %7492 = vmatpush1.bf16.msra.mxu1 %v11167_v43 }
 0x90f   :  { %v7258_v51 = vadd.f32 %v7246_v63, %v7078_v0  ;;  %7493 = vmatprep.subr.bf16.mxu1 %v11168_v58  ;;  %v19986_v63 = vld [vmem:[#allocation66_spill] sm:$0xff] }
 0x910   :  { %v7080_v19 = vpop.f32.mrf.mxu0  ;;  %v7248_v0 = vunpack.c.l.bf16 %v19986_v63 }
 0x911   :  { %v9003_v12 = vmul.f32 -1.442695, %v7258_v51  ;;  %v7259_v41 = vadd.f32 %v7247_v10, %v7080_v19  ;;  %7449 = vmatpush2.bf16.msra.mxu0 %v11169_v49  ;;  %v11187_v51 = vld [vmem:[%s18481_s3 + $0x510] ss:$24 sps:$4 sm:$0xff]   ;;  %v11188_v19 = vld [vmem:[%s18481_s3 + $0x4e4] ss:$24 sps:$4 sm:$0xff]  }
 0x912   :  { %v7082_v50 = vpop.f32.mrf.mxu0  ;;  %7450 = vmatprep.subr.bf16.mxu0 %v11170_v42  ;;  %7494 = vmatpush2.bf16.msra.mxu1 %v11171_v30 }
 0x913   :  { %10383 = vpow2.f32 %v9003_v12  ;;  %v9004_v57 = vmul.f32 -1.442695, %v7259_v41  ;;  %v7262_v52 = vadd.f32 %v7252_v39, %v7082_v50  ;;  %7495 = vmatprep.subr.bf16.mxu1 %v11172_v22  ;;  %v7249_v12 = vunpack.c.h.bf16 %v19986_v63 }
 0x914   :  { %10385 = vrcp.f32 %v7288_v27  ;;  %v7084_v47 = vpop.f32.mrf.mxu0 }
 0x915   :  { %10387 = vpow2.f32 %v9004_v57  ;;  %v9007_v24 = vmul.f32 -1.442695, %v7262_v52  ;;  %v7263_v60 = vadd.f32 %v7253_v15, %v7084_v47  ;;  %7451 = vmatpush2.bf16.msra.mxu0 %v11173_v33  ;;  %v11191_v47 = vld [vmem:[%s18481_s3 + $0x4e0] ss:$24 sps:$4 sm:$0xff]   ;;  %v11192_v33 = vld [vmem:[%s18481_s3 + $0x4b4] ss:$24 sps:$4 sm:$0xff]  }
 0x916   :  { %10389 = vrcp.f32 %v7289_v17  ;;  %7452 = vmatprep.subr.bf16.mxu0 %v11174_v25  ;;  %7496 = vmatpush2.bf16.msra.mxu1 %v11175_v13  ;;  %v19987_v17 = vld [vmem:[#allocation68_spill] sm:$0xff] }
 0x917   :  { %10391 = vpow2.f32 %v9007_v24  ;;  %v9008_v20 = vmul.f32 -1.442695, %v7263_v60  ;;  %7497 = vmatprep.subr.bf16.mxu1 %v11176_v44  ;;  %v7254_v50 = vunpack.c.l.bf16 %v19987_v17 }
 0x918   :  { %10393 = vrcp.f32 %v7292_v4  ;;  %v11190_v4 = vld [vmem:[%s18481_s3 + $0x1c4] ss:$24 sps:$4 sm:$0xff]  }
 0x919   :  { %10395 = vpow2.f32 %v9008_v20  ;;  %7453 = vmatpush2.bf16.msra.mxu0 %v11177_v53  ;;  %v11193_v20 = vld [vmem:[%s18481_s3 + $0x1c0] ss:$24 sps:$4 sm:$0xff]   ;;  %v11194_v53 = vld [vmem:[%s18481_s3 + $0x194] ss:$24 sps:$4 sm:$0xff]  }
 0x91a   :  { %10397 = vrcp.f32 %v7293_v62  ;;  %7454 = vmatprep.subr.bf16.mxu0 %v11178_v34  ;;  %7498 = vmatpush2.bf16.msra.mxu1 %v11179_v5  ;;  %v7255_v62 = vunpack.c.h.bf16 %v19987_v17  ;;  %v11195_v34 = vld [vmem:[%s18481_s3 + $0x4b0] ss:$24 sps:$4 sm:$0xff]   ;;  %v11196_v5 = vld [vmem:[%s18481_s3 + $0x484] ss:$24 sps:$4 sm:$0xff]  }
 0x91b   :  { %7499 = vmatprep.subr.bf16.mxu1 %v11180_v56  ;;  %v11197_v56 = vld [vmem:[%s18481_s3 + $0x190] ss:$24 sps:$4 sm:$0xff]  }
 0x91d   :  { %7455 = vmatpush2.bf16.msra.mxu0 %v11181_v36  ;;  %v11198_v36 = vld [vmem:[%s18481_s3 + $0x45c] ss:$24 sps:$4 sm:$0xff]  }
 0x91e   :  { %7456 = vmatprep.subr.bf16.mxu0 %v11182_v16  ;;  %7500 = vmatpush2.bf16.msra.mxu1 %v11183_v61  ;;  %v11199_v16 = vld [vmem:[%s18481_s3 + $0x480] ss:$24 sps:$4 sm:$0xff]   ;;  %v11200_v61 = vld [vmem:[%s18481_s3 + $0x464] ss:$24 sps:$4 sm:$0xff]  }
 0x91f   :  { %v7121_v8 = vpop.f32.mrf.mxu1  ;;  %7501 = vmatprep.subr.bf16.mxu1 %v11184_v1  ;;  %v11201_v1 = vld [vmem:[%s18481_s3 + $0x458] ss:$24 sps:$4 sm:$0xff]  }
 0x920   :  { %v10384_v18 = vpop.eup %10383  ;;  %v7312_v35 = vadd.f32 %v7121_v8, %v19264_v45 }
 0x921   :  { %v10386_v31 = vpop.eup %10385  ;;  %v7290_v26 = vadd.f32 1.0, %v10384_v18  ;;  %v7123_v46 = vpop.f32.mrf.mxu1  ;;  %7457 = vmatpush2.bf16.msra.mxu0 %v11185_v9 }
 0x922   :  { %v10388_v54 = vpop.eup %10387  ;;  %v7316_v40 = vmul.f32 %v10386_v31, %v7312_v35  ;;  %v7313_v43 = vadd.f32 %v7123_v46, %v19267_v32  ;;  %7458 = vmatprep.subr.bf16.mxu0 %v11186_v2  ;;  %7502 = vmatpush2.bf16.msra.mxu1 %v11187_v51  ;;  %v11202_v31 = vld [vmem:[%s18481_s3 + $0x42c] ss:$24 sps:$4 sm:$0xff]   ;;  %v11204_v2 = vld [vmem:[%s18481_s3 + $0x3fc] ss:$24 sps:$4 sm:$0xff]  }
 0x923   :  { %v10390_v10 = vpop.eup %10389  ;;  %10399 = vrcp.f32 %v7290_v26  ;;  %v7291_v58 = vadd.f32 1.0, %v10388_v54  ;;  %v7125_v27 = vpop.f32.mrf.mxu1  ;;  %7503 = vmatprep.subr.bf16.mxu1 %v11188_v19 }
 0x924   :  { %v10392_v11 = vpop.eup %10391  ;;  %v7320_v41 = vadd.f32 %v7316_v40, %v7248_v0  ;;  %v7317_v49 = vmul.f32 %v10390_v10, %v7313_v43  ;;  %v7314_v3 = vadd.f32 %v7125_v27, %v19264_v45 }
 0x925   :  { %v10394_v39 = vpop.eup %10393  ;;  %10401 = vrcp.f32 %v7291_v58  ;;  %v7294_v42 = vadd.f32 1.0, %v10392_v11  ;;  %v7127_v30 = vpop.f32.mrf.mxu1  ;;  %7459 = vmatpush2.bf16.msra.mxu0 %v11189_v21  ;;  %v11209_v21 = vld [vmem:[%s18481_s3 + $0x398] ss:$24 sps:$4 sm:$0xff]  }
 0x926   :  { %v10396_v57 = vpop.eup %10395  ;;  %10403 = vtanh.f32 %v7320_v41  ;;  %v7321_v52 = vadd.f32 %v7317_v49, %v7249_v12  ;;  %v7318_v15 = vmul.f32 %v10394_v39, %v7314_v3  ;;  %v7315_v22 = vadd.f32 %v7127_v30, %v19267_v32  ;;  %7460 = vmatprep.subr.bf16.mxu0 %v11190_v4  ;;  %7504 = vmatpush2.bf16.msra.mxu1 %v11191_v47  ;;  %v11205_v49 = vld [vmem:[%s18481_s3 + $0x3f8] ss:$24 sps:$4 sm:$0xff]   ;;  %v11206_v3 = vld [vmem:[%s18481_s3 + $0x3cc] ss:$24 sps:$4 sm:$0xff]   ;;  %v11208_v30 = vld [vmem:[%s18481_s3 + $0x39c] ss:$24 sps:$4 sm:$0xff]  }
 0x927   :  { %v10398_v24 = vpop.eup %10397  ;;  %10405 = vrcp.f32 %v7294_v42  ;;  %v7295_v60 = vadd.f32 1.0, %v10396_v57  ;;  %7505 = vmatprep.subr.bf16.mxu1 %v11192_v33  ;;  %v11210_v57 = vld [vmem:[%s18481_s3 + $0x460] ss:$24 sps:$4 sm:$0xff]   ;;  %v11214_v4 = vld [vmem:[%s18481_s3 + $0x430] ss:$24 sps:$4 sm:$0xff]  }
 0x928   :  { %10407 = vtanh.f32 %v7321_v52  ;;  %v7322_v25 = vadd.f32 %v7318_v15, %v7254_v50  ;;  %v7319_v13 = vmul.f32 %v10398_v24, %v7315_v22  ;;  %v11211_v52 = vld [vmem:[%s18481_s3 + $0x36c] ss:$24 sps:$4 sm:$0xff]   ;;  %v11213_v22 = vld [vmem:[%s18481_s3 + $0x368] ss:$24 sps:$4 sm:$0xff]   ;;  %v11215_v47 = vld [vmem:[%s18481_s3 + $0x33c] ss:$24 sps:$4 sm:$0xff]  }
 0x929   :  { %10409 = vrcp.f32 %v7295_v60  ;;  %7461 = vmatpush2.bf16.msra.mxu0 %v11193_v20  ;;  %v11212_v15 = vld [vmem:[%s18481_s3 + $0x434] ss:$24 sps:$4 sm:$0xff]   ;;  %v11216_v24 = vld [vmem:[%s18481_s3 + $0x404] ss:$24 sps:$4 sm:$0xff]   ;;  %v11217_v60 = vld [vmem:[%s18481_s3 + $0x338] ss:$24 sps:$4 sm:$0xff]  }
 0x92a   :  { %10411 = vtanh.f32 %v7322_v25  ;;  %v7323_v44 = vadd.f32 %v7319_v13, %v7255_v62  ;;  %7462 = vmatprep.subr.bf16.mxu0 %v11194_v53  ;;  %7506 = vmatpush2.bf16.msra.mxu1 %v11195_v34  ;;  %v11218_v33 = vld [vmem:[%s18481_s3 + $0x400] ss:$24 sps:$4 sm:$0xff]   ;;  %v11219_v62 = vld [vmem:[%s18481_s3 + $0x30c] ss:$24 sps:$4 sm:$0xff]   ;;  %v11222_v20 = vld [vmem:[%s18481_s3 + $0x3d0] ss:$24 sps:$4 sm:$0xff]  }
 0x92b   :  { %7507 = vmatprep.subr.bf16.mxu1 %v11196_v5  ;;  %v11220_v25 = vld [vmem:[%s18481_s3 + $0x3d4] ss:$24 sps:$4 sm:$0xff]   ;;  %v11221_v13 = vld [vmem:[%s18481_s3 + $0x308] ss:$24 sps:$4 sm:$0xff]   ;;  %v11224_v53 = vld [vmem:[%s18481_s3 + $0x3a4] ss:$24 sps:$4 sm:$0xff]  }
 0x92c   :  { %10413 = vtanh.f32 %v7323_v44  ;;  %v11223_v44 = vld [vmem:[%s18481_s3 + $0x5dc] ss:$24 sps:$4 sm:$0xff]   ;;  %v11225_v34 = vld [vmem:[%s18481_s3 + $0x5d8] ss:$24 sps:$4 sm:$0xff]  }
 0x92d   :  { %7463 = vmatpush2.bf16.msra.mxu0 %v11197_v56  ;;  %v11226_v5 = vld [vmem:[%s18481_s3 + $0x3a0] ss:$24 sps:$4 sm:$0xff]   ;;  %v11227_v56 = vld [vmem:[%s18481_s3 + $0x5ac] ss:$24 sps:$4 sm:$0xff]  }
 0x92e   :  { %7520 = vmatprep.subr.bf16.mxu0 %v11198_v36  ;;  %7508 = vmatpush2.bf16.msra.mxu1 %v11199_v16  ;;  %v11228_v36 = vld [vmem:[%s18481_s3 + $0x374] ss:$24 sps:$4 sm:$0xff]   ;;  %v11229_v16 = vld [vmem:[%s18481_s3 + $0x5a8] ss:$24 sps:$4 sm:$0xff]  }
 0x92f   :  { %7563 = vmatprep.subr.bf16.mxu1 %v11200_v61  ;;  %v11230_v61 = vld [vmem:[%s18481_s3 + $0x370] ss:$24 sps:$4 sm:$0xff]  }
 0x930   :  { %v10400_v8 = vpop.eup %10399  ;;  %7465 = vmatmul.mubr.bf16.vlgmr.msra.gmra.mxu0 %v17913_v14  ;;  %v11203_v14 = vld [vmem:[%s18481_s3 + $0x428] ss:$24 sps:$4 sm:$0xff]  }
 0x931   :  { %7521 = vmatpush1.bf16.msra.mxu0 %v11201_v1  ;;  %v7328_v18 = vsub.f32 1.0, %v10400_v8  ;;  %v7336_v63 = vmul.f32 %v10400_v8, %v17692_v23  ;;  %v11231_v8 = vld [vmem:[%s18481_s3 + $0x57c] ss:$24 sps:$4 sm:$0xff]  }
 0x932   :  { %v10402_v35 = vpop.eup %10401  ;;  %7522 = vmatprep.subr.bf16.mxu0 %v11202_v31  ;;  %v11232_v1 = vld [vmem:[%s18481_s3 + $0x344] ss:$24 sps:$4 sm:$0xff]  }
 0x933   :  { %v10404_v26 = vpop.eup %10403  ;;  %v7329_v46 = vsub.f32 1.0, %v10402_v35  ;;  %v7337_v10 = vmul.f32 %v10402_v35, %v17694_v29  ;;  %v11234_v35 = vld [vmem:[%s18481_s3 + $0x340] ss:$24 sps:$4 sm:$0xff]   ;;  %v11235_v31 = vld [vmem:[%s18481_s3 + $0x54c] ss:$24 sps:$4 sm:$0xff]  }
 0x934   :  { %v10406_v9 = vpop.eup %10405  ;;  %v7332_v54 = vmul.f32 %v10404_v26, %v7328_v18  ;;  %v11233_v18 = vld [vmem:[%s18481_s3 + $0x578] ss:$24 sps:$4 sm:$0xff]   ;;  %v11236_v26 = vld [vmem:[%s18481_s3 + $0x314] ss:$24 sps:$4 sm:$0xff]  }
 0x935   :  { %v10408_v0 = vpop.eup %10407  ;;  %7523 = vmatpush1.bf16.msra.mxu0 %v11203_v14  ;;  %v7330_v40 = vsub.f32 1.0, %v10406_v9  ;;  %v7338_v12 = vmul.f32 %v10406_v9, %v17700_v7  ;;  %v11207_v7 = vld [vmem:[%s18481_s3 + $0x3c8] ss:$24 sps:$4 sm:$0xff]  }
 0x936   :  { %v10410_v43 = vpop.eup %10409  ;;  %7524 = vmatprep.subr.bf16.mxu0 %v11204_v2  ;;  %v7333_v51 = vmul.f32 %v10408_v0, %v7329_v46  ;;  %v18140_v58 = vadd.f32 %v7336_v63, %v7332_v54  ;;  %v11237_v46 = vld [vmem:[%s18481_s3 + $0x548] ss:$24 sps:$4 sm:$0xff]   ;;  %v11239_v54 = vld [vmem:[%s18481_s3 + $0x51c] ss:$24 sps:$4 sm:$0xff]   ;;  %v11241_v0 = vld [vmem:[%s18481_s3 + $0x518] ss:$24 sps:$4 sm:$0xff]  }
 0x937   :  { %v10412_v27 = vpop.eup %10411  ;;  %v7331_v23 = vsub.f32 1.0, %v10410_v43  ;;  %v7339_v39 = vmul.f32 %v10410_v43, %v17702_v37  ;;  %v11238_v9 = vld [vmem:[%s18481_s3 + $0x310] ss:$24 sps:$4 sm:$0xff]   ;;  %v11240_v63 = vld [vmem:[%s18481_s3 + $0x5e4] ss:$24 sps:$4 sm:$0xff]  }
 0x938   :  { %v18142_v19 = vadd.f32 %v7337_v10, %v7333_v51  ;;  %v7334_v11 = vmul.f32 %v10412_v27, %v7330_v40  ;;  %v11242_v14 = vld [vmem:[%s18481_s3 + $0x5e0] ss:$24 sps:$4 sm:$0xff]   ;;  %v11243_v40 = vld [vmem:[%s18481_s3 + $0x4ec] ss:$24 sps:$4 sm:$0xff]   ;;  %v11246_v51 = vld [vmem:[%s18481_s3 + $0x5b0] ss:$24 sps:$4 sm:$0xff]  }
 0x939   :  { %v10414_v41 = vpop.eup %10413  ;;  %7525 = vmatpush1.bf16.msra.mxu0 %v11205_v49  ;;  %v11244_v43 = vld [vmem:[%s18481_s3 + $0x5b4] ss:$24 sps:$4 sm:$0xff]   ;;  %v11245_v2 = vld [vmem:[%s18481_s3 + $0x4e8] ss:$24 sps:$4 sm:$0xff]   ;;  %v11248_v27 = vld [vmem:[%s18481_s3 + $0x584] ss:$24 sps:$4 sm:$0xff]  }
 0x93a   :  { %7526 = vmatprep.subr.bf16.mxu0 %v11206_v3  ;;  %v7335_v29 = vmul.f32 %v10414_v41, %v7331_v23  ;;  %v18152_v17 = vadd.f32 %v7338_v12, %v7334_v11  ;;  %v11247_v10 = vld [vmem:[%s18481_s3 + $0x4bc] ss:$24 sps:$4 sm:$0xff]   ;;  %v11249_v23 = vld [vmem:[%s18481_s3 + $0x4b8] ss:$24 sps:$4 sm:$0xff]   ;;  %v11251_v12 = vld [vmem:[%s18481_s3 + $0x48c] ss:$24 sps:$4 sm:$0xff]  }
 0x93b   :  { %v11250_v11 = vld [vmem:[%s18481_s3 + $0x580] ss:$24 sps:$4 sm:$0xff]   ;;  %v11252_v41 = vld [vmem:[%s18481_s3 + $0x554] ss:$24 sps:$4 sm:$0xff]   ;;  %v11254_v3 = vld [vmem:[%s18481_s3 + $0x550] ss:$24 sps:$4 sm:$0xff]  }
 0x93c   :  { %v18154_v50 = vadd.f32 %v7339_v39, %v7335_v29  ;;  %v18166_v37 = vpack.c.bf16 %v18152_v17, %v18140_v58  ;;  %v11253_v49 = vld [vmem:[%s18481_s3 + $0x488] ss:$24 sps:$4 sm:$0xff]   ;;  %v11255_v29 = vld [vmem:[%s18481_s3 + $0x524] ss:$24 sps:$4 sm:$0xff]  }
 0x93d   :  { %7527 = vmatpush1.bf16.msra.mxu0 %v11207_v7  ;;  %v9823_v39 = vld [vmem:[%s18484_s6 + $0x78] sm:$0xff]  }
 0x93e   :  { %v7476_v42 = vpack.c.bf16 %v18154_v50, %v18142_v19  ;;  %7528 = vmatprep.subr.bf16.mxu0 %v11208_v30  ;;  %v11256_v7 = vld [vmem:[%s18481_s3 + $0x520] ss:$24 sps:$4 sm:$0xff]   ;;  %v11257_v30 = vld [vmem:[%s18481_s3 + $0x4f4] ss:$24 sps:$4 sm:$0xff]  }
 0x940   :  { %7509 = vmatprep.mubr.bf16.mxu1 %v7476_v42  ;;  %7552 = vmatprep.mubr.bf16.mxu0 %v7476_v42 }
 0x941   :  { %7510 = vmatmul.mubr.bf16.vlgmr.msra.gmra.mxu1 %v18166_v37  ;;  %7529 = vmatpush1.bf16.msra.mxu0 %v11209_v21  ;;  %v9825_v21 = vld [vmem:[%s18484_s6 + $0x70] sm:$0xff]  }
 0x942   :  { %7564 = vmatpush1.bf16.msra.mxu1 %v11210_v57  ;;  %7595 = vmatprep.mubr.bf16.mxu1 %v7476_v42  ;;  %v9824_v42 = vld [vmem:[%s18484_s6 + $0x38] sm:$0xff]   ;;  %v11258_v57 = vld [vmem:[%s18481_s3 + $0x4f0] ss:$24 sps:$4 sm:$0xff]  }
 0x943   :  { %7530 = vmatprep.subr.bf16.mxu0 %v11211_v52  ;;  %7565 = vmatprep.subr.bf16.mxu1 %v11212_v15  ;;  %v9826_v52 = vld [vmem:[%s18484_s6 + $0x30] sm:$0xff]   ;;  %v11259_v15 = vld [vmem:[%s18481_s3 + $0x4c4] ss:$24 sps:$4 sm:$0xff]  }
 0x945   :  { %7531 = vmatpush1.bf16.msra.mxu0 %v11213_v22  ;;  %v9827_v22 = vld [vmem:[%s18484_s6 + $0x68] sm:$0xff]  }
 0x946   :  { %7566 = vmatpush1.bf16.msra.mxu1 %v11214_v4  ;;  %7532 = vmatprep.subr.bf16.mxu0 %v11215_v47  ;;  %v11260_v4 = vld [vmem:[%s18481_s3 + $0x4c0] ss:$24 sps:$4 sm:$0xff]   ;;  %v9828_v47 = vld [vmem:[%s18484_s6 + $0x28] sm:$0xff]  }
 0x947   :  { %7567 = vmatprep.subr.bf16.mxu1 %v11216_v24  ;;  %v11261_v24 = vld [vmem:[%s18481_s3 + $0x494] ss:$24 sps:$4 sm:$0xff]  }
 0x949   :  { %7533 = vmatpush1.bf16.msra.mxu0 %v11217_v60  ;;  %v9829_v60 = vld [vmem:[%s18484_s6 + $0x60] sm:$0xff]  }
 0x94a   :  { %7568 = vmatpush1.bf16.msra.mxu1 %v11218_v33  ;;  %7534 = vmatprep.subr.bf16.mxu0 %v11219_v62  ;;  %v9830_v33 = vld [vmem:[%s18484_s6 + $0x20] sm:$0xff]   ;;  %v11262_v62 = vld [vmem:[%s18481_s3 + $0x490] ss:$24 sps:$4 sm:$0xff]  }
 0x94b   :  { %7569 = vmatprep.subr.bf16.mxu1 %v11220_v25  ;;  %v9831_v25 = vld [vmem:[%s18484_s6 + $0x58] sm:$0xff]  }
 0x94d   :  { %7535 = vmatpush1.bf16.msra.mxu0 %v11221_v13  ;;  %v9832_v13 = vld [vmem:[%s18484_s6 + $0x18] sm:$0xff]  }
 0x94e   :  { %7570 = vmatpush1.bf16.msra.mxu1 %v11222_v20  ;;  %7536 = vmatprep.subr.bf16.mxu0 %v11223_v44  ;;  %v9833_v20 = vld [vmem:[%s18484_s6 + $0x50] sm:$0xff]  }
 0x94f   :  { %7571 = vmatprep.subr.bf16.mxu1 %v11224_v53  ;;  %v9834_v44 = vld [vmem:[%s18484_s6 + $0x10] sm:$0xff]   ;;  %v9836_v53 = vld [vmem:[%s18484_s6 + $0x8] sm:$0xff]  }
 0x951   :  { %7537 = vmatpush2.bf16.msra.mxu0 %v11225_v34  ;;  %v9837_v34 = vld [vmem:[%s18484_s6 + $0x40] sm:$0xff]  }
 0x952   :  { %7572 = vmatpush1.bf16.msra.mxu1 %v11226_v5  ;;  %7538 = vmatprep.subr.bf16.mxu0 %v11227_v56  ;;  %v9838_v5 = vld [vmem:[%s18484_s6] sm:$0xff]  }
 0x953   :  { %7573 = vmatprep.subr.bf16.mxu1 %v11228_v36  ;;  %v9839_v36 = vld [vmem:[%s18484_s6 + $0xf8] sm:$0xff]  }
 0x955   :  { %7539 = vmatpush2.bf16.msra.mxu0 %v11229_v16  ;;  %v9840_v16 = vld [vmem:[%s18484_s6 + $0xb8] sm:$0xff]  }
 0x956   :  { %7574 = vmatpush1.bf16.msra.mxu1 %v11230_v61  ;;  %7540 = vmatprep.subr.bf16.mxu0 %v11231_v8  ;;  %v9841_v8 = vld [vmem:[%s18484_s6 + $0xf0] sm:$0xff]  }
 0x957   :  { %7575 = vmatprep.subr.bf16.mxu1 %v11232_v1  ;;  %v9842_v1 = vld [vmem:[%s18484_s6 + $0xb0] sm:$0xff]  }
 0x959   :  { %7541 = vmatpush2.bf16.msra.mxu0 %v11233_v18  ;;  %v19988_v18 = vld [vmem:[#allocation29_spill] sm:$0xff] }
 0x95a   :  { %7576 = vmatpush1.bf16.msra.mxu1 %v11234_v35  ;;  %7542 = vmatprep.subr.bf16.mxu0 %v11235_v31  ;;  %v7619_v35 = vunpack.c.l.bf16 %v19988_v18 }
 0x95b   :  { %7577 = vmatprep.subr.bf16.mxu1 %v11236_v26 }
 0x95d   :  { %7543 = vmatpush2.bf16.msra.mxu0 %v11237_v46  ;;  %v7620_v46 = vunpack.c.h.bf16 %v19988_v18 }
 0x95e   :  { %7578 = vmatpush1.bf16.msra.mxu1 %v11238_v9  ;;  %7544 = vmatprep.subr.bf16.mxu0 %v11239_v54  ;;  %v9843_v9 = vld [vmem:[%s18484_s6 + $0xe8] sm:$0xff]  }
 0x95f   :  { %7579 = vmatprep.subr.bf16.mxu1 %v11240_v63  ;;  %v9844_v54 = vld [vmem:[%s18484_s6 + $0xa8] sm:$0xff]  }
 0x961   :  { %7545 = vmatpush2.bf16.msra.mxu0 %v11241_v0  ;;  %v19989_v0 = vld [vmem:[#allocation31_spill] sm:$0xff] }
 0x962   :  { %7580 = vmatpush2.bf16.msra.mxu1 %v11242_v14  ;;  %7546 = vmatprep.subr.bf16.mxu0 %v11243_v40  ;;  %v7625_v14 = vunpack.c.l.bf16 %v19989_v0 }
 0x963   :  { %7581 = vmatprep.subr.bf16.mxu1 %v11244_v43 }
 0x965   :  { %7547 = vmatpush2.bf16.msra.mxu0 %v11245_v2 }
 0x966   :  { %7582 = vmatpush2.bf16.msra.mxu1 %v11246_v51  ;;  %7548 = vmatprep.subr.bf16.mxu0 %v11247_v10  ;;  %v7626_v10 = vunpack.c.h.bf16 %v19989_v0 }
 0x967   :  { %7583 = vmatprep.subr.bf16.mxu1 %v11248_v27  ;;  %v9845_v27 = vld [vmem:[%s18484_s6 + $0xe0] sm:$0xff]  }
 0x969   :  { %7549 = vmatpush2.bf16.msra.mxu0 %v11249_v23  ;;  %v9846_v23 = vld [vmem:[%s18484_s6 + $0xa0] sm:$0xff]  }
 0x96a   :  { %7584 = vmatpush2.bf16.msra.mxu1 %v11250_v11  ;;  %7550 = vmatprep.subr.bf16.mxu0 %v11251_v12  ;;  %v9847_v11 = vld [vmem:[%s18484_s6 + $0xd8] sm:$0xff]  }
 0x96b   :  { %7585 = vmatprep.subr.bf16.mxu1 %v11252_v41 }
 0x96d   :  { %7551 = vmatpush2.bf16.msra.mxu0 %v11253_v49  ;;  %v9848_v49 = vld [vmem:[%s18484_s6 + $0x98] sm:$0xff]  }
 0x96e   :  { %7586 = vmatpush2.bf16.msra.mxu1 %v11254_v3  ;;  %9154 = vmatprep.subr.bf16.mxu0 %v9823_v39  ;;  %v9849_v39 = vld [vmem:[%s18484_s6 + $0xd0] sm:$0xff]  }
 0x96f   :  { %7587 = vmatprep.subr.bf16.mxu1 %v11255_v29 }
 0x970   :  { %7553 = vmatmul.mubr.bf16.vlgmr.msra.gmra.mxu0 %v18166_v37 }
 0x971   :  { %9155 = vmatpush3.bf16.msra.mxu0 %v9824_v42  ;;  %v9850_v42 = vld [vmem:[%s18484_s6 + $0x90] sm:$0xff]  }
 0x972   :  { %7588 = vmatpush2.bf16.msra.mxu1 %v11256_v7  ;;  %9156 = vmatprep.subr.bf16.mxu0 %v9825_v21 }
 0x973   :  { %7589 = vmatprep.subr.bf16.mxu1 %v11257_v30  ;;  %v19990_v30 = vld [vmem:[#allocation30_spill] sm:$0xff] }
 0x974   :  { %v7621_v21 = vunpack.c.l.bf16 %v19990_v30 }
 0x975   :  { %9157 = vmatpush3.bf16.msra.mxu0 %v9826_v52  ;;  %v9851_v52 = vld [vmem:[%s18484_s6 + $0xc8] sm:$0xff]  }
 0x976   :  { %7590 = vmatpush2.bf16.msra.mxu1 %v11258_v57  ;;  %9158 = vmatprep.subr.bf16.mxu0 %v9827_v22  ;;  %v7622_v22 = vunpack.c.h.bf16 %v19990_v30 }
 0x977   :  { %7591 = vmatprep.subr.bf16.mxu1 %v11259_v15 }
 0x979   :  { %9159 = vmatpush3.bf16.msra.mxu0 %v9828_v47 }
 0x97a   :  { %7592 = vmatpush2.bf16.msra.mxu1 %v11260_v4  ;;  %9160 = vmatprep.subr.bf16.mxu0 %v9829_v60  ;;  %v19991_v4 = vld [vmem:[#allocation32_spill] sm:$0xff] }
 0x97b   :  { %7593 = vmatprep.subr.bf16.mxu1 %v11261_v24  ;;  %v7627_v47 = vunpack.c.l.bf16 %v19991_v4  ;;  %v9852_v24 = vld [vmem:[%s18484_s6 + $0x88] sm:$0xff]  }
 0x97d   :  { %9161 = vmatpush3.bf16.msra.mxu0 %v9830_v33 }
 0x97e   :  { %7594 = vmatpush2.bf16.msra.mxu1 %v11262_v62  ;;  %9162 = vmatprep.subr.bf16.mxu0 %v9831_v25  ;;  %v9853_v62 = vld [vmem:[%s18484_s6 + $0xc0] sm:$0xff]  }
 0x97f   :  { %9176 = vmatprep.subr.bf16.mxu1 %v9839_v36 }
 0x981   :  { %7596 = vmatmul.mubr.bf16.vlgmr.msra.gmra.mxu1 %v18166_v37  ;;  %9163 = vmatpush3.bf16.msra.mxu0 %v9832_v13  ;;  %v9835_v37 = vld [vmem:[%s18484_s6 + $0x48] sm:$0xff]   ;;  %v7628_v13 = vunpack.c.h.bf16 %v19991_v4 }
 0x982   :  { %9164 = vmatprep.subr.bf16.mxu0 %v9833_v20  ;;  %9177 = vmatpush3.bf16.msra.mxu1 %v9840_v16 }
 0x983   :  { %9178 = vmatprep.subr.bf16.mxu1 %v9841_v8 }
 0x985   :  { %9165 = vmatpush3.bf16.msra.mxu0 %v9834_v44 }
 0x986   :  { %9166 = vmatprep.subr.bf16.mxu0 %v9835_v37  ;;  %9179 = vmatpush3.bf16.msra.mxu1 %v9842_v1  ;;  %v9854_v37 = vld [vmem:[%s18484_s6 + $0x80] sm:$0xff]  }
 0x987   :  { %9180 = vmatprep.subr.bf16.mxu1 %v9843_v9 }
 0x989   :  { %9167 = vmatpush3.bf16.msra.mxu0 %v9836_v53 }
 0x98a   :  { %9168 = vmatprep.subr.bf16.mxu0 %v9837_v34  ;;  %9181 = vmatpush3.bf16.msra.mxu1 %v9844_v54 }
 0x98b   :  { %9182 = vmatprep.subr.bf16.mxu1 %v9845_v27 }
 0x98d   :  { %9169 = vmatpush3.bf16.msra.mxu0 %v9838_v5 }
 0x98e   :  { %9183 = vmatpush3.bf16.msra.mxu1 %v9846_v23 }
 0x98f   :  { %9184 = vmatprep.subr.bf16.mxu1 %v9847_v11 }
 0x992   :  { %9185 = vmatpush3.bf16.msra.mxu1 %v9848_v49 }
 0x993   :  { %9186 = vmatprep.subr.bf16.mxu1 %v9849_v39 }
 0x996   :  { %9187 = vmatpush3.bf16.msra.mxu1 %v9850_v42  ;;  %v19993_v42 = vld [vmem:[#allocation60_spill] sm:$0xff] }
 0x997   :  { %9188 = vmatprep.subr.bf16.mxu1 %v9851_v52  ;;  %v7629_v30 = vunpack.c.l.bf16 %v19993_v42  ;;  %v7630_v4 = vunpack.c.h.bf16 %v19993_v42 }
 0x99a   :  { %9189 = vmatpush3.bf16.msra.mxu1 %v9852_v24 }
 0x99b   :  { %9190 = vmatprep.subr.bf16.mxu1 %v9853_v62 }
 0x99e   :  { %9191 = vmatpush3.bf16.msra.mxu1 %v9854_v37 }
 0x9b0   :  { %v7380_v56 = vpop.f32.mrf.mxu0  ;;  %v7423_v2 = vpop.f32.mrf.mxu1 }
 0x9b1   :  { %v7631_v26 = vadd.f32 %v7619_v35, %v7380_v56  ;;  %v7633_v15 = vadd.f32 %v7621_v21, %v7423_v2 }
 0x9b2   :  { %v7382_v61 = vpop.f32.mrf.mxu0  ;;  %v7425_v3 = vpop.f32.mrf.mxu1 }
 0x9b3   :  { %v7632_v63 = vadd.f32 %v7620_v46, %v7382_v61  ;;  %v9009_v43 = vmul.f32 -1.442695, %v7631_v26  ;;  %v7634_v60 = vadd.f32 %v7622_v22, %v7425_v3  ;;  %v9011_v20 = vmul.f32 -1.442695, %v7633_v15 }
 0x9b4   :  { %v7384_v31 = vpop.f32.mrf.mxu0  ;;  %v7427_v57 = vpop.f32.mrf.mxu1 }
 0x9b5   :  { %v7635_v51 = vadd.f32 %v7625_v14, %v7384_v31  ;;  %v9010_v12 = vmul.f32 -1.442695, %v7632_v63  ;;  %10415 = vpow2.f32 %v9009_v43  ;;  %v7637_v25 = vadd.f32 %v7627_v47, %v7427_v57 }
 0x9b6   :  { %v7386_v40 = vpop.f32.mrf.mxu0  ;;  %v7429_v33 = vpop.f32.mrf.mxu1  ;;  %v9012_v53 = vmul.f32 -1.442695, %v7634_v60 }
 0x9b7   :  { %v7636_v41 = vadd.f32 %v7626_v10, %v7386_v40  ;;  %v9013_v29 = vmul.f32 -1.442695, %v7635_v51  ;;  %10417 = vpow2.f32 %v9010_v12  ;;  %v7638_v44 = vadd.f32 %v7628_v13, %v7429_v33  ;;  %v19992_v51 = vld [vmem:[#allocation59_spill] sm:$0xff] }
 0x9b8   :  { %v9015_v5 = vmul.f32 -1.442695, %v7637_v25  ;;  %v7623_v10 = vunpack.c.l.bf16 %v19992_v51  ;;  %v7624_v12 = vunpack.c.h.bf16 %v19992_v51 }
 0x9b9   :  { %v9014_v7 = vmul.f32 -1.442695, %v7636_v41  ;;  %10419 = vpow2.f32 %v9013_v29  ;;  %v9016_v36 = vmul.f32 -1.442695, %v7638_v44 }
 0x9bb   :  { %10421 = vpow2.f32 %v9014_v7 }
 0x9bc   :  { %10423 = vpow2.f32 %v9011_v20 }
 0x9bd   :  { %10425 = vpow2.f32 %v9012_v53 }
 0x9be   :  { %10427 = vpow2.f32 %v9015_v5 }
 0x9bf   :  { %10429 = vpow2.f32 %v9016_v36 }
 0x9c2   :  { %v10416_v34 = vpop.eup %10415 }
 0x9c3   :  { %v7663_v16 = vadd.f32 1.0, %v10416_v34 }
 0x9c4   :  { %v10418_v56 = vpop.eup %10417 }
 0x9c5   :  { %v7664_v8 = vadd.f32 1.0, %v10418_v56  ;;  %10431 = vrcp.f32 %v7663_v16 }
 0x9c6   :  { %v10420_v61 = vpop.eup %10419 }
 0x9c7   :  { %v7667_v18 = vadd.f32 1.0, %v10420_v61  ;;  %10433 = vrcp.f32 %v7664_v8 }
 0x9c8   :  { %v10422_v1 = vpop.eup %10421 }
 0x9c9   :  { %v7668_v35 = vadd.f32 1.0, %v10422_v1  ;;  %10435 = vrcp.f32 %v7667_v18  ;;  %v10424_v31 = vpop.eup %10423 }
 0x9ca   :  { %v10426_v26 = vpop.eup %10425  ;;  %v7665_v9 = vadd.f32 1.0, %v10424_v31 }
 0x9cb   :  { %10437 = vrcp.f32 %v7668_v35  ;;  %v10428_v46 = vpop.eup %10427  ;;  %v7666_v0 = vadd.f32 1.0, %v10426_v26 }
 0x9cc   :  { %v10430_v63 = vpop.eup %10429  ;;  %v7669_v43 = vadd.f32 1.0, %v10428_v46  ;;  %10439 = vrcp.f32 %v7665_v9 }
 0x9cd   :  { %v7670_v41 = vadd.f32 1.0, %v10430_v63  ;;  %10441 = vrcp.f32 %v7666_v0  ;;  %v19994_v0 = vld [vmem:[#allocation33_spill] sm:$0xff] }
 0x9ce   :  { %10443 = vrcp.f32 %v7669_v43 }
 0x9d2   :  { %v10432_v40 = vpop.eup %10431 }
 0x9d4   :  { %v10434_v11 = vpop.eup %10433 }
 0x9d6   :  { %v10436_v7 = vpop.eup %10435 }
 0x9d8   :  { %v10438_v22 = vpop.eup %10437 }
 0x9f0   :  { %v7466_v54 = vpop.f32.mrf.mxu0 }
 0x9f1   :  { %v7687_v14 = vadd.f32 %v7466_v54, %v13474_v48 }
 0x9f2   :  { %v7468_v2 = vpop.f32.mrf.mxu0 }
 0x9f3   :  { %v7691_v27 = vmul.f32 %v10432_v40, %v7687_v14  ;;  %v7688_v23 = vadd.f32 %v7468_v2, %v13479_v55  ;;  %v7719_v14 = vunpack.c.l.bf16 %v19994_v0  ;;  %v7720_v2 = vunpack.c.h.bf16 %v19994_v0 }
 0x9f4   :  { %v7470_v49 = vpop.f32.mrf.mxu0 }
 0x9f5   :  { %v7695_v3 = vadd.f32 %v7691_v27, %v7623_v10  ;;  %v7692_v29 = vmul.f32 %v10434_v11, %v7688_v23  ;;  %v7689_v39 = vadd.f32 %v7470_v49, %v13474_v48  ;;  %v10440_v48 = vpop.eup %10439 }
 0x9f6   :  { %v7472_v21 = vpop.f32.mrf.mxu0  ;;  %v10442_v33 = vpop.eup %10441  ;;  %v7703_v25 = vsub.f32 1.0, %v10440_v48 }
 0x9f7   :  { %10445 = vtanh.f32 %v7695_v3  ;;  %v7696_v57 = vadd.f32 %v7692_v29, %v7624_v12  ;;  %v7693_v52 = vmul.f32 %v10436_v7, %v7689_v39  ;;  %v7690_v15 = vadd.f32 %v7472_v21, %v13479_v55  ;;  %v10444_v62 = vpop.eup %10443  ;;  %v19996_v39 = vld [vmem:[#allocation61_spill] sm:$0xff] }
 0x9f8   :  { %10447 = vrcp.f32 %v7670_v41  ;;  %v7704_v44 = vsub.f32 1.0, %v10442_v33  ;;  %v7711_v55 = vmul.f32 %v10440_v48, %v17899_v28  ;;  %v7712_v5 = vmul.f32 %v10442_v33, %v17901_v38 }
 0x9f9   :  { %10449 = vtanh.f32 %v7696_v57  ;;  %v7697_v47 = vadd.f32 %v7693_v52, %v7629_v30  ;;  %v7694_v24 = vmul.f32 %v10438_v22, %v7690_v15  ;;  %v7705_v56 = vsub.f32 1.0, %v10444_v62 }
 0x9fa   :  { %v7713_v18 = vmul.f32 %v10444_v62, %v17905_v6  ;;  %v19995_v6 = vld [vmem:[#allocation34_spill] sm:$0xff]  ;;  %v7721_v7 = vunpack.c.l.bf16 %v19996_v39  ;;  %v7722_v57 = vunpack.c.h.bf16 %v19996_v39 }
 0x9fb   :  { %10451 = vtanh.f32 %v7697_v47  ;;  %v7698_v60 = vadd.f32 %v7694_v24, %v7630_v4  ;;  %v7725_v10 = vunpack.c.l.bf16 %v19995_v6  ;;  %v7726_v11 = vunpack.c.h.bf16 %v19995_v6  ;;  %v19997_v24 = vld [vmem:[#allocation63_spill] sm:$0xff] }
 0x9fd   :  { %10453 = vtanh.f32 %v7698_v60  ;;  %v7727_v60 = vunpack.c.l.bf16 %v19997_v24 }
 0xa01   :  { %v7511_v63 = vpop.f32.mrf.mxu1 }
 0xa02   :  { %v7731_v43 = vadd.f32 %v7719_v14, %v7511_v63 }
 0xa03   :  { %v7513_v38 = vpop.f32.mrf.mxu1 }
 0xa04   :  { %v10446_v13 = vpop.eup %10445  ;;  %v7732_v51 = vadd.f32 %v7720_v2, %v7513_v38  ;;  %v9017_v23 = vmul.f32 -1.442695, %v7731_v43  ;;  %v19999_v2 = vld [vmem:[#allocation64_spill] sm:$0xff] }
 0xa05   :  { %v10448_v20 = vpop.eup %10447  ;;  %v7707_v37 = vmul.f32 %v10446_v13, %v7703_v25  ;;  %v7515_v40 = vpop.f32.mrf.mxu1 }
 0xa06   :  { %v10450_v53 = vpop.eup %10449  ;;  %v7706_v61 = vsub.f32 1.0, %v10448_v20  ;;  %v7714_v26 = vmul.f32 %v10448_v20, %v17907_v59  ;;  %v7735_v59 = vadd.f32 %v7725_v10, %v7515_v40  ;;  %v9018_v12 = vmul.f32 -1.442695, %v7732_v51 }
 0xa07   :  { %v7708_v34 = vmul.f32 %v10450_v53, %v7704_v44  ;;  %v7715_v36 = vadd.f32 %v7711_v55, %v7707_v37  ;;  %v7517_v27 = vpop.f32.mrf.mxu1  ;;  %10455 = vpow2.f32 %v9017_v23  ;;  %v7728_v20 = vunpack.c.h.bf16 %v19997_v24 }
 0xa08   :  { %v10452_v16 = vpop.eup %10451  ;;  %v7736_v41 = vadd.f32 %v7726_v11, %v7517_v27  ;;  %v9021_v49 = vmul.f32 -1.442695, %v7735_v59  ;;  %10457 = vpow2.f32 %v9018_v12  ;;  %v7729_v51 = vunpack.c.l.bf16 %v19999_v2 }
 0xa09   :  { %v7716_v8 = vadd.f32 %v7712_v5, %v7708_v34  ;;  %v7709_v1 = vmul.f32 %v10452_v16, %v7705_v56 }
 0xa0a   :  { %v10454_v35 = vpop.eup %10453  ;;  %v9022_v3 = vmul.f32 -1.442695, %v7736_v41  ;;  %10459 = vpow2.f32 %v9021_v49  ;;  %v7730_v49 = vunpack.c.h.bf16 %v19999_v2 }
 0xa0b   :  { %v7710_v31 = vmul.f32 %v10454_v35, %v7706_v61  ;;  %v7717_v46 = vadd.f32 %v7713_v18, %v7709_v1  ;;  %v19998_v35 = vld [vmem:[#allocation62_spill] sm:$0xff] }
 0xa0c   :  { %10461 = vpow2.f32 %v9022_v3  ;;  %v7724_v38 = vunpack.c.h.bf16 %v19998_v35 }
 0xa0d   :  { %v7718_v9 = vadd.f32 %v7714_v26, %v7710_v31  ;;  %v7830_v54 = vpack.c.bf16 %v7717_v46, %v7715_v36  ;;  %v7723_v31 = vunpack.c.l.bf16 %v19998_v35 }
 0xa0f   :  { %v7831_v28 = vpack.c.bf16 %v7718_v9, %v7716_v8 }
 0xa11   :  { %8129 = vmatprep.mubr.bf16.mxu0 %v7831_v28 }
 0xa12   :  { %8130 = vmatmul.mubr.bf16.vlgmr.msra.gmra.mxu0 %v7830_v54 }
 0xa14   :  { %v10456_v29 = vpop.eup %10455 }
 0xa15   :  { %v10458_v30 = vpop.eup %10457  ;;  %v7763_v52 = vadd.f32 1.0, %v10456_v29 }
 0xa16   :  { %v7764_v48 = vadd.f32 1.0, %v10458_v30 }
 0xa17   :  { %v10460_v22 = vpop.eup %10459 }
 0xa18   :  { %v7767_v44 = vadd.f32 1.0, %v10460_v22 }
 0xa19   :  { %v10462_v62 = vpop.eup %10461 }
 0xa1a   :  { %v7768_v34 = vadd.f32 1.0, %v10462_v62 }
 0xa30   :  { %v7554_v42 = vpop.f32.mrf.mxu0 }
 0xa31   :  { %v7733_v21 = vadd.f32 %v7721_v7, %v7554_v42 }
 0xa32   :  { %v7556_v15 = vpop.f32.mrf.mxu0 }
 0xa33   :  { %v9019_v4 = vmul.f32 -1.442695, %v7733_v21  ;;  %v7734_v47 = vadd.f32 %v7722_v57, %v7556_v15 }
 0xa34   :  { %v7558_v33 = vpop.f32.mrf.mxu0 }
 0xa35   :  { %10463 = vpow2.f32 %v9019_v4  ;;  %v9020_v25 = vmul.f32 -1.442695, %v7734_v47  ;;  %v7737_v13 = vadd.f32 %v7727_v60, %v7558_v33 }
 0xa36   :  { %10465 = vrcp.f32 %v7763_v52  ;;  %v7560_v37 = vpop.f32.mrf.mxu0 }
 0xa37   :  { %10467 = vpow2.f32 %v9020_v25  ;;  %v9023_v55 = vmul.f32 -1.442695, %v7737_v13  ;;  %v7738_v53 = vadd.f32 %v7728_v20, %v7560_v37 }
 0xa38   :  { %10469 = vrcp.f32 %v7764_v48 }
 0xa39   :  { %10471 = vpow2.f32 %v9023_v55  ;;  %v9024_v5 = vmul.f32 -1.442695, %v7738_v53 }
 0xa3a   :  { %10473 = vrcp.f32 %v7767_v44 }
 0xa3b   :  { %10475 = vpow2.f32 %v9024_v5 }
 0xa3c   :  { %10477 = vrcp.f32 %v7768_v34 }
 0xa41   :  { %v7597_v56 = vpop.f32.mrf.mxu1 }
 0xa42   :  { %v10464_v36 = vpop.eup %10463  ;;  %v7787_v16 = vadd.f32 %v7597_v56, %v19264_v45 }
 0xa43   :  { %v10466_v61 = vpop.eup %10465  ;;  %v7765_v8 = vadd.f32 1.0, %v10464_v36  ;;  %v7599_v1 = vpop.f32.mrf.mxu1 }
 0xa44   :  { %v10468_v18 = vpop.eup %10467  ;;  %v7791_v26 = vmul.f32 %v10466_v61, %v7787_v16  ;;  %v7788_v46 = vadd.f32 %v7599_v1, %v19267_v32  ;;  %v9025_v16 = vld [vmem:[%s18485_s7] ss:$0 sm:$0xff] }
 0xa45   :  { %v10470_v9 = vpop.eup %10469  ;;  %10479 = vrcp.f32 %v7765_v8  ;;  %v7766_v54 = vadd.f32 1.0, %v10468_v18  ;;  %v7601_v28 = vpop.f32.mrf.mxu1 }
 0xa46   :  { %v10472_v63 = vpop.eup %10471  ;;  %v7795_v0 = vadd.f32 %v7791_v26, %v7723_v31  ;;  %v7792_v14 = vmul.f32 %v10470_v9, %v7788_v46  ;;  %v7789_v40 = vadd.f32 %v7601_v28, %v19264_v45 }
 0xa47   :  { %v10474_v43 = vpop.eup %10473  ;;  %10481 = vrcp.f32 %v7766_v54  ;;  %v7769_v6 = vadd.f32 1.0, %v10472_v63  ;;  %v7603_v10 = vpop.f32.mrf.mxu1 }
 0xa48   :  { %v10476_v27 = vpop.eup %10475  ;;  %10483 = vtanh.f32 %v7795_v0  ;;  %v7796_v23 = vadd.f32 %v7792_v14, %v7724_v38  ;;  %v7793_v59 = vmul.f32 %v10474_v43, %v7789_v40  ;;  %v7790_v11 = vadd.f32 %v7603_v10, %v19267_v32 }
 0xa49   :  { %v10478_v12 = vpop.eup %10477  ;;  %10485 = vrcp.f32 %v7769_v6  ;;  %v7770_v41 = vadd.f32 1.0, %v10476_v27 }
 0xa4a   :  { %10487 = vtanh.f32 %v7796_v23  ;;  %v7797_v3 = vadd.f32 %v7793_v59, %v7729_v51  ;;  %v7794_v45 = vmul.f32 %v10478_v12, %v7790_v11 }
 0xa4b   :  { %10489 = vrcp.f32 %v7770_v41 }
 0xa4c   :  { %10491 = vtanh.f32 %v7797_v3  ;;  %v7798_v29 = vadd.f32 %v7794_v45, %v7730_v49 }
 0xa4e   :  { %10493 = vtanh.f32 %v7798_v29 }
 0xa52   :  { %v10480_v39 = vpop.eup %10479 }
 0xa53   :  { %v7803_v7 = vsub.f32 1.0, %v10480_v39  ;;  %v7811_v32 = vmul.f32 %v10480_v39, %v18140_v58 }
 0xa54   :  { %v10482_v42 = vpop.eup %10481 }
 0xa55   :  { %v10484_v30 = vpop.eup %10483  ;;  %v7804_v21 = vsub.f32 1.0, %v10482_v42  ;;  %v7812_v24 = vmul.f32 %v10482_v42, %v18142_v19 }
 0xa56   :  { %v10486_v57 = vpop.eup %10485  ;;  %v7807_v52 = vmul.f32 %v10484_v30, %v7803_v7 }
 0xa57   :  { %v10488_v15 = vpop.eup %10487  ;;  %v7805_v22 = vsub.f32 1.0, %v10486_v57  ;;  %v7813_v13 = vmul.f32 %v10486_v57, %v18152_v17 }
 0xa58   :  { %v10490_v4 = vpop.eup %10489  ;;  %v7808_v47 = vmul.f32 %v10488_v15, %v7804_v21  ;;  %v7815_v60 = vadd.f32 %v7811_v32, %v7807_v52 }
 0xa59   :  { %v10492_v48 = vpop.eup %10491  ;;  %v7806_v33 = vsub.f32 1.0, %v10490_v4  ;;  %v7814_v37 = vmul.f32 %v10490_v4, %v18154_v50 }
 0xa5a   :  { %v7816_v62 = vadd.f32 %v7812_v24, %v7808_v47  ;;  %v7809_v25 = vmul.f32 %v10492_v48, %v7805_v22 }
 0xa5b   :  { %v10494_v20 = vpop.eup %10493 }
 0xa5c   :  { %v7810_v44 = vmul.f32 %v10494_v20, %v7806_v33  ;;  %v7817_v55 = vadd.f32 %v7813_v13, %v7809_v25 }
 0xa5e   :  { %v7818_v53 = vadd.f32 %v7814_v37, %v7810_v44  ;;  %v7832_v58 = vpack.c.bf16 %v7817_v55, %v7815_v60 }
 0xa60   :  { %v7833_v34 = vpack.c.bf16 %v7818_v53, %v7816_v62 }
 0xa62   :  { %8170 = vmatprep.mubr.bf16.mxu1 %v7833_v34 }
 0xa63   :  { %8171 = vmatmul.mubr.bf16.vlgmr.msra.gmra.mxu1 %v7832_v58 }
 0xad2   :  { %v9170_v5 = vpop.f32.mrf.mxu0 }
 0xad4   :  { %v9171_v56 = vpop.f32.mrf.mxu0 }
 0xad5   :  { %v9172_v36 = vadd.f32 %v9171_v56, %v9170_v5 }
 0xad6   :  { %v9173_v19 = vpop.f32.mrf.mxu0 }
 0xad7   :  { %v8132_v1 = vadd.f32 %v9172_v36, %v9025_v16 }
 0xad8   :  { %v9174_v61 = vpop.f32.mrf.mxu0 }
 0xad9   :  { %v9175_v18 = vadd.f32 %v9174_v61, %v9173_v19 }
 0xadb   :  { %v8135_v46 = vadd.f32 %v9175_v18, %v9025_v16 }
 0xb23   :  { %v9192_v17 = vpop.f32.mrf.mxu1 }
 0xb25   :  { %v9193_v8 = vpop.f32.mrf.mxu1 }
 0xb26   :  { %v9194_v50 = vadd.f32 %v9193_v8, %v9192_v17 }
 0xb27   :  { %v9195_v35 = vpop.f32.mrf.mxu1 }
 0xb28   :  { %v8173_v31 = vadd.f32 %v9194_v50, %v8132_v1 }
 0xb29   :  { %v9196_v26 = vpop.f32.mrf.mxu1 }
 0xb2a   :  { %8179 = vst [vmem:[%s18486_s8] sm:$0xff] %v8173_v31  ;;  %v9197_v9 = vadd.f32 %v9196_v26, %v9195_v35 }
 0xb2c   :  { %v8176_v54 = vadd.f32 %v9197_v9, %v8135_v46 }
 0xb2e   :  { %8180 = vst [vmem:[%s18486_s8 + $0x8] sm:$0xff] %v8176_v54 }

</bundles_post_ra>
